<compile_context>
chip_gen: v6e
topology: v6e:2x2x1
jax: 0.10.0
libtpu: 0.0.40
codegen_flags: <defaults>
</compile_context>

<pallas_src>
from functools import partial

import jax
import jax.numpy as jnp
from jax.experimental import pallas as pl
from jax.experimental.pallas import tpu as pltpu

LANE = 128


def _rup(v, m):
    return -(-v // m) * m


# ----------------------------------------------------------------------------
# Pallas kernels
# ----------------------------------------------------------------------------
def _conv_gemm_kernel(x_ref, w_ref, b_ref, o_ref, *, pool):
    """out = relu(x @ w + b); optionally fused 2x2 max-pool.

    When pool=True the rows of x are pre-ordered as four contiguous blocks,
    one per 2x2-window corner, so the pool is a max over the four quarters.
    """
    acc = jnp.dot(x_ref[...], w_ref[...], preferred_element_type=jnp.float32)
    acc = jnp.maximum(acc + b_ref[...], 0.0)       # b is (1, 128), broadcasts
    if pool:
        q = acc.shape[0] // 4
        acc = jnp.maximum(
            jnp.maximum(acc[0:q], acc[q:2 * q]),
            jnp.maximum(acc[2 * q:3 * q], acc[3 * q:4 * q]),
        )
    o_ref[...] = acc.astype(o_ref.dtype)


def _mlp_kernel(x_ref, w1_ref, b1_ref, w2_ref, b2_ref, o_ref):
    """Fused FC1 + ReLU + FC2 (Dropout is identity in eval mode)."""
    h = jnp.dot(x_ref[...], w1_ref[...], preferred_element_type=jnp.float32)
    h = jnp.maximum(h + b1_ref[...], 0.0)
    y = jnp.dot(h, w2_ref[...], preferred_element_type=jnp.float32) + b2_ref[...]
    o_ref[...] = y.astype(o_ref.dtype)


def _mean_axis1_kernel(x_ref, o_ref):
    """Mean-reduce the middle (window) axis: (M, R, C) -> (M, C)."""
    o_ref[...] = jnp.mean(x_ref[...], axis=1).astype(o_ref.dtype)


# ----------------------------------------------------------------------------
# Pallas wrappers
# ----------------------------------------------------------------------------
def conv_relu_maybe_pool(x, wmat, bvec, *, k, pad, pool, cout):
    """Conv2d(stride=1, padding=pad) + ReLU (+ fused MaxPool2d(2)).

    x: (N, H, W, Cin) NHWC.  wmat: (Kpad, 128) GEMM-ready weight (K padded to
    a multiple of 128, Cout padded to 128).  bvec: (1, 128) padded bias.
    Returns (N, Ho, Wo, cout).
    """
    N, H, W, C = x.shape
    Kreal = k * k * C
    Kp = wmat.shape[0]

    xp = jnp.pad(x, ((0, 0), (pad, pad), (pad, pad), (0, 0)))
    cols = [xp[:, dy:dy + H, dx:dx + W, :] for dy in range(k) for dx in range(k)]
    if Kp > Kreal:
        # Lane-dense K: append zero columns (matching zero weight rows).
        cols.append(jnp.zeros((N, H, W, Kp - Kreal), x.dtype))
    patches = jnp.concatenate(cols, axis=-1)               # (N, H, W, Kp)

    if pool:
        assert H % 2 == 0 and W % 2 == 0
        Ho, Wo = H // 2, W // 2
        # Reorder rows as (corner, n, ho, wo) so the kernel pools with a max of
        # four contiguous row blocks.
        patches = (patches.reshape(N, Ho, 2, Wo, 2, Kp)
                   .transpose(2, 4, 0, 1, 3, 5)
                   .reshape(4 * N * Ho * Wo, Kp))
    else:
        Ho, Wo = H, W
        patches = patches.reshape(N * H * W, Kp)

    Min = patches.shape[0]
    Mout = N * Ho * Wo

    cost = pl.CostEstimate(
        flops=2 * Min * Kp * LANE + 2 * Min * LANE,
        transcendentals=0,
        bytes_accessed=4 * (Min * Kp + Kp * LANE + LANE + Mout * LANE),
    )

    out = pl.pallas_call(
        partial(_conv_gemm_kernel, pool=pool),
        out_shape=jax.ShapeDtypeStruct((Mout, LANE), jnp.float32),
        grid=(1,),
        in_specs=[
            pl.BlockSpec((Min, Kp), lambda i: (0, 0)),
            pl.BlockSpec((Kp, LANE), lambda i: (0, 0)),
            pl.BlockSpec((1, LANE), lambda i: (0, 0)),
        ],
        out_specs=pl.BlockSpec((Mout, LANE), lambda i: (0, 0)),
        compiler_params=pltpu.CompilerParams(
            dimension_semantics=("arbitrary",)),
        cost_estimate=cost,
    )(patches, wmat, bvec)

    return out.reshape(N, Ho, Wo, LANE)[..., :cout]


def adaptive_avg_pool_4x4(x):
    """AdaptiveAvgPool2d((4,4)) on NHWC input (uniform bins)."""
    N, H, W, C = x.shape
    if H == 4 and W == 4:
        return x                       # identity — skip the kernel entirely
    # TODO(synk): general adaptive pooling with uneven bins (H % 4 != 0) not implemented.
    assert H % 4 == 0 and W % 4 == 0
    kh, kw = H // 4, W // 4
    xr = (x.reshape(N, 4, kh, 4, kw, C)
           .transpose(0, 1, 3, 2, 4, 5)
           .reshape(N * 16, kh * kw, C))
    out = pl.pallas_call(
        _mean_axis1_kernel,
        out_shape=jax.ShapeDtypeStruct((N * 16, C), x.dtype),
    )(xr)
    return out.reshape(N, 4, 4, C)


def mlp_head(x, w1, b1, w2, b2):
    """Fused Linear(2048->256)+ReLU+Linear(256->1); returns (M,) scalars."""
    M, K = x.shape
    Mp = max(8, _rup(M, 8))
    if Mp != M:
        x = jnp.pad(x, ((0, Mp - M), (0, 0)))
    H1 = w1.shape[1]

    cost = pl.CostEstimate(
        flops=2 * Mp * K * H1 + 2 * Mp * H1 * LANE + 2 * Mp * (H1 + LANE),
        transcendentals=0,
        bytes_accessed=4 * (Mp * K + K * H1 + H1 + H1 * LANE + LANE + Mp * LANE),
    )

    out = pl.pallas_call(
        _mlp_kernel,
        out_shape=jax.ShapeDtypeStruct((Mp, LANE), jnp.float32),
        grid=(1,),
        in_specs=[
            pl.BlockSpec((Mp, K), lambda i: (0, 0)),
            pl.BlockSpec((K, H1), lambda i: (0, 0)),
            pl.BlockSpec((1, H1), lambda i: (0, 0)),
            pl.BlockSpec((H1, LANE), lambda i: (0, 0)),
            pl.BlockSpec((1, LANE), lambda i: (0, 0)),
        ],
        out_specs=pl.BlockSpec((Mp, LANE), lambda i: (0, 0)),
        compiler_params=pltpu.CompilerParams(
            dimension_semantics=("arbitrary",)),
        cost_estimate=cost,
    )(x, w1, b1, w2, b2)
    return out[:M, 0]


# ----------------------------------------------------------------------------
# Parameter preparation (done once, outside the forward pass)
# ----------------------------------------------------------------------------
def prepare_params(p):
    """PyTorch-layout params -> padded, GEMM-ready matrices (lane-dense)."""
    def conv_prep(w, b):
        cout, cin, kh, kw = w.shape
        K = kh * kw * cin
        Kp = _rup(K, LANE)
        # K index ordering is ((dy*kw + dx)*cin + c)  ->  weight[(o, c, dy, dx)]
        wm = jnp.transpose(w, (2, 3, 1, 0)).reshape(K, cout)
        wm = jnp.pad(wm, ((0, Kp - K), (0, LANE - cout)))
        bv = jnp.pad(b.reshape(1, cout), ((0, 0), (0, LANE - cout)))
        return wm, bv

    pp = {}
    for name in ("c1", "c2", "c3", "c4"):
        wm, bv = conv_prep(p[name + "w"], p[name + "b"])
        pp[name + "w"], pp[name + "b"] = wm, bv

    # fc1: PyTorch weight (256, 128*4*4) expects NCHW flatten order
    # (c*16 + h*4 + w).  Fold the permutation into the row order so the kernel
    # can consume the NHWC flatten (h*512 + w*128 + c) directly, pre-transposed
    # to (in, out).
    f1 = p["f1w"]
    out1 = f1.shape[0]
    pp["f1w"] = f1.reshape(out1, 128, 4, 4).transpose(2, 3, 1, 0).reshape(4 * 4 * 128, out1)
    pp["f1b"] = p["f1b"].reshape(1, out1)

    # fc2: (1, 256) -> (256, 128) zero-padded columns; result lives in lane 0.
    f2 = p["f2w"]
    pp["f2w"] = jnp.pad(f2.T, ((0, 0), (0, LANE - f2.shape[0])))
    pp["f2b"] = jnp.pad(p["f2b"].reshape(1, -1), ((0, 0), (0, LANE - p["f2b"].shape[0])))
    return pp


# ----------------------------------------------------------------------------
# Full model forward
# ----------------------------------------------------------------------------
def jpeg_compression_predictor(x_nchw, pp):
    x = jnp.transpose(x_nchw, (0, 2, 3, 1))  # NCHW -> NHWC once at the input

    x = conv_relu_maybe_pool(x, pp["c1w"], pp["c1b"], k=5, pad=2, pool=True, cout=16)
    x = conv_relu_maybe_pool(x, pp["c2w"], pp["c2b"], k=3, pad=1, pool=True, cout=32)
    x = conv_relu_maybe_pool(x, pp["c3w"], pp["c3b"], k=3, pad=1, pool=True, cout=64)
    x = conv_relu_maybe_pool(x, pp["c4w"], pp["c4b"], k=3, pad=1, pool=False, cout=128)
    x = adaptive_avg_pool_4x4(x)             # identity for the 32x32 path

    # nn.Flatten's NCHW ordering is folded into the prepared fc1 weight, so a
    # plain NHWC reshape suffices here (row-major bitcast, no runtime transpose).
    N = x.shape[0]
    x = x.reshape(N, 4 * 4 * 128)

    # Dropout(0.3): identity in inference/eval mode.
    return mlp_head(x, pp["f1w"], pp["f1b"], pp["f2w"], pp["f2b"])  # (N,)


def init_params(key):
    ks = jax.random.split(key, 12)
    s = 0.05

    def nrm(k, shape):
        return jax.random.normal(k, shape, jnp.float32) * s

    return {
        "c1w": nrm(ks[0], (16, 3, 5, 5)),   "c1b": nrm(ks[1], (16,)),
        "c2w": nrm(ks[2], (32, 16, 3, 3)),  "c2b": nrm(ks[3], (32,)),
        "c3w": nrm(ks[4], (64, 32, 3, 3)),  "c3b": nrm(ks[5], (64,)),
        "c4w": nrm(ks[6], (128, 64, 3, 3)), "c4b": nrm(ks[7], (128,)),
        "f1w": nrm(ks[8], (256, 128 * 4 * 4)), "f1b": nrm(ks[9], (256,)),
        "f2w": nrm(ks[10], (1, 256)),          "f2b": nrm(ks[11], (1,)),
    }


if __name__ == "__main__":
    key = jax.random.PRNGKey(0)
    pkey, xkey = jax.random.split(key)
    params = init_params(pkey)
    pp = prepare_params(params)

    # Input: batch=2, channels=3, spatial=32 (32 -> 16 -> 8 -> 4 after 3 pools).
    x = jax.random.normal(xkey, (2, 3, 32, 32), jnp.float32)

    fwd = jax.jit(jpeg_compression_predictor)
    out = fwd(x, pp)
    out = jax.block_until_ready(out)
    assert out.shape == (2,), out.shape
    assert jnp.all(jnp.isfinite(out))
    print("KERNEL_OK")
</pallas_src>

<mosaic_0001>
module attributes {stable_mosaic.version = 11 : i64} {
  func.func @_conv_gemm_kernel(%arg0: i32, %arg1: memref<2048x128xf32, #tpu.memory_space<vmem>>, %arg2: memref<128x128xf32, #tpu.memory_space<vmem>>, %arg3: memref<1x128xf32, #tpu.memory_space<vmem>>, %arg4: memref<512x128xf32, #tpu.memory_space<vmem>>) attributes {dimension_semantics = [#tpu.dimension_semantics<arbitrary>], iteration_bounds = array<i64: 1>, scalar_prefetch = 0 : i64, scratch_operands = 0 : i64, tpu.core_type = #tpu.core_type<tc>, window_params = [{pipeline_mode = #tpu.pipeline_mode<synchronous>, transform_indices = @transform_0, window_bounds = array<i64: 2048, 128>}, {pipeline_mode = #tpu.pipeline_mode<synchronous>, transform_indices = @transform_1, window_bounds = array<i64: 128, 128>}, {pipeline_mode = #tpu.pipeline_mode<synchronous>, transform_indices = @transform_2, window_bounds = array<i64: 1, 128>}, {pipeline_mode = #tpu.pipeline_mode<synchronous>, transform_indices = @transform_3, window_bounds = array<i64: 512, 128>}]} {
    %c0 = arith.constant 0 : index
    %c0_0 = arith.constant 0 : index
    %0 = vector.load %arg1[%c0, %c0_0] : memref<2048x128xf32, #tpu.memory_space<vmem>>, vector<2048x128xf32>
    %c0_1 = arith.constant 0 : index
    %c0_2 = arith.constant 0 : index
    %1 = vector.load %arg2[%c0_1, %c0_2] : memref<128x128xf32, #tpu.memory_space<vmem>>, vector<128x128xf32>
    %cst = arith.constant dense<0.000000e+00> : vector<2048x128xf32>
    %2 = tpu.matmul %0, %1, %cst {dimension_numbers = #tpu.dot_dimension_numbers<[1], [0], [0], [1], [0, 0, 1, 1], [], []>} : vector<2048x128xf32>, vector<128x128xf32>, vector<2048x128xf32> -> vector<2048x128xf32>
    %c0_3 = arith.constant 0 : index
    %c0_4 = arith.constant 0 : index
    %3 = vector.load %arg3[%c0_3, %c0_4] : memref<1x128xf32, #tpu.memory_space<vmem>>, vector<1x128xf32>
    %4 = vector.broadcast %3 : vector<1x128xf32> to vector<2048x128xf32>
    %5 = arith.addf %2, %4 : vector<2048x128xf32>
    %cst_5 = arith.constant 0.000000e+00 : f32
    %6 = vector.broadcast %cst_5 : f32 to vector<2048x128xf32>
    %7 = arith.maximumf %5, %6 : vector<2048x128xf32>
    %8 = vector.extract_strided_slice %7 {offsets = [0, 0], sizes = [512, 128], strides = [1, 1]} : vector<2048x128xf32> to vector<512x128xf32>
    %9 = vector.extract_strided_slice %7 {offsets = [512, 0], sizes = [512, 128], strides = [1, 1]} : vector<2048x128xf32> to vector<512x128xf32>
    %10 = arith.maximumf %8, %9 : vector<512x128xf32>
    %11 = vector.extract_strided_slice %7 {offsets = [1024, 0], sizes = [512, 128], strides = [1, 1]} : vector<2048x128xf32> to vector<512x128xf32>
    %12 = vector.extract_strided_slice %7 {offsets = [1536, 0], sizes = [512, 128], strides = [1, 1]} : vector<2048x128xf32> to vector<512x128xf32>
    %13 = arith.maximumf %11, %12 : vector<512x128xf32>
    %14 = arith.maximumf %10, %13 : vector<512x128xf32>
    %c0_6 = arith.constant 0 : index
    %c0_7 = arith.constant 0 : index
    %15 = vector.load %arg4[%c0_6, %c0_7] : memref<512x128xf32, #tpu.memory_space<vmem>>, vector<512x128xf32>
    tpu.vector_store %arg4[%c0_6, %c0_7], %14 {strides = array<i32>} : memref<512x128xf32, #tpu.memory_space<vmem>>, vector<512x128xf32>,
    return
  }
  func.func @transform_0(%arg0: i32) -> (i32, i32) {
    %c0_i32 = arith.constant 0 : i32
    %c0_i32_0 = arith.constant 0 : i32
    %c0_i32_1 = arith.constant 0 : i32
    return %c0_i32, %c0_i32_0 : i32, i32
  }
  func.func @transform_1(%arg0: i32) -> (i32, i32) {
    %c0_i32 = arith.constant 0 : i32
    %c0_i32_0 = arith.constant 0 : i32
    %c0_i32_1 = arith.constant 0 : i32
    return %c0_i32, %c0_i32_0 : i32, i32
  }
  func.func @transform_2(%arg0: i32) -> (i32, i32) {
    %c0_i32 = arith.constant 0 : i32
    %c0_i32_0 = arith.constant 0 : i32
    %c0_i32_1 = arith.constant 0 : i32
    return %c0_i32, %c0_i32_0 : i32, i32
  }
  func.func @transform_3(%arg0: i32) -> (i32, i32) {
    %c0_i32 = arith.constant 0 : i32
    %c0_i32_0 = arith.constant 0 : i32
    %c0_i32_1 = arith.constant 0 : i32
    return %c0_i32, %c0_i32_0 : i32, i32
  }
}

module attributes {stable_mosaic.version = 11 : i64} {
  func.func @_conv_gemm_kernel(%arg0: i32, %arg1: memref<512x256xf32, #tpu.memory_space<vmem>>, %arg2: memref<256x128xf32, #tpu.memory_space<vmem>>, %arg3: memref<1x128xf32, #tpu.memory_space<vmem>>, %arg4: memref<128x128xf32, #tpu.memory_space<vmem>>) attributes {dimension_semantics = [#tpu.dimension_semantics<arbitrary>], iteration_bounds = array<i64: 1>, scalar_prefetch = 0 : i64, scratch_operands = 0 : i64, tpu.core_type = #tpu.core_type<tc>, window_params = [{pipeline_mode = #tpu.pipeline_mode<synchronous>, transform_indices = @transform_0, window_bounds = array<i64: 512, 256>}, {pipeline_mode = #tpu.pipeline_mode<synchronous>, transform_indices = @transform_1, window_bounds = array<i64: 256, 128>}, {pipeline_mode = #tpu.pipeline_mode<synchronous>, transform_indices = @transform_2, window_bounds = array<i64: 1, 128>}, {pipeline_mode = #tpu.pipeline_mode<synchronous>, transform_indices = @transform_3, window_bounds = array<i64: 128, 128>}]} {
    %c0 = arith.constant 0 : index
    %c0_0 = arith.constant 0 : index
    %0 = vector.load %arg1[%c0, %c0_0] : memref<512x256xf32, #tpu.memory_space<vmem>>, vector<512x256xf32>
    %c0_1 = arith.constant 0 : index
    %c0_2 = arith.constant 0 : index
    %1 = vector.load %arg2[%c0_1, %c0_2] : memref<256x128xf32, #tpu.memory_space<vmem>>, vector<256x128xf32>
    %cst = arith.constant dense<0.000000e+00> : vector<512x128xf32>
    %2 = tpu.matmul %0, %1, %cst {dimension_numbers = #tpu.dot_dimension_numbers<[1], [0], [0], [1], [0, 0, 1, 1], [], []>} : vector<512x256xf32>, vector<256x128xf32>, vector<512x128xf32> -> vector<512x128xf32>
    %c0_3 = arith.constant 0 : index
    %c0_4 = arith.constant 0 : index
    %3 = vector.load %arg3[%c0_3, %c0_4] : memref<1x128xf32, #tpu.memory_space<vmem>>, vector<1x128xf32>
    %4 = vector.broadcast %3 : vector<1x128xf32> to vector<512x128xf32>
    %5 = arith.addf %2, %4 : vector<512x128xf32>
    %cst_5 = arith.constant 0.000000e+00 : f32
    %6 = vector.broadcast %cst_5 : f32 to vector<512x128xf32>
    %7 = arith.maximumf %5, %6 : vector<512x128xf32>
    %8 = vector.extract_strided_slice %7 {offsets = [0, 0], sizes = [128, 128], strides = [1, 1]} : vector<512x128xf32> to vector<128x128xf32>
    %9 = vector.extract_strided_slice %7 {offsets = [128, 0], sizes = [128, 128], strides = [1, 1]} : vector<512x128xf32> to vector<128x128xf32>
    %10 = arith.maximumf %8, %9 : vector<128x128xf32>
    %11 = vector.extract_strided_slice %7 {offsets = [256, 0], sizes = [128, 128], strides = [1, 1]} : vector<512x128xf32> to vector<128x128xf32>
    %12 = vector.extract_strided_slice %7 {offsets = [384, 0], sizes = [128, 128], strides = [1, 1]} : vector<512x128xf32> to vector<128x128xf32>
    %13 = arith.maximumf %11, %12 : vector<128x128xf32>
    %14 = arith.maximumf %10, %13 : vector<128x128xf32>
    %c0_6 = arith.constant 0 : index
    %c0_7 = arith.constant 0 : index
    %15 = vector.load %arg4[%c0_6, %c0_7] : memref<128x128xf32, #tpu.memory_space<vmem>>, vector<128x128xf32>
    tpu.vector_store %arg4[%c0_6, %c0_7], %14 {strides = array<i32>} : memref<128x128xf32, #tpu.memory_space<vmem>>, vector<128x128xf32>,
    return
  }
  func.func @transform_0(%arg0: i32) -> (i32, i32) {
    %c0_i32 = arith.constant 0 : i32
    %c0_i32_0 = arith.constant 0 : i32
    %c0_i32_1 = arith.constant 0 : i32
    return %c0_i32, %c0_i32_0 : i32, i32
  }
  func.func @transform_1(%arg0: i32) -> (i32, i32) {
    %c0_i32 = arith.constant 0 : i32
    %c0_i32_0 = arith.constant 0 : i32
    %c0_i32_1 = arith.constant 0 : i32
    return %c0_i32, %c0_i32_0 : i32, i32
  }
  func.func @transform_2(%arg0: i32) -> (i32, i32) {
    %c0_i32 = arith.constant 0 : i32
    %c0_i32_0 = arith.constant 0 : i32
    %c0_i32_1 = arith.constant 0 : i32
    return %c0_i32, %c0_i32_0 : i32, i32
  }
  func.func @transform_3(%arg0: i32) -> (i32, i32) {
    %c0_i32 = arith.constant 0 : i32
    %c0_i32_0 = arith.constant 0 : i32
    %c0_i32_1 = arith.constant 0 : i32
    return %c0_i32, %c0_i32_0 : i32, i32
  }
}

module attributes {stable_mosaic.version = 11 : i64} {
  func.func @_conv_gemm_kernel(%arg0: i32, %arg1: memref<128x384xf32, #tpu.memory_space<vmem>>, %arg2: memref<384x128xf32, #tpu.memory_space<vmem>>, %arg3: memref<1x128xf32, #tpu.memory_space<vmem>>, %arg4: memref<32x128xf32, #tpu.memory_space<vmem>>) attributes {dimension_semantics = [#tpu.dimension_semantics<arbitrary>], iteration_bounds = array<i64: 1>, scalar_prefetch = 0 : i64, scratch_operands = 0 : i64, tpu.core_type = #tpu.core_type<tc>, window_params = [{pipeline_mode = #tpu.pipeline_mode<synchronous>, transform_indices = @transform_0, window_bounds = array<i64: 128, 384>}, {pipeline_mode = #tpu.pipeline_mode<synchronous>, transform_indices = @transform_1, window_bounds = array<i64: 384, 128>}, {pipeline_mode = #tpu.pipeline_mode<synchronous>, transform_indices = @transform_2, window_bounds = array<i64: 1, 128>}, {pipeline_mode = #tpu.pipeline_mode<synchronous>, transform_indices = @transform_3, window_bounds = array<i64: 32, 128>}]} {
    %c0 = arith.constant 0 : index
    %c0_0 = arith.constant 0 : index
    %0 = vector.load %arg1[%c0, %c0_0] : memref<128x384xf32, #tpu.memory_space<vmem>>, vector<128x384xf32>
    %c0_1 = arith.constant 0 : index
    %c0_2 = arith.constant 0 : index
    %1 = vector.load %arg2[%c0_1, %c0_2] : memref<384x128xf32, #tpu.memory_space<vmem>>, vector<384x128xf32>
    %cst = arith.constant dense<0.000000e+00> : vector<128x128xf32>
    %2 = tpu.matmul %0, %1, %cst {dimension_numbers = #tpu.dot_dimension_numbers<[1], [0], [0], [1], [0, 0, 1, 1], [], []>} : vector<128x384xf32>, vector<384x128xf32>, vector<128x128xf32> -> vector<128x128xf32>
    %c0_3 = arith.constant 0 : index
    %c0_4 = arith.constant 0 : index
    %3 = vector.load %arg3[%c0_3, %c0_4] : memref<1x128xf32, #tpu.memory_space<vmem>>, vector<1x128xf32>
    %4 = vector.broadcast %3 : vector<1x128xf32> to vector<128x128xf32>
    %5 = arith.addf %2, %4 : vector<128x128xf32>
    %cst_5 = arith.constant 0.000000e+00 : f32
    %6 = vector.broadcast %cst_5 : f32 to vector<128x128xf32>
    %7 = arith.maximumf %5, %6 : vector<128x128xf32>
    %8 = vector.extract_strided_slice %7 {offsets = [0, 0], sizes = [32, 128], strides = [1, 1]} : vector<128x128xf32> to vector<32x128xf32>
    %9 = vector.extract_strided_slice %7 {offsets = [32, 0], sizes = [32, 128], strides = [1, 1]} : vector<128x128xf32> to vector<32x128xf32>
    %10 = arith.maximumf %8, %9 : vector<32x128xf32>
    %11 = vector.extract_strided_slice %7 {offsets = [64, 0], sizes = [32, 128], strides = [1, 1]} : vector<128x128xf32> to vector<32x128xf32>
    %12 = vector.extract_strided_slice %7 {offsets = [96, 0], sizes = [32, 128], strides = [1, 1]} : vector<128x128xf32> to vector<32x128xf32>
    %13 = arith.maximumf %11, %12 : vector<32x128xf32>
    %14 = arith.maximumf %10, %13 : vector<32x128xf32>
    %c0_6 = arith.constant 0 : index
    %c0_7 = arith.constant 0 : index
    %15 = vector.load %arg4[%c0_6, %c0_7] : memref<32x128xf32, #tpu.memory_space<vmem>>, vector<32x128xf32>
    tpu.vector_store %arg4[%c0_6, %c0_7], %14 {strides = array<i32>} : memref<32x128xf32, #tpu.memory_space<vmem>>, vector<32x128xf32>,
    return
  }
  func.func @transform_0(%arg0: i32) -> (i32, i32) {
    %c0_i32 = arith.constant 0 : i32
    %c0_i32_0 = arith.constant 0 : i32
    %c0_i32_1 = arith.constant 0 : i32
    return %c0_i32, %c0_i32_0 : i32, i32
  }
  func.func @transform_1(%arg0: i32) -> (i32, i32) {
    %c0_i32 = arith.constant 0 : i32
    %c0_i32_0 = arith.constant 0 : i32
    %c0_i32_1 = arith.constant 0 : i32
    return %c0_i32, %c0_i32_0 : i32, i32
  }
  func.func @transform_2(%arg0: i32) -> (i32, i32) {
    %c0_i32 = arith.constant 0 : i32
    %c0_i32_0 = arith.constant 0 : i32
    %c0_i32_1 = arith.constant 0 : i32
    return %c0_i32, %c0_i32_0 : i32, i32
  }
  func.func @transform_3(%arg0: i32) -> (i32, i32) {
    %c0_i32 = arith.constant 0 : i32
    %c0_i32_0 = arith.constant 0 : i32
    %c0_i32_1 = arith.constant 0 : i32
    return %c0_i32, %c0_i32_0 : i32, i32
  }
}

module attributes {stable_mosaic.version = 11 : i64} {
  func.func @_conv_gemm_kernel(%arg0: i32, %arg1: memref<32x640xf32, #tpu.memory_space<vmem>>, %arg2: memref<640x128xf32, #tpu.memory_space<vmem>>, %arg3: memref<1x128xf32, #tpu.memory_space<vmem>>, %arg4: memref<32x128xf32, #tpu.memory_space<vmem>>) attributes {dimension_semantics = [#tpu.dimension_semantics<arbitrary>], iteration_bounds = array<i64: 1>, scalar_prefetch = 0 : i64, scratch_operands = 0 : i64, tpu.core_type = #tpu.core_type<tc>, window_params = [{pipeline_mode = #tpu.pipeline_mode<synchronous>, transform_indices = @transform_0, window_bounds = array<i64: 32, 640>}, {pipeline_mode = #tpu.pipeline_mode<synchronous>, transform_indices = @transform_1, window_bounds = array<i64: 640, 128>}, {pipeline_mode = #tpu.pipeline_mode<synchronous>, transform_indices = @transform_2, window_bounds = array<i64: 1, 128>}, {pipeline_mode = #tpu.pipeline_mode<synchronous>, transform_indices = @transform_3, window_bounds = array<i64: 32, 128>}]} {
    %c0 = arith.constant 0 : index
    %c0_0 = arith.constant 0 : index
    %0 = vector.load %arg1[%c0, %c0_0] : memref<32x640xf32, #tpu.memory_space<vmem>>, vector<32x640xf32>
    %c0_1 = arith.constant 0 : index
    %c0_2 = arith.constant 0 : index
    %1 = vector.load %arg2[%c0_1, %c0_2] : memref<640x128xf32, #tpu.memory_space<vmem>>, vector<640x128xf32>
    %cst = arith.constant dense<0.000000e+00> : vector<32x128xf32>
    %2 = tpu.matmul %0, %1, %cst {dimension_numbers = #tpu.dot_dimension_numbers<[1], [0], [0], [1], [0, 0, 1, 1], [], []>} : vector<32x640xf32>, vector<640x128xf32>, vector<32x128xf32> -> vector<32x128xf32>
    %c0_3 = arith.constant 0 : index
    %c0_4 = arith.constant 0 : index
    %3 = vector.load %arg3[%c0_3, %c0_4] : memref<1x128xf32, #tpu.memory_space<vmem>>, vector<1x128xf32>
    %4 = vector.broadcast %3 : vector<1x128xf32> to vector<32x128xf32>
    %5 = arith.addf %2, %4 : vector<32x128xf32>
    %cst_5 = arith.constant 0.000000e+00 : f32
    %6 = vector.broadcast %cst_5 : f32 to vector<32x128xf32>
    %7 = arith.maximumf %5, %6 : vector<32x128xf32>
    %c0_6 = arith.constant 0 : index
    %c0_7 = arith.constant 0 : index
    %8 = vector.load %arg4[%c0_6, %c0_7] : memref<32x128xf32, #tpu.memory_space<vmem>>, vector<32x128xf32>
    tpu.vector_store %arg4[%c0_6, %c0_7], %7 {strides = array<i32>} : memref<32x128xf32, #tpu.memory_space<vmem>>, vector<32x128xf32>,
    return
  }
  func.func @transform_0(%arg0: i32) -> (i32, i32) {
    %c0_i32 = arith.constant 0 : i32
    %c0_i32_0 = arith.constant 0 : i32
    %c0_i32_1 = arith.constant 0 : i32
    return %c0_i32, %c0_i32_0 : i32, i32
  }
  func.func @transform_1(%arg0: i32) -> (i32, i32) {
    %c0_i32 = arith.constant 0 : i32
    %c0_i32_0 = arith.constant 0 : i32
    %c0_i32_1 = arith.constant 0 : i32
    return %c0_i32, %c0_i32_0 : i32, i32
  }
  func.func @transform_2(%arg0: i32) -> (i32, i32) {
    %c0_i32 = arith.constant 0 : i32
    %c0_i32_0 = arith.constant 0 : i32
    %c0_i32_1 = arith.constant 0 : i32
    return %c0_i32, %c0_i32_0 : i32, i32
  }
  func.func @transform_3(%arg0: i32) -> (i32, i32) {
    %c0_i32 = arith.constant 0 : i32
    %c0_i32_0 = arith.constant 0 : i32
    %c0_i32_1 = arith.constant 0 : i32
    return %c0_i32, %c0_i32_0 : i32, i32
  }
}

module attributes {stable_mosaic.version = 11 : i64} {
  func.func @_mlp_kernel(%arg0: i32, %arg1: memref<8x2048xf32, #tpu.memory_space<vmem>>, %arg2: memref<2048x256xf32, #tpu.memory_space<vmem>>, %arg3: memref<1x256xf32, #tpu.memory_space<vmem>>, %arg4: memref<256x128xf32, #tpu.memory_space<vmem>>, %arg5: memref<1x128xf32, #tpu.memory_space<vmem>>, %arg6: memref<8x128xf32, #tpu.memory_space<vmem>>) attributes {dimension_semantics = [#tpu.dimension_semantics<arbitrary>], iteration_bounds = array<i64: 1>, scalar_prefetch = 0 : i64, scratch_operands = 0 : i64, tpu.core_type = #tpu.core_type<tc>, window_params = [{pipeline_mode = #tpu.pipeline_mode<synchronous>, transform_indices = @transform_0, window_bounds = array<i64: 8, 2048>}, {pipeline_mode = #tpu.pipeline_mode<synchronous>, transform_indices = @transform_1, window_bounds = array<i64: 2048, 256>}, {pipeline_mode = #tpu.pipeline_mode<synchronous>, transform_indices = @transform_2, window_bounds = array<i64: 1, 256>}, {pipeline_mode = #tpu.pipeline_mode<synchronous>, transform_indices = @transform_3, window_bounds = array<i64: 256, 128>}, {pipeline_mode = #tpu.pipeline_mode<synchronous>, transform_indices = @transform_4, window_bounds = array<i64: 1, 128>}, {pipeline_mode = #tpu.pipeline_mode<synchronous>, transform_indices = @transform_5, window_bounds = array<i64: 8, 128>}]} {
    %c0 = arith.constant 0 : index
    %c0_0 = arith.constant 0 : index
    %0 = vector.load %arg1[%c0, %c0_0] : memref<8x2048xf32, #tpu.memory_space<vmem>>, vector<8x2048xf32>
    %c0_1 = arith.constant 0 : index
    %c0_2 = arith.constant 0 : index
    %1 = vector.load %arg2[%c0_1, %c0_2] : memref<2048x256xf32, #tpu.memory_space<vmem>>, vector<2048x256xf32>
    %cst = arith.constant dense<0.000000e+00> : vector<8x256xf32>
    %2 = tpu.matmul %0, %1, %cst {dimension_numbers = #tpu.dot_dimension_numbers<[1], [0], [0], [1], [0, 0, 1, 1], [], []>} : vector<8x2048xf32>, vector<2048x256xf32>, vector<8x256xf32> -> vector<8x256xf32>
    %c0_3 = arith.constant 0 : index
    %c0_4 = arith.constant 0 : index
    %3 = vector.load %arg3[%c0_3, %c0_4] : memref<1x256xf32, #tpu.memory_space<vmem>>, vector<1x256xf32>
    %4 = vector.broadcast %3 : vector<1x256xf32> to vector<8x256xf32>
    %5 = arith.addf %2, %4 : vector<8x256xf32>
    %cst_5 = arith.constant 0.000000e+00 : f32
    %6 = vector.broadcast %cst_5 : f32 to vector<8x256xf32>
    %7 = arith.maximumf %5, %6 : vector<8x256xf32>
    %c0_6 = arith.constant 0 : index
    %c0_7 = arith.constant 0 : index
    %8 = vector.load %arg4[%c0_6, %c0_7] : memref<256x128xf32, #tpu.memory_space<vmem>>, vector<256x128xf32>
    %cst_8 = arith.constant dense<0.000000e+00> : vector<8x128xf32>
    %9 = tpu.matmul %7, %8, %cst_8 {dimension_numbers = #tpu.dot_dimension_numbers<[1], [0], [0], [1], [0, 0, 1, 1], [], []>} : vector<8x256xf32>, vector<256x128xf32>, vector<8x128xf32> -> vector<8x128xf32>
    %c0_9 = arith.constant 0 : index
    %c0_10 = arith.constant 0 : index
    %10 = vector.load %arg5[%c0_9, %c0_10] : memref<1x128xf32, #tpu.memory_space<vmem>>, vector<1x128xf32>
    %11 = vector.broadcast %10 : vector<1x128xf32> to vector<8x128xf32>
    %12 = arith.addf %9, %11 : vector<8x128xf32>
    %c0_11 = arith.constant 0 : index
    %c0_12 = arith.constant 0 : index
    %13 = vector.load %arg6[%c0_11, %c0_12] : memref<8x128xf32, #tpu.memory_space<vmem>>, vector<8x128xf32>
    tpu.vector_store %arg6[%c0_11, %c0_12], %12 {strides = array<i32>} : memref<8x128xf32, #tpu.memory_space<vmem>>, vector<8x128xf32>,
    return
  }
  func.func @transform_0(%arg0: i32) -> (i32, i32) {
    %c0_i32 = arith.constant 0 : i32
    %c0_i32_0 = arith.constant 0 : i32
    %c0_i32_1 = arith.constant 0 : i32
    return %c0_i32, %c0_i32_0 : i32, i32
  }
  func.func @transform_1(%arg0: i32) -> (i32, i32) {
    %c0_i32 = arith.constant 0 : i32
    %c0_i32_0 = arith.constant 0 : i32
    %c0_i32_1 = arith.constant 0 : i32
    return %c0_i32, %c0_i32_0 : i32, i32
  }
  func.func @transform_2(%arg0: i32) -> (i32, i32) {
    %c0_i32 = arith.constant 0 : i32
    %c0_i32_0 = arith.constant 0 : i32
    %c0_i32_1 = arith.constant 0 : i32
    return %c0_i32, %c0_i32_0 : i32, i32
  }
  func.func @transform_3(%arg0: i32) -> (i32, i32) {
    %c0_i32 = arith.constant 0 : i32
    %c0_i32_0 = arith.constant 0 : i32
    %c0_i32_1 = arith.constant 0 : i32
    return %c0_i32, %c0_i32_0 : i32, i32
  }
  func.func @transform_4(%arg0: i32) -> (i32, i32) {
    %c0_i32 = arith.constant 0 : i32
    %c0_i32_0 = arith.constant 0 : i32
    %c0_i32_1 = arith.constant 0 : i32
    return %c0_i32, %c0_i32_0 : i32, i32
  }
  func.func @transform_5(%arg0: i32) -> (i32, i32) {
    %c0_i32 = arith.constant 0 : i32
    %c0_i32_0 = arith.constant 0 : i32
    %c0_i32_1 = arith.constant 0 : i32
    return %c0_i32, %c0_i32_0 : i32, i32
  }
}

</mosaic_0001>

<bundles_post_ra>
// kernel: jpeg_compression_predictor.5
= control target key start
LH: loop header
LB: loop body
LE: loop exit
PB: predicated region body
PF: predicated region fallthrough
CT: control target
= control target key end

     0   :  { %s5177_s1 = inlined_call_operand.vmem [shape: f32[128,128], index: 1, kind: input, shape index: {}]   ;;  %s5178_s0 = inlined_call_operand.vmem [shape: f32[2048,128], index: 0, kind: input, shape index: {}]   ;;  %s5179_s2 = inlined_call_operand.vmem [shape: f32[1,128], index: 2, kind: input, shape index: {}]   ;;  %s5180_s3 = inlined_call_operand.vmem [shape: f32[512,128], index: 3, kind: output, shape index: {}]  }
   0x1   :  { %v285_v0 = vld [vmem:[%s5177_s1 + $0x78] sm:$0xff]  ;;  %v284_v1 = vld [vmem:[%s5177_s1 + $0x70] sm:$0xff]  ;;  %v283_v2 = vld [vmem:[%s5177_s1 + $0x68] sm:$0xff] }
   0x2   :  { %2427 = vmatprep.subr.mxu0 %v285_v0  ;;  %2843 = vmatprep.subr.mxu1 %v285_v0  ;;  %v282_v3 = vld [vmem:[%s5177_s1 + $0x60] sm:$0xff]  ;;  %v281_v4 = vld [vmem:[%s5177_s1 + $0x58] sm:$0xff]  ;;  %v280_v5 = vld [vmem:[%s5177_s1 + $0x50] sm:$0xff] }
   0x3   :  { %2428 = vmatpush3.msra.mxu0 %v285_v0  ;;  %2859 = vmatpush3.msra.mxu1 %v285_v0  ;;  %v279_v6 = vld [vmem:[%s5177_s1 + $0x48] sm:$0xff]  ;;  %v278_v7 = vld [vmem:[%s5177_s1 + $0x40] sm:$0xff]  ;;  %v277_v8 = vld [vmem:[%s5177_s1 + $0x38] sm:$0xff] }
   0x4   :  { %2429 = vmatprep.subr.mxu0 %v284_v1  ;;  %2844 = vmatprep.subr.mxu1 %v284_v1  ;;  %v276_v9 = vld [vmem:[%s5177_s1 + $0x30] sm:$0xff]  ;;  %v275_v10 = vld [vmem:[%s5177_s1 + $0x28] sm:$0xff]  ;;  %v274_v11 = vld [vmem:[%s5177_s1 + $0x20] sm:$0xff] }
   0x5   :  { %2430 = vmatpush3.msra.mxu0 %v284_v1  ;;  %2860 = vmatpush3.msra.mxu1 %v284_v1  ;;  %v273_v12 = vld [vmem:[%s5177_s1 + $0x18] sm:$0xff]  ;;  %v272_v13 = vld [vmem:[%s5177_s1 + $0x10] sm:$0xff]  ;;  %v271_v14 = vld [vmem:[%s5177_s1 + $0x8] sm:$0xff] }
   0x6   :  { %2431 = vmatprep.subr.mxu0 %v283_v2  ;;  %2845 = vmatprep.subr.mxu1 %v283_v2  ;;  %v270_v15 = vld [vmem:[%s5177_s1] sm:$0xff]  ;;  %v15_v18 = vld [vmem:[%s5178_s0 + $0x8] sm:$0xff]  ;;  %v16_v20 = vld [vmem:[%s5178_s0 + $0x10] sm:$0xff] }
   0x7   :  { %2432 = vmatpush3.msra.mxu0 %v283_v2  ;;  %2861 = vmatpush3.msra.mxu1 %v283_v2  ;;  %v14_v16 = vld [vmem:[%s5178_s0] sm:$0xff]  ;;  %v143_v19 = vld [vmem:[%s5178_s0 + $0x408] sm:$0xff]  ;;  %v144_v21 = vld [vmem:[%s5178_s0 + $0x410] sm:$0xff] }
   0x8   :  { %2433 = vmatprep.subr.mxu0 %v282_v3  ;;  %2846 = vmatprep.subr.mxu1 %v282_v3  ;;  %v142_v17 = vld [vmem:[%s5178_s0 + $0x400] sm:$0xff]  ;;  %v17_v22 = vld [vmem:[%s5178_s0 + $0x18] sm:$0xff]  ;;  %v19_v26 = vld [vmem:[%s5178_s0 + $0x28] sm:$0xff] }
   0x9   :  { %2434 = vmatpush3.msra.mxu0 %v282_v3  ;;  %2862 = vmatpush3.msra.mxu1 %v282_v3  ;;  %v145_v23 = vld [vmem:[%s5178_s0 + $0x418] sm:$0xff]  ;;  %v18_v24 = vld [vmem:[%s5178_s0 + $0x20] sm:$0xff]  ;;  %v147_v27 = vld [vmem:[%s5178_s0 + $0x428] sm:$0xff] }
   0xa   :  { %2435 = vmatprep.subr.mxu0 %v281_v4  ;;  %2847 = vmatprep.subr.mxu1 %v281_v4  ;;  %v146_v25 = vld [vmem:[%s5178_s0 + $0x420] sm:$0xff]  ;;  %v20_v28 = vld [vmem:[%s5178_s0 + $0x30] sm:$0xff]  ;;  %v21_v30 = vld [vmem:[%s5178_s0 + $0x38] sm:$0xff] }
   0xb   :  { %2436 = vmatpush3.msra.mxu0 %v281_v4  ;;  %2863 = vmatpush3.msra.mxu1 %v281_v4  ;;  %v148_v29 = vld [vmem:[%s5178_s0 + $0x430] sm:$0xff]  ;;  %v149_v31 = vld [vmem:[%s5178_s0 + $0x438] sm:$0xff]  ;;  %v22_v32 = vld [vmem:[%s5178_s0 + $0x40] sm:$0xff] }
   0xc   :  { %2437 = vmatprep.subr.mxu0 %v280_v5  ;;  %2848 = vmatprep.subr.mxu1 %v280_v5  ;;  %v150_v33 = vld [vmem:[%s5178_s0 + $0x440] sm:$0xff]  ;;  %v23_v34 = vld [vmem:[%s5178_s0 + $0x48] sm:$0xff]  ;;  %v24_v36 = vld [vmem:[%s5178_s0 + $0x50] sm:$0xff] }
   0xd   :  { %2438 = vmatpush3.msra.mxu0 %v280_v5  ;;  %2864 = vmatpush3.msra.mxu1 %v280_v5  ;;  %v151_v35 = vld [vmem:[%s5178_s0 + $0x448] sm:$0xff]  ;;  %v152_v37 = vld [vmem:[%s5178_s0 + $0x450] sm:$0xff]  ;;  %v25_v38 = vld [vmem:[%s5178_s0 + $0x58] sm:$0xff] }
   0xe   :  { %2439 = vmatprep.subr.mxu0 %v279_v6  ;;  %2849 = vmatprep.subr.mxu1 %v279_v6  ;;  %v153_v39 = vld [vmem:[%s5178_s0 + $0x458] sm:$0xff]  ;;  %v26_v40 = vld [vmem:[%s5178_s0 + $0x60] sm:$0xff]  ;;  %v27_v42 = vld [vmem:[%s5178_s0 + $0x68] sm:$0xff] }
   0xf   :  { %2440 = vmatpush3.msra.mxu0 %v279_v6  ;;  %2865 = vmatpush3.msra.mxu1 %v279_v6  ;;  %v154_v41 = vld [vmem:[%s5178_s0 + $0x460] sm:$0xff]  ;;  %v155_v43 = vld [vmem:[%s5178_s0 + $0x468] sm:$0xff]  ;;  %v28_v44 = vld [vmem:[%s5178_s0 + $0x70] sm:$0xff] }
  0x10   :  { %2441 = vmatprep.subr.mxu0 %v278_v7  ;;  %2850 = vmatprep.subr.mxu1 %v278_v7  ;;  %v156_v45 = vld [vmem:[%s5178_s0 + $0x470] sm:$0xff]  ;;  %v29_v46 = vld [vmem:[%s5178_s0 + $0x78] sm:$0xff]  ;;  %v30_v48 = vld [vmem:[%s5178_s0 + $0x80] sm:$0xff] }
  0x11   :  { %2442 = vmatpush3.msra.mxu0 %v278_v7  ;;  %2866 = vmatpush3.msra.mxu1 %v278_v7  ;;  %v157_v47 = vld [vmem:[%s5178_s0 + $0x478] sm:$0xff]  ;;  %v158_v49 = vld [vmem:[%s5178_s0 + $0x480] sm:$0xff]  ;;  %v31_v50 = vld [vmem:[%s5178_s0 + $0x88] sm:$0xff] }
  0x12   :  { %2443 = vmatprep.subr.mxu0 %v277_v8  ;;  %2851 = vmatprep.subr.mxu1 %v277_v8  ;;  %v159_v51 = vld [vmem:[%s5178_s0 + $0x488] sm:$0xff]  ;;  %v32_v52 = vld [vmem:[%s5178_s0 + $0x90] sm:$0xff]  ;;  %v33_v54 = vld [vmem:[%s5178_s0 + $0x98] sm:$0xff] }
  0x13   :  { %2444 = vmatpush3.msra.mxu0 %v277_v8  ;;  %2867 = vmatpush3.msra.mxu1 %v277_v8  ;;  %v160_v53 = vld [vmem:[%s5178_s0 + $0x490] sm:$0xff]  ;;  %v161_v55 = vld [vmem:[%s5178_s0 + $0x498] sm:$0xff]  ;;  %v34_v56 = vld [vmem:[%s5178_s0 + $0xa0] sm:$0xff] }
  0x14   :  { %2445 = vmatprep.subr.mxu0 %v276_v9  ;;  %2852 = vmatprep.subr.mxu1 %v276_v9  ;;  %v162_v57 = vld [vmem:[%s5178_s0 + $0x4a0] sm:$0xff]  ;;  %v35_v58 = vld [vmem:[%s5178_s0 + $0xa8] sm:$0xff]  ;;  %v36_v60 = vld [vmem:[%s5178_s0 + $0xb0] sm:$0xff] }
  0x15   :  { %2446 = vmatpush3.msra.mxu0 %v276_v9  ;;  %2868 = vmatpush3.msra.mxu1 %v276_v9  ;;  %v163_v59 = vld [vmem:[%s5178_s0 + $0x4a8] sm:$0xff]  ;;  %v164_v61 = vld [vmem:[%s5178_s0 + $0x4b0] sm:$0xff]  ;;  %v37_v62 = vld [vmem:[%s5178_s0 + $0xb8] sm:$0xff] }
  0x16   :  { %2447 = vmatprep.subr.mxu0 %v275_v10  ;;  %2853 = vmatprep.subr.mxu1 %v275_v10  ;;  %v165_v63 = vld [vmem:[%s5178_s0 + $0x4b8] sm:$0xff]  ;;  %v38_v0 = vld [vmem:[%s5178_s0 + $0xc0] sm:$0xff]  ;;  %v39_v2 = vld [vmem:[%s5178_s0 + $0xc8] sm:$0xff] }
  0x17   :  { %2448 = vmatpush3.msra.mxu0 %v275_v10  ;;  %2869 = vmatpush3.msra.mxu1 %v275_v10  ;;  %v166_v1 = vld [vmem:[%s5178_s0 + $0x4c0] sm:$0xff]  ;;  %v167_v3 = vld [vmem:[%s5178_s0 + $0x4c8] sm:$0xff]  ;;  %v40_v4 = vld [vmem:[%s5178_s0 + $0xd0] sm:$0xff] }
  0x18   :  { %2449 = vmatprep.subr.mxu0 %v274_v11  ;;  %2854 = vmatprep.subr.mxu1 %v274_v11  ;;  %v168_v5 = vld [vmem:[%s5178_s0 + $0x4d0] sm:$0xff]  ;;  %v41_v6 = vld [vmem:[%s5178_s0 + $0xd8] sm:$0xff]  ;;  %v42_v8 = vld [vmem:[%s5178_s0 + $0xe0] sm:$0xff] }
  0x19   :  { %2450 = vmatpush3.msra.mxu0 %v274_v11  ;;  %2870 = vmatpush3.msra.mxu1 %v274_v11  ;;  %v169_v7 = vld [vmem:[%s5178_s0 + $0x4d8] sm:$0xff]  ;;  %v170_v9 = vld [vmem:[%s5178_s0 + $0x4e0] sm:$0xff]  ;;  %v43_v10 = vld [vmem:[%s5178_s0 + $0xe8] sm:$0xff] }
  0x1a   :  { %2451 = vmatprep.subr.mxu0 %v273_v12  ;;  %2855 = vmatprep.subr.mxu1 %v273_v12  ;;  %v171_v11 = vld [vmem:[%s5178_s0 + $0x4e8] sm:$0xff] }
  0x1b   :  { %2452 = vmatpush3.msra.mxu0 %v273_v12  ;;  %2871 = vmatpush3.msra.mxu1 %v273_v12  ;;  %v44_v12 = vld [vmem:[%s5178_s0 + $0xf0] sm:$0xff] }
  0x1c   :  { %2453 = vmatprep.subr.mxu0 %v272_v13  ;;  %2856 = vmatprep.subr.mxu1 %v272_v13 }
  0x1d   :  { %2454 = vmatpush3.msra.mxu0 %v272_v13  ;;  %2872 = vmatpush3.msra.mxu1 %v272_v13  ;;  %v172_v13 = vld [vmem:[%s5178_s0 + $0x4f0] sm:$0xff] }
  0x1e   :  { %2455 = vmatprep.subr.mxu0 %v271_v14  ;;  %2857 = vmatprep.subr.mxu1 %v271_v14 }
  0x1f   :  { %2456 = vmatpush3.msra.mxu0 %v271_v14  ;;  %2873 = vmatpush3.msra.mxu1 %v271_v14  ;;  %v45_v14 = vld [vmem:[%s5178_s0 + $0xf8] sm:$0xff] }
  0x20   :  { %2457 = vmatprep.subr.mxu0 %v270_v15  ;;  %2858 = vmatprep.subr.mxu1 %v270_v15 }
  0x21   :  { %2458 = vmatpush3.msra.mxu0 %v270_v15  ;;  %2874 = vmatpush3.msra.mxu1 %v270_v15  ;;  %v173_v15 = vld [vmem:[%s5178_s0 + $0x4f8] sm:$0xff] }
  0x22   :  { %2459 = vmatprep.mubr.f32.mxu0 %v14_v16  ;;  %2651 = vmatprep.mubr.f32.mxu1 %v142_v17  ;;  %v46_v16 = vld [vmem:[%s5178_s0 + $0x100] sm:$0xff] }
  0x23   :  { %2460 = vmatmul.mubr.f32.vlgmr.msra.gmra.mxu0 %v15_v18  ;;  %2652 = vmatmul.mubr.f32.vlgmr.msra.gmra.mxu1 %v143_v19  ;;  %v174_v17 = vld [vmem:[%s5178_s0 + $0x500] sm:$0xff]  ;;  %v47_v18 = vld [vmem:[%s5178_s0 + $0x108] sm:$0xff] }
  0x24   :  { %2462 = vmatprep.mubr.f32.mxu0 %v16_v20  ;;  %2654 = vmatprep.mubr.f32.mxu1 %v144_v21  ;;  %v175_v19 = vld [vmem:[%s5178_s0 + $0x508] sm:$0xff]  ;;  %v48_v20 = vld [vmem:[%s5178_s0 + $0x110] sm:$0xff] }
  0x25   :  { %v176_v21 = vld [vmem:[%s5178_s0 + $0x510] sm:$0xff] }
  0x27   :  { %2463 = vmatmul.mubr.f32.gmra.mxu0 %v17_v22  ;;  %2655 = vmatmul.mubr.f32.gmra.mxu1 %v145_v23  ;;  %v49_v22 = vld [vmem:[%s5178_s0 + $0x118] sm:$0xff] }
  0x28   :  { %2465 = vmatprep.mubr.f32.mxu0 %v18_v24  ;;  %2657 = vmatprep.mubr.f32.mxu1 %v146_v25  ;;  %v177_v23 = vld [vmem:[%s5178_s0 + $0x518] sm:$0xff]  ;;  %v50_v24 = vld [vmem:[%s5178_s0 + $0x120] sm:$0xff] }
  0x29   :  { %v178_v25 = vld [vmem:[%s5178_s0 + $0x520] sm:$0xff] }
  0x2b   :  { %2466 = vmatmul.mubr.f32.gmra.mxu0 %v19_v26  ;;  %2658 = vmatmul.mubr.f32.gmra.mxu1 %v147_v27  ;;  %v51_v26 = vld [vmem:[%s5178_s0 + $0x128] sm:$0xff] }
  0x2c   :  { %2468 = vmatprep.mubr.f32.mxu0 %v20_v28  ;;  %2660 = vmatprep.mubr.f32.mxu1 %v148_v29  ;;  %v179_v27 = vld [vmem:[%s5178_s0 + $0x528] sm:$0xff]  ;;  %v52_v28 = vld [vmem:[%s5178_s0 + $0x130] sm:$0xff] }
  0x2d   :  { %v180_v29 = vld [vmem:[%s5178_s0 + $0x530] sm:$0xff] }
  0x2f   :  { %2469 = vmatmul.mubr.f32.gmra.mxu0 %v21_v30  ;;  %2661 = vmatmul.mubr.f32.gmra.mxu1 %v149_v31  ;;  %v53_v30 = vld [vmem:[%s5178_s0 + $0x138] sm:$0xff] }
  0x30   :  { %2471 = vmatprep.mubr.f32.mxu0 %v22_v32  ;;  %2663 = vmatprep.mubr.f32.mxu1 %v150_v33  ;;  %v181_v31 = vld [vmem:[%s5178_s0 + $0x538] sm:$0xff]  ;;  %v54_v32 = vld [vmem:[%s5178_s0 + $0x140] sm:$0xff] }
  0x31   :  { %v182_v33 = vld [vmem:[%s5178_s0 + $0x540] sm:$0xff] }
  0x33   :  { %2472 = vmatmul.mubr.f32.gmra.mxu0 %v23_v34  ;;  %2664 = vmatmul.mubr.f32.gmra.mxu1 %v151_v35  ;;  %v55_v34 = vld [vmem:[%s5178_s0 + $0x148] sm:$0xff] }
  0x34   :  { %2474 = vmatprep.mubr.f32.mxu0 %v24_v36  ;;  %2666 = vmatprep.mubr.f32.mxu1 %v152_v37  ;;  %v183_v35 = vld [vmem:[%s5178_s0 + $0x548] sm:$0xff]  ;;  %v56_v36 = vld [vmem:[%s5178_s0 + $0x150] sm:$0xff] }
  0x35   :  { %v184_v37 = vld [vmem:[%s5178_s0 + $0x550] sm:$0xff] }
  0x37   :  { %2475 = vmatmul.mubr.f32.gmra.mxu0 %v25_v38  ;;  %2667 = vmatmul.mubr.f32.gmra.mxu1 %v153_v39  ;;  %v57_v38 = vld [vmem:[%s5178_s0 + $0x158] sm:$0xff] }
  0x38   :  { %2477 = vmatprep.mubr.f32.mxu0 %v26_v40  ;;  %2669 = vmatprep.mubr.f32.mxu1 %v154_v41  ;;  %v185_v39 = vld [vmem:[%s5178_s0 + $0x558] sm:$0xff]  ;;  %v58_v40 = vld [vmem:[%s5178_s0 + $0x160] sm:$0xff] }
  0x39   :  { %v186_v41 = vld [vmem:[%s5178_s0 + $0x560] sm:$0xff] }
  0x3b   :  { %2478 = vmatmul.mubr.f32.gmra.mxu0 %v27_v42  ;;  %2670 = vmatmul.mubr.f32.gmra.mxu1 %v155_v43  ;;  %v59_v42 = vld [vmem:[%s5178_s0 + $0x168] sm:$0xff] }
  0x3c   :  { %2480 = vmatprep.mubr.f32.mxu0 %v28_v44  ;;  %2672 = vmatprep.mubr.f32.mxu1 %v156_v45  ;;  %v187_v43 = vld [vmem:[%s5178_s0 + $0x568] sm:$0xff]  ;;  %v60_v44 = vld [vmem:[%s5178_s0 + $0x170] sm:$0xff] }
  0x3d   :  { %v188_v45 = vld [vmem:[%s5178_s0 + $0x570] sm:$0xff] }
  0x3f   :  { %2481 = vmatmul.mubr.f32.gmra.mxu0 %v29_v46  ;;  %2673 = vmatmul.mubr.f32.gmra.mxu1 %v157_v47  ;;  %v61_v46 = vld [vmem:[%s5178_s0 + $0x178] sm:$0xff] }
  0x40   :  { %2483 = vmatprep.mubr.f32.mxu0 %v30_v48  ;;  %2675 = vmatprep.mubr.f32.mxu1 %v158_v49  ;;  %v189_v47 = vld [vmem:[%s5178_s0 + $0x578] sm:$0xff]  ;;  %v62_v48 = vld [vmem:[%s5178_s0 + $0x180] sm:$0xff] }
  0x41   :  { %v190_v49 = vld [vmem:[%s5178_s0 + $0x580] sm:$0xff] }
  0x43   :  { %2484 = vmatmul.mubr.f32.gmra.mxu0 %v31_v50  ;;  %2676 = vmatmul.mubr.f32.gmra.mxu1 %v159_v51  ;;  %v63_v50 = vld [vmem:[%s5178_s0 + $0x188] sm:$0xff] }
  0x44   :  { %2486 = vmatprep.mubr.f32.mxu0 %v32_v52  ;;  %2678 = vmatprep.mubr.f32.mxu1 %v160_v53  ;;  %v191_v51 = vld [vmem:[%s5178_s0 + $0x588] sm:$0xff]  ;;  %v64_v52 = vld [vmem:[%s5178_s0 + $0x190] sm:$0xff] }
  0x45   :  { %v192_v53 = vld [vmem:[%s5178_s0 + $0x590] sm:$0xff] }
  0x47   :  { %2487 = vmatmul.mubr.f32.gmra.mxu0 %v33_v54  ;;  %2679 = vmatmul.mubr.f32.gmra.mxu1 %v161_v55  ;;  %v65_v54 = vld [vmem:[%s5178_s0 + $0x198] sm:$0xff] }
  0x48   :  { %2489 = vmatprep.mubr.f32.mxu0 %v34_v56  ;;  %2681 = vmatprep.mubr.f32.mxu1 %v162_v57  ;;  %v193_v55 = vld [vmem:[%s5178_s0 + $0x598] sm:$0xff]  ;;  %v66_v56 = vld [vmem:[%s5178_s0 + $0x1a0] sm:$0xff] }
  0x49   :  { %v194_v57 = vld [vmem:[%s5178_s0 + $0x5a0] sm:$0xff] }
  0x4b   :  { %2490 = vmatmul.mubr.f32.gmra.mxu0 %v35_v58  ;;  %2682 = vmatmul.mubr.f32.gmra.mxu1 %v163_v59  ;;  %v67_v58 = vld [vmem:[%s5178_s0 + $0x1a8] sm:$0xff] }
  0x4c   :  { %2492 = vmatprep.mubr.f32.mxu0 %v36_v60  ;;  %2684 = vmatprep.mubr.f32.mxu1 %v164_v61  ;;  %v195_v59 = vld [vmem:[%s5178_s0 + $0x5a8] sm:$0xff]  ;;  %v68_v60 = vld [vmem:[%s5178_s0 + $0x1b0] sm:$0xff] }
  0x4d   :  { %v196_v61 = vld [vmem:[%s5178_s0 + $0x5b0] sm:$0xff] }
  0x4f   :  { %2493 = vmatmul.mubr.f32.gmra.mxu0 %v37_v62  ;;  %2685 = vmatmul.mubr.f32.gmra.mxu1 %v165_v63  ;;  %v69_v62 = vld [vmem:[%s5178_s0 + $0x1b8] sm:$0xff] }
  0x50   :  { %2495 = vmatprep.mubr.f32.mxu0 %v38_v0  ;;  %2687 = vmatprep.mubr.f32.mxu1 %v166_v1  ;;  %v197_v63 = vld [vmem:[%s5178_s0 + $0x5b8] sm:$0xff]  ;;  %v70_v0 = vld [vmem:[%s5178_s0 + $0x1c0] sm:$0xff] }
  0x51   :  { %v198_v1 = vld [vmem:[%s5178_s0 + $0x5c0] sm:$0xff] }
  0x53   :  { %2496 = vmatmul.mubr.f32.gmra.mxu0 %v39_v2  ;;  %2688 = vmatmul.mubr.f32.gmra.mxu1 %v167_v3  ;;  %v71_v2 = vld [vmem:[%s5178_s0 + $0x1c8] sm:$0xff] }
  0x54   :  { %2498 = vmatprep.mubr.f32.mxu0 %v40_v4  ;;  %2690 = vmatprep.mubr.f32.mxu1 %v168_v5  ;;  %v199_v3 = vld [vmem:[%s5178_s0 + $0x5c8] sm:$0xff]  ;;  %v72_v4 = vld [vmem:[%s5178_s0 + $0x1d0] sm:$0xff] }
  0x55   :  { %v200_v5 = vld [vmem:[%s5178_s0 + $0x5d0] sm:$0xff] }
  0x57   :  { %2499 = vmatmul.mubr.f32.gmra.mxu0 %v41_v6  ;;  %2691 = vmatmul.mubr.f32.gmra.mxu1 %v169_v7  ;;  %v73_v6 = vld [vmem:[%s5178_s0 + $0x1d8] sm:$0xff] }
  0x58   :  { %2501 = vmatprep.mubr.f32.mxu0 %v42_v8  ;;  %2693 = vmatprep.mubr.f32.mxu1 %v170_v9  ;;  %v201_v7 = vld [vmem:[%s5178_s0 + $0x5d8] sm:$0xff]  ;;  %v74_v8 = vld [vmem:[%s5178_s0 + $0x1e0] sm:$0xff] }
  0x59   :  { %v202_v9 = vld [vmem:[%s5178_s0 + $0x5e0] sm:$0xff] }
  0x5b   :  { %2502 = vmatmul.mubr.f32.gmra.mxu0 %v43_v10  ;;  %2694 = vmatmul.mubr.f32.gmra.mxu1 %v171_v11  ;;  %v75_v10 = vld [vmem:[%s5178_s0 + $0x1e8] sm:$0xff] }
  0x5c   :  { %2504 = vmatprep.mubr.f32.mxu0 %v44_v12  ;;  %2696 = vmatprep.mubr.f32.mxu1 %v172_v13  ;;  %v203_v11 = vld [vmem:[%s5178_s0 + $0x5e8] sm:$0xff]  ;;  %v76_v12 = vld [vmem:[%s5178_s0 + $0x1f0] sm:$0xff] }
  0x5d   :  { %v204_v13 = vld [vmem:[%s5178_s0 + $0x5f0] sm:$0xff] }
  0x5f   :  { %2505 = vmatmul.mubr.f32.gmra.mxu0 %v45_v14  ;;  %2697 = vmatmul.mubr.f32.gmra.mxu1 %v173_v15  ;;  %v77_v14 = vld [vmem:[%s5178_s0 + $0x1f8] sm:$0xff] }
  0x60   :  { %2507 = vmatprep.mubr.f32.mxu0 %v46_v16  ;;  %2699 = vmatprep.mubr.f32.mxu1 %v174_v17  ;;  %v205_v15 = vld [vmem:[%s5178_s0 + $0x5f8] sm:$0xff]  ;;  %v78_v16 = vld [vmem:[%s5178_s0 + $0x200] sm:$0xff] }
  0x61   :  { %v206_v17 = vld [vmem:[%s5178_s0 + $0x600] sm:$0xff] }
  0x63   :  { %2508 = vmatmul.mubr.f32.gmra.mxu0 %v47_v18  ;;  %2700 = vmatmul.mubr.f32.gmra.mxu1 %v175_v19  ;;  %v79_v18 = vld [vmem:[%s5178_s0 + $0x208] sm:$0xff] }
  0x64   :  { %2510 = vmatprep.mubr.f32.mxu0 %v48_v20  ;;  %2702 = vmatprep.mubr.f32.mxu1 %v176_v21  ;;  %v207_v19 = vld [vmem:[%s5178_s0 + $0x608] sm:$0xff]  ;;  %v80_v20 = vld [vmem:[%s5178_s0 + $0x210] sm:$0xff] }
  0x65   :  { %v208_v21 = vld [vmem:[%s5178_s0 + $0x610] sm:$0xff] }
  0x67   :  { %2511 = vmatmul.mubr.f32.gmra.mxu0 %v49_v22  ;;  %2703 = vmatmul.mubr.f32.gmra.mxu1 %v177_v23  ;;  %v81_v22 = vld [vmem:[%s5178_s0 + $0x218] sm:$0xff] }
  0x68   :  { %2513 = vmatprep.mubr.f32.mxu0 %v50_v24  ;;  %2705 = vmatprep.mubr.f32.mxu1 %v178_v25  ;;  %v209_v23 = vld [vmem:[%s5178_s0 + $0x618] sm:$0xff]  ;;  %v82_v24 = vld [vmem:[%s5178_s0 + $0x220] sm:$0xff] }
  0x69   :  { %v210_v25 = vld [vmem:[%s5178_s0 + $0x620] sm:$0xff] }
  0x6b   :  { %2514 = vmatmul.mubr.f32.gmra.mxu0 %v51_v26  ;;  %2706 = vmatmul.mubr.f32.gmra.mxu1 %v179_v27  ;;  %v83_v26 = vld [vmem:[%s5178_s0 + $0x228] sm:$0xff] }
  0x6c   :  { %2516 = vmatprep.mubr.f32.mxu0 %v52_v28  ;;  %2708 = vmatprep.mubr.f32.mxu1 %v180_v29  ;;  %v211_v27 = vld [vmem:[%s5178_s0 + $0x628] sm:$0xff]  ;;  %v84_v28 = vld [vmem:[%s5178_s0 + $0x230] sm:$0xff] }
  0x6d   :  { %v212_v29 = vld [vmem:[%s5178_s0 + $0x630] sm:$0xff] }
  0x6f   :  { %2517 = vmatmul.mubr.f32.gmra.mxu0 %v53_v30  ;;  %2709 = vmatmul.mubr.f32.gmra.mxu1 %v181_v31  ;;  %v85_v30 = vld [vmem:[%s5178_s0 + $0x238] sm:$0xff] }
  0x70   :  { %2519 = vmatprep.mubr.f32.mxu0 %v54_v32  ;;  %2711 = vmatprep.mubr.f32.mxu1 %v182_v33  ;;  %v213_v31 = vld [vmem:[%s5178_s0 + $0x638] sm:$0xff]  ;;  %v86_v32 = vld [vmem:[%s5178_s0 + $0x240] sm:$0xff] }
  0x71   :  { %v214_v33 = vld [vmem:[%s5178_s0 + $0x640] sm:$0xff] }
  0x73   :  { %2520 = vmatmul.mubr.f32.gmra.mxu0 %v55_v34  ;;  %2712 = vmatmul.mubr.f32.gmra.mxu1 %v183_v35  ;;  %v87_v34 = vld [vmem:[%s5178_s0 + $0x248] sm:$0xff] }
  0x74   :  { %2522 = vmatprep.mubr.f32.mxu0 %v56_v36  ;;  %2714 = vmatprep.mubr.f32.mxu1 %v184_v37  ;;  %v215_v35 = vld [vmem:[%s5178_s0 + $0x648] sm:$0xff]  ;;  %v88_v36 = vld [vmem:[%s5178_s0 + $0x250] sm:$0xff] }
  0x75   :  { %v216_v37 = vld [vmem:[%s5178_s0 + $0x650] sm:$0xff] }
  0x77   :  { %2523 = vmatmul.mubr.f32.gmra.mxu0 %v57_v38  ;;  %2715 = vmatmul.mubr.f32.gmra.mxu1 %v185_v39  ;;  %v89_v38 = vld [vmem:[%s5178_s0 + $0x258] sm:$0xff] }
  0x78   :  { %2525 = vmatprep.mubr.f32.mxu0 %v58_v40  ;;  %2717 = vmatprep.mubr.f32.mxu1 %v186_v41  ;;  %v217_v39 = vld [vmem:[%s5178_s0 + $0x658] sm:$0xff]  ;;  %v90_v40 = vld [vmem:[%s5178_s0 + $0x260] sm:$0xff] }
  0x79   :  { %v218_v41 = vld [vmem:[%s5178_s0 + $0x660] sm:$0xff] }
  0x7b   :  { %2526 = vmatmul.mubr.f32.gmra.mxu0 %v59_v42  ;;  %2718 = vmatmul.mubr.f32.gmra.mxu1 %v187_v43  ;;  %v91_v42 = vld [vmem:[%s5178_s0 + $0x268] sm:$0xff] }
  0x7c   :  { %2528 = vmatprep.mubr.f32.mxu0 %v60_v44  ;;  %2720 = vmatprep.mubr.f32.mxu1 %v188_v45  ;;  %v219_v43 = vld [vmem:[%s5178_s0 + $0x668] sm:$0xff]  ;;  %v92_v44 = vld [vmem:[%s5178_s0 + $0x270] sm:$0xff] }
  0x7d   :  { %v220_v45 = vld [vmem:[%s5178_s0 + $0x670] sm:$0xff] }
  0x7f   :  { %2529 = vmatmul.mubr.f32.gmra.mxu0 %v61_v46  ;;  %2721 = vmatmul.mubr.f32.gmra.mxu1 %v189_v47  ;;  %v93_v46 = vld [vmem:[%s5178_s0 + $0x278] sm:$0xff] }
  0x80   :  { %2531 = vmatprep.mubr.f32.mxu0 %v62_v48  ;;  %2723 = vmatprep.mubr.f32.mxu1 %v190_v49  ;;  %v221_v47 = vld [vmem:[%s5178_s0 + $0x678] sm:$0xff]  ;;  %v94_v48 = vld [vmem:[%s5178_s0 + $0x280] sm:$0xff] }
  0x81   :  { %v222_v49 = vld [vmem:[%s5178_s0 + $0x680] sm:$0xff] }
  0x83   :  { %2532 = vmatmul.mubr.f32.gmra.mxu0 %v63_v50  ;;  %2724 = vmatmul.mubr.f32.gmra.mxu1 %v191_v51  ;;  %v95_v50 = vld [vmem:[%s5178_s0 + $0x288] sm:$0xff] }
  0x84   :  { %2534 = vmatprep.mubr.f32.mxu0 %v64_v52  ;;  %2726 = vmatprep.mubr.f32.mxu1 %v192_v53  ;;  %v223_v51 = vld [vmem:[%s5178_s0 + $0x688] sm:$0xff]  ;;  %v96_v52 = vld [vmem:[%s5178_s0 + $0x290] sm:$0xff] }
  0x85   :  { %v224_v53 = vld [vmem:[%s5178_s0 + $0x690] sm:$0xff] }
  0x87   :  { %2535 = vmatmul.mubr.f32.gmra.mxu0 %v65_v54  ;;  %2727 = vmatmul.mubr.f32.gmra.mxu1 %v193_v55  ;;  %v97_v54 = vld [vmem:[%s5178_s0 + $0x298] sm:$0xff] }
  0x88   :  { %2537 = vmatprep.mubr.f32.mxu0 %v66_v56  ;;  %2729 = vmatprep.mubr.f32.mxu1 %v194_v57  ;;  %v225_v55 = vld [vmem:[%s5178_s0 + $0x698] sm:$0xff]  ;;  %v98_v56 = vld [vmem:[%s5178_s0 + $0x2a0] sm:$0xff] }
  0x89   :  { %v226_v57 = vld [vmem:[%s5178_s0 + $0x6a0] sm:$0xff] }
  0x8b   :  { %2538 = vmatmul.mubr.f32.gmra.mxu0 %v67_v58  ;;  %2730 = vmatmul.mubr.f32.gmra.mxu1 %v195_v59  ;;  %v99_v58 = vld [vmem:[%s5178_s0 + $0x2a8] sm:$0xff] }
  0x8c   :  { %2540 = vmatprep.mubr.f32.mxu0 %v68_v60  ;;  %2732 = vmatprep.mubr.f32.mxu1 %v196_v61  ;;  %v227_v59 = vld [vmem:[%s5178_s0 + $0x6a8] sm:$0xff]  ;;  %v100_v60 = vld [vmem:[%s5178_s0 + $0x2b0] sm:$0xff] }
  0x8d   :  { %v228_v61 = vld [vmem:[%s5178_s0 + $0x6b0] sm:$0xff] }
  0x8f   :  { %2541 = vmatmul.mubr.f32.gmra.mxu0 %v69_v62  ;;  %2733 = vmatmul.mubr.f32.gmra.mxu1 %v197_v63  ;;  %v101_v62 = vld [vmem:[%s5178_s0 + $0x2b8] sm:$0xff] }
  0x90   :  { %2543 = vmatprep.mubr.f32.mxu0 %v70_v0  ;;  %2735 = vmatprep.mubr.f32.mxu1 %v198_v1  ;;  %v229_v63 = vld [vmem:[%s5178_s0 + $0x6b8] sm:$0xff]  ;;  %v102_v0 = vld [vmem:[%s5178_s0 + $0x2c0] sm:$0xff] }
  0x91   :  { %v230_v1 = vld [vmem:[%s5178_s0 + $0x6c0] sm:$0xff] }
  0x93   :  { %2544 = vmatmul.mubr.f32.gmra.mxu0 %v71_v2  ;;  %2736 = vmatmul.mubr.f32.gmra.mxu1 %v199_v3  ;;  %v103_v2 = vld [vmem:[%s5178_s0 + $0x2c8] sm:$0xff] }
  0x94   :  { %2546 = vmatprep.mubr.f32.mxu0 %v72_v4  ;;  %2738 = vmatprep.mubr.f32.mxu1 %v200_v5  ;;  %v231_v3 = vld [vmem:[%s5178_s0 + $0x6c8] sm:$0xff]  ;;  %v104_v4 = vld [vmem:[%s5178_s0 + $0x2d0] sm:$0xff] }
  0x95   :  { %v232_v5 = vld [vmem:[%s5178_s0 + $0x6d0] sm:$0xff] }
  0x97   :  { %2547 = vmatmul.mubr.f32.gmra.mxu0 %v73_v6  ;;  %2739 = vmatmul.mubr.f32.gmra.mxu1 %v201_v7  ;;  %v105_v6 = vld [vmem:[%s5178_s0 + $0x2d8] sm:$0xff] }
  0x98   :  { %2549 = vmatprep.mubr.f32.mxu0 %v74_v8  ;;  %2741 = vmatprep.mubr.f32.mxu1 %v202_v9  ;;  %v233_v7 = vld [vmem:[%s5178_s0 + $0x6d8] sm:$0xff]  ;;  %v106_v8 = vld [vmem:[%s5178_s0 + $0x2e0] sm:$0xff] }
  0x99   :  { %v234_v9 = vld [vmem:[%s5178_s0 + $0x6e0] sm:$0xff] }
  0x9b   :  { %2550 = vmatmul.mubr.f32.gmra.mxu0 %v75_v10  ;;  %2742 = vmatmul.mubr.f32.gmra.mxu1 %v203_v11  ;;  %v107_v10 = vld [vmem:[%s5178_s0 + $0x2e8] sm:$0xff] }
  0x9c   :  { %2552 = vmatprep.mubr.f32.mxu0 %v76_v12  ;;  %2744 = vmatprep.mubr.f32.mxu1 %v204_v13  ;;  %v235_v11 = vld [vmem:[%s5178_s0 + $0x6e8] sm:$0xff]  ;;  %v108_v12 = vld [vmem:[%s5178_s0 + $0x2f0] sm:$0xff] }
  0x9d   :  { %v236_v13 = vld [vmem:[%s5178_s0 + $0x6f0] sm:$0xff] }
  0x9f   :  { %2553 = vmatmul.mubr.f32.gmra.mxu0 %v77_v14  ;;  %2745 = vmatmul.mubr.f32.gmra.mxu1 %v205_v15  ;;  %v109_v14 = vld [vmem:[%s5178_s0 + $0x2f8] sm:$0xff] }
  0xa0   :  { %2555 = vmatprep.mubr.f32.mxu0 %v78_v16  ;;  %2747 = vmatprep.mubr.f32.mxu1 %v206_v17  ;;  %v237_v15 = vld [vmem:[%s5178_s0 + $0x6f8] sm:$0xff]  ;;  %v110_v16 = vld [vmem:[%s5178_s0 + $0x300] sm:$0xff] }
  0xa1   :  { %v238_v17 = vld [vmem:[%s5178_s0 + $0x700] sm:$0xff] }
  0xa3   :  { %2556 = vmatmul.mubr.f32.gmra.mxu0 %v79_v18  ;;  %2748 = vmatmul.mubr.f32.gmra.mxu1 %v207_v19  ;;  %v111_v18 = vld [vmem:[%s5178_s0 + $0x308] sm:$0xff] }
  0xa4   :  { %2558 = vmatprep.mubr.f32.mxu0 %v80_v20  ;;  %2750 = vmatprep.mubr.f32.mxu1 %v208_v21  ;;  %v239_v19 = vld [vmem:[%s5178_s0 + $0x708] sm:$0xff]  ;;  %v112_v20 = vld [vmem:[%s5178_s0 + $0x310] sm:$0xff] }
  0xa5   :  { %v240_v21 = vld [vmem:[%s5178_s0 + $0x710] sm:$0xff] }
  0xa7   :  { %2559 = vmatmul.mubr.f32.gmra.mxu0 %v81_v22  ;;  %2751 = vmatmul.mubr.f32.gmra.mxu1 %v209_v23 }
  0xa8   :  { %2561 = vmatprep.mubr.f32.mxu0 %v82_v24  ;;  %2753 = vmatprep.mubr.f32.mxu1 %v210_v25  ;;  %v113_v24 = vld [vmem:[%s5178_s0 + $0x318] sm:$0xff] }
  0xa9   :  { %v241_v25 = vld [vmem:[%s5178_s0 + $0x718] sm:$0xff] }
  0xab   :  { %2562 = vmatmul.mubr.f32.gmra.mxu0 %v83_v26  ;;  %2754 = vmatmul.mubr.f32.gmra.mxu1 %v211_v27 }
  0xac   :  { %2564 = vmatprep.mubr.f32.mxu0 %v84_v28  ;;  %2756 = vmatprep.mubr.f32.mxu1 %v212_v29  ;;  %v114_v28 = vld [vmem:[%s5178_s0 + $0x320] sm:$0xff] }
  0xad   :  { %v242_v29 = vld [vmem:[%s5178_s0 + $0x720] sm:$0xff] }
  0xaf   :  { %2565 = vmatmul.mubr.f32.gmra.mxu0 %v85_v30  ;;  %2757 = vmatmul.mubr.f32.gmra.mxu1 %v213_v31 }
  0xb0   :  { %2567 = vmatprep.mubr.f32.mxu0 %v86_v32  ;;  %2759 = vmatprep.mubr.f32.mxu1 %v214_v33  ;;  %v115_v32 = vld [vmem:[%s5178_s0 + $0x328] sm:$0xff] }
  0xb1   :  { %v243_v33 = vld [vmem:[%s5178_s0 + $0x728] sm:$0xff] }
  0xb3   :  { %2568 = vmatmul.mubr.f32.gmra.mxu0 %v87_v34  ;;  %2760 = vmatmul.mubr.f32.gmra.mxu1 %v215_v35 }
  0xb4   :  { %2570 = vmatprep.mubr.f32.mxu0 %v88_v36  ;;  %2762 = vmatprep.mubr.f32.mxu1 %v216_v37  ;;  %v116_v36 = vld [vmem:[%s5178_s0 + $0x330] sm:$0xff] }
  0xb5   :  { %v244_v37 = vld [vmem:[%s5178_s0 + $0x730] sm:$0xff] }
  0xb7   :  { %2571 = vmatmul.mubr.f32.gmra.mxu0 %v89_v38  ;;  %2763 = vmatmul.mubr.f32.gmra.mxu1 %v217_v39 }
  0xb8   :  { %2573 = vmatprep.mubr.f32.mxu0 %v90_v40  ;;  %2765 = vmatprep.mubr.f32.mxu1 %v218_v41  ;;  %v117_v40 = vld [vmem:[%s5178_s0 + $0x338] sm:$0xff] }
  0xb9   :  { %v245_v41 = vld [vmem:[%s5178_s0 + $0x738] sm:$0xff] }
  0xbb   :  { %2574 = vmatmul.mubr.f32.gmra.mxu0 %v91_v42  ;;  %2766 = vmatmul.mubr.f32.gmra.mxu1 %v219_v43 }
  0xbc   :  { %2576 = vmatprep.mubr.f32.mxu0 %v92_v44  ;;  %2768 = vmatprep.mubr.f32.mxu1 %v220_v45  ;;  %v118_v44 = vld [vmem:[%s5178_s0 + $0x340] sm:$0xff] }
  0xbd   :  { %v246_v45 = vld [vmem:[%s5178_s0 + $0x740] sm:$0xff] }
  0xbf   :  { %2577 = vmatmul.mubr.f32.gmra.mxu0 %v93_v46  ;;  %2769 = vmatmul.mubr.f32.gmra.mxu1 %v221_v47 }
  0xc0   :  { %2579 = vmatprep.mubr.f32.mxu0 %v94_v48  ;;  %2771 = vmatprep.mubr.f32.mxu1 %v222_v49  ;;  %v119_v48 = vld [vmem:[%s5178_s0 + $0x348] sm:$0xff] }
  0xc1   :  { %v247_v49 = vld [vmem:[%s5178_s0 + $0x748] sm:$0xff] }
  0xc3   :  { %2580 = vmatmul.mubr.f32.gmra.mxu0 %v95_v50  ;;  %2772 = vmatmul.mubr.f32.gmra.mxu1 %v223_v51 }
  0xc4   :  { %2582 = vmatprep.mubr.f32.mxu0 %v96_v52  ;;  %2774 = vmatprep.mubr.f32.mxu1 %v224_v53  ;;  %v120_v52 = vld [vmem:[%s5178_s0 + $0x350] sm:$0xff] }
  0xc5   :  { %v248_v53 = vld [vmem:[%s5178_s0 + $0x750] sm:$0xff] }
  0xc7   :  { %2583 = vmatmul.mubr.f32.gmra.mxu0 %v97_v54  ;;  %2775 = vmatmul.mubr.f32.gmra.mxu1 %v225_v55 }
  0xc8   :  { %2585 = vmatprep.mubr.f32.mxu0 %v98_v56  ;;  %2777 = vmatprep.mubr.f32.mxu1 %v226_v57  ;;  %v121_v56 = vld [vmem:[%s5178_s0 + $0x358] sm:$0xff] }
  0xc9   :  { %v249_v57 = vld [vmem:[%s5178_s0 + $0x758] sm:$0xff] }
  0xcb   :  { %2586 = vmatmul.mubr.f32.gmra.mxu0 %v99_v58  ;;  %2778 = vmatmul.mubr.f32.gmra.mxu1 %v227_v59 }
  0xcc   :  { %2588 = vmatprep.mubr.f32.mxu0 %v100_v60  ;;  %2780 = vmatprep.mubr.f32.mxu1 %v228_v61  ;;  %v122_v60 = vld [vmem:[%s5178_s0 + $0x360] sm:$0xff] }
  0xcd   :  { %v250_v61 = vld [vmem:[%s5178_s0 + $0x760] sm:$0xff] }
  0xcf   :  { %2589 = vmatmul.mubr.f32.gmra.mxu0 %v101_v62  ;;  %2781 = vmatmul.mubr.f32.gmra.mxu1 %v229_v63 }
  0xd0   :  { %2591 = vmatprep.mubr.f32.mxu0 %v102_v0  ;;  %2783 = vmatprep.mubr.f32.mxu1 %v230_v1  ;;  %v123_v0 = vld [vmem:[%s5178_s0 + $0x368] sm:$0xff] }
  0xd1   :  { %v251_v1 = vld [vmem:[%s5178_s0 + $0x768] sm:$0xff] }
  0xd3   :  { %2592 = vmatmul.mubr.f32.gmra.mxu0 %v103_v2  ;;  %2784 = vmatmul.mubr.f32.gmra.mxu1 %v231_v3 }
  0xd4   :  { %2594 = vmatprep.mubr.f32.mxu0 %v104_v4  ;;  %2786 = vmatprep.mubr.f32.mxu1 %v232_v5  ;;  %v124_v4 = vld [vmem:[%s5178_s0 + $0x370] sm:$0xff] }
  0xd5   :  { %v252_v5 = vld [vmem:[%s5178_s0 + $0x770] sm:$0xff] }
  0xd7   :  { %2595 = vmatmul.mubr.f32.gmra.mxu0 %v105_v6  ;;  %2787 = vmatmul.mubr.f32.gmra.mxu1 %v233_v7 }
  0xd8   :  { %2597 = vmatprep.mubr.f32.mxu0 %v106_v8  ;;  %2789 = vmatprep.mubr.f32.mxu1 %v234_v9  ;;  %v125_v8 = vld [vmem:[%s5178_s0 + $0x378] sm:$0xff] }
  0xd9   :  { %v253_v9 = vld [vmem:[%s5178_s0 + $0x778] sm:$0xff] }
  0xdb   :  { %2598 = vmatmul.mubr.f32.gmra.mxu0 %v107_v10  ;;  %2790 = vmatmul.mubr.f32.gmra.mxu1 %v235_v11 }
  0xdc   :  { %2600 = vmatprep.mubr.f32.mxu0 %v108_v12  ;;  %2792 = vmatprep.mubr.f32.mxu1 %v236_v13  ;;  %v126_v12 = vld [vmem:[%s5178_s0 + $0x380] sm:$0xff] }
  0xdd   :  { %v254_v13 = vld [vmem:[%s5178_s0 + $0x780] sm:$0xff] }
  0xdf   :  { %2601 = vmatmul.mubr.f32.gmra.mxu0 %v109_v14  ;;  %2793 = vmatmul.mubr.f32.gmra.mxu1 %v237_v15 }
  0xe0   :  { %2603 = vmatprep.mubr.f32.mxu0 %v110_v16  ;;  %2795 = vmatprep.mubr.f32.mxu1 %v238_v17  ;;  %v127_v16 = vld [vmem:[%s5178_s0 + $0x388] sm:$0xff] }
  0xe1   :  { %v255_v17 = vld [vmem:[%s5178_s0 + $0x788] sm:$0xff] }
  0xe3   :  { %v3538_v22 = vpop.f32.mrf.mxu0  ;;  %2604 = vmatmul.mubr.f32.gmra.mxu0 %v111_v18  ;;  %v3540_v23 = vpop.f32.mrf.mxu1  ;;  %2796 = vmatmul.mubr.f32.gmra.mxu1 %v239_v19 }
  0xe4   :  { %2606 = vmatprep.mubr.f32.mxu0 %v112_v20  ;;  %2798 = vmatprep.mubr.f32.mxu1 %v240_v21  ;;  %v128_v20 = vld [vmem:[%s5178_s0 + $0x390] sm:$0xff] }
  0xe5   :  { %v3548_v26 = vpop.f32.mrf.mxu0  ;;  %v3550_v27 = vpop.f32.mrf.mxu1  ;;  %v256_v21 = vld [vmem:[%s5178_s0 + $0x790] sm:$0xff] }
  0xe7   :  { %v3558_v30 = vpop.f32.mrf.mxu0  ;;  %2607 = vmatmul.mubr.f32.gmra.mxu0 %v113_v24  ;;  %v3560_v31 = vpop.f32.mrf.mxu1  ;;  %2799 = vmatmul.mubr.f32.gmra.mxu1 %v241_v25 }
  0xe8   :  { %2609 = vmatprep.mubr.f32.mxu0 %v114_v28  ;;  %2801 = vmatprep.mubr.f32.mxu1 %v242_v29  ;;  %v129_v28 = vld [vmem:[%s5178_s0 + $0x398] sm:$0xff] }
  0xe9   :  { %v3568_v34 = vpop.f32.mrf.mxu0  ;;  %v3570_v35 = vpop.f32.mrf.mxu1  ;;  %v257_v29 = vld [vmem:[%s5178_s0 + $0x798] sm:$0xff] }
  0xeb   :  { %v3578_v38 = vpop.f32.mrf.mxu0  ;;  %2610 = vmatmul.mubr.f32.gmra.mxu0 %v115_v32  ;;  %v3580_v39 = vpop.f32.mrf.mxu1  ;;  %2802 = vmatmul.mubr.f32.gmra.mxu1 %v243_v33 }
  0xec   :  { %2612 = vmatprep.mubr.f32.mxu0 %v116_v36  ;;  %2804 = vmatprep.mubr.f32.mxu1 %v244_v37  ;;  %v130_v36 = vld [vmem:[%s5178_s0 + $0x3a0] sm:$0xff] }
  0xed   :  { %v3588_v42 = vpop.f32.mrf.mxu0  ;;  %v3590_v43 = vpop.f32.mrf.mxu1  ;;  %v258_v37 = vld [vmem:[%s5178_s0 + $0x7a0] sm:$0xff] }
  0xef   :  { %v3598_v46 = vpop.f32.mrf.mxu0  ;;  %2613 = vmatmul.mubr.f32.gmra.mxu0 %v117_v40  ;;  %v3600_v47 = vpop.f32.mrf.mxu1  ;;  %2805 = vmatmul.mubr.f32.gmra.mxu1 %v245_v41 }
  0xf0   :  { %2615 = vmatprep.mubr.f32.mxu0 %v118_v44  ;;  %2807 = vmatprep.mubr.f32.mxu1 %v246_v45  ;;  %v131_v44 = vld [vmem:[%s5178_s0 + $0x3a8] sm:$0xff] }
  0xf1   :  { %v3608_v50 = vpop.f32.mrf.mxu0  ;;  %v3610_v51 = vpop.f32.mrf.mxu1  ;;  %v259_v45 = vld [vmem:[%s5178_s0 + $0x7a8] sm:$0xff] }
  0xf3   :  { %v3618_v54 = vpop.f32.mrf.mxu0  ;;  %2616 = vmatmul.mubr.f32.gmra.mxu0 %v119_v48  ;;  %v3620_v55 = vpop.f32.mrf.mxu1  ;;  %2808 = vmatmul.mubr.f32.gmra.mxu1 %v247_v49 }
  0xf4   :  { %2618 = vmatprep.mubr.f32.mxu0 %v120_v52  ;;  %2810 = vmatprep.mubr.f32.mxu1 %v248_v53  ;;  %v132_v52 = vld [vmem:[%s5178_s0 + $0x3b0] sm:$0xff] }
  0xf5   :  { %v3628_v58 = vpop.f32.mrf.mxu0  ;;  %v3630_v59 = vpop.f32.mrf.mxu1  ;;  %v260_v53 = vld [vmem:[%s5178_s0 + $0x7b0] sm:$0xff] }
  0xf7   :  { %v3638_v62 = vpop.f32.mrf.mxu0  ;;  %2619 = vmatmul.mubr.f32.gmra.mxu0 %v121_v56  ;;  %v3640_v63 = vpop.f32.mrf.mxu1  ;;  %2811 = vmatmul.mubr.f32.gmra.mxu1 %v249_v57 }
  0xf8   :  { %2621 = vmatprep.mubr.f32.mxu0 %v122_v60  ;;  %2813 = vmatprep.mubr.f32.mxu1 %v250_v61  ;;  %v133_v60 = vld [vmem:[%s5178_s0 + $0x3b8] sm:$0xff] }
  0xf9   :  { %v3648_v2 = vpop.f32.mrf.mxu0  ;;  %v3650_v3 = vpop.f32.mrf.mxu1  ;;  %v261_v61 = vld [vmem:[%s5178_s0 + $0x7b8] sm:$0xff] }
  0xfb   :  { %v3658_v6 = vpop.f32.mrf.mxu0  ;;  %2622 = vmatmul.mubr.f32.gmra.mxu0 %v123_v0  ;;  %v3660_v7 = vpop.f32.mrf.mxu1  ;;  %2814 = vmatmul.mubr.f32.gmra.mxu1 %v251_v1 }
  0xfc   :  { %2624 = vmatprep.mubr.f32.mxu0 %v124_v4  ;;  %2816 = vmatprep.mubr.f32.mxu1 %v252_v5  ;;  %v134_v4 = vld [vmem:[%s5178_s0 + $0x3c0] sm:$0xff] }
  0xfd   :  { %v3668_v10 = vpop.f32.mrf.mxu0  ;;  %v3670_v11 = vpop.f32.mrf.mxu1  ;;  %v262_v5 = vld [vmem:[%s5178_s0 + $0x7c0] sm:$0xff] }
  0xff   :  { %v3678_v14 = vpop.f32.mrf.mxu0  ;;  %2625 = vmatmul.mubr.f32.gmra.mxu0 %v125_v8  ;;  %v3680_v15 = vpop.f32.mrf.mxu1  ;;  %2817 = vmatmul.mubr.f32.gmra.mxu1 %v253_v9 }
 0x100   :  { %2627 = vmatprep.mubr.f32.mxu0 %v126_v12  ;;  %2819 = vmatprep.mubr.f32.mxu1 %v254_v13  ;;  %v135_v12 = vld [vmem:[%s5178_s0 + $0x3c8] sm:$0xff] }
 0x101   :  { %v3688_v18 = vpop.f32.mrf.mxu0  ;;  %v3690_v19 = vpop.f32.mrf.mxu1  ;;  %v263_v13 = vld [vmem:[%s5178_s0 + $0x7c8] sm:$0xff] }
 0x103   :  { %v3698_v24 = vpop.f32.mrf.mxu0  ;;  %2628 = vmatmul.mubr.f32.gmra.mxu0 %v127_v16  ;;  %v3700_v25 = vpop.f32.mrf.mxu1  ;;  %2820 = vmatmul.mubr.f32.gmra.mxu1 %v255_v17 }
 0x104   :  { %2630 = vmatprep.mubr.f32.mxu0 %v128_v20  ;;  %2822 = vmatprep.mubr.f32.mxu1 %v256_v21  ;;  %v136_v20 = vld [vmem:[%s5178_s0 + $0x3d0] sm:$0xff] }
 0x105   :  { %v3708_v32 = vpop.f32.mrf.mxu0  ;;  %v3710_v33 = vpop.f32.mrf.mxu1  ;;  %v264_v21 = vld [vmem:[%s5178_s0 + $0x7d0] sm:$0xff] }
 0x107   :  { %v3718_v40 = vpop.f32.mrf.mxu0  ;;  %2631 = vmatmul.mubr.f32.gmra.mxu0 %v129_v28  ;;  %v3720_v41 = vpop.f32.mrf.mxu1  ;;  %2823 = vmatmul.mubr.f32.gmra.mxu1 %v257_v29 }
 0x108   :  { %2633 = vmatprep.mubr.f32.mxu0 %v130_v36  ;;  %2825 = vmatprep.mubr.f32.mxu1 %v258_v37  ;;  %v137_v36 = vld [vmem:[%s5178_s0 + $0x3d8] sm:$0xff] }
 0x109   :  { %v3728_v48 = vpop.f32.mrf.mxu0  ;;  %v3730_v49 = vpop.f32.mrf.mxu1  ;;  %v265_v37 = vld [vmem:[%s5178_s0 + $0x7d8] sm:$0xff] }
 0x10b   :  { %v3738_v56 = vpop.f32.mrf.mxu0  ;;  %2634 = vmatmul.mubr.f32.gmra.mxu0 %v131_v44  ;;  %v3740_v57 = vpop.f32.mrf.mxu1  ;;  %2826 = vmatmul.mubr.f32.gmra.mxu1 %v259_v45 }
 0x10c   :  { %2636 = vmatprep.mubr.f32.mxu0 %v132_v52  ;;  %2828 = vmatprep.mubr.f32.mxu1 %v260_v53  ;;  %v138_v52 = vld [vmem:[%s5178_s0 + $0x3e0] sm:$0xff] }
 0x10d   :  { %v3748_v0 = vpop.f32.mrf.mxu0  ;;  %v3750_v1 = vpop.f32.mrf.mxu1  ;;  %v266_v53 = vld [vmem:[%s5178_s0 + $0x7e0] sm:$0xff] }
 0x10f   :  { %v3758_v8 = vpop.f32.mrf.mxu0  ;;  %2637 = vmatmul.mubr.f32.gmra.mxu0 %v133_v60  ;;  %v3760_v9 = vpop.f32.mrf.mxu1  ;;  %2829 = vmatmul.mubr.f32.gmra.mxu1 %v261_v61 }
 0x110   :  { %2639 = vmatprep.mubr.f32.mxu0 %v134_v4  ;;  %2831 = vmatprep.mubr.f32.mxu1 %v262_v5  ;;  %v139_v4 = vld [vmem:[%s5178_s0 + $0x3e8] sm:$0xff] }
 0x111   :  { %v3768_v16 = vpop.f32.mrf.mxu0  ;;  %v3770_v17 = vpop.f32.mrf.mxu1  ;;  %v267_v5 = vld [vmem:[%s5178_s0 + $0x7e8] sm:$0xff] }
 0x113   :  { %v3778_v28 = vpop.f32.mrf.mxu0  ;;  %2640 = vmatmul.mubr.f32.gmra.mxu0 %v135_v12  ;;  %v3780_v29 = vpop.f32.mrf.mxu1  ;;  %2832 = vmatmul.mubr.f32.gmra.mxu1 %v263_v13 }
 0x114   :  { %2642 = vmatprep.mubr.f32.mxu0 %v136_v20  ;;  %2834 = vmatprep.mubr.f32.mxu1 %v264_v21  ;;  %v140_v20 = vld [vmem:[%s5178_s0 + $0x3f0] sm:$0xff] }
 0x115   :  { %v3788_v44 = vpop.f32.mrf.mxu0  ;;  %v3790_v45 = vpop.f32.mrf.mxu1  ;;  %v268_v21 = vld [vmem:[%s5178_s0 + $0x7f0] sm:$0xff] }
 0x117   :  { %v3798_v60 = vpop.f32.mrf.mxu0  ;;  %2643 = vmatmul.mubr.f32.gmra.mxu0 %v137_v36  ;;  %v3800_v61 = vpop.f32.mrf.mxu1  ;;  %2835 = vmatmul.mubr.f32.gmra.mxu1 %v265_v37 }
 0x118   :  { %5247 = vst [vmem:[#allocation2_spill] sm:$0xff] %v3798_v60  ;;  %5248 = vst [vmem:[#allocation3_spill] sm:$0xff] %v3800_v61  ;;  %2645 = vmatprep.mubr.f32.mxu0 %v138_v52  ;;  %2837 = vmatprep.mubr.f32.mxu1 %v266_v53  ;;  %v141_v52 = vld [vmem:[%s5178_s0 + $0x3f8] sm:$0xff] }
 0x119   :  { %v3808_v12 = vpop.f32.mrf.mxu0  ;;  %v3810_v13 = vpop.f32.mrf.mxu1  ;;  %v269_v53 = vld [vmem:[%s5178_s0 + $0x7f8] sm:$0xff] }
 0x11a   :  { %5249 = vst [vmem:[#allocation4_spill] sm:$0xff] %v3808_v12  ;;  %5250 = vst [vmem:[#allocation5_spill] sm:$0xff] %v3810_v13 }
 0x11b   :  { %v3818_v36 = vpop.f32.mrf.mxu0  ;;  %2646 = vmatmul.mubr.f32.gmra.mxu0 %v139_v4  ;;  %v3820_v37 = vpop.f32.mrf.mxu1  ;;  %2838 = vmatmul.mubr.f32.gmra.mxu1 %v267_v5 }
 0x11c   :  { %5251 = vst [vmem:[#allocation6_spill] sm:$0xff] %v3818_v36  ;;  %5252 = vst [vmem:[#allocation7_spill] sm:$0xff] %v3820_v37  ;;  %2648 = vmatprep.mubr.f32.mxu0 %v140_v20  ;;  %2840 = vmatprep.mubr.f32.mxu1 %v268_v21 }
 0x11d   :  { %v3828_v13 = vpop.f32.mrf.mxu0  ;;  %v3830_v12 = vpop.f32.mrf.mxu1 }
 0x11e   :  { %5253 = vst [vmem:[#allocation8_spill] sm:$0xff] %v3828_v13  ;;  %5254 = vst [vmem:[#allocation9_spill] sm:$0xff] %v3830_v12 }
 0x11f   :  { %v3832_v61 = vpop.f32.mrf.mxu0  ;;  %2649 = vmatmul.mubr.f32.gmra.mxu0 %v141_v52  ;;  %v3834_v4 = vpop.f32.mrf.mxu1  ;;  %2841 = vmatmul.mubr.f32.gmra.mxu1 %v269_v53 }
 0x120   :  { %5255 = vst [vmem:[#allocation10_spill] sm:$0xff] %v3834_v4 }
 0x121   :  { %v3836_v5 = vpop.f32.mrf.mxu0  ;;  %v3838_v20 = vpop.f32.mrf.mxu1 }
 0x122   :  { %5256 = vst [vmem:[#allocation11_spill] sm:$0xff] %v3836_v5  ;;  %5257 = vst [vmem:[#allocation12_spill] sm:$0xff] %v3838_v20 }
 0x123   :  { %v3840_v21 = vpop.f32.mrf.mxu0  ;;  %v3842_v37 = vpop.f32.mrf.mxu1 }
 0x124   :  { %5258 = vst [vmem:[#allocation13_spill] sm:$0xff] %v3840_v21  ;;  %5259 = vst [vmem:[#allocation14_spill] sm:$0xff] %v3842_v37 }
 0x125   :  { %v3844_v36 = vpop.f32.mrf.mxu0  ;;  %v3846_v60 = vpop.f32.mrf.mxu1 }
 0x126   :  { %5260 = vst [vmem:[#allocation15_spill] sm:$0xff] %v3844_v36 }
 0x127   :  { %v3848_v13 = vpop.f32.mrf.mxu0  ;;  %v3850_v12 = vpop.f32.mrf.mxu1 }
 0x128   :  { %5261 = vst [vmem:[#allocation16_spill] sm:$0xff] %v3850_v12  ;;  %v3871_v12 = vld [vmem:[%s5179_s2] ss:$0 sm:$0xff] }
 0x129   :  { %v3852_v52 = vpop.f32.mrf.mxu0  ;;  %v3854_v4 = vpop.f32.mrf.mxu1 }
 0x12a   :  { %5262 = vst [vmem:[#allocation17_spill] sm:$0xff] %v3852_v52  ;;  %5263 = vst [vmem:[#allocation18_spill] sm:$0xff] %v3854_v4 }
 0x12b   :  { %v3856_v53 = vpop.f32.mrf.mxu0  ;;  %v3858_v5 = vpop.f32.mrf.mxu1 }
 0x12c   :  { %5264 = vst [vmem:[#allocation19_spill] sm:$0xff] %v3856_v53  ;;  %5265 = vst [vmem:[#allocation20_spill] sm:$0xff] %v3858_v5 }
 0x12d   :  { %v3860_v20 = vpop.f32.mrf.mxu0  ;;  %v3862_v21 = vpop.f32.mrf.mxu1 }
 0x12e   :  { %5266 = vst [vmem:[#allocation21_spill] sm:$0xff] %v3860_v20  ;;  %5267 = vst [vmem:[#allocation22_spill] sm:$0xff] %v3862_v21  ;;  %v3883_v21 = vadd.f32 %v3538_v22, %v3871_v12  ;;  %v3903_v22 = vadd.f32 %v3558_v30, %v3871_v12 }
 0x12f   :  { %v3864_v37 = vpop.f32.mrf.mxu0  ;;  %v3866_v36 = vpop.f32.mrf.mxu1 }
 0x130   :  { %5268 = vst [vmem:[#allocation23_spill] sm:$0xff] %v3864_v37  ;;  %5269 = vst [vmem:[#allocation24_spill] sm:$0xff] %v3866_v36  ;;  %v3887_v36 = vadd.f32 %v3540_v23, %v3871_v12  ;;  %v3907_v23 = vadd.f32 %v3560_v31, %v3871_v12  ;;  %v3925_v31 = vadd.f32 %v3578_v38, %v3871_v12 }
 0x131   :  { %v3873_v52 = vpop.f32.mrf.mxu0  ;;  %v3875_v4 = vpop.f32.mrf.mxu1  ;;  %5273 = vst [vmem:[#allocation28_spill] sm:$0xff] %v3883_v21  ;;  %5278 = vst [vmem:[#allocation33_spill] sm:$0xff] %v3903_v22  ;;  %v4016_v22 = vadd.f32 %v3871_v12, %v3650_v3  ;;  %v4053_v3 = vadd.f32 %v3871_v12, %v3688_v18  ;;  %v4090_v18 = vadd.f32 %v3718_v40, %v3871_v12 }
 0x132   :  { %5270 = vst [vmem:[#allocation25_spill] sm:$0xff] %v3873_v52  ;;  %5274 = vst [vmem:[#allocation29_spill] sm:$0xff] %v3887_v36  ;;  %v3895_v52 = vadd.f32 %v3871_v12, %v3548_v26  ;;  %v3916_v26 = vadd.f32 %v3871_v12, %v3568_v34  ;;  %v4125_v40 = vadd.f32 %v3871_v12, %v3748_v0 }
 0x133   :  { %v3877_v53 = vpop.f32.mrf.mxu0  ;;  %v3879_v5 = vpop.f32.mrf.mxu1  ;;  %5279 = vst [vmem:[#allocation34_spill] sm:$0xff] %v3907_v23  ;;  %5281 = vst [vmem:[#allocation36_spill] sm:$0xff] %v3925_v31  ;;  %v4025_v23 = vadd.f32 %v3660_v7, %v3871_v12  ;;  %v4041_v7 = vadd.f32 %v3871_v12, %v3670_v11  ;;  %v4141_v0 = vadd.f32 %v3758_v8, %v3871_v12 }
 0x134   :  { %5271 = vst [vmem:[#allocation26_spill] sm:$0xff] %v3877_v53  ;;  %5272 = vst [vmem:[#allocation27_spill] sm:$0xff] %v3879_v5  ;;  %v3899_v53 = vadd.f32 %v3871_v12, %v3550_v27  ;;  %v3920_v27 = vadd.f32 %v3871_v12, %v3570_v35  ;;  %v3957_v35 = vadd.f32 %v3871_v12, %v3608_v50 }
 0x135   :  { %v3889_v37 = vpop.f32.mrf.mxu0  ;;  %v3891_v20 = vpop.f32.mrf.mxu1  ;;  %v3994_v50 = vadd.f32 %v3638_v62, %v3871_v12  ;;  %5291 = vst [vmem:[#allocation46_spill] sm:$0xff] %v4025_v23  ;;  %v4029_v62 = vadd.f32 %v3871_v12, %v3668_v10  ;;  %v4045_v10 = vadd.f32 %v3678_v14, %v3871_v12  ;;  %v4063_v14 = vadd.f32 %v3871_v12, %v3690_v19 }
 0x136   :  { %5275 = vst [vmem:[#allocation30_spill] sm:$0xff] %v3889_v37  ;;  %5276 = vst [vmem:[#allocation31_spill] sm:$0xff] %v3891_v20  ;;  %v3933_v20 = vadd.f32 %v3871_v12, %v3588_v42  ;;  %v3949_v42 = vadd.f32 %v3598_v46, %v3871_v12  ;;  %v3967_v46 = vadd.f32 %v3871_v12, %v3610_v51 }
 0x137   :  { %5277 = vst [vmem:[#allocation32_spill] sm:$0xff] %v3899_v53  ;;  %v3909_v5 = vpop.f32.mrf.mxu0  ;;  %v3911_v37 = vpop.f32.mrf.mxu1  ;;  %v3978_v53 = vadd.f32 %v3620_v55, %v3871_v12  ;;  %v3986_v51 = vadd.f32 %v3871_v12, %v3628_v58  ;;  %5288 = vst [vmem:[#allocation43_spill] sm:$0xff] %v3994_v50  ;;  %v3998_v55 = vadd.f32 %v3640_v63, %v3871_v12 }
 0x138   :  { %5280 = vst [vmem:[#allocation35_spill] sm:$0xff] %v3909_v5  ;;  %v3929_v5 = vadd.f32 %v3580_v39, %v3871_v12  ;;  %5283 = vst [vmem:[#allocation38_spill] sm:$0xff] %v3933_v20  ;;  %v3945_v39 = vadd.f32 %v3871_v12, %v3590_v43  ;;  %v4012_v63 = vadd.f32 %v3871_v12, %v3648_v2 }
 0x139   :  { %v3935_v34 = vpop.f32.mrf.mxu0  ;;  %v3937_v21 = vpop.f32.mrf.mxu1  ;;  %5286 = vst [vmem:[#allocation41_spill] sm:$0xff] %v3978_v53  ;;  %5289 = vst [vmem:[#allocation44_spill] sm:$0xff] %v3998_v55  ;;  %v4021_v58 = vadd.f32 %v3658_v6, %v3871_v12  ;;  %v4082_v19 = vadd.f32 %v3871_v12, %v3708_v32  ;;  %v4112_v50 = vadd.f32 %v3871_v12, %v3730_v49 }
 0x13a   :  { %5282 = vst [vmem:[#allocation37_spill] sm:$0xff] %v3929_v5  ;;  %5284 = vst [vmem:[#allocation39_spill] sm:$0xff] %v3935_v34  ;;  %v3953_v34 = vadd.f32 %v3600_v47, %v3871_v12  ;;  %v3971_v47 = vadd.f32 %v3618_v54, %v3871_v12  ;;  %v3990_v54 = vadd.f32 %v3871_v12, %v3630_v59 }
 0x13b   :  { %v3959_v30 = vpop.f32.mrf.mxu0  ;;  %v3961_v36 = vpop.f32.mrf.mxu1  ;;  %5290 = vst [vmem:[#allocation45_spill] sm:$0xff] %v4021_v58  ;;  %5292 = vst [vmem:[#allocation47_spill] sm:$0xff] %v4029_v62  ;;  %v4117_v32 = vadd.f32 %v3738_v56, %v3871_v12  ;;  %v4121_v55 = vadd.f32 %v3740_v57, %v3871_v12  ;;  %v4137_v57 = vadd.f32 %v3871_v12, %v3750_v1 }
 0x13c   :  { %5285 = vst [vmem:[#allocation40_spill] sm:$0xff] %v3971_v47  ;;  %5287 = vst [vmem:[#allocation42_spill] sm:$0xff] %v3990_v54  ;;  %v4049_v47 = vadd.f32 %v3680_v15, %v3871_v12  ;;  %v4067_v15 = vadd.f32 %v3698_v24, %v3871_v12  ;;  %v4074_v54 = vadd.f32 %v3700_v25, %v3871_v12 }
 0x13d   :  { %v3980_v38 = vpop.f32.mrf.mxu0  ;;  %v3982_v43 = vpop.f32.mrf.mxu1  ;;  %v4086_v24 = vadd.f32 %v3871_v12, %v3710_v33  ;;  %5296 = vst [vmem:[#allocation51_spill] sm:$0xff] %v4090_v18  ;;  %v4094_v25 = vadd.f32 %v3720_v41, %v3871_v12  ;;  %v4108_v41 = vadd.f32 %v3871_v12, %v3728_v48  ;;  %5299 = vst [vmem:[#allocation54_spill] sm:$0xff] %v4112_v50  ;;  %v5313_v18 = vld [vmem:[#allocation3_spill] sm:$0xff]  ;;  %v5317_v50 = vld [vmem:[#allocation4_spill] sm:$0xff] }
 0x13e   :  { %5293 = vst [vmem:[#allocation48_spill] sm:$0xff] %v4067_v15  ;;  %5294 = vst [vmem:[#allocation49_spill] sm:$0xff] %v4074_v54  ;;  %v4145_v15 = vadd.f32 %v3760_v9, %v3871_v12  ;;  %v4149_v49 = vadd.f32 %v3871_v12, %v3768_v16  ;;  %v4159_v8 = vadd.f32 %v3871_v12, %v3770_v17  ;;  %v5311_v16 = vld [vmem:[#allocation2_spill] sm:$0xff] }
 0x13f   :  { %v4004_v5 = vpop.f32.mrf.mxu0  ;;  %v4006_v59 = vpop.f32.mrf.mxu1  ;;  %5295 = vst [vmem:[#allocation50_spill] sm:$0xff] %v4086_v24  ;;  %5297 = vst [vmem:[#allocation52_spill] sm:$0xff] %v4094_v25  ;;  %v4163_v9 = vadd.f32 %v3778_v28, %v3871_v12  ;;  %v4170_v24 = vadd.f32 %v3780_v29, %v3871_v12  ;;  %v4178_v17 = vadd.f32 %v3871_v12, %v3788_v44  ;;  %v5321_v44 = vld [vmem:[#allocation6_spill] sm:$0xff] }
 0x140   :  { %5298 = vst [vmem:[#allocation53_spill] sm:$0xff] %v4108_v41  ;;  %5300 = vst [vmem:[#allocation55_spill] sm:$0xff] %v4117_v32  ;;  %v4182_v28 = vadd.f32 %v3871_v12, %v3790_v45  ;;  %v4186_v25 = vadd.f32 %v5311_v16, %v3871_v12  ;;  %v4190_v29 = vadd.f32 %v5313_v18, %v3871_v12  ;;  %v5319_v41 = vld [vmem:[#allocation5_spill] sm:$0xff]  ;;  %v5325_v32 = vld [vmem:[#allocation8_spill] sm:$0xff] }
 0x141   :  { %v4031_v2 = vpop.f32.mrf.mxu0  ;;  %v4033_v31 = vpop.f32.mrf.mxu1  ;;  %5301 = vst [vmem:[#allocation56_spill] sm:$0xff] %v4121_v55  ;;  %5302 = vst [vmem:[#allocation57_spill] sm:$0xff] %v4125_v40  ;;  %v4204_v18 = vadd.f32 %v3871_v12, %v5317_v50  ;;  %v4208_v40 = vadd.f32 %v3871_v12, %v5319_v41  ;;  %v4221_v16 = vadd.f32 %v3871_v12, %v5325_v32 }
 0x142   :  { %5303 = vst [vmem:[#allocation58_spill] sm:$0xff] %v4149_v49  ;;  %5304 = vst [vmem:[#allocation59_spill] sm:$0xff] %v4159_v8  ;;  %v5329_v8 = vld [vmem:[#allocation9_spill] sm:$0xff]  ;;  %v4237_v32 = vadd.f32 %v3832_v61, %v3871_v12 }
 0x143   :  { %v4055_v20 = vpop.f32.mrf.mxu0  ;;  %v4057_v53 = vpop.f32.mrf.mxu1  ;;  %5305 = vst [vmem:[#allocation60_spill] sm:$0xff] %v4163_v9  ;;  %5306 = vst [vmem:[#allocation61_spill] sm:$0xff] %v4170_v24 }
 0x144   :  { %5309 = vst [vmem:[#allocation64_spill] sm:$0xff] %v4178_v17  ;;  %5310 = vst [vmem:[#allocation65_spill] sm:$0xff] %v4182_v28 }
 0x145   :  { %v4076_v6 = vpop.f32.mrf.mxu0  ;;  %v4078_v11 = vpop.f32.mrf.mxu1  ;;  %5312 = vst [vmem:[#allocation2_spill] sm:$0xff] %v4186_v25  ;;  %5314 = vst [vmem:[#allocation3_spill] sm:$0xff] %v4190_v29  ;;  %v5336_v29 = vld [vmem:[#allocation12_spill] sm:$0xff]  ;;  %v5338_v25 = vld [vmem:[#allocation13_spill] sm:$0xff] }
 0x146   :  { %5318 = vst [vmem:[#allocation4_spill] sm:$0xff] %v4204_v18  ;;  %5320 = vst [vmem:[#allocation5_spill] sm:$0xff] %v4208_v40  ;;  %v4255_v61 = vadd.f32 %v3871_v12, %v5336_v29  ;;  %v5344_v29 = vld [vmem:[#allocation15_spill] sm:$0xff]  ;;  %v5353_v18 = vld [vmem:[#allocation18_spill] sm:$0xff] }
 0x147   :  { %v4100_v23 = vpop.f32.mrf.mxu0  ;;  %v4102_v33 = vpop.f32.mrf.mxu1  ;;  %5326 = vst [vmem:[#allocation8_spill] sm:$0xff] %v4221_v16  ;;  %v4274_v40 = vadd.f32 %v3871_v12, %v5344_v29  ;;  %v4304_v28 = vadd.f32 %v3871_v12, %v5353_v18  ;;  %v5355_v29 = vld [vmem:[#allocation19_spill] sm:$0xff] }
 0x148   :  { %5337 = vst [vmem:[#allocation12_spill] sm:$0xff] %v4255_v61  ;;  %v5363_v61 = vld [vmem:[#allocation22_spill] sm:$0xff] }
 0x149   :  { %v4127_v48 = vpop.f32.mrf.mxu0  ;;  %v4129_v58 = vpop.f32.mrf.mxu1  ;;  %5354 = vst [vmem:[#allocation18_spill] sm:$0xff] %v4304_v28 }
 0x14b   :  { %v4151_v62 = vpop.f32.mrf.mxu0  ;;  %v4153_v54 = vpop.f32.mrf.mxu1 }
 0x14d   :  { %v4172_v56 = vpop.f32.mrf.mxu0  ;;  %v4174_v1 = vpop.f32.mrf.mxu1 }
 0x14e   :  { %5307 = vst [vmem:[#allocation62_spill] sm:$0xff] %v4172_v56  ;;  %5308 = vst [vmem:[#allocation63_spill] sm:$0xff] %v4174_v1  ;;  %v4213_v1 = vadd.f32 %v5321_v44, %v3871_v12 }
 0x14f   :  { %v4196_v55 = vpop.f32.mrf.mxu0  ;;  %v4198_v45 = vpop.f32.mrf.mxu1 }
 0x150   :  { %5315 = vst [vmem:[#allocation66_spill] sm:$0xff] %v4196_v55  ;;  %5316 = vst [vmem:[#allocation67_spill] sm:$0xff] %v4198_v45  ;;  %v5323_v45 = vld [vmem:[#allocation7_spill] sm:$0xff] }
 0x151   :  { %5322 = vst [vmem:[#allocation6_spill] sm:$0xff] %v4213_v1  ;;  %v4217_v55 = vadd.f32 %v5323_v45, %v3871_v12  ;;  %v4223_v50 = vpop.f32.mrf.mxu0  ;;  %v4225_v9 = vpop.f32.mrf.mxu1  ;;  %v4233_v45 = vadd.f32 %v3871_v12, %v5329_v8  ;;  %v5351_v1 = vld [vmem:[#allocation17_spill] sm:$0xff] }
 0x152   :  { %5327 = vst [vmem:[#allocation68_spill] sm:$0xff] %v4223_v50  ;;  %5328 = vst [vmem:[#allocation69_spill] sm:$0xff] %v4225_v9  ;;  %v5330_v50 = vld [vmem:[#allocation10_spill] sm:$0xff]  ;;  %v5332_v9 = vld [vmem:[#allocation11_spill] sm:$0xff] }
 0x153   :  { %5324 = vst [vmem:[#allocation7_spill] sm:$0xff] %v4217_v55  ;;  %v4241_v49 = vadd.f32 %v5330_v50, %v3871_v12  ;;  %v4245_v41 = vadd.f32 %v3871_v12, %v5332_v9  ;;  %v4247_v56 = vpop.f32.mrf.mxu0  ;;  %v4249_v24 = vpop.f32.mrf.mxu1  ;;  %v4259_v50 = vadd.f32 %v5338_v25, %v3871_v12  ;;  %v4278_v25 = vadd.f32 %v3871_v12, %v3846_v60  ;;  %v5359_v55 = vld [vmem:[#allocation21_spill] sm:$0xff] }
 0x154   :  { %5334 = vst [vmem:[#allocation11_spill] sm:$0xff] %v4247_v56  ;;  %5335 = vst [vmem:[#allocation70_spill] sm:$0xff] %v4249_v24  ;;  %v5340_v24 = vld [vmem:[#allocation14_spill] sm:$0xff]  ;;  %v4282_v9 = vadd.f32 %v3848_v13, %v3871_v12  ;;  %v5347_v56 = vld [vmem:[#allocation16_spill] sm:$0xff]  ;;  %v4317_v13 = vadd.f32 %v3871_v12, %v5359_v55 }
 0x155   :  { %5331 = vst [vmem:[#allocation9_spill] sm:$0xff] %v4241_v49  ;;  %5333 = vst [vmem:[#allocation10_spill] sm:$0xff] %v4245_v41  ;;  %v4266_v17 = vadd.f32 %v5340_v24, %v3871_v12  ;;  %v4268_v44 = vpop.f32.mrf.mxu0  ;;  %v4270_v8 = vpop.f32.mrf.mxu1  ;;  %v4286_v24 = vadd.f32 %v5347_v56, %v3871_v12  ;;  %v4300_v56 = vadd.f32 %v3871_v12, %v5351_v1  ;;  %v5364_v41 = vld [vmem:[#allocation23_spill] sm:$0xff] }
 0x156   :  { %5339 = vst [vmem:[#allocation13_spill] sm:$0xff] %v4259_v50  ;;  %5342 = vst [vmem:[#allocation71_spill] sm:$0xff] %v4268_v44  ;;  %v4333_v55 = vadd.f32 %v5364_v41, %v3871_v12  ;;  %v4351_v41 = vadd.f32 %v3871_v12, %v3875_v4  ;;  %v5374_v4 = vld [vmem:[#allocation30_spill] sm:$0xff] }
 0x157   :  { %5341 = vst [vmem:[#allocation14_spill] sm:$0xff] %v4266_v17  ;;  %5343 = vst [vmem:[#allocation72_spill] sm:$0xff] %v4270_v8  ;;  %v4292_v16 = vpop.f32.mrf.mxu0  ;;  %v4294_v60 = vpop.f32.mrf.mxu1  ;;  %v4309_v8 = vadd.f32 %v5355_v29, %v3871_v12  ;;  %v4370_v28 = vadd.f32 %v3871_v12, %v5374_v4  ;;  %v4405_v4 = vadd.f32 %v3959_v30, %v3871_v12 }
 0x158   :  { %5345 = vst [vmem:[#allocation15_spill] sm:$0xff] %v4278_v25  ;;  %5346 = vst [vmem:[#allocation73_spill] sm:$0xff] %v4282_v9 }
 0x159   :  { %5348 = vst [vmem:[#allocation16_spill] sm:$0xff] %v4286_v24  ;;  %5349 = vst [vmem:[#allocation74_spill] sm:$0xff] %v4292_v16  ;;  %v4319_v1 = vpop.f32.mrf.mxu0  ;;  %v4321_v50 = vpop.f32.mrf.mxu1  ;;  %v5369_v24 = vld [vmem:[#allocation26_spill] sm:$0xff] }
 0x15a   :  { %5350 = vst [vmem:[#allocation75_spill] sm:$0xff] %v4294_v60  ;;  %5352 = vst [vmem:[#allocation17_spill] sm:$0xff] %v4300_v56  ;;  %v5357_v60 = vld [vmem:[#allocation20_spill] sm:$0xff] }
 0x15b   :  { %5356 = vst [vmem:[#allocation19_spill] sm:$0xff] %v4309_v8  ;;  %v4313_v16 = vadd.f32 %v5357_v60, %v3871_v12  ;;  %5360 = vst [vmem:[#allocation21_spill] sm:$0xff] %v4317_v13  ;;  %v4329_v60 = vadd.f32 %v3871_v12, %v5363_v61  ;;  %v4343_v44 = vpop.f32.mrf.mxu0  ;;  %v4345_v17 = vpop.f32.mrf.mxu1  ;;  %v5383_v8 = vld [vmem:[#allocation39_spill] sm:$0xff] }
 0x15c   :  { %5361 = vst [vmem:[#allocation76_spill] sm:$0xff] %v4319_v1  ;;  %5362 = vst [vmem:[#allocation77_spill] sm:$0xff] %v4321_v50  ;;  %v5365_v1 = vld [vmem:[#allocation24_spill] sm:$0xff]  ;;  %v5366_v50 = vld [vmem:[#allocation25_spill] sm:$0xff] }
 0x15d   :  { %5358 = vst [vmem:[#allocation20_spill] sm:$0xff] %v4313_v16  ;;  %v4337_v49 = vadd.f32 %v5365_v1, %v3871_v12  ;;  %v4341_v18 = vadd.f32 %v3871_v12, %v5366_v50  ;;  %5367 = vst [vmem:[#allocation22_spill] sm:$0xff] %v4343_v44  ;;  %v4355_v1 = vadd.f32 %v5369_v24, %v3871_v12  ;;  %v4364_v29 = vpop.f32.mrf.mxu0  ;;  %v4366_v61 = vpop.f32.mrf.mxu1  ;;  %v5376_v24 = vld [vmem:[#allocation31_spill] sm:$0xff] }
 0x15e   :  { %5368 = vst [vmem:[#allocation23_spill] sm:$0xff] %v4345_v17  ;;  %v5370_v17 = vld [vmem:[#allocation27_spill] sm:$0xff]  ;;  %5372 = vst [vmem:[#allocation25_spill] sm:$0xff] %v4364_v29  ;;  %v4374_v56 = vadd.f32 %v3871_v12, %v5376_v24  ;;  %v4400_v44 = vadd.f32 %v3871_v12, %v3937_v21  ;;  %v4437_v21 = vadd.f32 %v3871_v12, %v4031_v2 }
 0x15f   :  { %v4362_v25 = vadd.f32 %v5370_v17, %v3871_v12  ;;  %5373 = vst [vmem:[#allocation26_spill] sm:$0xff] %v4366_v61  ;;  %5375 = vst [vmem:[#allocation27_spill] sm:$0xff] %v4370_v28  ;;  %v5378_v50 = vld [vmem:[#allocation35_spill] sm:$0xff]  ;;  %v4382_v17 = vadd.f32 %v3911_v37, %v3871_v12  ;;  %v4388_v13 = vpop.f32.mrf.mxu0  ;;  %v4390_v24 = vpop.f32.mrf.mxu1  ;;  %v4396_v37 = vadd.f32 %v3871_v12, %v5383_v8 }
 0x160   :  { %5377 = vst [vmem:[#allocation30_spill] sm:$0xff] %v4374_v56  ;;  %v4378_v9 = vadd.f32 %v5378_v50, %v3871_v12  ;;  %5381 = vst [vmem:[#allocation78_spill] sm:$0xff] %v4388_v13  ;;  %v4409_v61 = vadd.f32 %v3961_v36, %v3871_v12  ;;  %v4413_v50 = vadd.f32 %v3871_v12, %v3980_v38 }
 0x161   :  { %5371 = vst [vmem:[#allocation24_spill] sm:$0xff] %v4362_v25  ;;  %5380 = vst [vmem:[#allocation35_spill] sm:$0xff] %v4382_v17  ;;  %v4415_v8 = vpop.f32.mrf.mxu0  ;;  %v4417_v16 = vpop.f32.mrf.mxu1  ;;  %v4425_v36 = vadd.f32 %v3871_v12, %v3982_v43  ;;  %v4429_v38 = vadd.f32 %v4004_v5, %v3871_v12  ;;  %v4448_v2 = vadd.f32 %v3871_v12, %v4033_v31  ;;  %v5394_v31 = vld [vmem:[#allocation28_spill] sm:$0xff] }
 0x162   :  { %5379 = vst [vmem:[#allocation31_spill] sm:$0xff] %v4378_v9  ;;  %5382 = vst [vmem:[#allocation79_spill] sm:$0xff] %v4390_v24 }
 0x163   :  { %5384 = vst [vmem:[#allocation39_spill] sm:$0xff] %v4396_v37  ;;  %5385 = vst [vmem:[#allocation80_spill] sm:$0xff] %v4400_v44  ;;  %v2557_v29 = vpop.f32.mrf.mxu0  ;;  %v2749_v24 = vpop.f32.mrf.mxu1  ;;  %v5396_v37 = vld [vmem:[#allocation29_spill] sm:$0xff] }
 0x164   :  { %5386 = vst [vmem:[#allocation81_spill] sm:$0xff] %v4405_v4  ;;  %5387 = vst [vmem:[#allocation82_spill] sm:$0xff] %v4409_v61  ;;  %v685_v43 = vadd.f32 %v2557_v29, %v3871_v12  ;;  %v1325_v13 = vadd.f32 %v2749_v24, %v3871_v12  ;;  %v5395_v4 = vmax.f32 %v5394_v31, 0.0  ;;  %v4463_v24 = vadd.f32 %v4055_v20, %v3871_v12 }
 0x165   :  { %5388 = vst [vmem:[#allocation83_spill] sm:$0xff] %v4413_v50  ;;  %5389 = vst [vmem:[#allocation84_spill] sm:$0xff] %v4415_v8  ;;  %v4433_v8 = vadd.f32 %v4006_v59, %v3871_v12  ;;  %v679_v9 = vpop.f32.mrf.mxu0  ;;  %v1319_v56 = vpop.f32.mrf.mxu1  ;;  %v4474_v31 = vadd.f32 %v4057_v53, %v3871_v12  ;;  %v5402_v53 = vld [vmem:[#allocation33_spill] sm:$0xff] }
 0x166   :  { %5390 = vst [vmem:[#allocation85_spill] sm:$0xff] %v4417_v16  ;;  %5392 = vst [vmem:[#allocation87_spill] sm:$0xff] %v4437_v21  ;;  %v1703_v28 = vmax.f32 %v685_v43, 0.0  ;;  %v1831_v30 = vmax.f32 %v1325_v13, 0.0  ;;  %v680_v16 = vadd.f32 %v3871_v12, %v679_v9  ;;  %v1320_v29 = vadd.f32 %v3871_v12, %v1319_v56 }
 0x167   :  { %5391 = vst [vmem:[#allocation86_spill] sm:$0xff] %v4433_v8  ;;  %5393 = vst [vmem:[#allocation88_spill] sm:$0xff] %v4448_v2  ;;  %v2560_v50 = vpop.f32.mrf.mxu0  ;;  %v2752_v61 = vpop.f32.mrf.mxu1  ;;  %v5397_v43 = vmax.f32 %v5396_v37, 0.0  ;;  %v5400_v37 = vld [vmem:[#allocation32_spill] sm:$0xff] }
 0x168   :  { %v1895_v44 = vmax.f32 %v5395_v4, %v1703_v28  ;;  %v1702_v25 = vmax.f32 %v680_v16, 0.0  ;;  %v1830_v9 = vmax.f32 %v1320_v29, 0.0  ;;  %5398 = vst [vmem:[#allocation28_spill] sm:$0xff] %v4463_v24  ;;  %v695_v17 = vadd.f32 %v2560_v50, %v3871_v12  ;;  %v5410_v24 = vld [vmem:[#allocation37_spill] sm:$0xff] }
 0x169   :  { %v1959_v13 = vmax.f32 %v5397_v43, %v1831_v30  ;;  %v1335_v59 = vadd.f32 %v2752_v61, %v3871_v12  ;;  %v689_v5 = vpop.f32.mrf.mxu0  ;;  %v1329_v21 = vpop.f32.mrf.mxu1  ;;  %v5399_v28 = vmax.f32 %v3895_v52, 0.0  ;;  %v5401_v30 = vmax.f32 %v5400_v37, 0.0 }
 0x16a   :  { %v690_v29 = vadd.f32 %v3871_v12, %v689_v5  ;;  %v1705_v20 = vmax.f32 %v695_v17, 0.0  ;;  %v1330_v50 = vadd.f32 %v3871_v12, %v1329_v21 }
 0x16b   :  { %v2023_v8 = vmax.f32 %v1895_v44, %v1959_v13  ;;  %v1894_v4 = vmax.f32 %v5399_v28, %v1702_v25  ;;  %v1958_v16 = vmax.f32 %v5401_v30, %v1830_v9  ;;  %v1833_v43 = vmax.f32 %v1335_v59, 0.0  ;;  %v2563_v61 = vpop.f32.mrf.mxu0  ;;  %v2755_v56 = vpop.f32.mrf.mxu1  ;;  %v5404_v59 = vld [vmem:[#allocation34_spill] sm:$0xff] }
 0x16c   :  { %v1704_v44 = vmax.f32 %v690_v29, 0.0  ;;  %v705_v25 = vadd.f32 %v2563_v61, %v3871_v12  ;;  %v1345_v5 = vadd.f32 %v2755_v56, %v3871_v12  ;;  %v5403_v9 = vmax.f32 %v5402_v53, 0.0 }
 0x16d   :  { %2087 = vst [vmem:[%s5180_s3 + $0x8] sm:$0xff] %v2023_v8  ;;  %v2022_v52 = vmax.f32 %v1894_v4, %v1958_v16  ;;  %v5405_v28 = vmax.f32 %v5404_v59, 0.0  ;;  %v1832_v37 = vmax.f32 %v1330_v50, 0.0  ;;  %v699_v30 = vpop.f32.mrf.mxu0  ;;  %v1339_v2 = vpop.f32.mrf.mxu1  ;;  %v5406_v8 = vmax.f32 %v3916_v26, 0.0 }
 0x16e   :  { %v1897_v17 = vmax.f32 %v5403_v9, %v1705_v20  ;;  %v1707_v16 = vmax.f32 %v705_v25, 0.0  ;;  %v1835_v56 = vmax.f32 %v1345_v5, 0.0  ;;  %v700_v29 = vadd.f32 %v3871_v12, %v699_v30 }
 0x16f   :  { %v1961_v21 = vmax.f32 %v5405_v28, %v1833_v43  ;;  %2086 = vst [vmem:[%s5180_s3] sm:$0xff] %v2022_v52  ;;  %v1896_v4 = vmax.f32 %v5406_v8, %v1704_v44  ;;  %v1815_v61 = vmax.f32 %v4474_v31, 0.0  ;;  %v5407_v53 = vmax.f32 %v3920_v27, 0.0  ;;  %v2566_v9 = vpop.f32.mrf.mxu0  ;;  %v2758_v59 = vpop.f32.mrf.mxu1  ;;  %v5408_v28 = vld [vmem:[#allocation36_spill] sm:$0xff] }
 0x170   :  { %v1340_v50 = vadd.f32 %v3871_v12, %v1339_v2  ;;  %v5409_v13 = vmax.f32 %v5408_v28, 0.0  ;;  %v5411_v26 = vmax.f32 %v5410_v24, 0.0  ;;  %v1706_v25 = vmax.f32 %v700_v29, 0.0  ;;  %v5412_v24 = vld [vmem:[#allocation38_spill] sm:$0xff] }
 0x171   :  { %v2025_v20 = vmax.f32 %v1897_v17, %v1961_v21  ;;  %v1960_v43 = vmax.f32 %v5407_v53, %v1832_v37  ;;  %v715_v5 = vadd.f32 %v2566_v9, %v3871_v12  ;;  %v4504_v30 = vadd.f32 %v3871_v12, %v4076_v6  ;;  %v709_v21 = vpop.f32.mrf.mxu0 }
 0x172   :  { %v1899_v52 = vmax.f32 %v5409_v13, %v1707_v16  ;;  %v1963_v44 = vmax.f32 %v5411_v26, %v1835_v56  ;;  %v1834_v2 = vmax.f32 %v1340_v50, 0.0  ;;  %v1355_v17 = vadd.f32 %v2758_v59, %v3871_v12  ;;  %v1349_v13 = vpop.f32.mrf.mxu1 }
 0x173   :  { %2089 = vst [vmem:[%s5180_s3 + $0x18] sm:$0xff] %v2025_v20  ;;  %v2024_v27 = vmax.f32 %v1896_v4, %v1960_v43  ;;  %v5413_v8 = vmax.f32 %v5412_v24, 0.0  ;;  %v1709_v56 = vmax.f32 %v715_v5, 0.0  ;;  %v710_v29 = vadd.f32 %v3871_v12, %v709_v21  ;;  %v2569_v50 = vpop.f32.mrf.mxu0 }
 0x174   :  { %v2027_v37 = vmax.f32 %v1899_v52, %v1963_v44  ;;  %v4515_v6 = vadd.f32 %v3871_v12, %v4078_v11  ;;  %v5414_v4 = vmax.f32 %v3945_v39, 0.0  ;;  %v1837_v53 = vmax.f32 %v1355_v17, 0.0  ;;  %v2761_v9 = vpop.f32.mrf.mxu1 }
 0x175   :  { %v1898_v16 = vmax.f32 %v5413_v8, %v1706_v25  ;;  %2088 = vst [vmem:[%s5180_s3 + $0x10] sm:$0xff] %v2024_v27  ;;  %v1350_v43 = vadd.f32 %v3871_v12, %v1349_v13  ;;  %v5415_v59 = vmax.f32 %v3949_v42, 0.0  ;;  %v1708_v28 = vmax.f32 %v710_v29, 0.0 }
 0x176   :  { %v1962_v20 = vmax.f32 %v5414_v4, %v1834_v2  ;;  %2091 = vst [vmem:[%s5180_s3 + $0x28] sm:$0xff] %v2027_v37  ;;  %v725_v52 = vadd.f32 %v2569_v50, %v3871_v12  ;;  %v1365_v26 = vadd.f32 %v2761_v9, %v3871_v12  ;;  %v1686_v39 = vmax.f32 %v4504_v30, 0.0  ;;  %v719_v2 = vpop.f32.mrf.mxu0  ;;  %v1359_v17 = vpop.f32.mrf.mxu1  ;;  %v5421_v50 = vld [vmem:[#allocation41_spill] sm:$0xff] }
 0x177   :  { %v1901_v11 = vmax.f32 %v5415_v59, %v1709_v56  ;;  %v5416_v25 = vmax.f32 %v3953_v34, 0.0  ;;  %v1836_v27 = vmax.f32 %v1350_v43, 0.0  ;;  %v5417_v21 = vmax.f32 %v3957_v35, 0.0  ;;  %v5419_v35 = vld [vmem:[#allocation40_spill] sm:$0xff] }
 0x178   :  { %v2026_v44 = vmax.f32 %v1898_v16, %v1962_v20  ;;  %v1711_v37 = vmax.f32 %v725_v52, 0.0  ;;  %v1839_v42 = vmax.f32 %v1365_v26, 0.0  ;;  %v720_v24 = vadd.f32 %v3871_v12, %v719_v2  ;;  %v2572_v4 = vpop.f32.mrf.mxu0  ;;  %v2764_v20 = vpop.f32.mrf.mxu1 }
 0x179   :  { %v1965_v5 = vmax.f32 %v5416_v25, %v1837_v53  ;;  %v1900_v13 = vmax.f32 %v5417_v21, %v1708_v28  ;;  %v1814_v8 = vmax.f32 %v4515_v6, 0.0  ;;  %v5418_v34 = vmax.f32 %v3967_v46, 0.0 }
 0x17a   :  { %2090 = vst [vmem:[%s5180_s3 + $0x20] sm:$0xff] %v2026_v44  ;;  %v1360_v29 = vadd.f32 %v3871_v12, %v1359_v17  ;;  %v5420_v53 = vmax.f32 %v5419_v35, 0.0  ;;  %v5422_v9 = vmax.f32 %v5421_v50, 0.0  ;;  %v1710_v28 = vmax.f32 %v720_v24, 0.0  ;;  %v729_v25 = vpop.f32.mrf.mxu0 }
 0x17b   :  { %v2029_v16 = vmax.f32 %v1901_v11, %v1965_v5  ;;  %v1964_v56 = vmax.f32 %v5418_v34, %v1836_v27  ;;  %v735_v52 = vadd.f32 %v2572_v4, %v3871_v12  ;;  %v4550_v26 = vadd.f32 %v4100_v23, %v3871_v12  ;;  %v1369_v5 = vpop.f32.mrf.mxu1 }
 0x17c   :  { %v1903_v43 = vmax.f32 %v5420_v53, %v1711_v37  ;;  %v1967_v59 = vmax.f32 %v5422_v9, %v1839_v42  ;;  %v1838_v11 = vmax.f32 %v1360_v29, 0.0  ;;  %v1375_v44 = vadd.f32 %v2764_v20, %v3871_v12  ;;  %v5426_v29 = vld [vmem:[#allocation43_spill] sm:$0xff]  ;;  %v5428_v9 = vld [vmem:[#allocation44_spill] sm:$0xff] }
 0x17d   :  { %2093 = vst [vmem:[%s5180_s3 + $0x38] sm:$0xff] %v2029_v16  ;;  %v2028_v46 = vmax.f32 %v1900_v13, %v1964_v56  ;;  %v5423_v2 = vmax.f32 %v3986_v51, 0.0  ;;  %v1713_v21 = vmax.f32 %v735_v52, 0.0  ;;  %v730_v37 = vadd.f32 %v3871_v12, %v729_v25  ;;  %v5424_v13 = vld [vmem:[#allocation42_spill] sm:$0xff]  ;;  %v2575_v56 = vpop.f32.mrf.mxu0  ;;  %v2767_v51 = vpop.f32.mrf.mxu1 }
 0x17e   :  { %v2031_v27 = vmax.f32 %v1903_v43, %v1967_v59  ;;  %v4561_v23 = vadd.f32 %v4102_v33, %v3871_v12  ;;  %v5425_v42 = vmax.f32 %v5424_v13, 0.0  ;;  %v1841_v16 = vmax.f32 %v1375_v44, 0.0 }
 0x17f   :  { %v1902_v17 = vmax.f32 %v5423_v2, %v1710_v28  ;;  %2092 = vst [vmem:[%s5180_s3 + $0x30] sm:$0xff] %v2028_v46  ;;  %v1370_v34 = vadd.f32 %v3871_v12, %v1369_v5  ;;  %v5427_v4 = vmax.f32 %v5426_v29, 0.0  ;;  %v1712_v20 = vmax.f32 %v730_v37, 0.0  ;;  %v739_v46 = vpop.f32.mrf.mxu0 }
 0x180   :  { %v1966_v24 = vmax.f32 %v5425_v42, %v1838_v11  ;;  %2095 = vst [vmem:[%s5180_s3 + $0x48] sm:$0xff] %v2031_v27  ;;  %v745_v35 = vadd.f32 %v2575_v56, %v3871_v12  ;;  %v1385_v53 = vadd.f32 %v2767_v51, %v3871_v12  ;;  %v1689_v43 = vmax.f32 %v4550_v26, 0.0  ;;  %v1379_v11 = vpop.f32.mrf.mxu1  ;;  %v5434_v51 = vld [vmem:[#allocation46_spill] sm:$0xff] }
 0x181   :  { %v1905_v33 = vmax.f32 %v5427_v4, %v1713_v21  ;;  %v5429_v59 = vmax.f32 %v5428_v9, 0.0  ;;  %v1840_v52 = vmax.f32 %v1370_v34, 0.0  ;;  %v5430_v44 = vmax.f32 %v4012_v63, 0.0  ;;  %v5432_v63 = vld [vmem:[#allocation45_spill] sm:$0xff] }
 0x182   :  { %v2030_v50 = vmax.f32 %v1902_v17, %v1966_v24  ;;  %v1715_v5 = vmax.f32 %v745_v35, 0.0  ;;  %v1843_v27 = vmax.f32 %v1385_v53, 0.0  ;;  %v740_v2 = vadd.f32 %v3871_v12, %v739_v46  ;;  %v2578_v24 = vpop.f32.mrf.mxu0 }
 0x183   :  { %v1969_v28 = vmax.f32 %v5429_v59, %v1841_v16  ;;  %v1904_v25 = vmax.f32 %v5430_v44, %v1712_v20  ;;  %v1817_v21 = vmax.f32 %v4561_v23, 0.0  ;;  %v5431_v37 = vmax.f32 %v4016_v22, 0.0  ;;  %v2770_v16 = vpop.f32.mrf.mxu1 }
 0x184   :  { %2094 = vst [vmem:[%s5180_s3 + $0x40] sm:$0xff] %v2030_v50  ;;  %v1380_v42 = vadd.f32 %v3871_v12, %v1379_v11  ;;  %v5433_v34 = vmax.f32 %v5432_v63, 0.0  ;;  %v5435_v29 = vmax.f32 %v5434_v51, 0.0  ;;  %v1714_v20 = vmax.f32 %v740_v2, 0.0  ;;  %v749_v9 = vpop.f32.mrf.mxu0 }
 0x185   :  { %v2033_v17 = vmax.f32 %v1905_v33, %v1969_v28  ;;  %v1968_v13 = vmax.f32 %v5431_v37, %v1840_v52  ;;  %v755_v35 = vadd.f32 %v2578_v24, %v3871_v12  ;;  %v4596_v53 = vadd.f32 %v3871_v12, %v4127_v48  ;;  %v1389_v59 = vpop.f32.mrf.mxu1  ;;  %v5436_v52 = vld [vmem:[#allocation47_spill] sm:$0xff] }
 0x186   :  { %v1907_v56 = vmax.f32 %v5433_v34, %v1715_v5  ;;  %v1971_v4 = vmax.f32 %v5435_v29, %v1843_v27  ;;  %v1842_v33 = vmax.f32 %v1380_v42, 0.0  ;;  %v1395_v50 = vadd.f32 %v2770_v16, %v3871_v12  ;;  %v2581_v37 = vpop.f32.mrf.mxu0 }
 0x187   :  { %2097 = vst [vmem:[%s5180_s3 + $0x58] sm:$0xff] %v2033_v17  ;;  %v2032_v22 = vmax.f32 %v1904_v25, %v1968_v13  ;;  %v5437_v46 = vmax.f32 %v5436_v52, 0.0  ;;  %v1717_v44 = vmax.f32 %v755_v35, 0.0  ;;  %v750_v5 = vadd.f32 %v3871_v12, %v749_v9  ;;  %v2773_v13 = vpop.f32.mrf.mxu1 }
 0x188   :  { %v2035_v28 = vmax.f32 %v1907_v56, %v1971_v4  ;;  %v4607_v48 = vadd.f32 %v3871_v12, %v4129_v58  ;;  %v5438_v25 = vmax.f32 %v4041_v7, 0.0  ;;  %v1845_v2 = vmax.f32 %v1395_v50, 0.0  ;;  %v759_v4 = vpop.f32.mrf.mxu0 }
 0x189   :  { %v1906_v11 = vmax.f32 %v5437_v46, %v1714_v20  ;;  %2096 = vst [vmem:[%s5180_s3 + $0x50] sm:$0xff] %v2032_v22  ;;  %v1390_v17 = vadd.f32 %v3871_v12, %v1389_v59  ;;  %v5439_v42 = vmax.f32 %v4045_v10, 0.0  ;;  %v1716_v24 = vmax.f32 %v750_v5, 0.0  ;;  %v1399_v20 = vpop.f32.mrf.mxu1 }
 0x18a   :  { %v1970_v27 = vmax.f32 %v5438_v25, %v1842_v33  ;;  %2099 = vst [vmem:[%s5180_s3 + $0x68] sm:$0xff] %v2035_v28  ;;  %v765_v16 = vadd.f32 %v2581_v37, %v3871_v12  ;;  %v1405_v63 = vadd.f32 %v2773_v13, %v3871_v12  ;;  %v1688_v7 = vmax.f32 %v4596_v53, 0.0  ;;  %v2584_v46 = vpop.f32.mrf.mxu0  ;;  %v5445_v25 = vld [vmem:[#allocation49_spill] sm:$0xff] }
 0x18b   :  { %v1909_v58 = vmax.f32 %v5439_v42, %v1717_v44  ;;  %v5440_v56 = vmax.f32 %v4049_v47, 0.0  ;;  %v1844_v29 = vmax.f32 %v1390_v17, 0.0  ;;  %v5441_v35 = vmax.f32 %v4053_v3, 0.0  ;;  %v5443_v3 = vld [vmem:[#allocation48_spill] sm:$0xff] }
 0x18c   :  { %v2034_v34 = vmax.f32 %v1906_v11, %v1970_v27  ;;  %v1719_v33 = vmax.f32 %v765_v16, 0.0  ;;  %v1847_v10 = vmax.f32 %v1405_v63, 0.0  ;;  %v760_v50 = vadd.f32 %v3871_v12, %v759_v4  ;;  %v2776_v11 = vpop.f32.mrf.mxu1  ;;  %v5448_v4 = vld [vmem:[#allocation50_spill] sm:$0xff] }
 0x18d   :  { %v1973_v51 = vmax.f32 %v5440_v56, %v1845_v2  ;;  %v1908_v22 = vmax.f32 %v5441_v35, %v1716_v24  ;;  %v1816_v9 = vmax.f32 %v4607_v48, 0.0  ;;  %v5442_v47 = vmax.f32 %v4063_v14, 0.0  ;;  %v769_v24 = vpop.f32.mrf.mxu0 }
 0x18e   :  { %2098 = vst [vmem:[%s5180_s3 + $0x60] sm:$0xff] %v2034_v34  ;;  %v1400_v52 = vadd.f32 %v3871_v12, %v1399_v20  ;;  %v5444_v44 = vmax.f32 %v5443_v3, 0.0  ;;  %v5446_v27 = vmax.f32 %v5445_v25, 0.0  ;;  %v1718_v17 = vmax.f32 %v760_v50, 0.0  ;;  %v1409_v16 = vpop.f32.mrf.mxu1  ;;  %v5450_v50 = vld [vmem:[#allocation51_spill] sm:$0xff]  ;;  %v5452_v3 = vld [vmem:[#allocation52_spill] sm:$0xff] }
 0x18f   :  { %v2037_v59 = vmax.f32 %v1909_v58, %v1973_v51  ;;  %v1972_v28 = vmax.f32 %v5442_v47, %v1844_v29  ;;  %v775_v37 = vadd.f32 %v2584_v46, %v3871_v12  ;;  %v4642_v13 = vadd.f32 %v4151_v62, %v3871_v12 }
 0x190   :  { %v1911_v5 = vmax.f32 %v5444_v44, %v1719_v33  ;;  %v1975_v2 = vmax.f32 %v5446_v27, %v1847_v10  ;;  %v1846_v42 = vmax.f32 %v1400_v52, 0.0  ;;  %v1415_v58 = vadd.f32 %v2776_v11, %v3871_v12  ;;  %v2587_v10 = vpop.f32.mrf.mxu0 }
 0x191   :  { %2101 = vst [vmem:[%s5180_s3 + $0x78] sm:$0xff] %v2037_v59  ;;  %v2036_v14 = vmax.f32 %v1908_v22, %v1972_v28  ;;  %v5447_v34 = vmax.f32 %v4082_v19, 0.0  ;;  %v1721_v51 = vmax.f32 %v775_v37, 0.0  ;;  %v770_v29 = vadd.f32 %v3871_v12, %v769_v24  ;;  %v2779_v19 = vpop.f32.mrf.mxu1 }
 0x192   :  { %v2039_v63 = vmax.f32 %v1911_v5, %v1975_v2  ;;  %v4653_v62 = vadd.f32 %v4153_v54, %v3871_v12  ;;  %v5449_v20 = vmax.f32 %v5448_v4, 0.0  ;;  %v1849_v22 = vmax.f32 %v1415_v58, 0.0  ;;  %v779_v27 = vpop.f32.mrf.mxu0 }
 0x193   :  { %v1910_v56 = vmax.f32 %v5447_v34, %v1718_v17  ;;  %2100 = vst [vmem:[%s5180_s3 + $0x70] sm:$0xff] %v2036_v14  ;;  %v1410_v33 = vadd.f32 %v3871_v12, %v1409_v16  ;;  %v5451_v59 = vmax.f32 %v5450_v50, 0.0  ;;  %v1720_v47 = vmax.f32 %v770_v29, 0.0  ;;  %v1419_v2 = vpop.f32.mrf.mxu1  ;;  %v5454_v17 = vld [vmem:[#allocation53_spill] sm:$0xff]  ;;  %v5456_v34 = vld [vmem:[#allocation54_spill] sm:$0xff] }
 0x194   :  { %v1974_v35 = vmax.f32 %v5449_v20, %v1846_v42  ;;  %2103 = vst [vmem:[%s5180_s3 + $0x88] sm:$0xff] %v2039_v63  ;;  %v785_v28 = vadd.f32 %v2587_v10, %v3871_v12  ;;  %v1425_v52 = vadd.f32 %v2779_v19, %v3871_v12  ;;  %v1691_v46 = vmax.f32 %v4642_v13, 0.0  ;;  %v2590_v4 = vpop.f32.mrf.mxu0  ;;  %v5460_v10 = vld [vmem:[#allocation56_spill] sm:$0xff] }
 0x195   :  { %v1913_v54 = vmax.f32 %v5451_v59, %v1721_v51  ;;  %v5453_v44 = vmax.f32 %v5452_v3, 0.0  ;;  %v1848_v25 = vmax.f32 %v1410_v33, 0.0  ;;  %v5455_v37 = vmax.f32 %v5454_v17, 0.0  ;;  %v2782_v20 = vpop.f32.mrf.mxu1 }
 0x196   :  { %v2038_v11 = vmax.f32 %v1910_v56, %v1974_v35  ;;  %v1723_v42 = vmax.f32 %v785_v28, 0.0  ;;  %v1851_v58 = vmax.f32 %v1425_v52, 0.0  ;;  %v780_v24 = vadd.f32 %v3871_v12, %v779_v27  ;;  %v5458_v35 = vld [vmem:[#allocation55_spill] sm:$0xff]  ;;  %v5462_v28 = vld [vmem:[#allocation62_spill] sm:$0xff]  ;;  %v5463_v27 = vld [vmem:[#allocation57_spill] sm:$0xff] }
 0x197   :  { %v1977_v5 = vmax.f32 %v5453_v44, %v1849_v22  ;;  %v1912_v14 = vmax.f32 %v5455_v37, %v1720_v47  ;;  %v1819_v16 = vmax.f32 %v4653_v62, 0.0  ;;  %v5457_v56 = vmax.f32 %v5456_v34, 0.0  ;;  %v789_v44 = vpop.f32.mrf.mxu0 }
 0x198   :  { %2102 = vst [vmem:[%s5180_s3 + $0x80] sm:$0xff] %v2038_v11  ;;  %v1420_v29 = vadd.f32 %v3871_v12, %v1419_v2  ;;  %v5459_v22 = vmax.f32 %v5458_v35, 0.0  ;;  %v5461_v19 = vmax.f32 %v5460_v10, 0.0  ;;  %v1722_v59 = vmax.f32 %v780_v24, 0.0 }
 0x199   :  { %v2041_v63 = vmax.f32 %v1913_v54, %v1977_v5  ;;  %v1976_v51 = vmax.f32 %v5457_v56, %v1848_v25  ;;  %v795_v47 = vadd.f32 %v2590_v4, %v3871_v12  ;;  %v4688_v52 = vadd.f32 %v3871_v12, %v5462_v28  ;;  %v1429_v5 = vpop.f32.mrf.mxu1 }
 0x19a   :  { %v1915_v33 = vmax.f32 %v5459_v22, %v1723_v42  ;;  %v1979_v50 = vmax.f32 %v5461_v19, %v1851_v58  ;;  %v1850_v11 = vmax.f32 %v1420_v29, 0.0  ;;  %v1435_v3 = vadd.f32 %v2782_v20, %v3871_v12  ;;  %v5465_v58 = vld [vmem:[#allocation63_spill] sm:$0xff] }
 0x19b   :  { %2105 = vst [vmem:[%s5180_s3 + $0x98] sm:$0xff] %v2041_v63  ;;  %v2040_v54 = vmax.f32 %v1912_v14, %v1976_v51  ;;  %v5464_v2 = vmax.f32 %v5463_v27, 0.0  ;;  %v1725_v37 = vmax.f32 %v795_v47, 0.0  ;;  %v790_v42 = vadd.f32 %v3871_v12, %v789_v44  ;;  %v2593_v51 = vpop.f32.mrf.mxu0  ;;  %v2785_v29 = vpop.f32.mrf.mxu1 }
 0x19c   :  { %v2043_v25 = vmax.f32 %v1915_v33, %v1979_v50  ;;  %v4699_v24 = vadd.f32 %v3871_v12, %v5465_v58  ;;  %v5466_v14 = vmax.f32 %v4137_v57, 0.0  ;;  %v1853_v34 = vmax.f32 %v1435_v3, 0.0 }
 0x19d   :  { %v1914_v17 = vmax.f32 %v5464_v2, %v1722_v59  ;;  %2104 = vst [vmem:[%s5180_s3 + $0x90] sm:$0xff] %v2040_v54  ;;  %v1430_v56 = vadd.f32 %v3871_v12, %v1429_v5  ;;  %v5467_v4 = vmax.f32 %v4141_v0, 0.0  ;;  %v1724_v35 = vmax.f32 %v790_v42, 0.0  ;;  %v799_v47 = vpop.f32.mrf.mxu0  ;;  %v1439_v28 = vpop.f32.mrf.mxu1  ;;  %v5469_v54 = vld [vmem:[#allocation58_spill] sm:$0xff]  ;;  %v5471_v2 = vld [vmem:[#allocation59_spill] sm:$0xff] }
 0x19e   :  { %v1978_v63 = vmax.f32 %v5466_v14, %v1850_v11  ;;  %2107 = vst [vmem:[%s5180_s3 + $0xa8] sm:$0xff] %v2043_v25  ;;  %v805_v22 = vadd.f32 %v2593_v51, %v3871_v12  ;;  %v1445_v33 = vadd.f32 %v2785_v29, %v3871_v12  ;;  %v1690_v57 = vmax.f32 %v4688_v52, 0.0 }
 0x19f   :  { %v1917_v20 = vmax.f32 %v5467_v4, %v1725_v37  ;;  %v5468_v19 = vmax.f32 %v4145_v15, 0.0  ;;  %v1852_v59 = vmax.f32 %v1430_v56, 0.0  ;;  %v5470_v11 = vmax.f32 %v5469_v54, 0.0  ;;  %v4729_v37 = vld [vmem:[%s5179_s2] ss:$0 sm:$0xff]  ;;  %v2596_v58 = vpop.f32.mrf.mxu0  ;;  %v2788_v14 = vpop.f32.mrf.mxu1  ;;  %v5475_v56 = vld [vmem:[#allocation61_spill] sm:$0xff] }
 0x1a0   :  { %v2042_v10 = vmax.f32 %v1914_v17, %v1978_v63  ;;  %v1727_v44 = vmax.f32 %v805_v22, 0.0  ;;  %v1855_v0 = vmax.f32 %v1445_v33, 0.0  ;;  %v800_v5 = vadd.f32 %v3871_v12, %v799_v47  ;;  %v5473_v12 = vld [vmem:[#allocation60_spill] sm:$0xff] }
 0x1a1   :  { %v1981_v50 = vmax.f32 %v5468_v19, %v1853_v34  ;;  %v1916_v3 = vmax.f32 %v5470_v11, %v1724_v35  ;;  %v1818_v25 = vmax.f32 %v4699_v24, 0.0  ;;  %v5472_v15 = vmax.f32 %v5471_v2, 0.0  ;;  %v5477_v35 = vld [vmem:[#allocation66_spill] sm:$0xff] }
 0x1a2   :  { %2106 = vst [vmem:[%s5180_s3 + $0xa0] sm:$0xff] %v2042_v10  ;;  %v1440_v42 = vadd.f32 %v4729_v37, %v1439_v28  ;;  %v5474_v63 = vmax.f32 %v5473_v12, 0.0  ;;  %v5476_v51 = vmax.f32 %v5475_v56, 0.0  ;;  %v1726_v4 = vmax.f32 %v800_v5, 0.0  ;;  %v5478_v28 = vld [vmem:[#allocation64_spill] sm:$0xff]  ;;  %v5480_v5 = vld [vmem:[#allocation67_spill] sm:$0xff] }
 0x1a3   :  { %v2045_v27 = vmax.f32 %v1917_v20, %v1981_v50  ;;  %v1980_v17 = vmax.f32 %v5472_v15, %v1852_v59  ;;  %v815_v20 = vadd.f32 %v4729_v37, %v2596_v58  ;;  %v4739_v22 = vadd.f32 %v4729_v37, %v5477_v35  ;;  %v809_v50 = vpop.f32.mrf.mxu0  ;;  %v1449_v59 = vpop.f32.mrf.mxu1  ;;  %v5483_v12 = vld [vmem:[#allocation2_spill] sm:$0xff]  ;;  %v5485_v35 = vld [vmem:[#allocation3_spill] sm:$0xff] }
 0x1a4   :  { %v1919_v34 = vmax.f32 %v5474_v63, %v1727_v44  ;;  %v1983_v29 = vmax.f32 %v5476_v51, %v1855_v0  ;;  %v1854_v10 = vmax.f32 %v1440_v42, 0.0  ;;  %v1455_v19 = vadd.f32 %v4729_v37, %v2788_v14 }
 0x1a5   :  { %2109 = vst [vmem:[%s5180_s3 + $0xb8] sm:$0xff] %v2045_v27  ;;  %v2044_v33 = vmax.f32 %v1916_v3, %v1980_v17  ;;  %v5479_v54 = vmax.f32 %v5478_v28, 0.0  ;;  %v1729_v44 = vmax.f32 %v815_v20, 0.0  ;;  %v810_v0 = vadd.f32 %v4729_v37, %v809_v50  ;;  %v5481_v3 = vld [vmem:[#allocation65_spill] sm:$0xff]  ;;  %v2599_v58 = vpop.f32.mrf.mxu0  ;;  %v2791_v14 = vpop.f32.mrf.mxu1  ;;  %v5487_v28 = vld [vmem:[#allocation4_spill] sm:$0xff] }
 0x1a6   :  { %v2047_v47 = vmax.f32 %v1919_v34, %v1983_v29  ;;  %v4750_v2 = vadd.f32 %v4729_v37, %v5480_v5  ;;  %v5482_v27 = vmax.f32 %v5481_v3, 0.0  ;;  %v1857_v17 = vmax.f32 %v1455_v19, 0.0 }
 0x1a7   :  { %v1918_v11 = vmax.f32 %v5479_v54, %v1726_v4  ;;  %2108 = vst [vmem:[%s5180_s3 + $0xb0] sm:$0xff] %v2044_v33  ;;  %v1450_v42 = vadd.f32 %v4729_v37, %v1449_v59  ;;  %v5484_v63 = vmax.f32 %v5483_v12, 0.0  ;;  %v1728_v56 = vmax.f32 %v810_v0, 0.0  ;;  %v819_v50 = vpop.f32.mrf.mxu0  ;;  %v1459_v59 = vpop.f32.mrf.mxu1  ;;  %v5491_v12 = vld [vmem:[#allocation6_spill] sm:$0xff] }
 0x1a8   :  { %v1982_v15 = vmax.f32 %v5482_v27, %v1854_v10  ;;  %2111 = vst [vmem:[%s5180_s3 + $0xc8] sm:$0xff] %v2047_v47  ;;  %v825_v51 = vadd.f32 %v4729_v37, %v2599_v58  ;;  %v1465_v29 = vadd.f32 %v4729_v37, %v2791_v14  ;;  %v1693_v4 = vmax.f32 %v4739_v22, 0.0  ;;  %v5489_v27 = vld [vmem:[#allocation5_spill] sm:$0xff] }
 0x1a9   :  { %v1921_v34 = vmax.f32 %v5484_v63, %v1729_v44  ;;  %v5486_v33 = vmax.f32 %v5485_v35, 0.0  ;;  %v1856_v19 = vmax.f32 %v1450_v42, 0.0  ;;  %v5488_v54 = vmax.f32 %v5487_v28, 0.0  ;;  %v2602_v58 = vpop.f32.mrf.mxu0  ;;  %v2794_v14 = vpop.f32.mrf.mxu1  ;;  %v5495_v28 = vld [vmem:[#allocation68_spill] sm:$0xff] }
 0x1aa   :  { %v2046_v20 = vmax.f32 %v1918_v11, %v1982_v15  ;;  %v1731_v5 = vmax.f32 %v825_v51, 0.0  ;;  %v1859_v3 = vmax.f32 %v1465_v29, 0.0  ;;  %v820_v44 = vadd.f32 %v4729_v37, %v819_v50  ;;  %v5493_v51 = vld [vmem:[#allocation7_spill] sm:$0xff] }
 0x1ab   :  { %v1985_v10 = vmax.f32 %v5486_v33, %v1857_v17  ;;  %v1920_v47 = vmax.f32 %v5488_v54, %v1728_v56  ;;  %v5490_v15 = vmax.f32 %v5489_v27, 0.0  ;;  %v1460_v42 = vadd.f32 %v4729_v37, %v1459_v59  ;;  %v829_v59 = vpop.f32.mrf.mxu0  ;;  %v1469_v54 = vpop.f32.mrf.mxu1  ;;  %v5496_v27 = vld [vmem:[#allocation8_spill] sm:$0xff] }
 0x1ac   :  { %2110 = vst [vmem:[%s5180_s3 + $0xc0] sm:$0xff] %v2046_v20  ;;  %v5492_v63 = vmax.f32 %v5491_v12, 0.0  ;;  %v5494_v29 = vmax.f32 %v5493_v51, 0.0  ;;  %v1730_v33 = vmax.f32 %v820_v44, 0.0  ;;  %v835_v50 = vadd.f32 %v4729_v37, %v2602_v58  ;;  %v5498_v12 = vld [vmem:[#allocation69_spill] sm:$0xff] }
 0x1ad   :  { %v2049_v11 = vmax.f32 %v1921_v34, %v1985_v10  ;;  %v1984_v17 = vmax.f32 %v5490_v15, %v1856_v19  ;;  %v4785_v20 = vadd.f32 %v4729_v37, %v5495_v28  ;;  %v1858_v10 = vmax.f32 %v1460_v42, 0.0 }
 0x1ae   :  { %v1923_v56 = vmax.f32 %v5492_v63, %v1731_v5  ;;  %v1987_v35 = vmax.f32 %v5494_v29, %v1859_v3  ;;  %v1475_v19 = vadd.f32 %v4729_v37, %v2794_v14  ;;  %v5497_v3 = vmax.f32 %v5496_v27, 0.0  ;;  %v2605_v14 = vpop.f32.mrf.mxu0 }
 0x1af   :  { %2113 = vst [vmem:[%s5180_s3 + $0xd8] sm:$0xff] %v2049_v11  ;;  %v2048_v34 = vmax.f32 %v1920_v47, %v1984_v17  ;;  %v1733_v15 = vmax.f32 %v835_v50, 0.0  ;;  %v830_v58 = vadd.f32 %v4729_v37, %v829_v59  ;;  %v4796_v63 = vadd.f32 %v4729_v37, %v5498_v12 }
 0x1b0   :  { %v2051_v5 = vmax.f32 %v1923_v56, %v1987_v35  ;;  %v1922_v44 = vmax.f32 %v5497_v3, %v1730_v33  ;;  %v5499_v47 = vmax.f32 %v4233_v45, 0.0  ;;  %v1861_v17 = vmax.f32 %v1475_v19, 0.0  ;;  %v2797_v56 = vpop.f32.mrf.mxu1  ;;  %v5503_v3 = vld [vmem:[#allocation10_spill] sm:$0xff] }
 0x1b1   :  { %2112 = vst [vmem:[%s5180_s3 + $0xd0] sm:$0xff] %v2048_v34  ;;  %v1470_v42 = vadd.f32 %v4729_v37, %v1469_v54  ;;  %v5500_v51 = vmax.f32 %v4237_v32, 0.0  ;;  %v1732_v35 = vmax.f32 %v830_v58, 0.0  ;;  %v845_v33 = vadd.f32 %v4729_v37, %v2605_v14  ;;  %v5501_v34 = vld [vmem:[#allocation9_spill] sm:$0xff]  ;;  %v839_v54 = vpop.f32.mrf.mxu0  ;;  %v5511_v58 = vld [vmem:[#allocation11_spill] sm:$0xff] }
 0x1b2   :  { %v1986_v11 = vmax.f32 %v5499_v47, %v1858_v10  ;;  %2115 = vst [vmem:[%s5180_s3 + $0xe8] sm:$0xff] %v2051_v5  ;;  %v1485_v50 = vadd.f32 %v4729_v37, %v2797_v56  ;;  %v5502_v10 = vmax.f32 %v5501_v34, 0.0  ;;  %v1479_v27 = vpop.f32.mrf.mxu1  ;;  %v5504_v12 = vmax.f32 %v5503_v3, 0.0  ;;  %v5507_v34 = vld [vmem:[#allocation13_spill] sm:$0xff] }
 0x1b3   :  { %v1925_v29 = vmax.f32 %v5500_v51, %v1733_v15  ;;  %v1860_v59 = vmax.f32 %v1470_v42, 0.0  ;;  %v1735_v47 = vmax.f32 %v845_v33, 0.0  ;;  %v840_v15 = vadd.f32 %v4729_v37, %v839_v54  ;;  %v2608_v56 = vpop.f32.mrf.mxu0 }
 0x1b4   :  { %v2050_v28 = vmax.f32 %v1922_v44, %v1986_v11  ;;  %v1989_v19 = vmax.f32 %v5502_v10, %v1861_v17  ;;  %v1924_v5 = vmax.f32 %v5504_v12, %v1732_v35  ;;  %v1863_v32 = vmax.f32 %v1485_v50, 0.0  ;;  %v5505_v11 = vld [vmem:[#allocation12_spill] sm:$0xff]  ;;  %v2800_v51 = vpop.f32.mrf.mxu1  ;;  %v5509_v50 = vld [vmem:[#allocation14_spill] sm:$0xff] }
 0x1b5   :  { %v5506_v14 = vmax.f32 %v5505_v11, 0.0  ;;  %v1480_v42 = vadd.f32 %v4729_v37, %v1479_v27  ;;  %v5508_v35 = vmax.f32 %v5507_v34, 0.0  ;;  %v5510_v10 = vmax.f32 %v5509_v50, 0.0  ;;  %v849_v27 = vpop.f32.mrf.mxu0  ;;  %v5513_v34 = vld [vmem:[#allocation70_spill] sm:$0xff] }
 0x1b6   :  { %2114 = vst [vmem:[%s5180_s3 + $0xe0] sm:$0xff] %v2050_v28  ;;  %v2053_v44 = vmax.f32 %v1925_v29, %v1989_v19  ;;  %v1734_v3 = vmax.f32 %v840_v15, 0.0  ;;  %v855_v12 = vadd.f32 %v4729_v37, %v2608_v56  ;;  %v4831_v28 = vadd.f32 %v4729_v37, %v5511_v58 }
 0x1b7   :  { %v1988_v17 = vmax.f32 %v5506_v14, %v1860_v59  ;;  %v1927_v33 = vmax.f32 %v5508_v35, %v1735_v47  ;;  %v1991_v54 = vmax.f32 %v5510_v10, %v1863_v32  ;;  %v1862_v19 = vmax.f32 %v1480_v42, 0.0  ;;  %v1489_v47 = vpop.f32.mrf.mxu1  ;;  %v2611_v35 = vpop.f32.mrf.mxu0 }
 0x1b8   :  { %2117 = vst [vmem:[%s5180_s3 + $0xf8] sm:$0xff] %v2053_v44  ;;  %v1495_v59 = vadd.f32 %v4729_v37, %v2800_v51  ;;  %v5512_v32 = vmax.f32 %v4274_v40, 0.0  ;;  %v1737_v14 = vmax.f32 %v855_v12, 0.0  ;;  %v850_v56 = vadd.f32 %v4729_v37, %v849_v27 }
 0x1b9   :  { %v2052_v29 = vmax.f32 %v1924_v5, %v1988_v17  ;;  %v2055_v11 = vmax.f32 %v1927_v33, %v1991_v54  ;;  %v4842_v58 = vadd.f32 %v4729_v37, %v5513_v34  ;;  %v5514_v5 = vld [vmem:[#allocation15_spill] sm:$0xff]  ;;  %v1490_v51 = vadd.f32 %v4729_v37, %v1489_v47  ;;  %v2803_v40 = vpop.f32.mrf.mxu1  ;;  %v5516_v33 = vld [vmem:[#allocation73_spill] sm:$0xff]  ;;  %v859_v34 = vpop.f32.mrf.mxu0 }
 0x1ba   :  { %v1926_v15 = vmax.f32 %v5512_v32, %v1734_v3  ;;  %v5515_v44 = vmax.f32 %v5514_v5, 0.0  ;;  %v1865_v42 = vmax.f32 %v1495_v59, 0.0  ;;  %v5517_v50 = vmax.f32 %v5516_v33, 0.0  ;;  %v5518_v59 = vld [vmem:[#allocation16_spill] sm:$0xff] }
 0x1bb   :  { %2116 = vst [vmem:[%s5180_s3 + $0xf0] sm:$0xff] %v2052_v29  ;;  %2119 = vst [vmem:[%s5180_s3 + $0x108] sm:$0xff] %v2055_v11  ;;  %v1736_v54 = vmax.f32 %v850_v56, 0.0  ;;  %v865_v3 = vadd.f32 %v4729_v37, %v2611_v35  ;;  %v1505_v12 = vadd.f32 %v4729_v37, %v2803_v40  ;;  %v1695_v29 = vmax.f32 %v4831_v28, 0.0  ;;  %v1499_v5 = vpop.f32.mrf.mxu1  ;;  %v2614_v40 = vpop.f32.mrf.mxu0  ;;  %v5528_v56 = vld [vmem:[#allocation71_spill] sm:$0xff] }
 0x1bc   :  { %v1990_v17 = vmax.f32 %v5515_v44, %v1862_v19  ;;  %v1929_v10 = vmax.f32 %v5517_v50, %v1737_v14  ;;  %v5519_v27 = vmax.f32 %v5518_v59, 0.0  ;;  %v1864_v32 = vmax.f32 %v1490_v51, 0.0  ;;  %v5520_v44 = vld [vmem:[#allocation17_spill] sm:$0xff]  ;;  %v5524_v59 = vld [vmem:[#allocation19_spill] sm:$0xff] }
 0x1bd   :  { %v5521_v45 = vmax.f32 %v5520_v44, 0.0  ;;  %v1739_v0 = vmax.f32 %v865_v3, 0.0  ;;  %v1867_v33 = vmax.f32 %v1505_v12, 0.0  ;;  %v860_v14 = vadd.f32 %v4729_v37, %v859_v34  ;;  %v2806_v50 = vpop.f32.mrf.mxu1  ;;  %v5526_v3 = vld [vmem:[#allocation20_spill] sm:$0xff] }
 0x1be   :  { %v2054_v19 = vmax.f32 %v1926_v15, %v1990_v17  ;;  %v1993_v47 = vmax.f32 %v5519_v27, %v1865_v42  ;;  %v5522_v17 = vld [vmem:[#allocation18_spill] sm:$0xff]  ;;  %v1500_v51 = vadd.f32 %v4729_v37, %v1499_v5  ;;  %v5527_v12 = vmax.f32 %v5526_v3, 0.0  ;;  %v869_v5 = vpop.f32.mrf.mxu0 }
 0x1bf   :  { %v1928_v11 = vmax.f32 %v5521_v45, %v1736_v54  ;;  %v5523_v35 = vmax.f32 %v5522_v17, 0.0  ;;  %v5525_v45 = vmax.f32 %v5524_v59, 0.0  ;;  %v1738_v34 = vmax.f32 %v860_v14, 0.0 }
 0x1c0   :  { %2118 = vst [vmem:[%s5180_s3 + $0x100] sm:$0xff] %v2054_v19  ;;  %v2057_v15 = vmax.f32 %v1929_v10, %v1993_v47  ;;  %v1995_v27 = vmax.f32 %v5527_v12, %v1867_v33  ;;  %v875_v44 = vadd.f32 %v4729_v37, %v2614_v40  ;;  %v4877_v19 = vadd.f32 %v4729_v37, %v5528_v56 }
 0x1c1   :  { %v1992_v42 = vmax.f32 %v5523_v35, %v1864_v32  ;;  %v1931_v54 = vmax.f32 %v5525_v45, %v1739_v0  ;;  %v1866_v47 = vmax.f32 %v1500_v51, 0.0  ;;  %v1515_v32 = vadd.f32 %v4729_v37, %v2806_v50  ;;  %v1509_v0 = vpop.f32.mrf.mxu1  ;;  %v5529_v35 = vld [vmem:[#allocation21_spill] sm:$0xff]  ;;  %v5531_v45 = vld [vmem:[#allocation72_spill] sm:$0xff]  ;;  %v2617_v50 = vpop.f32.mrf.mxu0 }
 0x1c2   :  { %2121 = vst [vmem:[%s5180_s3 + $0x118] sm:$0xff] %v2057_v15  ;;  %v5530_v33 = vmax.f32 %v5529_v35, 0.0  ;;  %v1741_v59 = vmax.f32 %v875_v44, 0.0  ;;  %v870_v40 = vadd.f32 %v4729_v37, %v869_v5  ;;  %v4888_v56 = vadd.f32 %v4729_v37, %v5531_v45 }
 0x1c3   :  { %v2056_v10 = vmax.f32 %v1928_v11, %v1992_v42  ;;  %v2059_v17 = vmax.f32 %v1931_v54, %v1995_v27  ;;  %v5532_v11 = vmax.f32 %v4329_v60, 0.0  ;;  %v1869_v42 = vmax.f32 %v1515_v32, 0.0  ;;  %v2809_v54 = vpop.f32.mrf.mxu1 }
 0x1c4   :  { %v1930_v14 = vmax.f32 %v5530_v33, %v1738_v34  ;;  %v1510_v51 = vadd.f32 %v4729_v37, %v1509_v0  ;;  %v5533_v3 = vmax.f32 %v4333_v55, 0.0  ;;  %v1740_v27 = vmax.f32 %v870_v40, 0.0  ;;  %v879_v0 = vpop.f32.mrf.mxu0 }
 0x1c5   :  { %2120 = vst [vmem:[%s5180_s3 + $0x110] sm:$0xff] %v2056_v10  ;;  %v1994_v15 = vmax.f32 %v5532_v11, %v1866_v47  ;;  %2123 = vst [vmem:[%s5180_s3 + $0x128] sm:$0xff] %v2059_v17  ;;  %v885_v34 = vadd.f32 %v4729_v37, %v2617_v50  ;;  %v1525_v44 = vadd.f32 %v4729_v37, %v2809_v54  ;;  %v1694_v60 = vmax.f32 %v4877_v19, 0.0  ;;  %v1519_v35 = vpop.f32.mrf.mxu1  ;;  %v5538_v54 = vld [vmem:[#allocation24_spill] sm:$0xff] }
 0x1c6   :  { %v1933_v12 = vmax.f32 %v5533_v3, %v1741_v59  ;;  %v5534_v47 = vmax.f32 %v4337_v49, 0.0  ;;  %v1868_v5 = vmax.f32 %v1510_v51, 0.0  ;;  %v5535_v33 = vmax.f32 %v4341_v18, 0.0 }
 0x1c7   :  { %v2058_v10 = vmax.f32 %v1930_v14, %v1994_v15  ;;  %v1743_v45 = vmax.f32 %v885_v34, 0.0  ;;  %v1871_v55 = vmax.f32 %v1525_v44, 0.0  ;;  %v880_v59 = vadd.f32 %v4729_v37, %v879_v0  ;;  %v2812_v51 = vpop.f32.mrf.mxu1 }
 0x1c8   :  { %v1997_v32 = vmax.f32 %v5534_v47, %v1869_v42  ;;  %v1932_v17 = vmax.f32 %v5535_v33, %v1740_v27  ;;  %v5536_v49 = vmax.f32 %v4351_v41, 0.0  ;;  %v1520_v15 = vadd.f32 %v4729_v37, %v1519_v35  ;;  %v2620_v42 = vpop.f32.mrf.mxu0  ;;  %v5540_v47 = vld [vmem:[#allocation74_spill] sm:$0xff]  ;;  %v5541_v35 = vld [vmem:[#allocation27_spill] sm:$0xff] }
 0x1c9   :  { %2122 = vst [vmem:[%s5180_s3 + $0x120] sm:$0xff] %v2058_v10  ;;  %v5537_v18 = vmax.f32 %v4355_v1, 0.0  ;;  %v5539_v3 = vmax.f32 %v5538_v54, 0.0  ;;  %v1742_v34 = vmax.f32 %v880_v59, 0.0  ;;  %v895_v44 = vadd.f32 %v4729_v37, %v2620_v42  ;;  %v5546_v54 = vld [vmem:[#allocation31_spill] sm:$0xff] }
 0x1ca   :  { %v2061_v14 = vmax.f32 %v1933_v12, %v1997_v32  ;;  %v1996_v11 = vmax.f32 %v5536_v49, %v1868_v5  ;;  %v4923_v10 = vadd.f32 %v4729_v37, %v5540_v47  ;;  %v1870_v12 = vmax.f32 %v1520_v15, 0.0  ;;  %v889_v1 = vpop.f32.mrf.mxu0  ;;  %v1529_v5 = vpop.f32.mrf.mxu1  ;;  %v5543_v49 = vld [vmem:[#allocation75_spill] sm:$0xff] }
 0x1cb   :  { %v1935_v50 = vmax.f32 %v5537_v18, %v1743_v45  ;;  %v1999_v27 = vmax.f32 %v5539_v3, %v1871_v55  ;;  %v1535_v32 = vadd.f32 %v4729_v37, %v2812_v51  ;;  %v5542_v33 = vmax.f32 %v5541_v35, 0.0 }
 0x1cc   :  { %2125 = vst [vmem:[%s5180_s3 + $0x138] sm:$0xff] %v2061_v14  ;;  %v2060_v41 = vmax.f32 %v1932_v17, %v1996_v11  ;;  %v1745_v55 = vmax.f32 %v895_v44, 0.0  ;;  %v890_v59 = vadd.f32 %v4729_v37, %v889_v1  ;;  %v4934_v42 = vadd.f32 %v4729_v37, %v5543_v49  ;;  %v5544_v17 = vld [vmem:[#allocation30_spill] sm:$0xff]  ;;  %v2623_v18 = vpop.f32.mrf.mxu0 }
 0x1cd   :  { %v2063_v0 = vmax.f32 %v1935_v50, %v1999_v27  ;;  %v1934_v45 = vmax.f32 %v5542_v33, %v1742_v34  ;;  %v5545_v14 = vmax.f32 %v5544_v17, 0.0  ;;  %v1873_v15 = vmax.f32 %v1535_v32, 0.0  ;;  %v2815_v50 = vpop.f32.mrf.mxu1  ;;  %v5548_v32 = vld [vmem:[#allocation35_spill] sm:$0xff] }
 0x1ce   :  { %2124 = vst [vmem:[%s5180_s3 + $0x130] sm:$0xff] %v2060_v41  ;;  %v1530_v51 = vadd.f32 %v4729_v37, %v1529_v5  ;;  %v5547_v3 = vmax.f32 %v5546_v54, 0.0  ;;  %v1744_v34 = vmax.f32 %v890_v59, 0.0  ;;  %v905_v44 = vadd.f32 %v4729_v37, %v2623_v18  ;;  %v899_v33 = vpop.f32.mrf.mxu0  ;;  %v5550_v17 = vld [vmem:[#allocation39_spill] sm:$0xff]  ;;  %v5558_v59 = vld [vmem:[#allocation76_spill] sm:$0xff] }
 0x1cf   :  { %v1998_v11 = vmax.f32 %v5545_v14, %v1870_v12  ;;  %2127 = vst [vmem:[%s5180_s3 + $0x148] sm:$0xff] %v2063_v0  ;;  %v1545_v47 = vadd.f32 %v4729_v37, %v2815_v50  ;;  %v5549_v1 = vmax.f32 %v5548_v32, 0.0  ;;  %v1539_v49 = vpop.f32.mrf.mxu1  ;;  %v5551_v14 = vmax.f32 %v5550_v17, 0.0  ;;  %v5554_v32 = vld [vmem:[#allocation81_spill] sm:$0xff] }
 0x1d0   :  { %v1937_v27 = vmax.f32 %v5547_v3, %v1745_v55  ;;  %v1872_v35 = vmax.f32 %v1530_v51, 0.0  ;;  %v1747_v40 = vmax.f32 %v905_v44, 0.0  ;;  %v900_v55 = vadd.f32 %v4729_v37, %v899_v33  ;;  %v2626_v50 = vpop.f32.mrf.mxu0 }
 0x1d1   :  { %v2062_v12 = vmax.f32 %v1934_v45, %v1998_v11  ;;  %v2001_v5 = vmax.f32 %v5549_v1, %v1873_v15  ;;  %v1936_v0 = vmax.f32 %v5551_v14, %v1744_v34  ;;  %v1875_v54 = vmax.f32 %v1545_v47, 0.0  ;;  %v5552_v11 = vld [vmem:[#allocation80_spill] sm:$0xff]  ;;  %v2818_v3 = vpop.f32.mrf.mxu1  ;;  %v5556_v47 = vld [vmem:[#allocation82_spill] sm:$0xff] }
 0x1d2   :  { %v5553_v18 = vmax.f32 %v5552_v11, 0.0  ;;  %v1540_v51 = vadd.f32 %v4729_v37, %v1539_v49  ;;  %v5555_v34 = vmax.f32 %v5554_v32, 0.0  ;;  %v5557_v1 = vmax.f32 %v5556_v47, 0.0  ;;  %v909_v49 = vpop.f32.mrf.mxu0 }
 0x1d3   :  { %2126 = vst [vmem:[%s5180_s3 + $0x140] sm:$0xff] %v2062_v12  ;;  %v2065_v45 = vmax.f32 %v1937_v27, %v2001_v5  ;;  %v1746_v17 = vmax.f32 %v900_v55, 0.0  ;;  %v915_v14 = vadd.f32 %v4729_v37, %v2626_v50  ;;  %v4969_v12 = vadd.f32 %v4729_v37, %v5558_v59 }
 0x1d4   :  { %v2000_v15 = vmax.f32 %v5553_v18, %v1872_v35  ;;  %v1939_v44 = vmax.f32 %v5555_v34, %v1747_v40  ;;  %v2003_v33 = vmax.f32 %v5557_v1, %v1875_v54  ;;  %v1874_v5 = vmax.f32 %v1540_v51, 0.0  ;;  %v1549_v40 = vpop.f32.mrf.mxu1  ;;  %v5559_v18 = vld [vmem:[#allocation83_spill] sm:$0xff]  ;;  %v5561_v34 = vld [vmem:[#allocation77_spill] sm:$0xff] }
 0x1d5   :  { %2129 = vst [vmem:[%s5180_s3 + $0x158] sm:$0xff] %v2065_v45  ;;  %v1555_v35 = vadd.f32 %v4729_v37, %v2818_v3  ;;  %v5560_v54 = vmax.f32 %v5559_v18, 0.0  ;;  %v1749_v32 = vmax.f32 %v915_v14, 0.0  ;;  %v910_v50 = vadd.f32 %v4729_v37, %v909_v49  ;;  %v2629_v3 = vpop.f32.mrf.mxu0 }
 0x1d6   :  { %v2064_v27 = vmax.f32 %v1936_v0, %v2000_v15  ;;  %v2067_v11 = vmax.f32 %v1939_v44, %v2003_v33  ;;  %v4980_v59 = vadd.f32 %v4729_v37, %v5561_v34  ;;  %v5562_v0 = vmax.f32 %v4425_v36, 0.0  ;;  %v2821_v44 = vpop.f32.mrf.mxu1  ;;  %v5566_v34 = vld [vmem:[#allocation87_spill] sm:$0xff] }
 0x1d7   :  { %v1938_v55 = vmax.f32 %v5560_v54, %v1746_v17  ;;  %v1877_v15 = vmax.f32 %v1555_v35, 0.0  ;;  %v1550_v51 = vadd.f32 %v4729_v37, %v1549_v40  ;;  %v5563_v47 = vmax.f32 %v4429_v38, 0.0  ;;  %v919_v18 = vpop.f32.mrf.mxu0 }
 0x1d8   :  { %2128 = vst [vmem:[%s5180_s3 + $0x150] sm:$0xff] %v2064_v27  ;;  %v2002_v45 = vmax.f32 %v5562_v0, %v1874_v5  ;;  %2131 = vst [vmem:[%s5180_s3 + $0x168] sm:$0xff] %v2067_v11  ;;  %v1748_v33 = vmax.f32 %v910_v50, 0.0  ;;  %v925_v17 = vadd.f32 %v4729_v37, %v2629_v3  ;;  %v1565_v14 = vadd.f32 %v4729_v37, %v2821_v44  ;;  %v5564_v5 = vld [vmem:[#allocation86_spill] sm:$0xff]  ;;  %v1559_v54 = vpop.f32.mrf.mxu1 }
 0x1d9   :  { %v1941_v1 = vmax.f32 %v5563_v47, %v1749_v32  ;;  %v1696_v36 = vmax.f32 %v4969_v12, 0.0  ;;  %v5565_v35 = vmax.f32 %v5564_v5, 0.0  ;;  %v1876_v40 = vmax.f32 %v1550_v51, 0.0  ;;  %v2632_v44 = vpop.f32.mrf.mxu0  ;;  %v5570_v5 = vld [vmem:[#allocation28_spill] sm:$0xff] }
 0x1da   :  { %v2066_v27 = vmax.f32 %v1938_v55, %v2002_v45  ;;  %v5567_v0 = vmax.f32 %v5566_v34, 0.0  ;;  %v1751_v41 = vmax.f32 %v925_v17, 0.0  ;;  %v1879_v38 = vmax.f32 %v1565_v14, 0.0  ;;  %v5568_v45 = vld [vmem:[#allocation88_spill] sm:$0xff]  ;;  %v2824_v47 = vpop.f32.mrf.mxu1  ;;  %v5572_v34 = vld [vmem:[#allocation22_spill] sm:$0xff] }
 0x1db   :  { %v2005_v49 = vmax.f32 %v5565_v35, %v1877_v15  ;;  %v920_v32 = vadd.f32 %v4729_v37, %v919_v18  ;;  %v1824_v50 = vmax.f32 %v4980_v59, 0.0  ;;  %v5569_v3 = vmax.f32 %v5568_v45, 0.0 }
 0x1dc   :  { %v1940_v11 = vmax.f32 %v5567_v0, %v1748_v33  ;;  %2130 = vst [vmem:[%s5180_s3 + $0x160] sm:$0xff] %v2066_v27  ;;  %v1560_v51 = vadd.f32 %v4729_v37, %v1559_v54  ;;  %v5571_v33 = vmax.f32 %v5570_v5, 0.0  ;;  %v2007_v14 = vmax.f32 %v1815_v61, %v1879_v38  ;;  %v929_v54 = vpop.f32.mrf.mxu0 }
 0x1dd   :  { %v2069_v55 = vmax.f32 %v1941_v1, %v2005_v49  ;;  %v2004_v15 = vmax.f32 %v5569_v3, %v1876_v40  ;;  %v1750_v35 = vmax.f32 %v920_v32, 0.0  ;;  %v935_v18 = vadd.f32 %v4729_v37, %v2632_v44  ;;  %v5573_v32 = vld [vmem:[#allocation23_spill] sm:$0xff] }
 0x1de   :  { %v1943_v17 = vmax.f32 %v5571_v33, %v1751_v41  ;;  %v5015_v27 = vadd.f32 %v4729_v37, %v5572_v34  ;;  %v1878_v49 = vmax.f32 %v1560_v51, 0.0  ;;  %v1575_v40 = vadd.f32 %v4729_v37, %v2824_v47  ;;  %v1569_v41 = vpop.f32.mrf.mxu1 }
 0x1df   :  { %2133 = vst [vmem:[%s5180_s3 + $0x178] sm:$0xff] %v2069_v55  ;;  %v2068_v1 = vmax.f32 %v1940_v11, %v2004_v15  ;;  %v1942_v31 = vmax.f32 %v1686_v39, %v1750_v35  ;;  %v1753_v61 = vmax.f32 %v935_v18, 0.0  ;;  %v930_v38 = vadd.f32 %v4729_v37, %v929_v54  ;;  %v2635_v15 = vpop.f32.mrf.mxu0 }
 0x1e0   :  { %v2071_v0 = vmax.f32 %v1943_v17, %v2007_v14  ;;  %v5026_v45 = vadd.f32 %v4729_v37, %v5573_v32  ;;  %v2006_v11 = vmax.f32 %v1814_v8, %v1878_v49  ;;  %v1881_v55 = vmax.f32 %v1575_v40, 0.0  ;;  %v2827_v30 = vpop.f32.mrf.mxu1 }
 0x1e1   :  { %2132 = vst [vmem:[%s5180_s3 + $0x170] sm:$0xff] %v2068_v1  ;;  %v1570_v3 = vadd.f32 %v4729_v37, %v1569_v41  ;;  %v1945_v39 = vmax.f32 %v1689_v43, %v1753_v61  ;;  %v1752_v51 = vmax.f32 %v930_v38, 0.0  ;;  %v945_v44 = vadd.f32 %v4729_v37, %v2635_v15  ;;  %v939_v17 = vpop.f32.mrf.mxu0 }
 0x1e2   :  { %2135 = vst [vmem:[%s5180_s3 + $0x188] sm:$0xff] %v2071_v0  ;;  %v1585_v47 = vadd.f32 %v4729_v37, %v2827_v30  ;;  %v1699_v6 = vmax.f32 %v5015_v27, 0.0  ;;  %v2070_v8 = vmax.f32 %v1942_v31, %v2006_v11  ;;  %v2009_v5 = vmax.f32 %v1817_v21, %v1881_v55  ;;  %v1579_v14 = vpop.f32.mrf.mxu1  ;;  %v5574_v0 = vld [vmem:[#allocation25_spill] sm:$0xff]  ;;  %v5575_v11 = vld [vmem:[#allocation26_spill] sm:$0xff] }
 0x1e3   :  { %v1880_v33 = vmax.f32 %v1570_v3, 0.0  ;;  %v1944_v35 = vmax.f32 %v1688_v7, %v1752_v51  ;;  %v1755_v18 = vmax.f32 %v945_v44, 0.0  ;;  %v940_v43 = vadd.f32 %v4729_v37, %v939_v17  ;;  %v2638_v49 = vpop.f32.mrf.mxu0 }
 0x1e4   :  { %v1883_v26 = vmax.f32 %v1585_v47, 0.0  ;;  %v1827_v34 = vmax.f32 %v5026_v45, 0.0  ;;  %2134 = vst [vmem:[%s5180_s3 + $0x180] sm:$0xff] %v2070_v8  ;;  %v2073_v1 = vmax.f32 %v1945_v39, %v2009_v5  ;;  %v1580_v21 = vadd.f32 %v4729_v37, %v1579_v14  ;;  %v2830_v40 = vpop.f32.mrf.mxu1 }
 0x1e5   :  { %v2008_v23 = vmax.f32 %v1816_v9, %v1880_v33  ;;  %v1947_v53 = vmax.f32 %v1691_v46, %v1755_v18  ;;  %v1754_v54 = vmax.f32 %v940_v43, 0.0  ;;  %v955_v41 = vadd.f32 %v4729_v37, %v2638_v49  ;;  %v949_v13 = vpop.f32.mrf.mxu0 }
 0x1e6   :  { %v2011_v7 = vmax.f32 %v1819_v16, %v1883_v26  ;;  %v5061_v31 = vadd.f32 %v4729_v37, %v5574_v0  ;;  %2137 = vst [vmem:[%s5180_s3 + $0x198] sm:$0xff] %v2073_v1  ;;  %v1882_v9 = vmax.f32 %v1580_v21, 0.0  ;;  %v1595_v61 = vadd.f32 %v4729_v37, %v2830_v40  ;;  %v1589_v46 = vpop.f32.mrf.mxu1  ;;  %v5580_v0 = vld [vmem:[#allocation78_spill] sm:$0xff] }
 0x1e7   :  { %v2072_v48 = vmax.f32 %v1944_v35, %v2008_v23  ;;  %v1946_v62 = vmax.f32 %v1690_v57, %v1754_v54  ;;  %v1757_v16 = vmax.f32 %v955_v41, 0.0  ;;  %v950_v32 = vadd.f32 %v4729_v37, %v949_v13  ;;  %v2641_v39 = vpop.f32.mrf.mxu0 }
 0x1e8   :  { %v2075_v38 = vmax.f32 %v1947_v53, %v2011_v7  ;;  %v5072_v55 = vadd.f32 %v4729_v37, %v5575_v11  ;;  %v2010_v3 = vmax.f32 %v1818_v25, %v1882_v9  ;;  %v1885_v15 = vmax.f32 %v1595_v61, 0.0  ;;  %v2833_v52 = vpop.f32.mrf.mxu1 }
 0x1e9   :  { %2136 = vst [vmem:[%s5180_s3 + $0x190] sm:$0xff] %v2072_v48  ;;  %v1590_v30 = vadd.f32 %v4729_v37, %v1589_v46  ;;  %v1949_v57 = vmax.f32 %v1693_v4, %v1757_v16  ;;  %v1756_v51 = vmax.f32 %v950_v32, 0.0  ;;  %v965_v44 = vadd.f32 %v4729_v37, %v2641_v39  ;;  %v959_v17 = vpop.f32.mrf.mxu0 }
 0x1ea   :  { %2139 = vst [vmem:[%s5180_s3 + $0x1a8] sm:$0xff] %v2075_v38  ;;  %v1605_v47 = vadd.f32 %v4729_v37, %v2833_v52  ;;  %v1698_v24 = vmax.f32 %v5061_v31, 0.0  ;;  %v2074_v25 = vmax.f32 %v1946_v62, %v2010_v3  ;;  %v5576_v8 = vmax.f32 %v4750_v2, 0.0  ;;  %v1599_v14 = vpop.f32.mrf.mxu1  ;;  %v5581_v62 = vld [vmem:[#allocation79_spill] sm:$0xff] }
 0x1eb   :  { %v1884_v33 = vmax.f32 %v1590_v30, 0.0  ;;  %v5577_v35 = vmax.f32 %v4785_v20, 0.0  ;;  %v1759_v26 = vmax.f32 %v965_v44, 0.0  ;;  %v960_v4 = vadd.f32 %v4729_v37, %v959_v17  ;;  %v2644_v49 = vpop.f32.mrf.mxu0 }
 0x1ec   :  { %v2013_v5 = vmax.f32 %v5576_v8, %v1885_v15  ;;  %v1887_v22 = vmax.f32 %v1605_v47, 0.0  ;;  %v1826_v43 = vmax.f32 %v5072_v55, 0.0  ;;  %2138 = vst [vmem:[%s5180_s3 + $0x1a0] sm:$0xff] %v2074_v25  ;;  %v5578_v2 = vmax.f32 %v4796_v63, 0.0  ;;  %v2836_v40 = vpop.f32.mrf.mxu1 }
 0x1ed   :  { %v1948_v18 = vmax.f32 %v5577_v35, %v1756_v51  ;;  %v1600_v21 = vadd.f32 %v4729_v37, %v1599_v14  ;;  %v1951_v20 = vmax.f32 %v1695_v29, %v1759_v26  ;;  %v5579_v53 = vmax.f32 %v4842_v58, 0.0  ;;  %v969_v28 = vpop.f32.mrf.mxu0 }
 0x1ee   :  { %v2077_v1 = vmax.f32 %v1949_v57, %v2013_v5  ;;  %v2012_v23 = vmax.f32 %v5578_v2, %v1884_v33  ;;  %v1758_v54 = vmax.f32 %v960_v4, 0.0  ;;  %v975_v41 = vadd.f32 %v4729_v37, %v2644_v49  ;;  %v1609_v29 = vpop.f32.mrf.mxu1  ;;  %v5586_v49 = vld [vmem:[#allocation85_spill] sm:$0xff] }
 0x1ef   :  { %v2015_v7 = vmax.f32 %v5579_v53, %v1887_v22  ;;  %v5107_v48 = vadd.f32 %v4729_v37, %v5580_v0  ;;  %v1886_v9 = vmax.f32 %v1600_v21, 0.0  ;;  %v1615_v61 = vadd.f32 %v4729_v37, %v2836_v40  ;;  %v2647_v30 = vpop.f32.mrf.mxu0 }
 0x1f0   :  { %2141 = vst [vmem:[%s5180_s3 + $0x1b8] sm:$0xff] %v2077_v1  ;;  %v2076_v63 = vmax.f32 %v1948_v18, %v2012_v23  ;;  %v1950_v58 = vmax.f32 %v1694_v60, %v1758_v54  ;;  %v1761_v46 = vmax.f32 %v975_v41, 0.0  ;;  %v970_v38 = vadd.f32 %v4729_v37, %v969_v28  ;;  %v2839_v39 = vpop.f32.mrf.mxu1  ;;  %v5585_v18 = vld [vmem:[#allocation84_spill] sm:$0xff] }
 0x1f1   :  { %v2079_v13 = vmax.f32 %v1951_v20, %v2015_v7  ;;  %v1315_v16 = vadd.f32 %v4729_v37, %v5581_v62  ;;  %v5582_v32 = vmax.f32 %v4888_v56, 0.0  ;;  %v1889_v3 = vmax.f32 %v1615_v61, 0.0  ;;  %v979_v5 = vpop.f32.mrf.mxu0 }
 0x1f2   :  { %2140 = vst [vmem:[%s5180_s3 + $0x1b0] sm:$0xff] %v2076_v63  ;;  %v1610_v15 = vadd.f32 %v4729_v37, %v1609_v29  ;;  %v5583_v19 = vmax.f32 %v4923_v10, 0.0  ;;  %v1760_v52 = vmax.f32 %v970_v38, 0.0  ;;  %v985_v57 = vadd.f32 %v4729_v37, %v2647_v30  ;;  %v1619_v33 = vpop.f32.mrf.mxu1 }
 0x1f3   :  { %v2014_v11 = vmax.f32 %v5582_v32, %v1886_v9  ;;  %2143 = vst [vmem:[%s5180_s3 + $0x1c8] sm:$0xff] %v2079_v13  ;;  %v1625_v51 = vadd.f32 %v4729_v37, %v2839_v39  ;;  %v1701_v56 = vmax.f32 %v5107_v48, 0.0  ;;  %v5584_v47 = vmax.f32 %v4934_v42, 0.0  ;;  %v2650_v1 = vpop.f32.mrf.mxu0 }
 0x1f4   :  { %v1953_v60 = vmax.f32 %v5583_v19, %v1761_v46  ;;  %v1888_v8 = vmax.f32 %v1610_v15, 0.0  ;;  %v1952_v17 = vmax.f32 %v1696_v36, %v1760_v52  ;;  %v1763_v14 = vmax.f32 %v985_v57, 0.0  ;;  %v2842_v12 = vpop.f32.mrf.mxu1 }
 0x1f5   :  { %v2078_v44 = vmax.f32 %v1950_v58, %v2014_v11  ;;  %v2017_v25 = vmax.f32 %v5584_v47, %v1889_v3  ;;  %v1891_v10 = vmax.f32 %v1625_v51, 0.0  ;;  %v980_v35 = vadd.f32 %v4729_v37, %v979_v5  ;;  %v989_v53 = vpop.f32.mrf.mxu0 }
 0x1f6   :  { %v670_v26 = vadd.f32 %v4729_v37, %v5585_v18  ;;  %v2016_v42 = vmax.f32 %v1824_v50, %v1888_v8  ;;  %v1620_v4 = vadd.f32 %v4729_v37, %v1619_v33  ;;  %v1955_v36 = vmax.f32 %v1699_v6, %v1763_v14  ;;  %v1629_v27 = vpop.f32.mrf.mxu1 }
 0x1f7   :  { %2142 = vst [vmem:[%s5180_s3 + $0x1c0] sm:$0xff] %v2078_v44  ;;  %v2081_v22 = vmax.f32 %v1953_v60, %v2017_v25  ;;  %v2019_v2 = vmax.f32 %v1827_v34, %v1891_v10  ;;  %v1762_v23 = vmax.f32 %v980_v35, 0.0  ;;  %v995_v21 = vadd.f32 %v4729_v37, %v2650_v1 }
 0x1f8   :  { %v1310_v40 = vadd.f32 %v4729_v37, %v5586_v49  ;;  %v2080_v59 = vmax.f32 %v1952_v17, %v2016_v42  ;;  %v1890_v50 = vmax.f32 %v1620_v4, 0.0  ;;  %v1635_v20 = vadd.f32 %v4729_v37, %v2842_v12 }
 0x1f9   :  { %2145 = vst [vmem:[%s5180_s3 + $0x1d8] sm:$0xff] %v2081_v22  ;;  %v2083_v6 = vmax.f32 %v1955_v36, %v2019_v2  ;;  %v1954_v45 = vmax.f32 %v1698_v24, %v1762_v23  ;;  %v1765_v34 = vmax.f32 %v995_v21, 0.0  ;;  %v990_v7 = vadd.f32 %v4729_v37, %v989_v53 }
 0x1fa   :  { %v1829_v54 = vmax.f32 %v1315_v16, 0.0  ;;  %2144 = vst [vmem:[%s5180_s3 + $0x1d0] sm:$0xff] %v2080_v59  ;;  %v2018_v41 = vmax.f32 %v1826_v43, %v1890_v50  ;;  %v1893_v0 = vmax.f32 %v1635_v20, 0.0  ;;  %v1630_v48 = vadd.f32 %v4729_v37, %v1629_v27 }
 0x1fb   :  { %v1700_v63 = vmax.f32 %v670_v26, 0.0  ;;  %2147 = vst [vmem:[%s5180_s3 + $0x1e8] sm:$0xff] %v2083_v6  ;;  %v1957_v31 = vmax.f32 %v1701_v56, %v1765_v34  ;;  %v1764_v24 = vmax.f32 %v990_v7, 0.0  ;;  %v1828_v9 = vmax.f32 %v1310_v40, 0.0 }
 0x1fc   :  { %v2082_v61 = vmax.f32 %v1954_v45, %v2018_v41  ;;  %v2021_v28 = vmax.f32 %v1829_v54, %v1893_v0  ;;  %v1892_v29 = vmax.f32 %v1630_v48, 0.0 }
 0x1fd   :  { %v1956_v13 = vmax.f32 %v1700_v63, %v1764_v24 }
 0x1fe   :  { %2146 = vst [vmem:[%s5180_s3 + $0x1e0] sm:$0xff] %v2082_v61  ;;  %v2085_v55 = vmax.f32 %v1957_v31, %v2021_v28  ;;  %v2020_v43 = vmax.f32 %v1828_v9, %v1892_v29 }
 0x200   :  { %2149 = vst [vmem:[%s5180_s3 + $0x1f8] sm:$0xff] %v2085_v55  ;;  %v2084_v37 = vmax.f32 %v1956_v13, %v2020_v43 }
 0x202   :  { %2148 = vst [vmem:[%s5180_s3 + $0x1f0] sm:$0xff] %v2084_v37 }

// kernel: jpeg_compression_predictor.6
= control target key start
LH: loop header
LB: loop body
LE: loop exit
PB: predicated region body
PF: predicated region fallthrough
CT: control target
= control target key end

     0   :  { %v764_v0 = vmov 0.0   ;;  %s1542_s1 = inlined_call_operand.vmem [shape: f32[256,128], index: 1, kind: input, shape index: {}]   ;;  %s1543_s0 = inlined_call_operand.vmem [shape: f32[512,256], index: 0, kind: input, shape index: {}]   ;;  %s1544_s2 = inlined_call_operand.vmem [shape: f32[1,128], index: 2, kind: input, shape index: {}]   ;;  %s1545_s3 = inlined_call_operand.vmem [shape: f32[128,128], index: 3, kind: output, shape index: {}]  }
   0x1   :  { %181 = vmatprep.subr.mxu0 %v764_v0  ;;  %699 = vmatprep.subr.mxu1 %v764_v0  ;;  %v157_v1 = vld [vmem:[%s1542_s1 + $0x78] sm:$0xff]  ;;  %v156_v2 = vld [vmem:[%s1542_s1 + $0x70] sm:$0xff]  ;;  %v155_v3 = vld [vmem:[%s1542_s1 + $0x68] sm:$0xff] }
   0x2   :  { %182 = vmatpush1.msra.mxu0 %v157_v1  ;;  %731 = vmatpush1.msra.mxu1 %v157_v1  ;;  %v154_v4 = vld [vmem:[%s1542_s1 + $0x60] sm:$0xff]  ;;  %v153_v5 = vld [vmem:[%s1542_s1 + $0x58] sm:$0xff]  ;;  %v152_v6 = vld [vmem:[%s1542_s1 + $0x50] sm:$0xff] }
   0x3   :  { %183 = vmatprep.subr.mxu0 %v764_v0  ;;  %700 = vmatprep.subr.mxu1 %v764_v0  ;;  %v151_v7 = vld [vmem:[%s1542_s1 + $0x48] sm:$0xff]  ;;  %v150_v8 = vld [vmem:[%s1542_s1 + $0x40] sm:$0xff]  ;;  %v149_v9 = vld [vmem:[%s1542_s1 + $0x38] sm:$0xff] }
   0x4   :  { %184 = vmatpush1.msra.mxu0 %v156_v2  ;;  %732 = vmatpush1.msra.mxu1 %v156_v2  ;;  %v148_v10 = vld [vmem:[%s1542_s1 + $0x30] sm:$0xff]  ;;  %v147_v11 = vld [vmem:[%s1542_s1 + $0x28] sm:$0xff]  ;;  %v146_v12 = vld [vmem:[%s1542_s1 + $0x20] sm:$0xff] }
   0x5   :  { %185 = vmatprep.subr.mxu0 %v764_v0  ;;  %701 = vmatprep.subr.mxu1 %v764_v0  ;;  %v145_v13 = vld [vmem:[%s1542_s1 + $0x18] sm:$0xff]  ;;  %v144_v14 = vld [vmem:[%s1542_s1 + $0x10] sm:$0xff]  ;;  %v143_v15 = vld [vmem:[%s1542_s1 + $0x8] sm:$0xff] }
   0x6   :  { %186 = vmatpush1.msra.mxu0 %v155_v3  ;;  %733 = vmatpush1.msra.mxu1 %v155_v3  ;;  %v142_v16 = vld [vmem:[%s1542_s1] sm:$0xff]  ;;  %v173_v17 = vld [vmem:[%s1542_s1 + $0xf8] sm:$0xff]  ;;  %v172_v18 = vld [vmem:[%s1542_s1 + $0xf0] sm:$0xff] }
   0x7   :  { %187 = vmatprep.subr.mxu0 %v764_v0  ;;  %702 = vmatprep.subr.mxu1 %v764_v0  ;;  %v171_v19 = vld [vmem:[%s1542_s1 + $0xe8] sm:$0xff]  ;;  %v170_v20 = vld [vmem:[%s1542_s1 + $0xe0] sm:$0xff]  ;;  %v169_v21 = vld [vmem:[%s1542_s1 + $0xd8] sm:$0xff] }
   0x8   :  { %188 = vmatpush1.msra.mxu0 %v154_v4  ;;  %734 = vmatpush1.msra.mxu1 %v154_v4  ;;  %v168_v22 = vld [vmem:[%s1542_s1 + $0xd0] sm:$0xff]  ;;  %v167_v23 = vld [vmem:[%s1542_s1 + $0xc8] sm:$0xff]  ;;  %v166_v24 = vld [vmem:[%s1542_s1 + $0xc0] sm:$0xff] }
   0x9   :  { %189 = vmatprep.subr.mxu0 %v764_v0  ;;  %703 = vmatprep.subr.mxu1 %v764_v0  ;;  %v165_v25 = vld [vmem:[%s1542_s1 + $0xb8] sm:$0xff]  ;;  %v164_v26 = vld [vmem:[%s1542_s1 + $0xb0] sm:$0xff]  ;;  %v163_v27 = vld [vmem:[%s1542_s1 + $0xa8] sm:$0xff] }
   0xa   :  { %190 = vmatpush1.msra.mxu0 %v153_v5  ;;  %735 = vmatpush1.msra.mxu1 %v153_v5  ;;  %v162_v28 = vld [vmem:[%s1542_s1 + $0xa0] sm:$0xff]  ;;  %v161_v29 = vld [vmem:[%s1542_s1 + $0x98] sm:$0xff]  ;;  %v160_v30 = vld [vmem:[%s1542_s1 + $0x90] sm:$0xff] }
   0xb   :  { %191 = vmatprep.subr.mxu0 %v764_v0  ;;  %704 = vmatprep.subr.mxu1 %v764_v0  ;;  %v159_v31 = vld [vmem:[%s1542_s1 + $0x88] sm:$0xff]  ;;  %v158_v32 = vld [vmem:[%s1542_s1 + $0x80] sm:$0xff]  ;;  %v17_v37 = vld [vmem:[%s1543_s0 + $0x18] sm:$0xff] }
   0xc   :  { %192 = vmatpush1.msra.mxu0 %v152_v6  ;;  %736 = vmatpush1.msra.mxu1 %v152_v6  ;;  %v15_v33 = vld [vmem:[%s1543_s0 + $0x8] sm:$0xff]  ;;  %v14_v35 = vld [vmem:[%s1543_s0] sm:$0xff]  ;;  %v81_v38 = vld [vmem:[%s1543_s0 + $0x218] sm:$0xff] }
   0xd   :  { %193 = vmatprep.subr.mxu0 %v764_v0  ;;  %705 = vmatprep.subr.mxu1 %v764_v0  ;;  %v79_v34 = vld [vmem:[%s1543_s0 + $0x208] sm:$0xff]  ;;  %v78_v36 = vld [vmem:[%s1543_s0 + $0x200] sm:$0xff]  ;;  %v16_v39 = vld [vmem:[%s1543_s0 + $0x10] sm:$0xff] }
   0xe   :  { %194 = vmatpush1.msra.mxu0 %v151_v7  ;;  %737 = vmatpush1.msra.mxu1 %v151_v7  ;;  %v80_v40 = vld [vmem:[%s1543_s0 + $0x210] sm:$0xff]  ;;  %v19_v41 = vld [vmem:[%s1543_s0 + $0x28] sm:$0xff]  ;;  %v18_v43 = vld [vmem:[%s1543_s0 + $0x20] sm:$0xff] }
   0xf   :  { %195 = vmatprep.subr.mxu0 %v764_v0  ;;  %706 = vmatprep.subr.mxu1 %v764_v0  ;;  %v83_v42 = vld [vmem:[%s1543_s0 + $0x228] sm:$0xff]  ;;  %v82_v44 = vld [vmem:[%s1543_s0 + $0x220] sm:$0xff]  ;;  %v21_v45 = vld [vmem:[%s1543_s0 + $0x38] sm:$0xff] }
  0x10   :  { %196 = vmatpush1.msra.mxu0 %v150_v8  ;;  %738 = vmatpush1.msra.mxu1 %v150_v8  ;;  %v85_v46 = vld [vmem:[%s1543_s0 + $0x238] sm:$0xff]  ;;  %v20_v47 = vld [vmem:[%s1543_s0 + $0x30] sm:$0xff]  ;;  %v23_v49 = vld [vmem:[%s1543_s0 + $0x48] sm:$0xff] }
  0x11   :  { %197 = vmatprep.subr.mxu0 %v764_v0  ;;  %707 = vmatprep.subr.mxu1 %v764_v0  ;;  %v84_v48 = vld [vmem:[%s1543_s0 + $0x230] sm:$0xff]  ;;  %v87_v50 = vld [vmem:[%s1543_s0 + $0x248] sm:$0xff]  ;;  %v22_v51 = vld [vmem:[%s1543_s0 + $0x40] sm:$0xff] }
  0x12   :  { %198 = vmatpush1.msra.mxu0 %v149_v9  ;;  %739 = vmatpush1.msra.mxu1 %v149_v9  ;;  %v86_v52 = vld [vmem:[%s1543_s0 + $0x240] sm:$0xff]  ;;  %v25_v53 = vld [vmem:[%s1543_s0 + $0x58] sm:$0xff]  ;;  %v24_v55 = vld [vmem:[%s1543_s0 + $0x50] sm:$0xff] }
  0x13   :  { %199 = vmatprep.subr.mxu0 %v764_v0  ;;  %708 = vmatprep.subr.mxu1 %v764_v0  ;;  %v89_v54 = vld [vmem:[%s1543_s0 + $0x258] sm:$0xff]  ;;  %v88_v56 = vld [vmem:[%s1543_s0 + $0x250] sm:$0xff]  ;;  %v27_v57 = vld [vmem:[%s1543_s0 + $0x68] sm:$0xff] }
  0x14   :  { %200 = vmatpush1.msra.mxu0 %v148_v10  ;;  %740 = vmatpush1.msra.mxu1 %v148_v10  ;;  %v91_v58 = vld [vmem:[%s1543_s0 + $0x268] sm:$0xff]  ;;  %v26_v59 = vld [vmem:[%s1543_s0 + $0x60] sm:$0xff]  ;;  %v29_v61 = vld [vmem:[%s1543_s0 + $0x78] sm:$0xff] }
  0x15   :  { %201 = vmatprep.subr.mxu0 %v764_v0  ;;  %709 = vmatprep.subr.mxu1 %v764_v0  ;;  %v90_v60 = vld [vmem:[%s1543_s0 + $0x260] sm:$0xff]  ;;  %v93_v62 = vld [vmem:[%s1543_s0 + $0x278] sm:$0xff]  ;;  %v28_v63 = vld [vmem:[%s1543_s0 + $0x70] sm:$0xff] }
  0x16   :  { %202 = vmatpush1.msra.mxu0 %v147_v11  ;;  %741 = vmatpush1.msra.mxu1 %v147_v11  ;;  %v31_v1 = vld [vmem:[%s1543_s0 + $0x88] sm:$0xff]  ;;  %v30_v3 = vld [vmem:[%s1543_s0 + $0x80] sm:$0xff]  ;;  %v33_v5 = vld [vmem:[%s1543_s0 + $0x98] sm:$0xff] }
  0x17   :  { %203 = vmatprep.subr.mxu0 %v764_v0  ;;  %710 = vmatprep.subr.mxu1 %v764_v0  ;;  %v95_v2 = vld [vmem:[%s1543_s0 + $0x288] sm:$0xff]  ;;  %v94_v4 = vld [vmem:[%s1543_s0 + $0x280] sm:$0xff]  ;;  %v97_v6 = vld [vmem:[%s1543_s0 + $0x298] sm:$0xff] }
  0x18   :  { %204 = vmatpush1.msra.mxu0 %v146_v12  ;;  %742 = vmatpush1.msra.mxu1 %v146_v12  ;;  %v32_v7 = vld [vmem:[%s1543_s0 + $0x90] sm:$0xff]  ;;  %v35_v9 = vld [vmem:[%s1543_s0 + $0xa8] sm:$0xff]  ;;  %v34_v11 = vld [vmem:[%s1543_s0 + $0xa0] sm:$0xff] }
  0x19   :  { %205 = vmatprep.subr.mxu0 %v764_v0  ;;  %711 = vmatprep.subr.mxu1 %v764_v0  ;;  %v96_v8 = vld [vmem:[%s1543_s0 + $0x290] sm:$0xff]  ;;  %v99_v10 = vld [vmem:[%s1543_s0 + $0x2a8] sm:$0xff]  ;;  %v98_v12 = vld [vmem:[%s1543_s0 + $0x2a0] sm:$0xff] }
  0x1a   :  { %206 = vmatpush1.msra.mxu0 %v145_v13  ;;  %743 = vmatpush1.msra.mxu1 %v145_v13  ;;  %v37_v13 = vld [vmem:[%s1543_s0 + $0xb8] sm:$0xff] }
  0x1b   :  { %207 = vmatprep.subr.mxu0 %v764_v0  ;;  %712 = vmatprep.subr.mxu1 %v764_v0 }
  0x1c   :  { %208 = vmatpush1.msra.mxu0 %v144_v14  ;;  %744 = vmatpush1.msra.mxu1 %v144_v14  ;;  %v101_v14 = vld [vmem:[%s1543_s0 + $0x2b8] sm:$0xff] }
  0x1d   :  { %209 = vmatprep.subr.mxu0 %v764_v0  ;;  %713 = vmatprep.subr.mxu1 %v764_v0 }
  0x1e   :  { %210 = vmatpush1.msra.mxu0 %v143_v15  ;;  %745 = vmatpush1.msra.mxu1 %v143_v15  ;;  %v36_v15 = vld [vmem:[%s1543_s0 + $0xb0] sm:$0xff] }
  0x1f   :  { %211 = vmatprep.subr.mxu0 %v764_v0  ;;  %714 = vmatprep.subr.mxu1 %v764_v0 }
  0x20   :  { %212 = vmatpush1.msra.mxu0 %v142_v16  ;;  %746 = vmatpush1.msra.mxu1 %v142_v16  ;;  %v100_v16 = vld [vmem:[%s1543_s0 + $0x2b0] sm:$0xff] }
  0x21   :  { %213 = vmatprep.subr.mxu0 %v764_v0  ;;  %715 = vmatprep.subr.mxu1 %v764_v0 }
  0x22   :  { %214 = vmatpush2.msra.mxu0 %v173_v17  ;;  %747 = vmatpush2.msra.mxu1 %v173_v17  ;;  %v39_v17 = vld [vmem:[%s1543_s0 + $0xc8] sm:$0xff] }
  0x23   :  { %215 = vmatprep.subr.mxu0 %v764_v0  ;;  %716 = vmatprep.subr.mxu1 %v764_v0 }
  0x24   :  { %216 = vmatpush2.msra.mxu0 %v172_v18  ;;  %748 = vmatpush2.msra.mxu1 %v172_v18  ;;  %v103_v18 = vld [vmem:[%s1543_s0 + $0x2c8] sm:$0xff] }
  0x25   :  { %217 = vmatprep.subr.mxu0 %v764_v0  ;;  %717 = vmatprep.subr.mxu1 %v764_v0 }
  0x26   :  { %218 = vmatpush2.msra.mxu0 %v171_v19  ;;  %749 = vmatpush2.msra.mxu1 %v171_v19  ;;  %v38_v19 = vld [vmem:[%s1543_s0 + $0xc0] sm:$0xff] }
  0x27   :  { %219 = vmatprep.subr.mxu0 %v764_v0  ;;  %718 = vmatprep.subr.mxu1 %v764_v0 }
  0x28   :  { %220 = vmatpush2.msra.mxu0 %v170_v20  ;;  %750 = vmatpush2.msra.mxu1 %v170_v20  ;;  %v102_v20 = vld [vmem:[%s1543_s0 + $0x2c0] sm:$0xff] }
  0x29   :  { %221 = vmatprep.subr.mxu0 %v764_v0  ;;  %719 = vmatprep.subr.mxu1 %v764_v0 }
  0x2a   :  { %222 = vmatpush2.msra.mxu0 %v169_v21  ;;  %751 = vmatpush2.msra.mxu1 %v169_v21  ;;  %v41_v21 = vld [vmem:[%s1543_s0 + $0xd8] sm:$0xff] }
  0x2b   :  { %223 = vmatprep.subr.mxu0 %v764_v0  ;;  %720 = vmatprep.subr.mxu1 %v764_v0 }
  0x2c   :  { %224 = vmatpush2.msra.mxu0 %v168_v22  ;;  %752 = vmatpush2.msra.mxu1 %v168_v22  ;;  %v105_v22 = vld [vmem:[%s1543_s0 + $0x2d8] sm:$0xff] }
  0x2d   :  { %225 = vmatprep.subr.mxu0 %v764_v0  ;;  %721 = vmatprep.subr.mxu1 %v764_v0 }
  0x2e   :  { %226 = vmatpush2.msra.mxu0 %v167_v23  ;;  %753 = vmatpush2.msra.mxu1 %v167_v23  ;;  %v40_v23 = vld [vmem:[%s1543_s0 + $0xd0] sm:$0xff] }
  0x2f   :  { %227 = vmatprep.subr.mxu0 %v764_v0  ;;  %722 = vmatprep.subr.mxu1 %v764_v0 }
  0x30   :  { %228 = vmatpush2.msra.mxu0 %v166_v24  ;;  %754 = vmatpush2.msra.mxu1 %v166_v24  ;;  %v104_v24 = vld [vmem:[%s1543_s0 + $0x2d0] sm:$0xff] }
  0x31   :  { %229 = vmatprep.subr.mxu0 %v764_v0  ;;  %723 = vmatprep.subr.mxu1 %v764_v0 }
  0x32   :  { %230 = vmatpush2.msra.mxu0 %v165_v25  ;;  %755 = vmatpush2.msra.mxu1 %v165_v25  ;;  %v43_v25 = vld [vmem:[%s1543_s0 + $0xe8] sm:$0xff] }
  0x33   :  { %231 = vmatprep.subr.mxu0 %v764_v0  ;;  %724 = vmatprep.subr.mxu1 %v764_v0 }
  0x34   :  { %232 = vmatpush2.msra.mxu0 %v164_v26  ;;  %756 = vmatpush2.msra.mxu1 %v164_v26  ;;  %v107_v26 = vld [vmem:[%s1543_s0 + $0x2e8] sm:$0xff] }
  0x35   :  { %233 = vmatprep.subr.mxu0 %v764_v0  ;;  %725 = vmatprep.subr.mxu1 %v764_v0 }
  0x36   :  { %234 = vmatpush2.msra.mxu0 %v163_v27  ;;  %757 = vmatpush2.msra.mxu1 %v163_v27  ;;  %v42_v27 = vld [vmem:[%s1543_s0 + $0xe0] sm:$0xff] }
  0x37   :  { %235 = vmatprep.subr.mxu0 %v764_v0  ;;  %726 = vmatprep.subr.mxu1 %v764_v0 }
  0x38   :  { %236 = vmatpush2.msra.mxu0 %v162_v28  ;;  %758 = vmatpush2.msra.mxu1 %v162_v28  ;;  %v106_v28 = vld [vmem:[%s1543_s0 + $0x2e0] sm:$0xff] }
  0x39   :  { %237 = vmatprep.subr.mxu0 %v764_v0  ;;  %727 = vmatprep.subr.mxu1 %v764_v0 }
  0x3a   :  { %238 = vmatpush2.msra.mxu0 %v161_v29  ;;  %759 = vmatpush2.msra.mxu1 %v161_v29  ;;  %v45_v29 = vld [vmem:[%s1543_s0 + $0xf8] sm:$0xff] }
  0x3b   :  { %239 = vmatprep.subr.mxu0 %v764_v0  ;;  %728 = vmatprep.subr.mxu1 %v764_v0 }
  0x3c   :  { %240 = vmatpush2.msra.mxu0 %v160_v30  ;;  %760 = vmatpush2.msra.mxu1 %v160_v30  ;;  %v109_v30 = vld [vmem:[%s1543_s0 + $0x2f8] sm:$0xff] }
  0x3d   :  { %241 = vmatprep.subr.mxu0 %v764_v0  ;;  %729 = vmatprep.subr.mxu1 %v764_v0 }
  0x3e   :  { %242 = vmatpush2.msra.mxu0 %v159_v31  ;;  %761 = vmatpush2.msra.mxu1 %v159_v31  ;;  %v44_v31 = vld [vmem:[%s1543_s0 + $0xf0] sm:$0xff] }
  0x3f   :  { %243 = vmatprep.subr.mxu0 %v764_v0  ;;  %730 = vmatprep.subr.mxu1 %v764_v0  ;;  %v92_v0 = vld [vmem:[%s1543_s0 + $0x270] sm:$0xff] }
  0x40   :  { %244 = vmatpush2.msra.mxu0 %v158_v32  ;;  %762 = vmatpush2.msra.mxu1 %v158_v32  ;;  %v108_v32 = vld [vmem:[%s1543_s0 + $0x2f0] sm:$0xff] }
  0x41   :  { %245 = vmatprep.mubr.f32.mxu0 %v15_v33  ;;  %405 = vmatprep.mubr.f32.mxu1 %v79_v34  ;;  %v47_v33 = vld [vmem:[%s1543_s0 + $0x108] sm:$0xff] }
  0x42   :  { %246 = vmatmul.mubr.f32.vlgmr.msra.gmra.mxu0 %v14_v35  ;;  %406 = vmatmul.mubr.f32.vlgmr.msra.gmra.mxu1 %v78_v36  ;;  %v111_v34 = vld [vmem:[%s1543_s0 + $0x308] sm:$0xff]  ;;  %v46_v35 = vld [vmem:[%s1543_s0 + $0x100] sm:$0xff] }
  0x43   :  { %250 = vmatprep.mubr.f32.mxu0 %v17_v37  ;;  %410 = vmatprep.mubr.f32.mxu1 %v81_v38  ;;  %v110_v36 = vld [vmem:[%s1543_s0 + $0x300] sm:$0xff]  ;;  %v49_v37 = vld [vmem:[%s1543_s0 + $0x118] sm:$0xff] }
  0x44   :  { %v113_v38 = vld [vmem:[%s1543_s0 + $0x318] sm:$0xff] }
  0x46   :  { %251 = vmatmul.mubr.f32.gmra.mxu0 %v16_v39  ;;  %411 = vmatmul.mubr.f32.gmra.mxu1 %v80_v40  ;;  %v48_v39 = vld [vmem:[%s1543_s0 + $0x110] sm:$0xff] }
  0x47   :  { %255 = vmatprep.mubr.f32.mxu0 %v19_v41  ;;  %415 = vmatprep.mubr.f32.mxu1 %v83_v42  ;;  %v112_v40 = vld [vmem:[%s1543_s0 + $0x310] sm:$0xff]  ;;  %v51_v41 = vld [vmem:[%s1543_s0 + $0x128] sm:$0xff] }
  0x48   :  { %v115_v42 = vld [vmem:[%s1543_s0 + $0x328] sm:$0xff] }
  0x4a   :  { %256 = vmatmul.mubr.f32.gmra.mxu0 %v18_v43  ;;  %416 = vmatmul.mubr.f32.gmra.mxu1 %v82_v44  ;;  %v50_v43 = vld [vmem:[%s1543_s0 + $0x120] sm:$0xff] }
  0x4b   :  { %260 = vmatprep.mubr.f32.mxu0 %v21_v45  ;;  %420 = vmatprep.mubr.f32.mxu1 %v85_v46  ;;  %v114_v44 = vld [vmem:[%s1543_s0 + $0x320] sm:$0xff]  ;;  %v53_v45 = vld [vmem:[%s1543_s0 + $0x138] sm:$0xff] }
  0x4c   :  { %v117_v46 = vld [vmem:[%s1543_s0 + $0x338] sm:$0xff] }
  0x4e   :  { %261 = vmatmul.mubr.f32.gmra.mxu0 %v20_v47  ;;  %421 = vmatmul.mubr.f32.gmra.mxu1 %v84_v48  ;;  %v52_v47 = vld [vmem:[%s1543_s0 + $0x130] sm:$0xff] }
  0x4f   :  { %265 = vmatprep.mubr.f32.mxu0 %v23_v49  ;;  %425 = vmatprep.mubr.f32.mxu1 %v87_v50  ;;  %v116_v48 = vld [vmem:[%s1543_s0 + $0x330] sm:$0xff]  ;;  %v55_v49 = vld [vmem:[%s1543_s0 + $0x148] sm:$0xff] }
  0x50   :  { %v119_v50 = vld [vmem:[%s1543_s0 + $0x348] sm:$0xff] }
  0x52   :  { %266 = vmatmul.mubr.f32.gmra.mxu0 %v22_v51  ;;  %426 = vmatmul.mubr.f32.gmra.mxu1 %v86_v52  ;;  %v54_v51 = vld [vmem:[%s1543_s0 + $0x140] sm:$0xff] }
  0x53   :  { %270 = vmatprep.mubr.f32.mxu0 %v25_v53  ;;  %430 = vmatprep.mubr.f32.mxu1 %v89_v54  ;;  %v118_v52 = vld [vmem:[%s1543_s0 + $0x340] sm:$0xff]  ;;  %v57_v53 = vld [vmem:[%s1543_s0 + $0x158] sm:$0xff] }
  0x54   :  { %v121_v54 = vld [vmem:[%s1543_s0 + $0x358] sm:$0xff] }
  0x56   :  { %271 = vmatmul.mubr.f32.gmra.mxu0 %v24_v55  ;;  %431 = vmatmul.mubr.f32.gmra.mxu1 %v88_v56  ;;  %v56_v55 = vld [vmem:[%s1543_s0 + $0x150] sm:$0xff] }
  0x57   :  { %275 = vmatprep.mubr.f32.mxu0 %v27_v57  ;;  %435 = vmatprep.mubr.f32.mxu1 %v91_v58  ;;  %v120_v56 = vld [vmem:[%s1543_s0 + $0x350] sm:$0xff]  ;;  %v59_v57 = vld [vmem:[%s1543_s0 + $0x168] sm:$0xff] }
  0x58   :  { %v123_v58 = vld [vmem:[%s1543_s0 + $0x368] sm:$0xff] }
  0x5a   :  { %276 = vmatmul.mubr.f32.gmra.mxu0 %v26_v59  ;;  %436 = vmatmul.mubr.f32.gmra.mxu1 %v90_v60  ;;  %v58_v59 = vld [vmem:[%s1543_s0 + $0x160] sm:$0xff] }
  0x5b   :  { %280 = vmatprep.mubr.f32.mxu0 %v29_v61  ;;  %440 = vmatprep.mubr.f32.mxu1 %v93_v62  ;;  %v122_v60 = vld [vmem:[%s1543_s0 + $0x360] sm:$0xff]  ;;  %v61_v61 = vld [vmem:[%s1543_s0 + $0x178] sm:$0xff] }
  0x5c   :  { %v125_v62 = vld [vmem:[%s1543_s0 + $0x378] sm:$0xff] }
  0x5e   :  { %281 = vmatmul.mubr.f32.gmra.mxu0 %v28_v63  ;;  %441 = vmatmul.mubr.f32.gmra.mxu1 %v92_v0  ;;  %v60_v63 = vld [vmem:[%s1543_s0 + $0x170] sm:$0xff] }
  0x5f   :  { %285 = vmatprep.mubr.f32.mxu0 %v31_v1  ;;  %445 = vmatprep.mubr.f32.mxu1 %v95_v2  ;;  %v124_v0 = vld [vmem:[%s1543_s0 + $0x370] sm:$0xff]  ;;  %v63_v1 = vld [vmem:[%s1543_s0 + $0x188] sm:$0xff] }
  0x60   :  { %v127_v2 = vld [vmem:[%s1543_s0 + $0x388] sm:$0xff] }
  0x62   :  { %286 = vmatmul.mubr.f32.gmra.mxu0 %v30_v3  ;;  %446 = vmatmul.mubr.f32.gmra.mxu1 %v94_v4  ;;  %v62_v3 = vld [vmem:[%s1543_s0 + $0x180] sm:$0xff] }
  0x63   :  { %290 = vmatprep.mubr.f32.mxu0 %v33_v5  ;;  %450 = vmatprep.mubr.f32.mxu1 %v97_v6  ;;  %v126_v4 = vld [vmem:[%s1543_s0 + $0x380] sm:$0xff]  ;;  %v65_v5 = vld [vmem:[%s1543_s0 + $0x198] sm:$0xff] }
  0x64   :  { %v129_v6 = vld [vmem:[%s1543_s0 + $0x398] sm:$0xff] }
  0x66   :  { %291 = vmatmul.mubr.f32.gmra.mxu0 %v32_v7  ;;  %451 = vmatmul.mubr.f32.gmra.mxu1 %v96_v8  ;;  %v64_v7 = vld [vmem:[%s1543_s0 + $0x190] sm:$0xff] }
  0x67   :  { %295 = vmatprep.mubr.f32.mxu0 %v35_v9  ;;  %455 = vmatprep.mubr.f32.mxu1 %v99_v10  ;;  %v128_v8 = vld [vmem:[%s1543_s0 + $0x390] sm:$0xff]  ;;  %v67_v9 = vld [vmem:[%s1543_s0 + $0x1a8] sm:$0xff] }
  0x68   :  { %v131_v10 = vld [vmem:[%s1543_s0 + $0x3a8] sm:$0xff] }
  0x6a   :  { %296 = vmatmul.mubr.f32.gmra.mxu0 %v34_v11  ;;  %456 = vmatmul.mubr.f32.gmra.mxu1 %v98_v12  ;;  %v66_v11 = vld [vmem:[%s1543_s0 + $0x1a0] sm:$0xff] }
  0x6b   :  { %300 = vmatprep.mubr.f32.mxu0 %v37_v13  ;;  %460 = vmatprep.mubr.f32.mxu1 %v101_v14  ;;  %v130_v12 = vld [vmem:[%s1543_s0 + $0x3a0] sm:$0xff]  ;;  %v69_v13 = vld [vmem:[%s1543_s0 + $0x1b8] sm:$0xff] }
  0x6c   :  { %v133_v14 = vld [vmem:[%s1543_s0 + $0x3b8] sm:$0xff] }
  0x6e   :  { %301 = vmatmul.mubr.f32.gmra.mxu0 %v36_v15  ;;  %461 = vmatmul.mubr.f32.gmra.mxu1 %v100_v16  ;;  %v68_v15 = vld [vmem:[%s1543_s0 + $0x1b0] sm:$0xff] }
  0x6f   :  { %305 = vmatprep.mubr.f32.mxu0 %v39_v17  ;;  %465 = vmatprep.mubr.f32.mxu1 %v103_v18  ;;  %v132_v16 = vld [vmem:[%s1543_s0 + $0x3b0] sm:$0xff]  ;;  %v71_v17 = vld [vmem:[%s1543_s0 + $0x1c8] sm:$0xff] }
  0x70   :  { %v135_v18 = vld [vmem:[%s1543_s0 + $0x3c8] sm:$0xff] }
  0x72   :  { %306 = vmatmul.mubr.f32.gmra.mxu0 %v38_v19  ;;  %466 = vmatmul.mubr.f32.gmra.mxu1 %v102_v20  ;;  %v70_v19 = vld [vmem:[%s1543_s0 + $0x1c0] sm:$0xff] }
  0x73   :  { %310 = vmatprep.mubr.f32.mxu0 %v41_v21  ;;  %470 = vmatprep.mubr.f32.mxu1 %v105_v22  ;;  %v134_v20 = vld [vmem:[%s1543_s0 + $0x3c0] sm:$0xff]  ;;  %v73_v21 = vld [vmem:[%s1543_s0 + $0x1d8] sm:$0xff] }
  0x74   :  { %v137_v22 = vld [vmem:[%s1543_s0 + $0x3d8] sm:$0xff] }
  0x76   :  { %311 = vmatmul.mubr.f32.gmra.mxu0 %v40_v23  ;;  %471 = vmatmul.mubr.f32.gmra.mxu1 %v104_v24  ;;  %v72_v23 = vld [vmem:[%s1543_s0 + $0x1d0] sm:$0xff] }
  0x77   :  { %315 = vmatprep.mubr.f32.mxu0 %v43_v25  ;;  %475 = vmatprep.mubr.f32.mxu1 %v107_v26  ;;  %v136_v24 = vld [vmem:[%s1543_s0 + $0x3d0] sm:$0xff]  ;;  %v75_v25 = vld [vmem:[%s1543_s0 + $0x1e8] sm:$0xff] }
  0x78   :  { %v139_v26 = vld [vmem:[%s1543_s0 + $0x3e8] sm:$0xff] }
  0x7a   :  { %316 = vmatmul.mubr.f32.gmra.mxu0 %v42_v27  ;;  %476 = vmatmul.mubr.f32.gmra.mxu1 %v106_v28  ;;  %v74_v27 = vld [vmem:[%s1543_s0 + $0x1e0] sm:$0xff] }
  0x7b   :  { %320 = vmatprep.mubr.f32.mxu0 %v45_v29  ;;  %480 = vmatprep.mubr.f32.mxu1 %v109_v30  ;;  %v138_v28 = vld [vmem:[%s1543_s0 + $0x3e0] sm:$0xff]  ;;  %v77_v29 = vld [vmem:[%s1543_s0 + $0x1f8] sm:$0xff] }
  0x7c   :  { %v141_v30 = vld [vmem:[%s1543_s0 + $0x3f8] sm:$0xff] }
  0x7e   :  { %321 = vmatmul.mubr.f32.gmra.mxu0 %v44_v31  ;;  %481 = vmatmul.mubr.f32.gmra.mxu1 %v108_v32  ;;  %v76_v31 = vld [vmem:[%s1543_s0 + $0x1f0] sm:$0xff] }
  0x7f   :  { %325 = vmatprep.mubr.f32.mxu0 %v47_v33  ;;  %485 = vmatprep.mubr.f32.mxu1 %v111_v34  ;;  %v140_v32 = vld [vmem:[%s1543_s0 + $0x3f0] sm:$0xff] }
  0x82   :  { %326 = vmatmul.mubr.f32.gmra.mxu0 %v46_v35  ;;  %486 = vmatmul.mubr.f32.gmra.mxu1 %v110_v36 }
  0x83   :  { %330 = vmatprep.mubr.f32.mxu0 %v49_v37  ;;  %490 = vmatprep.mubr.f32.mxu1 %v113_v38 }
  0x86   :  { %331 = vmatmul.mubr.f32.gmra.mxu0 %v48_v39  ;;  %491 = vmatmul.mubr.f32.gmra.mxu1 %v112_v40 }
  0x87   :  { %335 = vmatprep.mubr.f32.mxu0 %v51_v41  ;;  %495 = vmatprep.mubr.f32.mxu1 %v115_v42 }
  0x8a   :  { %336 = vmatmul.mubr.f32.gmra.mxu0 %v50_v43  ;;  %496 = vmatmul.mubr.f32.gmra.mxu1 %v114_v44 }
  0x8b   :  { %340 = vmatprep.mubr.f32.mxu0 %v53_v45  ;;  %500 = vmatprep.mubr.f32.mxu1 %v117_v46 }
  0x8e   :  { %341 = vmatmul.mubr.f32.gmra.mxu0 %v52_v47  ;;  %501 = vmatmul.mubr.f32.gmra.mxu1 %v116_v48 }
  0x8f   :  { %345 = vmatprep.mubr.f32.mxu0 %v55_v49  ;;  %505 = vmatprep.mubr.f32.mxu1 %v119_v50 }
  0x92   :  { %346 = vmatmul.mubr.f32.gmra.mxu0 %v54_v51  ;;  %506 = vmatmul.mubr.f32.gmra.mxu1 %v118_v52 }
  0x93   :  { %350 = vmatprep.mubr.f32.mxu0 %v57_v53  ;;  %510 = vmatprep.mubr.f32.mxu1 %v121_v54 }
  0x96   :  { %351 = vmatmul.mubr.f32.gmra.mxu0 %v56_v55  ;;  %511 = vmatmul.mubr.f32.gmra.mxu1 %v120_v56 }
  0x97   :  { %355 = vmatprep.mubr.f32.mxu0 %v59_v57  ;;  %515 = vmatprep.mubr.f32.mxu1 %v123_v58 }
  0x9a   :  { %356 = vmatmul.mubr.f32.gmra.mxu0 %v58_v59  ;;  %516 = vmatmul.mubr.f32.gmra.mxu1 %v122_v60 }
  0x9b   :  { %360 = vmatprep.mubr.f32.mxu0 %v61_v61  ;;  %520 = vmatprep.mubr.f32.mxu1 %v125_v62 }
  0x9e   :  { %361 = vmatmul.mubr.f32.gmra.mxu0 %v60_v63  ;;  %521 = vmatmul.mubr.f32.gmra.mxu1 %v124_v0 }
  0x9f   :  { %365 = vmatprep.mubr.f32.mxu0 %v63_v1  ;;  %525 = vmatprep.mubr.f32.mxu1 %v127_v2 }
  0xa2   :  { %366 = vmatmul.mubr.f32.gmra.mxu0 %v62_v3  ;;  %526 = vmatmul.mubr.f32.gmra.mxu1 %v126_v4 }
  0xa3   :  { %370 = vmatprep.mubr.f32.mxu0 %v65_v5  ;;  %530 = vmatprep.mubr.f32.mxu1 %v129_v6 }
  0xa6   :  { %371 = vmatmul.mubr.f32.gmra.mxu0 %v64_v7  ;;  %531 = vmatmul.mubr.f32.gmra.mxu1 %v128_v8 }
  0xa7   :  { %375 = vmatprep.mubr.f32.mxu0 %v67_v9  ;;  %535 = vmatprep.mubr.f32.mxu1 %v131_v10 }
  0xaa   :  { %376 = vmatmul.mubr.f32.gmra.mxu0 %v66_v11  ;;  %536 = vmatmul.mubr.f32.gmra.mxu1 %v130_v12 }
  0xab   :  { %380 = vmatprep.mubr.f32.mxu0 %v69_v13  ;;  %540 = vmatprep.mubr.f32.mxu1 %v133_v14 }
  0xae   :  { %381 = vmatmul.mubr.f32.gmra.mxu0 %v68_v15  ;;  %541 = vmatmul.mubr.f32.gmra.mxu1 %v132_v16 }
  0xaf   :  { %385 = vmatprep.mubr.f32.mxu0 %v71_v17  ;;  %545 = vmatprep.mubr.f32.mxu1 %v135_v18 }
  0xb2   :  { %386 = vmatmul.mubr.f32.gmra.mxu0 %v70_v19  ;;  %546 = vmatmul.mubr.f32.gmra.mxu1 %v134_v20 }
  0xb3   :  { %390 = vmatprep.mubr.f32.mxu0 %v73_v21  ;;  %550 = vmatprep.mubr.f32.mxu1 %v137_v22 }
  0xb6   :  { %391 = vmatmul.mubr.f32.gmra.mxu0 %v72_v23  ;;  %551 = vmatmul.mubr.f32.gmra.mxu1 %v136_v24 }
  0xb7   :  { %395 = vmatprep.mubr.f32.mxu0 %v75_v25  ;;  %555 = vmatprep.mubr.f32.mxu1 %v139_v26 }
  0xba   :  { %396 = vmatmul.mubr.f32.gmra.mxu0 %v74_v27  ;;  %556 = vmatmul.mubr.f32.gmra.mxu1 %v138_v28 }
  0xbb   :  { %400 = vmatprep.mubr.f32.mxu0 %v77_v29  ;;  %560 = vmatprep.mubr.f32.mxu1 %v141_v30  ;;  %v1392_v29 = vld [vmem:[%s1544_s2] ss:$0 sm:$0xff] }
  0xbe   :  { %401 = vmatmul.mubr.f32.gmra.mxu0 %v76_v31  ;;  %561 = vmatmul.mubr.f32.gmra.mxu1 %v140_v32 }
 0x102   :  { %v1329_v33 = vpop.f32.mrf.mxu0  ;;  %v1331_v34 = vpop.f32.mrf.mxu1 }
 0x103   :  { %v248_v32 = vadd.f32 %v1392_v29, %v1329_v33 }
 0x104   :  { %v249_v35 = vpop.f32.mrf.mxu0  ;;  %v409_v36 = vpop.f32.mrf.mxu1 }
 0x106   :  { %v1333_v37 = vpop.f32.mrf.mxu0  ;;  %v1335_v38 = vpop.f32.mrf.mxu1 }
 0x107   :  { %v413_v33 = vadd.f32 %v1392_v29, %v1335_v38 }
 0x108   :  { %v254_v39 = vpop.f32.mrf.mxu0  ;;  %v414_v40 = vpop.f32.mrf.mxu1 }
 0x109   :  { %v408_v39 = vadd.f32 %v1392_v29, %v1331_v34  ;;  %v599_v38 = vmax.f32 %v413_v33, 0.0 }
 0x10a   :  { %v1337_v41 = vpop.f32.mrf.mxu0  ;;  %v1339_v42 = vpop.f32.mrf.mxu1 }
 0x10c   :  { %v259_v43 = vpop.f32.mrf.mxu0  ;;  %v419_v44 = vpop.f32.mrf.mxu1 }
 0x10e   :  { %v1341_v45 = vpop.f32.mrf.mxu0  ;;  %v1343_v46 = vpop.f32.mrf.mxu1 }
 0x110   :  { %v264_v47 = vpop.f32.mrf.mxu0  ;;  %v424_v48 = vpop.f32.mrf.mxu1 }
 0x111   :  { %v566_v48 = vmax.f32 %v248_v32, 0.0 }
 0x112   :  { %v1345_v49 = vpop.f32.mrf.mxu0  ;;  %v1347_v50 = vpop.f32.mrf.mxu1 }
 0x114   :  { %v269_v51 = vpop.f32.mrf.mxu0  ;;  %v429_v52 = vpop.f32.mrf.mxu1 }
 0x115   :  { %v253_v51 = vadd.f32 %v1392_v29, %v1333_v37  ;;  %v258_v37 = vadd.f32 %v1392_v29, %v1337_v41 }
 0x116   :  { %v1349_v53 = vpop.f32.mrf.mxu0  ;;  %v1351_v54 = vpop.f32.mrf.mxu1 }
 0x118   :  { %v274_v55 = vpop.f32.mrf.mxu0  ;;  %v434_v56 = vpop.f32.mrf.mxu1 }
 0x119   :  { %v598_v56 = vmax.f32 %v408_v39, 0.0 }
 0x11a   :  { %v1353_v57 = vpop.f32.mrf.mxu0  ;;  %v1355_v58 = vpop.f32.mrf.mxu1 }
 0x11c   :  { %v279_v59 = vpop.f32.mrf.mxu0  ;;  %v439_v60 = vpop.f32.mrf.mxu1 }
 0x11e   :  { %v1357_v61 = vpop.f32.mrf.mxu0  ;;  %v1359_v62 = vpop.f32.mrf.mxu1 }
 0x120   :  { %v284_v63 = vpop.f32.mrf.mxu0  ;;  %v444_v0 = vpop.f32.mrf.mxu1 }
 0x122   :  { %v1361_v1 = vpop.f32.mrf.mxu0  ;;  %v1363_v2 = vpop.f32.mrf.mxu1 }
 0x124   :  { %v289_v3 = vpop.f32.mrf.mxu0  ;;  %v449_v4 = vpop.f32.mrf.mxu1 }
 0x126   :  { %v1365_v5 = vpop.f32.mrf.mxu0  ;;  %v1367_v6 = vpop.f32.mrf.mxu1 }
 0x128   :  { %v294_v7 = vpop.f32.mrf.mxu0  ;;  %v454_v8 = vpop.f32.mrf.mxu1 }
 0x129   :  { %v567_v8 = vmax.f32 %v253_v51, 0.0 }
 0x12a   :  { %v1369_v9 = vpop.f32.mrf.mxu0  ;;  %v1371_v10 = vpop.f32.mrf.mxu1 }
 0x12c   :  { %v299_v11 = vpop.f32.mrf.mxu0  ;;  %v459_v12 = vpop.f32.mrf.mxu1 }
 0x12d   :  { %v418_v11 = vadd.f32 %v1392_v29, %v1339_v42 }
 0x12e   :  { %v1373_v13 = vpop.f32.mrf.mxu0  ;;  %v1375_v14 = vpop.f32.mrf.mxu1 }
 0x12f   :  { %v600_v42 = vmax.f32 %v418_v11, 0.0 }
 0x130   :  { %v304_v15 = vpop.f32.mrf.mxu0  ;;  %v464_v16 = vpop.f32.mrf.mxu1 }
 0x132   :  { %v1377_v17 = vpop.f32.mrf.mxu0  ;;  %v1379_v18 = vpop.f32.mrf.mxu1 }
 0x134   :  { %v309_v19 = vpop.f32.mrf.mxu0  ;;  %v469_v20 = vpop.f32.mrf.mxu1 }
 0x136   :  { %v1381_v21 = vpop.f32.mrf.mxu0  ;;  %v1383_v22 = vpop.f32.mrf.mxu1 }
 0x138   :  { %v314_v23 = vpop.f32.mrf.mxu0  ;;  %v474_v24 = vpop.f32.mrf.mxu1 }
 0x13a   :  { %v1385_v25 = vpop.f32.mrf.mxu0  ;;  %v1387_v26 = vpop.f32.mrf.mxu1 }
 0x13c   :  { %v319_v27 = vpop.f32.mrf.mxu0  ;;  %v479_v28 = vpop.f32.mrf.mxu1 }
 0x13e   :  { %v1394_v30 = vpop.f32.mrf.mxu0  ;;  %v1396_v31 = vpop.f32.mrf.mxu1 }
 0x140   :  { %v324_v35 = vpop.f32.mrf.mxu0  ;;  %v484_v36 = vpop.f32.mrf.mxu1 }
 0x141   :  { %v568_v35 = vmax.f32 %v258_v37, 0.0  ;;  %v263_v36 = vadd.f32 %v1392_v29, %v1341_v45 }
 0x142   :  { %v327_v40 = vpop.f32.mrf.mxu0  ;;  %v487_v43 = vpop.f32.mrf.mxu1 }
 0x143   :  { %v328_v44 = vadd.f32 %v1392_v29, %v327_v40  ;;  %v488_v47 = vadd.f32 %v1392_v29, %v487_v43  ;;  %v423_v43 = vadd.f32 %v1392_v29, %v1343_v46  ;;  %v428_v46 = vadd.f32 %v1392_v29, %v1347_v50 }
 0x144   :  { %v329_v52 = vpop.f32.mrf.mxu0  ;;  %v489_v55 = vpop.f32.mrf.mxu1 }
 0x145   :  { %v582_v59 = vmax.f32 %v328_v44, 0.0  ;;  %v614_v60 = vmax.f32 %v488_v47, 0.0  ;;  %v602_v50 = vmax.f32 %v428_v46, 0.0  ;;  %v283_v46 = vadd.f32 %v1392_v29, %v1357_v61 }
 0x146   :  { %v332_v63 = vpop.f32.mrf.mxu0  ;;  %v492_v34 = vpop.f32.mrf.mxu1 }
 0x147   :  { %v630_v0 = vmax.f32 %v566_v48, %v582_v59  ;;  %v646_v3 = vmax.f32 %v598_v56, %v614_v60  ;;  %v333_v4 = vadd.f32 %v1392_v29, %v332_v63  ;;  %v493_v7 = vadd.f32 %v1392_v29, %v492_v34 }
 0x148   :  { %v334_v12 = vpop.f32.mrf.mxu0  ;;  %v494_v15 = vpop.f32.mrf.mxu1  ;;  %v569_v59 = vmax.f32 %v263_v36, 0.0  ;;  %v268_v60 = vadd.f32 %v1392_v29, %v1345_v49 }
 0x149   :  { %v662_v16 = vmax.f32 %v630_v0, %v646_v3  ;;  %v583_v19 = vmax.f32 %v333_v4, 0.0  ;;  %v615_v20 = vmax.f32 %v493_v7, 0.0  ;;  %v601_v0 = vmax.f32 %v423_v43, 0.0 }
 0x14a   :  { %v337_v23 = vpop.f32.mrf.mxu0  ;;  %v497_v24 = vpop.f32.mrf.mxu1 }
 0x14b   :  { %678 = vst [vmem:[%s1545_s3] sm:$0xff] %v662_v16  ;;  %v631_v27 = vmax.f32 %v567_v8, %v583_v19  ;;  %v647_v28 = vmax.f32 %v599_v38, %v615_v20  ;;  %v338_v32 = vadd.f32 %v1392_v29, %v337_v23  ;;  %v498_v41 = vadd.f32 %v1392_v29, %v497_v24 }
 0x14c   :  { %v339_v39 = vpop.f32.mrf.mxu0  ;;  %v499_v40 = vpop.f32.mrf.mxu1  ;;  %v570_v38 = vmax.f32 %v268_v60, 0.0  ;;  %v273_v16 = vadd.f32 %v1392_v29, %v1349_v53  ;;  %v433_v23 = vadd.f32 %v1392_v29, %v1351_v54  ;;  %v438_v54 = vadd.f32 %v1392_v29, %v1355_v58 }
 0x14d   :  { %v663_v44 = vmax.f32 %v631_v27, %v647_v28  ;;  %v584_v47 = vmax.f32 %v338_v32, 0.0  ;;  %v616_v48 = vmax.f32 %v498_v41, 0.0  ;;  %v278_v40 = vadd.f32 %v1392_v29, %v1353_v57 }
 0x14e   :  { %v342_v51 = vpop.f32.mrf.mxu0  ;;  %v502_v52 = vpop.f32.mrf.mxu1  ;;  %v571_v39 = vmax.f32 %v273_v16, 0.0  ;;  %v604_v58 = vmax.f32 %v438_v54, 0.0 }
 0x14f   :  { %679 = vst [vmem:[%s1545_s3 + $0x8] sm:$0xff] %v663_v44  ;;  %v632_v55 = vmax.f32 %v568_v35, %v584_v47  ;;  %v648_v56 = vmax.f32 %v600_v42, %v616_v48  ;;  %v343_v33 = vadd.f32 %v1392_v29, %v342_v51  ;;  %v503_v45 = vadd.f32 %v1392_v29, %v502_v52 }
 0x150   :  { %v344_v63 = vpop.f32.mrf.mxu0  ;;  %v504_v34 = vpop.f32.mrf.mxu1  ;;  %v603_v47 = vmax.f32 %v433_v23, 0.0  ;;  %v572_v60 = vmax.f32 %v278_v40, 0.0  ;;  %v453_v40 = vadd.f32 %v1392_v29, %v1367_v6  ;;  %v458_v6 = vadd.f32 %v1392_v29, %v1371_v10 }
 0x151   :  { %v664_v3 = vmax.f32 %v632_v55, %v648_v56  ;;  %v585_v4 = vmax.f32 %v343_v33, 0.0  ;;  %v617_v7 = vmax.f32 %v503_v45, 0.0 }
 0x152   :  { %v347_v8 = vpop.f32.mrf.mxu0  ;;  %v507_v37 = vpop.f32.mrf.mxu1  ;;  %v608_v10 = vmax.f32 %v458_v6, 0.0 }
 0x153   :  { %680 = vst [vmem:[%s1545_s3 + $0x10] sm:$0xff] %v664_v3  ;;  %v633_v11 = vmax.f32 %v569_v59, %v585_v4  ;;  %v649_v12 = vmax.f32 %v601_v0, %v617_v7  ;;  %v348_v15 = vadd.f32 %v1392_v29, %v347_v8  ;;  %v508_v49 = vadd.f32 %v1392_v29, %v507_v37 }
 0x154   :  { %v349_v19 = vpop.f32.mrf.mxu0  ;;  %v509_v20 = vpop.f32.mrf.mxu1  ;;  %v443_v0 = vadd.f32 %v1392_v29, %v1359_v62  ;;  %v448_v62 = vadd.f32 %v1392_v29, %v1363_v2 }
 0x155   :  { %v665_v24 = vmax.f32 %v633_v11, %v649_v12  ;;  %v586_v27 = vmax.f32 %v348_v15, 0.0  ;;  %v618_v28 = vmax.f32 %v508_v49, 0.0  ;;  %v573_v49 = vmax.f32 %v283_v46, 0.0 }
 0x156   :  { %v352_v32 = vpop.f32.mrf.mxu0  ;;  %v512_v41 = vpop.f32.mrf.mxu1  ;;  %v605_v19 = vmax.f32 %v443_v0, 0.0  ;;  %v606_v2 = vmax.f32 %v448_v62, 0.0 }
 0x157   :  { %681 = vst [vmem:[%s1545_s3 + $0x18] sm:$0xff] %v665_v24  ;;  %v634_v35 = vmax.f32 %v570_v38, %v586_v27  ;;  %v650_v42 = vmax.f32 %v602_v50, %v618_v28  ;;  %v353_v36 = vadd.f32 %v1392_v29, %v352_v32  ;;  %v513_v53 = vadd.f32 %v1392_v29, %v512_v41 }
 0x158   :  { %v354_v43 = vpop.f32.mrf.mxu0  ;;  %v514_v44 = vpop.f32.mrf.mxu1  ;;  %v288_v38 = vadd.f32 %v1392_v29, %v1361_v1 }
 0x159   :  { %v666_v48 = vmax.f32 %v634_v35, %v650_v42  ;;  %v587_v51 = vmax.f32 %v353_v36, 0.0  ;;  %v619_v52 = vmax.f32 %v513_v53, 0.0  ;;  %v293_v36 = vadd.f32 %v1392_v29, %v1365_v5 }
 0x15a   :  { %v357_v55 = vpop.f32.mrf.mxu0  ;;  %v517_v56 = vpop.f32.mrf.mxu1  ;;  %v574_v42 = vmax.f32 %v288_v38, 0.0 }
 0x15b   :  { %682 = vst [vmem:[%s1545_s3 + $0x20] sm:$0xff] %v666_v48  ;;  %v635_v33 = vmax.f32 %v571_v39, %v587_v51  ;;  %v651_v45 = vmax.f32 %v603_v47, %v619_v52  ;;  %v358_v59 = vadd.f32 %v1392_v29, %v357_v55  ;;  %v518_v57 = vadd.f32 %v1392_v29, %v517_v56 }
 0x15c   :  { %v359_v63 = vpop.f32.mrf.mxu0  ;;  %v519_v34 = vpop.f32.mrf.mxu1  ;;  %v575_v56 = vmax.f32 %v293_v36, 0.0 }
 0x15d   :  { %v667_v3 = vmax.f32 %v635_v33, %v651_v45  ;;  %v588_v4 = vmax.f32 %v358_v59, 0.0  ;;  %v620_v7 = vmax.f32 %v518_v57, 0.0  ;;  %v298_v33 = vadd.f32 %v1392_v29, %v1369_v9 }
 0x15e   :  { %v362_v8 = vpop.f32.mrf.mxu0  ;;  %v522_v37 = vpop.f32.mrf.mxu1  ;;  %v607_v57 = vmax.f32 %v453_v40, 0.0  ;;  %v313_v40 = vadd.f32 %v1392_v29, %v1381_v21 }
 0x15f   :  { %683 = vst [vmem:[%s1545_s3 + $0x28] sm:$0xff] %v667_v3  ;;  %v636_v11 = vmax.f32 %v572_v60, %v588_v4  ;;  %v652_v12 = vmax.f32 %v604_v58, %v620_v7  ;;  %v363_v15 = vadd.f32 %v1392_v29, %v362_v8  ;;  %v523_v61 = vadd.f32 %v1392_v29, %v522_v37 }
 0x160   :  { %v364_v50 = vpop.f32.mrf.mxu0  ;;  %v524_v16 = vpop.f32.mrf.mxu1  ;;  %v576_v7 = vmax.f32 %v298_v33, 0.0  ;;  %v303_v8 = vadd.f32 %v1392_v29, %v1373_v13  ;;  %v579_v6 = vmax.f32 %v313_v40, 0.0 }
 0x161   :  { %v668_v20 = vmax.f32 %v636_v11, %v652_v12  ;;  %v589_v23 = vmax.f32 %v363_v15, 0.0  ;;  %v621_v24 = vmax.f32 %v523_v61, 0.0  ;;  %v463_v12 = vadd.f32 %v1392_v29, %v1375_v14 }
 0x162   :  { %v367_v27 = vpop.f32.mrf.mxu0  ;;  %v527_v28 = vpop.f32.mrf.mxu1  ;;  %v468_v14 = vadd.f32 %v1392_v29, %v1379_v18 }
 0x163   :  { %684 = vst [vmem:[%s1545_s3 + $0x30] sm:$0xff] %v668_v20  ;;  %v637_v32 = vmax.f32 %v573_v49, %v589_v23  ;;  %v653_v41 = vmax.f32 %v605_v19, %v621_v24  ;;  %v368_v35 = vadd.f32 %v1392_v29, %v367_v27  ;;  %v528_v1 = vadd.f32 %v1392_v29, %v527_v28 }
 0x164   :  { %v369_v53 = vpop.f32.mrf.mxu0  ;;  %v529_v39 = vpop.f32.mrf.mxu1  ;;  %v577_v20 = vmax.f32 %v303_v8, 0.0  ;;  %v308_v23 = vadd.f32 %v1392_v29, %v1377_v17  ;;  %v609_v28 = vmax.f32 %v463_v12, 0.0  ;;  %v610_v18 = vmax.f32 %v468_v14, 0.0 }
 0x165   :  { %v669_v54 = vmax.f32 %v637_v32, %v653_v41  ;;  %v590_v43 = vmax.f32 %v368_v35, 0.0  ;;  %v622_v44 = vmax.f32 %v528_v1, 0.0 }
 0x166   :  { %v372_v47 = vpop.f32.mrf.mxu0  ;;  %v532_v48 = vpop.f32.mrf.mxu1  ;;  %v578_v39 = vmax.f32 %v308_v23, 0.0 }
 0x167   :  { %685 = vst [vmem:[%s1545_s3 + $0x38] sm:$0xff] %v669_v54  ;;  %v638_v51 = vmax.f32 %v574_v42, %v590_v43  ;;  %v654_v52 = vmax.f32 %v606_v2, %v622_v44  ;;  %v373_v55 = vadd.f32 %v1392_v29, %v372_v47  ;;  %v533_v5 = vadd.f32 %v1392_v29, %v532_v48 }
 0x168   :  { %v374_v45 = vpop.f32.mrf.mxu0  ;;  %v534_v59 = vpop.f32.mrf.mxu1  ;;  %v473_v44 = vadd.f32 %v1392_v29, %v1383_v22  ;;  %v478_v22 = vadd.f32 %v1392_v29, %v1387_v26 }
 0x169   :  { %v670_v60 = vmax.f32 %v638_v51, %v654_v52  ;;  %v591_v58 = vmax.f32 %v373_v55, 0.0  ;;  %v623_v46 = vmax.f32 %v533_v5, 0.0  ;;  %v318_v45 = vadd.f32 %v1392_v29, %v1385_v25 }
 0x16a   :  { %v377_v63 = vpop.f32.mrf.mxu0  ;;  %v537_v34 = vpop.f32.mrf.mxu1  ;;  %v612_v26 = vmax.f32 %v478_v22, 0.0 }
 0x16b   :  { %686 = vst [vmem:[%s1545_s3 + $0x40] sm:$0xff] %v670_v60  ;;  %v639_v0 = vmax.f32 %v575_v56, %v591_v58  ;;  %v655_v3 = vmax.f32 %v607_v57, %v623_v46  ;;  %v378_v4 = vadd.f32 %v1392_v29, %v377_v63  ;;  %v538_v9 = vadd.f32 %v1392_v29, %v537_v34 }
 0x16c   :  { %v379_v37 = vpop.f32.mrf.mxu0  ;;  %v539_v11 = vpop.f32.mrf.mxu1  ;;  %v611_v60 = vmax.f32 %v473_v44, 0.0 }
 0x16d   :  { %v671_v15 = vmax.f32 %v639_v0, %v655_v3  ;;  %v592_v61 = vmax.f32 %v378_v4, 0.0  ;;  %v624_v49 = vmax.f32 %v538_v9, 0.0  ;;  %v483_v11 = vadd.f32 %v1392_v29, %v1396_v31 }
 0x16e   :  { %v382_v38 = vpop.f32.mrf.mxu0  ;;  %v542_v62 = vpop.f32.mrf.mxu1 }
 0x16f   :  { %687 = vst [vmem:[%s1545_s3 + $0x48] sm:$0xff] %v671_v15  ;;  %v640_v50 = vmax.f32 %v576_v7, %v592_v61  ;;  %v656_v16 = vmax.f32 %v608_v10, %v624_v49  ;;  %v383_v19 = vadd.f32 %v1392_v29, %v382_v38  ;;  %v543_v13 = vadd.f32 %v1392_v29, %v542_v62 }
 0x170   :  { %v384_v24 = vpop.f32.mrf.mxu0  ;;  %v544_v27 = vpop.f32.mrf.mxu1  ;;  %v580_v7 = vmax.f32 %v318_v45, 0.0  ;;  %v323_v10 = vadd.f32 %v1392_v29, %v1394_v30  ;;  %v613_v23 = vmax.f32 %v483_v11, 0.0 }
 0x171   :  { %v672_v32 = vmax.f32 %v640_v50, %v656_v16  ;;  %v593_v41 = vmax.f32 %v383_v19, 0.0  ;;  %v625_v35 = vmax.f32 %v543_v13, 0.0 }
 0x172   :  { %v387_v1 = vpop.f32.mrf.mxu0  ;;  %v547_v42 = vpop.f32.mrf.mxu1  ;;  %v581_v19 = vmax.f32 %v323_v10, 0.0 }
 0x173   :  { %688 = vst [vmem:[%s1545_s3 + $0x50] sm:$0xff] %v672_v32  ;;  %v641_v2 = vmax.f32 %v577_v20, %v593_v41  ;;  %v657_v36 = vmax.f32 %v609_v28, %v625_v35  ;;  %v388_v53 = vadd.f32 %v1392_v29, %v387_v1  ;;  %v548_v17 = vadd.f32 %v1392_v29, %v547_v42 }
 0x174   :  { %v389_v54 = vpop.f32.mrf.mxu0  ;;  %v549_v43 = vpop.f32.mrf.mxu1 }
 0x175   :  { %v673_v47 = vmax.f32 %v641_v2, %v657_v36  ;;  %v594_v48 = vmax.f32 %v388_v53, 0.0  ;;  %v626_v51 = vmax.f32 %v548_v17, 0.0 }
 0x176   :  { %v392_v52 = vpop.f32.mrf.mxu0  ;;  %v552_v55 = vpop.f32.mrf.mxu1 }
 0x177   :  { %689 = vst [vmem:[%s1545_s3 + $0x58] sm:$0xff] %v673_v47  ;;  %v642_v5 = vmax.f32 %v578_v39, %v594_v48  ;;  %v658_v56 = vmax.f32 %v610_v18, %v626_v51  ;;  %v393_v33 = vadd.f32 %v1392_v29, %v392_v52  ;;  %v553_v21 = vadd.f32 %v1392_v29, %v552_v55 }
 0x178   :  { %v394_v59 = vpop.f32.mrf.mxu0  ;;  %v554_v57 = vpop.f32.mrf.mxu1 }
 0x179   :  { %v674_v58 = vmax.f32 %v642_v5, %v658_v56  ;;  %v595_v46 = vmax.f32 %v393_v33, 0.0  ;;  %v627_v63 = vmax.f32 %v553_v21, 0.0 }
 0x17a   :  { %v397_v34 = vpop.f32.mrf.mxu0  ;;  %v557_v0 = vpop.f32.mrf.mxu1 }
 0x17b   :  { %690 = vst [vmem:[%s1545_s3 + $0x60] sm:$0xff] %v674_v58  ;;  %v643_v3 = vmax.f32 %v579_v6, %v595_v46  ;;  %v659_v4 = vmax.f32 %v611_v60, %v627_v63  ;;  %v398_v9 = vadd.f32 %v1392_v29, %v397_v34  ;;  %v558_v25 = vadd.f32 %v1392_v29, %v557_v0 }
 0x17c   :  { %v399_v8 = vpop.f32.mrf.mxu0  ;;  %v559_v37 = vpop.f32.mrf.mxu1 }
 0x17d   :  { %v675_v12 = vmax.f32 %v643_v3, %v659_v4  ;;  %v596_v15 = vmax.f32 %v398_v9, 0.0  ;;  %v628_v61 = vmax.f32 %v558_v25, 0.0 }
 0x17e   :  { %v402_v49 = vpop.f32.mrf.mxu0  ;;  %v562_v38 = vpop.f32.mrf.mxu1 }
 0x17f   :  { %691 = vst [vmem:[%s1545_s3 + $0x68] sm:$0xff] %v675_v12  ;;  %v644_v62 = vmax.f32 %v580_v7, %v596_v15  ;;  %v660_v50 = vmax.f32 %v612_v26, %v628_v61  ;;  %v403_v16 = vadd.f32 %v1392_v29, %v402_v49  ;;  %v563_v30 = vadd.f32 %v1392_v29, %v562_v38 }
 0x180   :  { %v404_v13 = vpop.f32.mrf.mxu0  ;;  %v564_v20 = vpop.f32.mrf.mxu1 }
 0x181   :  { %v676_v31 = vmax.f32 %v644_v62, %v660_v50  ;;  %v597_v14 = vmax.f32 %v403_v16, 0.0  ;;  %v629_v24 = vmax.f32 %v563_v30, 0.0 }
 0x183   :  { %692 = vst [vmem:[%s1545_s3 + $0x70] sm:$0xff] %v676_v31  ;;  %v645_v27 = vmax.f32 %v581_v19, %v597_v14  ;;  %v661_v28 = vmax.f32 %v613_v23, %v629_v24 }
 0x185   :  { %v677_v32 = vmax.f32 %v645_v27, %v661_v28 }
 0x187   :  { %693 = vst [vmem:[%s1545_s3 + $0x78] sm:$0xff] %v677_v32 }

// kernel: jpeg_compression_predictor.7
= control target key start
LH: loop header
LB: loop body
LE: loop exit
PB: predicated region body
PF: predicated region fallthrough
CT: control target
= control target key end

     0   :  { %s971_s1 = inlined_call_operand.vmem [shape: f32[384,128], index: 1, kind: input, shape index: {}]   ;;  %s972_s0 = inlined_call_operand.vmem [shape: f32[128,384], index: 0, kind: input, shape index: {}]   ;;  %s973_s2 = inlined_call_operand.vmem [shape: f32[1,128], index: 2, kind: input, shape index: {}]   ;;  %s974_s3 = inlined_call_operand.vmem [shape: f32[32,128], index: 3, kind: output, shape index: {}]  }
   0x1   :  { %v93_v0 = vld [vmem:[%s971_s1 + $0xf8] sm:$0xff]  ;;  %v92_v2 = vld [vmem:[%s971_s1 + $0xf0] sm:$0xff]  ;;  %v91_v5 = vld [vmem:[%s971_s1 + $0xe8] sm:$0xff] }
   0x2   :  { %v77_v1 = vld [vmem:[%s971_s1 + $0x78] sm:$0xff]  ;;  %444 = vmatprep.subr.mxu0 %v93_v0  ;;  %v76_v3 = vld [vmem:[%s971_s1 + $0x70] sm:$0xff]  ;;  %v75_v7 = vld [vmem:[%s971_s1 + $0x68] sm:$0xff] }
   0x3   :  { %v109_v4 = vld [vmem:[%s971_s1 + $0x178] sm:$0xff]  ;;  %445 = vmatpush3.msra.mxu0 %v77_v1  ;;  %v108_v6 = vld [vmem:[%s971_s1 + $0x170] sm:$0xff]  ;;  %v107_v8 = vld [vmem:[%s971_s1 + $0x168] sm:$0xff] }
   0x4   :  { %556 = vmatprep.subr.mxu1 %v109_v4  ;;  %446 = vmatprep.subr.mxu0 %v92_v2  ;;  %v90_v9 = vld [vmem:[%s971_s1 + $0xe0] sm:$0xff]  ;;  %v89_v12 = vld [vmem:[%s971_s1 + $0xd8] sm:$0xff]  ;;  %v88_v15 = vld [vmem:[%s971_s1 + $0xd0] sm:$0xff] }
   0x5   :  { %557 = vmatpush3.msra.mxu1 %v109_v4  ;;  %447 = vmatpush3.msra.mxu0 %v76_v3  ;;  %v74_v10 = vld [vmem:[%s971_s1 + $0x60] sm:$0xff]  ;;  %v73_v13 = vld [vmem:[%s971_s1 + $0x58] sm:$0xff]  ;;  %v72_v16 = vld [vmem:[%s971_s1 + $0x50] sm:$0xff] }
   0x6   :  { %558 = vmatprep.subr.mxu1 %v108_v6  ;;  %448 = vmatprep.subr.mxu0 %v91_v5  ;;  %v106_v11 = vld [vmem:[%s971_s1 + $0x160] sm:$0xff]  ;;  %v105_v14 = vld [vmem:[%s971_s1 + $0x158] sm:$0xff]  ;;  %v104_v17 = vld [vmem:[%s971_s1 + $0x150] sm:$0xff] }
   0x7   :  { %559 = vmatpush3.msra.mxu1 %v108_v6  ;;  %449 = vmatpush3.msra.mxu0 %v75_v7  ;;  %v87_v18 = vld [vmem:[%s971_s1 + $0xc8] sm:$0xff]  ;;  %v86_v21 = vld [vmem:[%s971_s1 + $0xc0] sm:$0xff]  ;;  %v85_v24 = vld [vmem:[%s971_s1 + $0xb8] sm:$0xff] }
   0x8   :  { %560 = vmatprep.subr.mxu1 %v107_v8  ;;  %450 = vmatprep.subr.mxu0 %v90_v9  ;;  %v71_v19 = vld [vmem:[%s971_s1 + $0x48] sm:$0xff]  ;;  %v70_v22 = vld [vmem:[%s971_s1 + $0x40] sm:$0xff]  ;;  %v69_v25 = vld [vmem:[%s971_s1 + $0x38] sm:$0xff] }
   0x9   :  { %561 = vmatpush3.msra.mxu1 %v107_v8  ;;  %451 = vmatpush3.msra.mxu0 %v74_v10  ;;  %v103_v20 = vld [vmem:[%s971_s1 + $0x148] sm:$0xff]  ;;  %v102_v23 = vld [vmem:[%s971_s1 + $0x140] sm:$0xff]  ;;  %v101_v26 = vld [vmem:[%s971_s1 + $0x138] sm:$0xff] }
   0xa   :  { %562 = vmatprep.subr.mxu1 %v106_v11  ;;  %452 = vmatprep.subr.mxu0 %v89_v12  ;;  %v84_v27 = vld [vmem:[%s971_s1 + $0xb0] sm:$0xff]  ;;  %v83_v30 = vld [vmem:[%s971_s1 + $0xa8] sm:$0xff]  ;;  %v82_v33 = vld [vmem:[%s971_s1 + $0xa0] sm:$0xff] }
   0xb   :  { %563 = vmatpush3.msra.mxu1 %v106_v11  ;;  %453 = vmatpush3.msra.mxu0 %v73_v13  ;;  %v68_v28 = vld [vmem:[%s971_s1 + $0x30] sm:$0xff]  ;;  %v67_v31 = vld [vmem:[%s971_s1 + $0x28] sm:$0xff]  ;;  %v66_v34 = vld [vmem:[%s971_s1 + $0x20] sm:$0xff] }
   0xc   :  { %564 = vmatprep.subr.mxu1 %v105_v14  ;;  %454 = vmatprep.subr.mxu0 %v88_v15  ;;  %v100_v29 = vld [vmem:[%s971_s1 + $0x130] sm:$0xff]  ;;  %v99_v32 = vld [vmem:[%s971_s1 + $0x128] sm:$0xff]  ;;  %v98_v35 = vld [vmem:[%s971_s1 + $0x120] sm:$0xff] }
   0xd   :  { %565 = vmatpush3.msra.mxu1 %v105_v14  ;;  %455 = vmatpush3.msra.mxu0 %v72_v16  ;;  %v81_v36 = vld [vmem:[%s971_s1 + $0x98] sm:$0xff]  ;;  %v80_v39 = vld [vmem:[%s971_s1 + $0x90] sm:$0xff]  ;;  %v79_v42 = vld [vmem:[%s971_s1 + $0x88] sm:$0xff] }
   0xe   :  { %566 = vmatprep.subr.mxu1 %v104_v17  ;;  %456 = vmatprep.subr.mxu0 %v87_v18  ;;  %v65_v37 = vld [vmem:[%s971_s1 + $0x18] sm:$0xff]  ;;  %v64_v40 = vld [vmem:[%s971_s1 + $0x10] sm:$0xff]  ;;  %v15_v43 = vld [vmem:[%s972_s0 + $0x8] sm:$0xff] }
   0xf   :  { %567 = vmatpush3.msra.mxu1 %v104_v17  ;;  %457 = vmatpush3.msra.mxu0 %v71_v19  ;;  %v97_v38 = vld [vmem:[%s971_s1 + $0x118] sm:$0xff]  ;;  %v96_v41 = vld [vmem:[%s971_s1 + $0x110] sm:$0xff]  ;;  %v63_v44 = vld [vmem:[%s971_s1 + $0x8] sm:$0xff] }
  0x10   :  { %568 = vmatprep.subr.mxu1 %v103_v20  ;;  %458 = vmatprep.subr.mxu0 %v86_v21  ;;  %v78_v45 = vld [vmem:[%s971_s1 + $0x80] sm:$0xff]  ;;  %v95_v46 = vld [vmem:[%s971_s1 + $0x108] sm:$0xff]  ;;  %v16_v51 = vld [vmem:[%s972_s0 + $0x10] sm:$0xff] }
  0x11   :  { %569 = vmatpush3.msra.mxu1 %v103_v20  ;;  %459 = vmatpush3.msra.mxu0 %v70_v22  ;;  %v62_v47 = vld [vmem:[%s971_s1] sm:$0xff]  ;;  %v19_v52 = vld [vmem:[%s972_s0 + $0x28] sm:$0xff]  ;;  %v17_v53 = vld [vmem:[%s972_s0 + $0x18] sm:$0xff] }
  0x12   :  { %570 = vmatprep.subr.mxu1 %v102_v23  ;;  %460 = vmatprep.subr.mxu0 %v85_v24  ;;  %v14_v48 = vld [vmem:[%s972_s0] sm:$0xff]  ;;  %v21_v55 = vld [vmem:[%s972_s0 + $0x38] sm:$0xff]  ;;  %v20_v57 = vld [vmem:[%s972_s0 + $0x30] sm:$0xff] }
  0x13   :  { %571 = vmatpush3.msra.mxu1 %v102_v23  ;;  %461 = vmatpush3.msra.mxu0 %v69_v25  ;;  %v94_v49 = vld [vmem:[%s971_s1 + $0x100] sm:$0xff]  ;;  %v25_v56 = vld [vmem:[%s972_s0 + $0x58] sm:$0xff]  ;;  %v28_v58 = vld [vmem:[%s972_s0 + $0x70] sm:$0xff] }
  0x14   :  { %572 = vmatprep.subr.mxu1 %v101_v26  ;;  %462 = vmatprep.subr.mxu0 %v84_v27  ;;  %v18_v50 = vld [vmem:[%s972_s0 + $0x20] sm:$0xff]  ;;  %v24_v59 = vld [vmem:[%s972_s0 + $0x50] sm:$0xff]  ;;  %v31_v60 = vld [vmem:[%s972_s0 + $0x88] sm:$0xff] }
  0x15   :  { %573 = vmatpush3.msra.mxu1 %v101_v26  ;;  %463 = vmatpush3.msra.mxu0 %v68_v28  ;;  %v22_v54 = vld [vmem:[%s972_s0 + $0x40] sm:$0xff]  ;;  %v23_v61 = vld [vmem:[%s972_s0 + $0x48] sm:$0xff]  ;;  %v37_v0 = vld [vmem:[%s972_s0 + $0xb8] sm:$0xff] }
  0x16   :  { %574 = vmatprep.subr.mxu1 %v100_v29  ;;  %464 = vmatprep.subr.mxu0 %v83_v30  ;;  %v34_v62 = vld [vmem:[%s972_s0 + $0xa0] sm:$0xff]  ;;  %v27_v63 = vld [vmem:[%s972_s0 + $0x68] sm:$0xff]  ;;  %v40_v2 = vld [vmem:[%s972_s0 + $0xd0] sm:$0xff] }
  0x17   :  { %575 = vmatpush3.msra.mxu1 %v100_v29  ;;  %465 = vmatpush3.msra.mxu0 %v67_v31  ;;  %v26_v1 = vld [vmem:[%s972_s0 + $0x60] sm:$0xff]  ;;  %v43_v4 = vld [vmem:[%s972_s0 + $0xe8] sm:$0xff]  ;;  %v29_v5 = vld [vmem:[%s972_s0 + $0x78] sm:$0xff] }
  0x18   :  { %576 = vmatprep.subr.mxu1 %v99_v32  ;;  %466 = vmatprep.subr.mxu0 %v82_v33  ;;  %v30_v3 = vld [vmem:[%s972_s0 + $0x80] sm:$0xff]  ;;  %v33_v7 = vld [vmem:[%s972_s0 + $0x98] sm:$0xff]  ;;  %v32_v9 = vld [vmem:[%s972_s0 + $0x90] sm:$0xff] }
  0x19   :  { %577 = vmatpush3.msra.mxu1 %v99_v32  ;;  %467 = vmatpush3.msra.mxu0 %v66_v34  ;;  %v46_v6 = vld [vmem:[%s972_s0 + $0x100] sm:$0xff]  ;;  %v49_v8 = vld [vmem:[%s972_s0 + $0x118] sm:$0xff]  ;;  %v52_v10 = vld [vmem:[%s972_s0 + $0x130] sm:$0xff] }
  0x1a   :  { %578 = vmatprep.subr.mxu1 %v98_v35  ;;  %468 = vmatprep.subr.mxu0 %v81_v36  ;;  %v36_v11 = vld [vmem:[%s972_s0 + $0xb0] sm:$0xff]  ;;  %v55_v12 = vld [vmem:[%s972_s0 + $0x148] sm:$0xff]  ;;  %v58_v14 = vld [vmem:[%s972_s0 + $0x160] sm:$0xff] }
  0x1b   :  { %579 = vmatpush3.msra.mxu1 %v98_v35  ;;  %469 = vmatpush3.msra.mxu0 %v65_v37  ;;  %v35_v13 = vld [vmem:[%s972_s0 + $0xa8] sm:$0xff]  ;;  %v61_v16 = vld [vmem:[%s972_s0 + $0x178] sm:$0xff]  ;;  %v38_v17 = vld [vmem:[%s972_s0 + $0xc0] sm:$0xff] }
  0x1c   :  { %580 = vmatprep.subr.mxu1 %v97_v38  ;;  %470 = vmatprep.subr.mxu0 %v80_v39  ;;  %v39_v15 = vld [vmem:[%s972_s0 + $0xc8] sm:$0xff]  ;;  %v42_v18 = vld [vmem:[%s972_s0 + $0xe0] sm:$0xff]  ;;  %v41_v19 = vld [vmem:[%s972_s0 + $0xd8] sm:$0xff] }
  0x1d   :  { %581 = vmatpush3.msra.mxu1 %v97_v38  ;;  %471 = vmatpush3.msra.mxu0 %v64_v40  ;;  %v45_v20 = vld [vmem:[%s972_s0 + $0xf8] sm:$0xff]  ;;  %v44_v21 = vld [vmem:[%s972_s0 + $0xf0] sm:$0xff]  ;;  %v47_v23 = vld [vmem:[%s972_s0 + $0x108] sm:$0xff] }
  0x1e   :  { %582 = vmatprep.subr.mxu1 %v96_v41  ;;  %472 = vmatprep.subr.mxu0 %v79_v42  ;;  %v48_v22 = vld [vmem:[%s972_s0 + $0x110] sm:$0xff]  ;;  %v51_v24 = vld [vmem:[%s972_s0 + $0x128] sm:$0xff]  ;;  %v50_v25 = vld [vmem:[%s972_s0 + $0x120] sm:$0xff] }
  0x1f   :  { %181 = vmatprep.mubr.f32.mxu0 %v15_v43  ;;  %473 = vmatpush3.msra.mxu0 %v63_v44  ;;  %v54_v26 = vld [vmem:[%s972_s0 + $0x140] sm:$0xff]  ;;  %v53_v27 = vld [vmem:[%s972_s0 + $0x138] sm:$0xff]  ;;  %v56_v29 = vld [vmem:[%s972_s0 + $0x150] sm:$0xff] }
  0x20   :  { %583 = vmatpush3.msra.mxu1 %v96_v41  ;;  %474 = vmatprep.subr.mxu0 %v78_v45  ;;  %v57_v28 = vld [vmem:[%s972_s0 + $0x158] sm:$0xff]  ;;  %v60_v30 = vld [vmem:[%s972_s0 + $0x170] sm:$0xff]  ;;  %v59_v31 = vld [vmem:[%s972_s0 + $0x168] sm:$0xff] }
  0x21   :  { %584 = vmatprep.subr.mxu1 %v95_v46  ;;  %475 = vmatpush3.msra.mxu0 %v62_v47 }
  0x22   :  { %585 = vmatpush3.msra.mxu1 %v95_v46  ;;  %182 = vmatmul.mubr.f32.vlgmr.msra.gmra.mxu0 %v14_v48 }
  0x23   :  { %586 = vmatprep.subr.mxu1 %v94_v49  ;;  %186 = vmatprep.mubr.f32.mxu0 %v18_v50 }
  0x24   :  { %587 = vmatpush3.msra.mxu1 %v94_v49  ;;  %588 = vmatprep.mubr.f32.mxu1 %v16_v51 }
  0x25   :  { %589 = vmatmul.mubr.f32.vlgmr.msra.gmra.mxu1 %v19_v52 }
  0x26   :  { %187 = vmatmul.mubr.f32.gmra.mxu0 %v17_v53  ;;  %591 = vmatprep.mubr.f32.mxu1 %v22_v54 }
  0x27   :  { %191 = vmatprep.mubr.f32.mxu0 %v21_v55 }
  0x29   :  { %592 = vmatmul.mubr.f32.gmra.mxu1 %v25_v56 }
  0x2a   :  { %192 = vmatmul.mubr.f32.gmra.mxu0 %v20_v57  ;;  %594 = vmatprep.mubr.f32.mxu1 %v28_v58 }
  0x2b   :  { %196 = vmatprep.mubr.f32.mxu0 %v24_v59 }
  0x2d   :  { %595 = vmatmul.mubr.f32.gmra.mxu1 %v31_v60 }
  0x2e   :  { %197 = vmatmul.mubr.f32.gmra.mxu0 %v23_v61  ;;  %597 = vmatprep.mubr.f32.mxu1 %v34_v62 }
  0x2f   :  { %201 = vmatprep.mubr.f32.mxu0 %v27_v63 }
  0x31   :  { %598 = vmatmul.mubr.f32.gmra.mxu1 %v37_v0 }
  0x32   :  { %202 = vmatmul.mubr.f32.gmra.mxu0 %v26_v1  ;;  %600 = vmatprep.mubr.f32.mxu1 %v40_v2 }
  0x33   :  { %206 = vmatprep.mubr.f32.mxu0 %v30_v3  ;;  %v935_v3 = vld [vmem:[%s973_s2] ss:$0 sm:$0xff] }
  0x35   :  { %601 = vmatmul.mubr.f32.gmra.mxu1 %v43_v4 }
  0x36   :  { %207 = vmatmul.mubr.f32.gmra.mxu0 %v29_v5  ;;  %603 = vmatprep.mubr.f32.mxu1 %v46_v6 }
  0x37   :  { %211 = vmatprep.mubr.f32.mxu0 %v33_v7 }
  0x39   :  { %604 = vmatmul.mubr.f32.gmra.mxu1 %v49_v8 }
  0x3a   :  { %212 = vmatmul.mubr.f32.gmra.mxu0 %v32_v9  ;;  %606 = vmatprep.mubr.f32.mxu1 %v52_v10 }
  0x3b   :  { %216 = vmatprep.mubr.f32.mxu0 %v36_v11 }
  0x3d   :  { %607 = vmatmul.mubr.f32.gmra.mxu1 %v55_v12 }
  0x3e   :  { %217 = vmatmul.mubr.f32.gmra.mxu0 %v35_v13  ;;  %609 = vmatprep.mubr.f32.mxu1 %v58_v14 }
  0x3f   :  { %221 = vmatprep.mubr.f32.mxu0 %v39_v15 }
  0x41   :  { %610 = vmatmul.mubr.f32.gmra.mxu1 %v61_v16 }
  0x42   :  { %222 = vmatmul.mubr.f32.gmra.mxu0 %v38_v17 }
  0x43   :  { %226 = vmatprep.mubr.f32.mxu0 %v42_v18 }
  0x46   :  { %227 = vmatmul.mubr.f32.gmra.mxu0 %v41_v19 }
  0x47   :  { %231 = vmatprep.mubr.f32.mxu0 %v45_v20 }
  0x4a   :  { %232 = vmatmul.mubr.f32.gmra.mxu0 %v44_v21 }
  0x4b   :  { %236 = vmatprep.mubr.f32.mxu0 %v48_v22 }
  0x4e   :  { %237 = vmatmul.mubr.f32.gmra.mxu0 %v47_v23 }
  0x4f   :  { %241 = vmatprep.mubr.f32.mxu0 %v51_v24 }
  0x52   :  { %242 = vmatmul.mubr.f32.gmra.mxu0 %v50_v25 }
  0x53   :  { %246 = vmatprep.mubr.f32.mxu0 %v54_v26 }
  0x56   :  { %247 = vmatmul.mubr.f32.gmra.mxu0 %v53_v27 }
  0x57   :  { %251 = vmatprep.mubr.f32.mxu0 %v57_v28 }
  0x5a   :  { %252 = vmatmul.mubr.f32.gmra.mxu0 %v56_v29 }
  0x5b   :  { %256 = vmatprep.mubr.f32.mxu0 %v60_v30 }
  0x5e   :  { %257 = vmatmul.mubr.f32.gmra.mxu0 %v59_v31 }
  0xe2   :  { %v476_v32 = vpop.f32.mrf.mxu0 }
  0xe4   :  { %v477_v33 = vpop.f32.mrf.mxu0 }
  0xe5   :  { %v590_v38 = vpop.f32.mrf.mxu1  ;;  %v478_v2 = vadd.f32 %v477_v33, %v476_v32 }
  0xe6   :  { %v479_v34 = vpop.f32.mrf.mxu0 }
  0xe7   :  { %v328_v41 = vpop.f32.mrf.mxu1  ;;  %v184_v11 = vadd.f32 %v478_v2, %v935_v3 }
  0xe8   :  { %v480_v35 = vpop.f32.mrf.mxu0 }
  0xe9   :  { %v924_v43 = vpop.f32.mrf.mxu1  ;;  %v481_v6 = vadd.f32 %v480_v35, %v479_v34  ;;  %v329_v21 = vadd.f32 %v328_v41, %v184_v11 }
  0xea   :  { %v482_v36 = vpop.f32.mrf.mxu0 }
  0xeb   :  { %v926_v46 = vpop.f32.mrf.mxu1  ;;  %v189_v16 = vadd.f32 %v481_v6, %v935_v3  ;;  %v407_v35 = vmax.f32 %v329_v21, 0.0 }
  0xec   :  { %v483_v37 = vpop.f32.mrf.mxu0 }
  0xed   :  { %v596_v48 = vpop.f32.mrf.mxu1  ;;  %v484_v23 = vadd.f32 %v483_v37, %v482_v36  ;;  %v334_v30 = vadd.f32 %v590_v38, %v189_v16 }
  0xee   :  { %v920_v39 = vpop.f32.mrf.mxu0 }
  0xef   :  { %v348_v51 = vpop.f32.mrf.mxu1  ;;  %v194_v37 = vadd.f32 %v484_v23, %v935_v3 }
  0xf0   :  { %v922_v40 = vpop.f32.mrf.mxu0 }
  0xf1   :  { %v928_v53 = vpop.f32.mrf.mxu1  ;;  %v487_v36 = vadd.f32 %v922_v40, %v920_v39 }
  0xf2   :  { %v488_v42 = vpop.f32.mrf.mxu0 }
  0xf3   :  { %v358_v56 = vpop.f32.mrf.mxu1 }
  0xf4   :  { %v489_v44 = vpop.f32.mrf.mxu0 }
  0xf5   :  { %v602_v59 = vpop.f32.mrf.mxu1  ;;  %v490_v63 = vadd.f32 %v489_v44, %v488_v42 }
  0xf6   :  { %v491_v45 = vpop.f32.mrf.mxu0 }
  0xf7   :  { %v368_v61 = vpop.f32.mrf.mxu1  ;;  %v204_v8 = vadd.f32 %v490_v63, %v935_v3  ;;  %v339_v63 = vadd.f32 %v926_v46, %v194_v37 }
  0xf8   :  { %v492_v47 = vpop.f32.mrf.mxu0 }
  0xf9   :  { %v930_v1 = vpop.f32.mrf.mxu1  ;;  %v493_v7 = vadd.f32 %v492_v47, %v491_v45  ;;  %v349_v18 = vadd.f32 %v348_v51, %v204_v8  ;;  %v409_v16 = vmax.f32 %v339_v63, 0.0 }
  0xfa   :  { %v494_v49 = vpop.f32.mrf.mxu0 }
  0xfb   :  { %v378_v10 = vpop.f32.mrf.mxu1  ;;  %v209_v17 = vadd.f32 %v493_v7, %v935_v3  ;;  %v411_v32 = vmax.f32 %v349_v18, 0.0 }
  0xfc   :  { %v495_v50 = vpop.f32.mrf.mxu0 }
  0xfd   :  { %v608_v14 = vpop.f32.mrf.mxu1  ;;  %v496_v19 = vadd.f32 %v495_v50, %v494_v49  ;;  %v354_v31 = vadd.f32 %v596_v48, %v209_v17 }
  0xfe   :  { %v497_v52 = vpop.f32.mrf.mxu0 }
  0xff   :  { %v388_v27 = vpop.f32.mrf.mxu1  ;;  %v214_v33 = vadd.f32 %v496_v19, %v935_v3 }
 0x100   :  { %v498_v54 = vpop.f32.mrf.mxu0 }
 0x101   :  { %v499_v42 = vadd.f32 %v498_v54, %v497_v52  ;;  %v611_v50 = vpop.f32.mrf.mxu1  ;;  %v423_v52 = vmax.f32 %v407_v35, %v411_v32  ;;  %v359_v54 = vadd.f32 %v358_v56, %v214_v33 }
 0x102   :  { %v500_v55 = vpop.f32.mrf.mxu0 }
 0x103   :  { %v413_v11 = vmax.f32 %v359_v54, 0.0 }
 0x104   :  { %v501_v57 = vpop.f32.mrf.mxu0 }
 0x105   :  { %v502_v5 = vadd.f32 %v501_v57, %v500_v55  ;;  %v408_v57 = vmax.f32 %v334_v30, 0.0  ;;  %v425_v23 = vmax.f32 %v409_v16, %v413_v11 }
 0x106   :  { %v503_v58 = vpop.f32.mrf.mxu0 }
 0x107   :  { %v224_v15 = vadd.f32 %v502_v5, %v935_v3  ;;  %v398_v5 = vpop.f32.mrf.mxu1 }
 0x108   :  { %v504_v60 = vpop.f32.mrf.mxu0 }
 0x109   :  { %v505_v12 = vadd.f32 %v504_v60, %v503_v58  ;;  %v369_v28 = vadd.f32 %v368_v61, %v224_v15  ;;  %v412_v58 = vmax.f32 %v354_v31, 0.0  ;;  %v219_v61 = vadd.f32 %v499_v42, %v935_v3 }
 0x10a   :  { %v506_v62 = vpop.f32.mrf.mxu0 }
 0x10b   :  { %v229_v24 = vadd.f32 %v505_v12, %v935_v3  ;;  %v415_v38 = vmax.f32 %v369_v28, 0.0 }
 0x10c   :  { %v507_v0 = vpop.f32.mrf.mxu0 }
 0x10d   :  { %v508_v25 = vadd.f32 %v507_v0, %v506_v62  ;;  %v374_v45 = vadd.f32 %v602_v59, %v229_v24  ;;  %v199_v59 = vadd.f32 %v487_v36, %v935_v3 }
 0x10e   :  { %v509_v4 = vpop.f32.mrf.mxu0 }
 0x10f   :  { %v234_v47 = vadd.f32 %v508_v25, %v935_v3  ;;  %v416_v0 = vmax.f32 %v374_v45, 0.0  ;;  %v344_v15 = vadd.f32 %v924_v43, %v199_v59 }
 0x110   :  { %v510_v9 = vpop.f32.mrf.mxu0 }
 0x111   :  { %v511_v48 = vadd.f32 %v510_v9, %v509_v4  ;;  %v379_v2 = vadd.f32 %v378_v10, %v234_v47  ;;  %v424_v9 = vmax.f32 %v408_v57, %v412_v58  ;;  %v410_v25 = vmax.f32 %v344_v15, 0.0 }
 0x112   :  { %v512_v13 = vpop.f32.mrf.mxu0 }
 0x113   :  { %v239_v6 = vadd.f32 %v511_v48, %v935_v3  ;;  %v417_v17 = vmax.f32 %v379_v2, 0.0 }
 0x114   :  { %v513_v20 = vpop.f32.mrf.mxu0 }
 0x115   :  { %v514_v22 = vadd.f32 %v513_v20, %v512_v13  ;;  %v364_v13 = vadd.f32 %v928_v53, %v219_v61  ;;  %v384_v18 = vadd.f32 %v930_v1, %v239_v6 }
 0x116   :  { %v515_v26 = vpop.f32.mrf.mxu0 }
 0x117   :  { %v244_v29 = vadd.f32 %v514_v22, %v935_v3  ;;  %v414_v22 = vmax.f32 %v364_v13, 0.0 }
 0x118   :  { %v516_v34 = vpop.f32.mrf.mxu0 }
 0x119   :  { %v517_v44 = vadd.f32 %v516_v34, %v515_v26  ;;  %v389_v41 = vadd.f32 %v388_v27, %v244_v29  ;;  %v418_v26 = vmax.f32 %v384_v18, 0.0  ;;  %v426_v28 = vmax.f32 %v410_v25, %v414_v22 }
 0x11a   :  { %v518_v49 = vpop.f32.mrf.mxu0 }
 0x11b   :  { %v249_v51 = vadd.f32 %v517_v44, %v935_v3  ;;  %v419_v55 = vmax.f32 %v389_v41, 0.0 }
 0x11c   :  { %v519_v60 = vpop.f32.mrf.mxu0 }
 0x11d   :  { %v394_v39 = vadd.f32 %v608_v14, %v249_v51  ;;  %v427_v40 = vmax.f32 %v415_v38, %v419_v55  ;;  %v520_v62 = vadd.f32 %v519_v60, %v518_v49 }
 0x11e   :  { %v521_v4 = vpop.f32.mrf.mxu0 }
 0x11f   :  { %v420_v7 = vmax.f32 %v394_v39, 0.0  ;;  %v431_v8 = vmax.f32 %v423_v52, %v427_v40  ;;  %v254_v56 = vadd.f32 %v520_v62, %v935_v3 }
 0x120   :  { %v522_v12 = vpop.f32.mrf.mxu0 }
 0x121   :  { %v428_v14 = vmax.f32 %v416_v0, %v420_v7  ;;  %435 = vst [vmem:[%s974_s3] sm:$0xff] %v431_v8  ;;  %v523_v46 = vadd.f32 %v522_v12, %v521_v4  ;;  %v399_v10 = vadd.f32 %v398_v5, %v254_v56 }
 0x123   :  { %v432_v19 = vmax.f32 %v424_v9, %v428_v14  ;;  %v259_v20 = vadd.f32 %v523_v46, %v935_v3  ;;  %v421_v21 = vmax.f32 %v399_v10, 0.0 }
 0x125   :  { %436 = vst [vmem:[%s974_s3 + $0x8] sm:$0xff] %v432_v19  ;;  %v404_v53 = vadd.f32 %v611_v50, %v259_v20  ;;  %v429_v24 = vmax.f32 %v417_v17, %v421_v21 }
 0x127   :  { %v422_v27 = vmax.f32 %v404_v53, 0.0  ;;  %v433_v43 = vmax.f32 %v425_v23, %v429_v24 }
 0x129   :  { %v430_v29 = vmax.f32 %v418_v26, %v422_v27  ;;  %437 = vst [vmem:[%s974_s3 + $0x10] sm:$0xff] %v433_v43 }
 0x12b   :  { %v434_v1 = vmax.f32 %v426_v28, %v430_v29 }
 0x12d   :  { %438 = vst [vmem:[%s974_s3 + $0x18] sm:$0xff] %v434_v1 }

// kernel: jpeg_compression_predictor.8
= control target key start
LH: loop header
LB: loop body
LE: loop exit
PB: predicated region body
PF: predicated region fallthrough
CT: control target
= control target key end

     0   :  { %s902_s1 = inlined_call_operand.vmem [shape: f32[640,128], index: 1, kind: input, shape index: {}]   ;;  %s903_s0 = inlined_call_operand.vmem [shape: f32[32,640], index: 0, kind: input, shape index: {}]   ;;  %s904_s2 = inlined_call_operand.vmem [shape: f32[1,128], index: 2, kind: input, shape index: {}]   ;;  %s905_s3 = inlined_call_operand.vmem [shape: f32[32,128], index: 3, kind: output, shape index: {}]  }
   0x1   :  { %v65_v0 = vld [vmem:[%s902_s1 + $0xf8] sm:$0xff]  ;;  %v64_v4 = vld [vmem:[%s902_s1 + $0xf0] sm:$0xff]  ;;  %v63_v8 = vld [vmem:[%s902_s1 + $0xe8] sm:$0xff] }
   0x2   :  { %v97_v1 = vld [vmem:[%s902_s1 + $0x1f8] sm:$0xff]  ;;  %389 = vmatprep.subr.mxu0 %v65_v0  ;;  %v96_v5 = vld [vmem:[%s902_s1 + $0x1f0] sm:$0xff]  ;;  %v95_v9 = vld [vmem:[%s902_s1 + $0x1e8] sm:$0xff] }
   0x3   :  { %v49_v2 = vld [vmem:[%s902_s1 + $0x78] sm:$0xff]  ;;  %433 = vmatprep.subr.mxu1 %v97_v1  ;;  %v48_v6 = vld [vmem:[%s902_s1 + $0x70] sm:$0xff]  ;;  %v47_v10 = vld [vmem:[%s902_s1 + $0x68] sm:$0xff] }
   0x4   :  { %v81_v3 = vld [vmem:[%s902_s1 + $0x178] sm:$0xff]  ;;  %390 = vmatpush3.msra.mxu0 %v49_v2  ;;  %v80_v7 = vld [vmem:[%s902_s1 + $0x170] sm:$0xff]  ;;  %v79_v11 = vld [vmem:[%s902_s1 + $0x168] sm:$0xff] }
   0x5   :  { %434 = vmatpush3.msra.mxu1 %v81_v3  ;;  %391 = vmatprep.subr.mxu0 %v64_v4  ;;  %v62_v12 = vld [vmem:[%s902_s1 + $0xe0] sm:$0xff]  ;;  %v61_v16 = vld [vmem:[%s902_s1 + $0xd8] sm:$0xff]  ;;  %v60_v20 = vld [vmem:[%s902_s1 + $0xd0] sm:$0xff] }
   0x6   :  { %435 = vmatprep.subr.mxu1 %v96_v5  ;;  %392 = vmatpush3.msra.mxu0 %v48_v6  ;;  %v94_v13 = vld [vmem:[%s902_s1 + $0x1e0] sm:$0xff]  ;;  %v93_v17 = vld [vmem:[%s902_s1 + $0x1d8] sm:$0xff]  ;;  %v92_v21 = vld [vmem:[%s902_s1 + $0x1d0] sm:$0xff] }
   0x7   :  { %436 = vmatpush3.msra.mxu1 %v80_v7  ;;  %393 = vmatprep.subr.mxu0 %v63_v8  ;;  %v46_v14 = vld [vmem:[%s902_s1 + $0x60] sm:$0xff]  ;;  %v45_v18 = vld [vmem:[%s902_s1 + $0x58] sm:$0xff]  ;;  %v44_v22 = vld [vmem:[%s902_s1 + $0x50] sm:$0xff] }
   0x8   :  { %437 = vmatprep.subr.mxu1 %v95_v9  ;;  %v78_v15 = vld [vmem:[%s902_s1 + $0x160] sm:$0xff]  ;;  %394 = vmatpush3.msra.mxu0 %v47_v10  ;;  %v77_v19 = vld [vmem:[%s902_s1 + $0x158] sm:$0xff]  ;;  %v76_v23 = vld [vmem:[%s902_s1 + $0x150] sm:$0xff] }
   0x9   :  { %438 = vmatpush3.msra.mxu1 %v79_v11  ;;  %395 = vmatprep.subr.mxu0 %v62_v12  ;;  %v59_v24 = vld [vmem:[%s902_s1 + $0xc8] sm:$0xff]  ;;  %v58_v28 = vld [vmem:[%s902_s1 + $0xc0] sm:$0xff]  ;;  %v57_v32 = vld [vmem:[%s902_s1 + $0xb8] sm:$0xff] }
   0xa   :  { %439 = vmatprep.subr.mxu1 %v94_v13  ;;  %396 = vmatpush3.msra.mxu0 %v46_v14  ;;  %v91_v25 = vld [vmem:[%s902_s1 + $0x1c8] sm:$0xff]  ;;  %v90_v29 = vld [vmem:[%s902_s1 + $0x1c0] sm:$0xff]  ;;  %v89_v33 = vld [vmem:[%s902_s1 + $0x1b8] sm:$0xff] }
   0xb   :  { %440 = vmatpush3.msra.mxu1 %v78_v15  ;;  %397 = vmatprep.subr.mxu0 %v61_v16  ;;  %v43_v26 = vld [vmem:[%s902_s1 + $0x48] sm:$0xff]  ;;  %v42_v30 = vld [vmem:[%s902_s1 + $0x40] sm:$0xff]  ;;  %v41_v34 = vld [vmem:[%s902_s1 + $0x38] sm:$0xff] }
   0xc   :  { %441 = vmatprep.subr.mxu1 %v93_v17  ;;  %398 = vmatpush3.msra.mxu0 %v45_v18  ;;  %v75_v27 = vld [vmem:[%s902_s1 + $0x148] sm:$0xff]  ;;  %v74_v31 = vld [vmem:[%s902_s1 + $0x140] sm:$0xff]  ;;  %v73_v35 = vld [vmem:[%s902_s1 + $0x138] sm:$0xff] }
   0xd   :  { %442 = vmatpush3.msra.mxu1 %v77_v19  ;;  %399 = vmatprep.subr.mxu0 %v60_v20  ;;  %v56_v36 = vld [vmem:[%s902_s1 + $0xb0] sm:$0xff]  ;;  %v55_v40 = vld [vmem:[%s902_s1 + $0xa8] sm:$0xff]  ;;  %v54_v44 = vld [vmem:[%s902_s1 + $0xa0] sm:$0xff] }
   0xe   :  { %443 = vmatprep.subr.mxu1 %v92_v21  ;;  %400 = vmatpush3.msra.mxu0 %v44_v22  ;;  %v88_v37 = vld [vmem:[%s902_s1 + $0x1b0] sm:$0xff]  ;;  %v87_v41 = vld [vmem:[%s902_s1 + $0x1a8] sm:$0xff]  ;;  %v86_v45 = vld [vmem:[%s902_s1 + $0x1a0] sm:$0xff] }
   0xf   :  { %444 = vmatpush3.msra.mxu1 %v76_v23  ;;  %401 = vmatprep.subr.mxu0 %v59_v24  ;;  %v40_v38 = vld [vmem:[%s902_s1 + $0x30] sm:$0xff]  ;;  %v39_v42 = vld [vmem:[%s902_s1 + $0x28] sm:$0xff]  ;;  %v38_v46 = vld [vmem:[%s902_s1 + $0x20] sm:$0xff] }
  0x10   :  { %445 = vmatprep.subr.mxu1 %v91_v25  ;;  %402 = vmatpush3.msra.mxu0 %v43_v26  ;;  %v72_v39 = vld [vmem:[%s902_s1 + $0x130] sm:$0xff]  ;;  %v71_v43 = vld [vmem:[%s902_s1 + $0x128] sm:$0xff]  ;;  %v70_v47 = vld [vmem:[%s902_s1 + $0x120] sm:$0xff] }
  0x11   :  { %446 = vmatpush3.msra.mxu1 %v75_v27  ;;  %403 = vmatprep.subr.mxu0 %v58_v28  ;;  %v53_v48 = vld [vmem:[%s902_s1 + $0x98] sm:$0xff]  ;;  %v52_v52 = vld [vmem:[%s902_s1 + $0x90] sm:$0xff]  ;;  %v51_v56 = vld [vmem:[%s902_s1 + $0x88] sm:$0xff] }
  0x12   :  { %447 = vmatprep.subr.mxu1 %v90_v29  ;;  %404 = vmatpush3.msra.mxu0 %v42_v30  ;;  %v85_v49 = vld [vmem:[%s902_s1 + $0x198] sm:$0xff]  ;;  %v84_v53 = vld [vmem:[%s902_s1 + $0x190] sm:$0xff]  ;;  %v83_v57 = vld [vmem:[%s902_s1 + $0x188] sm:$0xff] }
  0x13   :  { %448 = vmatpush3.msra.mxu1 %v74_v31  ;;  %405 = vmatprep.subr.mxu0 %v57_v32  ;;  %v37_v50 = vld [vmem:[%s902_s1 + $0x18] sm:$0xff]  ;;  %v36_v54 = vld [vmem:[%s902_s1 + $0x10] sm:$0xff]  ;;  %v35_v58 = vld [vmem:[%s902_s1 + $0x8] sm:$0xff] }
  0x14   :  { %449 = vmatprep.subr.mxu1 %v89_v33  ;;  %406 = vmatpush3.msra.mxu0 %v41_v34  ;;  %v69_v51 = vld [vmem:[%s902_s1 + $0x118] sm:$0xff]  ;;  %v68_v55 = vld [vmem:[%s902_s1 + $0x110] sm:$0xff]  ;;  %v67_v59 = vld [vmem:[%s902_s1 + $0x108] sm:$0xff] }
  0x15   :  { %450 = vmatpush3.msra.mxu1 %v73_v35  ;;  %407 = vmatprep.subr.mxu0 %v56_v36  ;;  %v50_v60 = vld [vmem:[%s902_s1 + $0x80] sm:$0xff]  ;;  %v15_v63 = vld [vmem:[%s903_s0 + $0x8] sm:$0xff]  ;;  %v17_v1 = vld [vmem:[%s903_s0 + $0x18] sm:$0xff] }
  0x16   :  { %451 = vmatprep.subr.mxu1 %v88_v37  ;;  %408 = vmatpush3.msra.mxu0 %v40_v38  ;;  %v82_v61 = vld [vmem:[%s902_s1 + $0x180] sm:$0xff]  ;;  %v16_v3 = vld [vmem:[%s903_s0 + $0x10] sm:$0xff]  ;;  %v113_v4 = vld [vmem:[%s902_s1 + $0x278] sm:$0xff] }
  0x17   :  { %452 = vmatpush3.msra.mxu1 %v72_v39  ;;  %409 = vmatprep.subr.mxu0 %v55_v40  ;;  %v34_v62 = vld [vmem:[%s902_s1] sm:$0xff]  ;;  %v112_v5 = vld [vmem:[%s902_s1 + $0x270] sm:$0xff]  ;;  %v111_v6 = vld [vmem:[%s902_s1 + $0x268] sm:$0xff] }
  0x18   :  { %453 = vmatprep.subr.mxu1 %v87_v41  ;;  %410 = vmatpush3.msra.mxu0 %v39_v42  ;;  %v66_v0 = vld [vmem:[%s902_s1 + $0x100] sm:$0xff]  ;;  %v109_v8 = vld [vmem:[%s902_s1 + $0x258] sm:$0xff]  ;;  %v108_v9 = vld [vmem:[%s902_s1 + $0x250] sm:$0xff] }
  0x19   :  { %454 = vmatpush3.msra.mxu1 %v71_v43  ;;  %411 = vmatprep.subr.mxu0 %v54_v44  ;;  %v14_v2 = vld [vmem:[%s903_s0] sm:$0xff]  ;;  %v107_v10 = vld [vmem:[%s902_s1 + $0x248] sm:$0xff]  ;;  %v20_v12 = vld [vmem:[%s903_s0 + $0x30] sm:$0xff] }
  0x1a   :  { %455 = vmatprep.subr.mxu1 %v86_v45  ;;  %412 = vmatpush3.msra.mxu0 %v38_v46  ;;  %v110_v7 = vld [vmem:[%s902_s1 + $0x260] sm:$0xff]  ;;  %v19_v13 = vld [vmem:[%s903_s0 + $0x28] sm:$0xff]  ;;  %v105_v14 = vld [vmem:[%s902_s1 + $0x238] sm:$0xff] }
  0x1b   :  { %456 = vmatpush3.msra.mxu1 %v70_v47  ;;  %413 = vmatprep.subr.mxu0 %v53_v48  ;;  %v106_v11 = vld [vmem:[%s902_s1 + $0x240] sm:$0xff]  ;;  %v104_v16 = vld [vmem:[%s902_s1 + $0x230] sm:$0xff]  ;;  %v21_v17 = vld [vmem:[%s903_s0 + $0x38] sm:$0xff] }
  0x1c   :  { %457 = vmatprep.subr.mxu1 %v85_v49  ;;  %414 = vmatpush3.msra.mxu0 %v37_v50  ;;  %v22_v15 = vld [vmem:[%s903_s0 + $0x40] sm:$0xff]  ;;  %v25_v18 = vld [vmem:[%s903_s0 + $0x58] sm:$0xff]  ;;  %v24_v19 = vld [vmem:[%s903_s0 + $0x50] sm:$0xff] }
  0x1d   :  { %458 = vmatpush3.msra.mxu1 %v69_v51  ;;  %415 = vmatprep.subr.mxu0 %v52_v52  ;;  %v103_v20 = vld [vmem:[%s902_s1 + $0x228] sm:$0xff]  ;;  %v102_v22 = vld [vmem:[%s902_s1 + $0x220] sm:$0xff]  ;;  %v29_v25 = vld [vmem:[%s903_s0 + $0x78] sm:$0xff] }
  0x1e   :  { %459 = vmatprep.subr.mxu1 %v84_v53  ;;  %416 = vmatpush3.msra.mxu0 %v36_v54  ;;  %v27_v21 = vld [vmem:[%s903_s0 + $0x68] sm:$0xff]  ;;  %v26_v23 = vld [vmem:[%s903_s0 + $0x60] sm:$0xff]  ;;  %v101_v26 = vld [vmem:[%s902_s1 + $0x218] sm:$0xff] }
  0x1f   :  { %460 = vmatpush3.msra.mxu1 %v68_v55  ;;  %417 = vmatprep.subr.mxu0 %v51_v56  ;;  %v30_v24 = vld [vmem:[%s903_s0 + $0x80] sm:$0xff]  ;;  %v32_v27 = vld [vmem:[%s903_s0 + $0x90] sm:$0xff]  ;;  %v31_v29 = vld [vmem:[%s903_s0 + $0x88] sm:$0xff] }
  0x20   :  { %461 = vmatprep.subr.mxu1 %v83_v57  ;;  %418 = vmatpush3.msra.mxu0 %v35_v58  ;;  %v100_v28 = vld [vmem:[%s902_s1 + $0x210] sm:$0xff]  ;;  %v99_v30 = vld [vmem:[%s902_s1 + $0x208] sm:$0xff]  ;;  %v98_v31 = vld [vmem:[%s902_s1 + $0x200] sm:$0xff] }
  0x21   :  { %462 = vmatpush3.msra.mxu1 %v67_v59  ;;  %419 = vmatprep.subr.mxu0 %v50_v60  ;;  %v18_v32 = vld [vmem:[%s903_s0 + $0x20] sm:$0xff]  ;;  %v28_v33 = vld [vmem:[%s903_s0 + $0x70] sm:$0xff]  ;;  %v23_v34 = vld [vmem:[%s903_s0 + $0x48] sm:$0xff] }
  0x22   :  { %463 = vmatprep.subr.mxu1 %v82_v61  ;;  %420 = vmatpush3.msra.mxu0 %v34_v62  ;;  %v33_v35 = vld [vmem:[%s903_s0 + $0x98] sm:$0xff]  ;;  %v388_v52 = vld [vmem:[%s904_s2] ss:$0 sm:$0xff] }
  0x23   :  { %185 = vmatprep.mubr.f32.mxu0 %v15_v63  ;;  %464 = vmatpush3.msra.mxu1 %v66_v0 }
  0x24   :  { %270 = vmatprep.mubr.f32.mxu1 %v17_v1  ;;  %186 = vmatmul.mubr.f32.vlgmr.msra.gmra.mxu0 %v14_v2 }
  0x25   :  { %271 = vmatmul.mubr.f32.vlgmr.msra.gmra.mxu1 %v16_v3  ;;  %497 = vmatprep.subr.mxu0 %v113_v4 }
  0x26   :  { %535 = vmatprep.subr.mxu1 %v113_v4  ;;  %498 = vmatpush3.msra.mxu0 %v113_v4 }
  0x27   :  { %551 = vmatpush3.msra.mxu1 %v113_v4  ;;  %499 = vmatprep.subr.mxu0 %v112_v5 }
  0x28   :  { %536 = vmatprep.subr.mxu1 %v112_v5  ;;  %500 = vmatpush3.msra.mxu0 %v112_v5 }
  0x29   :  { %552 = vmatpush3.msra.mxu1 %v112_v5  ;;  %501 = vmatprep.subr.mxu0 %v111_v6 }
  0x2a   :  { %537 = vmatprep.subr.mxu1 %v111_v6  ;;  %502 = vmatpush3.msra.mxu0 %v111_v6 }
  0x2b   :  { %553 = vmatpush3.msra.mxu1 %v111_v6  ;;  %503 = vmatprep.subr.mxu0 %v110_v7 }
  0x2c   :  { %538 = vmatprep.subr.mxu1 %v110_v7  ;;  %504 = vmatpush3.msra.mxu0 %v110_v7 }
  0x2d   :  { %554 = vmatpush3.msra.mxu1 %v110_v7  ;;  %505 = vmatprep.subr.mxu0 %v109_v8 }
  0x2e   :  { %539 = vmatprep.subr.mxu1 %v109_v8  ;;  %506 = vmatpush3.msra.mxu0 %v109_v8 }
  0x2f   :  { %555 = vmatpush3.msra.mxu1 %v109_v8  ;;  %507 = vmatprep.subr.mxu0 %v108_v9 }
  0x30   :  { %540 = vmatprep.subr.mxu1 %v108_v9  ;;  %508 = vmatpush3.msra.mxu0 %v108_v9 }
  0x31   :  { %556 = vmatpush3.msra.mxu1 %v108_v9  ;;  %509 = vmatprep.subr.mxu0 %v107_v10 }
  0x32   :  { %541 = vmatprep.subr.mxu1 %v107_v10  ;;  %510 = vmatpush3.msra.mxu0 %v107_v10 }
  0x33   :  { %557 = vmatpush3.msra.mxu1 %v107_v10  ;;  %511 = vmatprep.subr.mxu0 %v106_v11 }
  0x34   :  { %542 = vmatprep.subr.mxu1 %v106_v11  ;;  %190 = vmatprep.mubr.f32.mxu0 %v20_v12 }
  0x35   :  { %512 = vmatpush3.msra.mxu0 %v106_v11  ;;  %558 = vmatpush3.msra.mxu1 %v106_v11 }
  0x36   :  { %191 = vmatmul.mubr.f32.gmra.mxu0 %v19_v13  ;;  %513 = vmatprep.subr.mxu0 %v105_v14 }
  0x37   :  { %543 = vmatprep.subr.mxu1 %v105_v14  ;;  %275 = vmatprep.mubr.f32.mxu1 %v22_v15 }
  0x38   :  { %514 = vmatpush3.msra.mxu0 %v105_v14  ;;  %559 = vmatpush3.msra.mxu1 %v105_v14 }
  0x39   :  { %515 = vmatprep.subr.mxu0 %v104_v16  ;;  %276 = vmatmul.mubr.f32.gmra.mxu1 %v21_v17 }
  0x3a   :  { %544 = vmatprep.subr.mxu1 %v104_v16  ;;  %195 = vmatprep.mubr.f32.mxu0 %v25_v18 }
  0x3b   :  { %516 = vmatpush3.msra.mxu0 %v104_v16  ;;  %560 = vmatpush3.msra.mxu1 %v104_v16 }
  0x3c   :  { %196 = vmatmul.mubr.f32.gmra.mxu0 %v24_v19  ;;  %517 = vmatprep.subr.mxu0 %v103_v20 }
  0x3d   :  { %545 = vmatprep.subr.mxu1 %v103_v20  ;;  %280 = vmatprep.mubr.f32.mxu1 %v27_v21 }
  0x3e   :  { %518 = vmatpush3.msra.mxu0 %v103_v20  ;;  %561 = vmatpush3.msra.mxu1 %v103_v20 }
  0x3f   :  { %519 = vmatprep.subr.mxu0 %v102_v22  ;;  %281 = vmatmul.mubr.f32.gmra.mxu1 %v26_v23 }
  0x40   :  { %546 = vmatprep.subr.mxu1 %v102_v22  ;;  %200 = vmatprep.mubr.f32.mxu0 %v30_v24 }
  0x41   :  { %520 = vmatpush3.msra.mxu0 %v102_v22  ;;  %562 = vmatpush3.msra.mxu1 %v102_v22 }
  0x42   :  { %201 = vmatmul.mubr.f32.gmra.mxu0 %v29_v25  ;;  %521 = vmatprep.subr.mxu0 %v101_v26 }
  0x43   :  { %547 = vmatprep.subr.mxu1 %v101_v26  ;;  %285 = vmatprep.mubr.f32.mxu1 %v32_v27 }
  0x44   :  { %522 = vmatpush3.msra.mxu0 %v101_v26  ;;  %563 = vmatpush3.msra.mxu1 %v101_v26 }
  0x45   :  { %523 = vmatprep.subr.mxu0 %v100_v28  ;;  %286 = vmatmul.mubr.f32.gmra.mxu1 %v31_v29 }
  0x46   :  { %548 = vmatprep.subr.mxu1 %v100_v28  ;;  %524 = vmatpush3.msra.mxu0 %v100_v28 }
  0x47   :  { %564 = vmatpush3.msra.mxu1 %v100_v28  ;;  %525 = vmatprep.subr.mxu0 %v99_v30 }
  0x48   :  { %549 = vmatprep.subr.mxu1 %v99_v30  ;;  %526 = vmatpush3.msra.mxu0 %v99_v30 }
  0x49   :  { %565 = vmatpush3.msra.mxu1 %v99_v30  ;;  %527 = vmatprep.subr.mxu0 %v98_v31 }
  0x4a   :  { %550 = vmatprep.subr.mxu1 %v98_v31  ;;  %528 = vmatpush3.msra.mxu0 %v98_v31 }
  0x4b   :  { %566 = vmatpush3.msra.mxu1 %v98_v31  ;;  %529 = vmatprep.mubr.f32.mxu0 %v18_v32 }
  0x4c   :  { %532 = vmatprep.mubr.f32.mxu1 %v28_v33  ;;  %530 = vmatmul.mubr.f32.vlgmr.msra.gmra.mxu0 %v23_v34 }
  0x4d   :  { %533 = vmatmul.mubr.f32.vlgmr.msra.gmra.mxu1 %v33_v35 }
  0xe4   :  { %v421_v36 = vpop.f32.mrf.mxu0 }
  0xe5   :  { %v465_v37 = vpop.f32.mrf.mxu1 }
  0xe6   :  { %v422_v38 = vpop.f32.mrf.mxu0 }
  0xe7   :  { %v466_v40 = vpop.f32.mrf.mxu1  ;;  %v423_v53 = vadd.f32 %v422_v38, %v421_v36 }
  0xe8   :  { %v467_v1 = vadd.f32 %v466_v40, %v465_v37 }
  0xe9   :  { %v188_v61 = vadd.f32 %v423_v53, %v388_v52 }
  0xeb   :  { %v273_v7 = vadd.f32 %v467_v1, %v188_v61 }
  0xf6   :  { %v424_v39 = vpop.f32.mrf.mxu0 }
  0xf8   :  { %v425_v41 = vpop.f32.mrf.mxu0 }
  0xf9   :  { %v468_v42 = vpop.f32.mrf.mxu1  ;;  %v426_v49 = vadd.f32 %v425_v41, %v424_v39 }
  0xfb   :  { %v469_v44 = vpop.f32.mrf.mxu1  ;;  %v193_v57 = vadd.f32 %v426_v49, %v388_v52 }
  0xfc   :  { %v427_v43 = vpop.f32.mrf.mxu0  ;;  %v470_v58 = vadd.f32 %v469_v44, %v468_v42 }
  0xfe   :  { %v428_v45 = vpop.f32.mrf.mxu0  ;;  %v278_v2 = vadd.f32 %v470_v58, %v193_v57 }
  0xff   :  { %v471_v46 = vpop.f32.mrf.mxu1  ;;  %v429_v54 = vadd.f32 %v428_v45, %v427_v43 }
 0x101   :  { %v472_v48 = vpop.f32.mrf.mxu1  ;;  %v198_v62 = vadd.f32 %v429_v54, %v388_v52 }
 0x102   :  { %v430_v47 = vpop.f32.mrf.mxu0  ;;  %v473_v63 = vadd.f32 %v472_v48, %v471_v46 }
 0x104   :  { %v431_v50 = vpop.f32.mrf.mxu0  ;;  %v283_v8 = vadd.f32 %v473_v63, %v198_v62 }
 0x105   :  { %v432_v51 = vadd.f32 %v431_v50, %v430_v47  ;;  %v474_v55 = vpop.f32.mrf.mxu1 }
 0x107   :  { %v203_v56 = vadd.f32 %v432_v51, %v388_v52  ;;  %v475_v59 = vpop.f32.mrf.mxu1 }
 0x108   :  { %v476_v60 = vadd.f32 %v475_v59, %v474_v55 }
 0x10a   :  { %v288_v0 = vadd.f32 %v476_v60, %v203_v56 }
 0x10c   :  { %v531_v3 = vpop.f32.mrf.mxu0 }
 0x10d   :  { %v534_v4 = vpop.f32.mrf.mxu1  ;;  %v363_v5 = vadd.f32 %v531_v3, %v278_v2 }
 0x10e   :  { %v373_v6 = vadd.f32 %v534_v4, %v288_v0  ;;  %v357_v9 = vpop.f32.mrf.mxu0 }
 0x10f   :  { %v367_v10 = vpop.f32.mrf.mxu1  ;;  %v377_v11 = vmax.f32 %v363_v5, 0.0  ;;  %v358_v13 = vadd.f32 %v357_v9, %v273_v7 }
 0x110   :  { %v379_v12 = vmax.f32 %v373_v6, 0.0  ;;  %v368_v14 = vadd.f32 %v367_v10, %v283_v8 }
 0x111   :  { %381 = vst [vmem:[%s905_s3 + $0x8] sm:$0xff] %v377_v11  ;;  %v376_v15 = vmax.f32 %v358_v13, 0.0 }
 0x112   :  { %383 = vst [vmem:[%s905_s3 + $0x18] sm:$0xff] %v379_v12  ;;  %v378_v16 = vmax.f32 %v368_v14, 0.0 }
 0x113   :  { %380 = vst [vmem:[%s905_s3] sm:$0xff] %v376_v15 }
 0x114   :  { %382 = vst [vmem:[%s905_s3 + $0x10] sm:$0xff] %v378_v16 }

// kernel: jpeg_compression_predictor.9
= control target key start
LH: loop header
LB: loop body
LE: loop exit
PB: predicated region body
PF: predicated region fallthrough
CT: control target
= control target key end

     0   :  { %s2999_s1 = inlined_call_operand.vmem [shape: f32[2048,256], index: 1, kind: input, shape index: {}]   ;;  %s3000_s0 = inlined_call_operand.vmem [shape: f32[8,2048], index: 0, kind: input, shape index: {}]   ;;  %s3001_s3 = inlined_call_operand.vmem [shape: f32[256,128], index: 3, kind: input, shape index: {}]   ;;  %s3002_s2 = inlined_call_operand.vmem [shape: f32[1,256], index: 2, kind: input, shape index: {}]   ;;  %s3003_s4 = inlined_call_operand.vmem [shape: f32[1,128], index: 4, kind: input, shape index: {}]   ;;  %s3004_s5 = inlined_call_operand.vmem [shape: f32[8,128], index: 5, kind: output, shape index: {}]  }
   0x1   :  { %v67_v0 = vld [vmem:[%s2999_s1 + $0xf8] sm:$0xff]  ;;  %v66_v2 = vld [vmem:[%s2999_s1 + $0xf0] sm:$0xff]  ;;  %v65_v4 = vld [vmem:[%s2999_s1 + $0xe8] sm:$0xff] }
   0x2   :  { %v131_v1 = vld [vmem:[%s2999_s1 + $0x2f8] sm:$0xff]  ;;  %560 = vmatprep.subr.mxu0 %v67_v0  ;;  %v130_v3 = vld [vmem:[%s2999_s1 + $0x2f0] sm:$0xff]  ;;  %v129_v5 = vld [vmem:[%s2999_s1 + $0x2e8] sm:$0xff] }
   0x3   :  { %631 = vmatprep.subr.mxu1 %v131_v1  ;;  %561 = vmatpush1.msra.mxu0 %v66_v2  ;;  %v64_v6 = vld [vmem:[%s2999_s1 + $0xe0] sm:$0xff]  ;;  %v63_v8 = vld [vmem:[%s2999_s1 + $0xd8] sm:$0xff]  ;;  %v62_v10 = vld [vmem:[%s2999_s1 + $0xd0] sm:$0xff] }
   0x4   :  { %632 = vmatpush1.msra.mxu1 %v130_v3  ;;  %v128_v7 = vld [vmem:[%s2999_s1 + $0x2e0] sm:$0xff]  ;;  %562 = vmatprep.subr.mxu0 %v65_v4  ;;  %v127_v9 = vld [vmem:[%s2999_s1 + $0x2d8] sm:$0xff]  ;;  %v126_v11 = vld [vmem:[%s2999_s1 + $0x2d0] sm:$0xff] }
   0x5   :  { %633 = vmatprep.subr.mxu1 %v129_v5  ;;  %563 = vmatpush1.msra.mxu0 %v64_v6  ;;  %v61_v12 = vld [vmem:[%s2999_s1 + $0xc8] sm:$0xff]  ;;  %v60_v14 = vld [vmem:[%s2999_s1 + $0xc0] sm:$0xff]  ;;  %v59_v16 = vld [vmem:[%s2999_s1 + $0xb8] sm:$0xff] }
   0x6   :  { %634 = vmatpush1.msra.mxu1 %v128_v7  ;;  %v125_v13 = vld [vmem:[%s2999_s1 + $0x2c8] sm:$0xff]  ;;  %564 = vmatprep.subr.mxu0 %v63_v8  ;;  %v124_v15 = vld [vmem:[%s2999_s1 + $0x2c0] sm:$0xff]  ;;  %v123_v17 = vld [vmem:[%s2999_s1 + $0x2b8] sm:$0xff] }
   0x7   :  { %635 = vmatprep.subr.mxu1 %v127_v9  ;;  %565 = vmatpush1.msra.mxu0 %v62_v10  ;;  %v58_v18 = vld [vmem:[%s2999_s1 + $0xb0] sm:$0xff]  ;;  %v57_v20 = vld [vmem:[%s2999_s1 + $0xa8] sm:$0xff]  ;;  %v56_v22 = vld [vmem:[%s2999_s1 + $0xa0] sm:$0xff] }
   0x8   :  { %636 = vmatpush1.msra.mxu1 %v126_v11  ;;  %566 = vmatprep.subr.mxu0 %v61_v12  ;;  %v122_v19 = vld [vmem:[%s2999_s1 + $0x2b0] sm:$0xff]  ;;  %v121_v21 = vld [vmem:[%s2999_s1 + $0x2a8] sm:$0xff]  ;;  %v120_v23 = vld [vmem:[%s2999_s1 + $0x2a0] sm:$0xff] }
   0x9   :  { %637 = vmatprep.subr.mxu1 %v125_v13  ;;  %567 = vmatpush1.msra.mxu0 %v60_v14  ;;  %v55_v24 = vld [vmem:[%s2999_s1 + $0x98] sm:$0xff]  ;;  %v54_v26 = vld [vmem:[%s2999_s1 + $0x90] sm:$0xff]  ;;  %v53_v28 = vld [vmem:[%s2999_s1 + $0x88] sm:$0xff] }
   0xa   :  { %638 = vmatpush1.msra.mxu1 %v124_v15  ;;  %568 = vmatprep.subr.mxu0 %v59_v16  ;;  %v119_v25 = vld [vmem:[%s2999_s1 + $0x298] sm:$0xff]  ;;  %v118_v27 = vld [vmem:[%s2999_s1 + $0x290] sm:$0xff]  ;;  %v117_v29 = vld [vmem:[%s2999_s1 + $0x288] sm:$0xff] }
   0xb   :  { %639 = vmatprep.subr.mxu1 %v123_v17  ;;  %569 = vmatpush1.msra.mxu0 %v58_v18  ;;  %v52_v30 = vld [vmem:[%s2999_s1 + $0x80] sm:$0xff]  ;;  %v51_v32 = vld [vmem:[%s2999_s1 + $0x78] sm:$0xff]  ;;  %v50_v34 = vld [vmem:[%s2999_s1 + $0x70] sm:$0xff] }
   0xc   :  { %640 = vmatpush1.msra.mxu1 %v122_v19  ;;  %570 = vmatprep.subr.mxu0 %v57_v20  ;;  %v116_v31 = vld [vmem:[%s2999_s1 + $0x280] sm:$0xff]  ;;  %v115_v33 = vld [vmem:[%s2999_s1 + $0x278] sm:$0xff]  ;;  %v114_v35 = vld [vmem:[%s2999_s1 + $0x270] sm:$0xff] }
   0xd   :  { %641 = vmatprep.subr.mxu1 %v121_v21  ;;  %571 = vmatpush1.msra.mxu0 %v56_v22  ;;  %v49_v36 = vld [vmem:[%s2999_s1 + $0x68] sm:$0xff]  ;;  %v48_v38 = vld [vmem:[%s2999_s1 + $0x60] sm:$0xff]  ;;  %v47_v40 = vld [vmem:[%s2999_s1 + $0x58] sm:$0xff] }
   0xe   :  { %642 = vmatpush1.msra.mxu1 %v120_v23  ;;  %572 = vmatprep.subr.mxu0 %v55_v24  ;;  %v113_v37 = vld [vmem:[%s2999_s1 + $0x268] sm:$0xff]  ;;  %v112_v39 = vld [vmem:[%s2999_s1 + $0x260] sm:$0xff]  ;;  %v111_v41 = vld [vmem:[%s2999_s1 + $0x258] sm:$0xff] }
   0xf   :  { %643 = vmatprep.subr.mxu1 %v119_v25  ;;  %573 = vmatpush1.msra.mxu0 %v54_v26  ;;  %v46_v42 = vld [vmem:[%s2999_s1 + $0x50] sm:$0xff]  ;;  %v45_v44 = vld [vmem:[%s2999_s1 + $0x48] sm:$0xff]  ;;  %v44_v46 = vld [vmem:[%s2999_s1 + $0x40] sm:$0xff] }
  0x10   :  { %644 = vmatpush1.msra.mxu1 %v118_v27  ;;  %574 = vmatprep.subr.mxu0 %v53_v28  ;;  %v110_v43 = vld [vmem:[%s2999_s1 + $0x250] sm:$0xff]  ;;  %v109_v45 = vld [vmem:[%s2999_s1 + $0x248] sm:$0xff]  ;;  %v108_v47 = vld [vmem:[%s2999_s1 + $0x240] sm:$0xff] }
  0x11   :  { %645 = vmatprep.subr.mxu1 %v117_v29  ;;  %575 = vmatpush1.msra.mxu0 %v52_v30  ;;  %v43_v48 = vld [vmem:[%s2999_s1 + $0x38] sm:$0xff]  ;;  %v42_v50 = vld [vmem:[%s2999_s1 + $0x30] sm:$0xff]  ;;  %v41_v52 = vld [vmem:[%s2999_s1 + $0x28] sm:$0xff] }
  0x12   :  { %646 = vmatpush1.msra.mxu1 %v116_v31  ;;  %576 = vmatprep.subr.mxu0 %v51_v32  ;;  %v107_v49 = vld [vmem:[%s2999_s1 + $0x238] sm:$0xff]  ;;  %v106_v51 = vld [vmem:[%s2999_s1 + $0x230] sm:$0xff]  ;;  %v105_v53 = vld [vmem:[%s2999_s1 + $0x228] sm:$0xff] }
  0x13   :  { %647 = vmatprep.subr.mxu1 %v115_v33  ;;  %577 = vmatpush1.msra.mxu0 %v50_v34  ;;  %v40_v54 = vld [vmem:[%s2999_s1 + $0x20] sm:$0xff]  ;;  %v39_v56 = vld [vmem:[%s2999_s1 + $0x18] sm:$0xff]  ;;  %v38_v58 = vld [vmem:[%s2999_s1 + $0x10] sm:$0xff] }
  0x14   :  { %648 = vmatpush1.msra.mxu1 %v114_v35  ;;  %578 = vmatprep.subr.mxu0 %v49_v36  ;;  %v104_v55 = vld [vmem:[%s2999_s1 + $0x220] sm:$0xff]  ;;  %v103_v57 = vld [vmem:[%s2999_s1 + $0x218] sm:$0xff]  ;;  %v102_v59 = vld [vmem:[%s2999_s1 + $0x210] sm:$0xff] }
  0x15   :  { %649 = vmatprep.subr.mxu1 %v113_v37  ;;  %579 = vmatpush1.msra.mxu0 %v48_v38  ;;  %v37_v60 = vld [vmem:[%s2999_s1 + $0x8] sm:$0xff]  ;;  %v36_v62 = vld [vmem:[%s2999_s1] sm:$0xff]  ;;  %v99_v0 = vld [vmem:[%s2999_s1 + $0x1f8] sm:$0xff] }
  0x16   :  { %650 = vmatpush1.msra.mxu1 %v112_v39  ;;  %580 = vmatprep.subr.mxu0 %v47_v40  ;;  %v101_v61 = vld [vmem:[%s2999_s1 + $0x208] sm:$0xff]  ;;  %v100_v63 = vld [vmem:[%s2999_s1 + $0x200] sm:$0xff]  ;;  %v163_v1 = vld [vmem:[%s2999_s1 + $0x3f8] sm:$0xff] }
  0x17   :  { %651 = vmatprep.subr.mxu1 %v111_v41  ;;  %581 = vmatpush1.msra.mxu0 %v46_v42  ;;  %v98_v2 = vld [vmem:[%s2999_s1 + $0x1f0] sm:$0xff]  ;;  %v97_v4 = vld [vmem:[%s2999_s1 + $0x1e8] sm:$0xff]  ;;  %v96_v6 = vld [vmem:[%s2999_s1 + $0x1e0] sm:$0xff] }
  0x18   :  { %652 = vmatpush1.msra.mxu1 %v110_v43  ;;  %582 = vmatprep.subr.mxu0 %v45_v44  ;;  %v162_v3 = vld [vmem:[%s2999_s1 + $0x3f0] sm:$0xff]  ;;  %v161_v5 = vld [vmem:[%s2999_s1 + $0x3e8] sm:$0xff]  ;;  %v160_v7 = vld [vmem:[%s2999_s1 + $0x3e0] sm:$0xff] }
  0x19   :  { %653 = vmatprep.subr.mxu1 %v109_v45  ;;  %583 = vmatpush1.msra.mxu0 %v44_v46  ;;  %v95_v8 = vld [vmem:[%s2999_s1 + $0x1d8] sm:$0xff]  ;;  %v94_v10 = vld [vmem:[%s2999_s1 + $0x1d0] sm:$0xff]  ;;  %v93_v12 = vld [vmem:[%s2999_s1 + $0x1c8] sm:$0xff] }
  0x1a   :  { %654 = vmatpush1.msra.mxu1 %v108_v47  ;;  %584 = vmatprep.subr.mxu0 %v43_v48  ;;  %v159_v9 = vld [vmem:[%s2999_s1 + $0x3d8] sm:$0xff]  ;;  %v158_v11 = vld [vmem:[%s2999_s1 + $0x3d0] sm:$0xff]  ;;  %v157_v13 = vld [vmem:[%s2999_s1 + $0x3c8] sm:$0xff] }
  0x1b   :  { %655 = vmatprep.subr.mxu1 %v107_v49  ;;  %585 = vmatpush1.msra.mxu0 %v42_v50  ;;  %v92_v14 = vld [vmem:[%s2999_s1 + $0x1c0] sm:$0xff]  ;;  %v91_v16 = vld [vmem:[%s2999_s1 + $0x1b8] sm:$0xff]  ;;  %v90_v18 = vld [vmem:[%s2999_s1 + $0x1b0] sm:$0xff] }
  0x1c   :  { %656 = vmatpush1.msra.mxu1 %v106_v51  ;;  %586 = vmatprep.subr.mxu0 %v41_v52  ;;  %v156_v15 = vld [vmem:[%s2999_s1 + $0x3c0] sm:$0xff]  ;;  %v155_v17 = vld [vmem:[%s2999_s1 + $0x3b8] sm:$0xff]  ;;  %v154_v19 = vld [vmem:[%s2999_s1 + $0x3b0] sm:$0xff] }
  0x1d   :  { %657 = vmatprep.subr.mxu1 %v105_v53  ;;  %587 = vmatpush1.msra.mxu0 %v40_v54  ;;  %v89_v20 = vld [vmem:[%s2999_s1 + $0x1a8] sm:$0xff]  ;;  %v88_v22 = vld [vmem:[%s2999_s1 + $0x1a0] sm:$0xff]  ;;  %v87_v24 = vld [vmem:[%s2999_s1 + $0x198] sm:$0xff] }
  0x1e   :  { %658 = vmatpush1.msra.mxu1 %v104_v55  ;;  %588 = vmatprep.subr.mxu0 %v39_v56  ;;  %v153_v21 = vld [vmem:[%s2999_s1 + $0x3a8] sm:$0xff]  ;;  %v152_v23 = vld [vmem:[%s2999_s1 + $0x3a0] sm:$0xff]  ;;  %v151_v25 = vld [vmem:[%s2999_s1 + $0x398] sm:$0xff] }
  0x1f   :  { %659 = vmatprep.subr.mxu1 %v103_v57  ;;  %589 = vmatpush1.msra.mxu0 %v38_v58  ;;  %v86_v26 = vld [vmem:[%s2999_s1 + $0x190] sm:$0xff]  ;;  %v85_v28 = vld [vmem:[%s2999_s1 + $0x188] sm:$0xff]  ;;  %v84_v30 = vld [vmem:[%s2999_s1 + $0x180] sm:$0xff] }
  0x20   :  { %660 = vmatpush1.msra.mxu1 %v102_v59  ;;  %590 = vmatprep.subr.mxu0 %v37_v60  ;;  %v150_v27 = vld [vmem:[%s2999_s1 + $0x390] sm:$0xff]  ;;  %v149_v29 = vld [vmem:[%s2999_s1 + $0x388] sm:$0xff]  ;;  %v148_v31 = vld [vmem:[%s2999_s1 + $0x380] sm:$0xff] }
  0x21   :  { %661 = vmatprep.subr.mxu1 %v101_v61  ;;  %591 = vmatpush1.msra.mxu0 %v36_v62  ;;  %v83_v32 = vld [vmem:[%s2999_s1 + $0x178] sm:$0xff]  ;;  %v82_v34 = vld [vmem:[%s2999_s1 + $0x170] sm:$0xff]  ;;  %v81_v36 = vld [vmem:[%s2999_s1 + $0x168] sm:$0xff] }
  0x22   :  { %662 = vmatpush1.msra.mxu1 %v100_v63  ;;  %592 = vmatprep.subr.mxu0 %v99_v0  ;;  %v147_v33 = vld [vmem:[%s2999_s1 + $0x378] sm:$0xff]  ;;  %v146_v35 = vld [vmem:[%s2999_s1 + $0x370] sm:$0xff]  ;;  %v145_v37 = vld [vmem:[%s2999_s1 + $0x368] sm:$0xff] }
  0x23   :  { %663 = vmatprep.subr.mxu1 %v163_v1  ;;  %593 = vmatpush2.msra.mxu0 %v98_v2  ;;  %v80_v38 = vld [vmem:[%s2999_s1 + $0x160] sm:$0xff]  ;;  %v79_v40 = vld [vmem:[%s2999_s1 + $0x158] sm:$0xff]  ;;  %v78_v42 = vld [vmem:[%s2999_s1 + $0x150] sm:$0xff] }
  0x24   :  { %664 = vmatpush2.msra.mxu1 %v162_v3  ;;  %594 = vmatprep.subr.mxu0 %v97_v4  ;;  %v144_v39 = vld [vmem:[%s2999_s1 + $0x360] sm:$0xff]  ;;  %v143_v41 = vld [vmem:[%s2999_s1 + $0x358] sm:$0xff]  ;;  %v142_v43 = vld [vmem:[%s2999_s1 + $0x350] sm:$0xff] }
  0x25   :  { %665 = vmatprep.subr.mxu1 %v161_v5  ;;  %595 = vmatpush2.msra.mxu0 %v96_v6  ;;  %v77_v44 = vld [vmem:[%s2999_s1 + $0x148] sm:$0xff]  ;;  %v76_v46 = vld [vmem:[%s2999_s1 + $0x140] sm:$0xff]  ;;  %v75_v48 = vld [vmem:[%s2999_s1 + $0x138] sm:$0xff] }
  0x26   :  { %666 = vmatpush2.msra.mxu1 %v160_v7  ;;  %596 = vmatprep.subr.mxu0 %v95_v8  ;;  %v141_v45 = vld [vmem:[%s2999_s1 + $0x348] sm:$0xff]  ;;  %v140_v47 = vld [vmem:[%s2999_s1 + $0x340] sm:$0xff]  ;;  %v139_v49 = vld [vmem:[%s2999_s1 + $0x338] sm:$0xff] }
  0x27   :  { %667 = vmatprep.subr.mxu1 %v159_v9  ;;  %597 = vmatpush2.msra.mxu0 %v94_v10  ;;  %v74_v50 = vld [vmem:[%s2999_s1 + $0x130] sm:$0xff]  ;;  %v73_v52 = vld [vmem:[%s2999_s1 + $0x128] sm:$0xff]  ;;  %v72_v54 = vld [vmem:[%s2999_s1 + $0x120] sm:$0xff] }
  0x28   :  { %668 = vmatpush2.msra.mxu1 %v158_v11  ;;  %598 = vmatprep.subr.mxu0 %v93_v12  ;;  %v138_v51 = vld [vmem:[%s2999_s1 + $0x330] sm:$0xff]  ;;  %v137_v53 = vld [vmem:[%s2999_s1 + $0x328] sm:$0xff]  ;;  %v136_v55 = vld [vmem:[%s2999_s1 + $0x320] sm:$0xff] }
  0x29   :  { %669 = vmatprep.subr.mxu1 %v157_v13  ;;  %599 = vmatpush2.msra.mxu0 %v92_v14  ;;  %v71_v56 = vld [vmem:[%s2999_s1 + $0x118] sm:$0xff]  ;;  %v70_v58 = vld [vmem:[%s2999_s1 + $0x110] sm:$0xff]  ;;  %v69_v60 = vld [vmem:[%s2999_s1 + $0x108] sm:$0xff] }
  0x2a   :  { %670 = vmatpush2.msra.mxu1 %v156_v15  ;;  %600 = vmatprep.subr.mxu0 %v91_v16  ;;  %v135_v57 = vld [vmem:[%s2999_s1 + $0x318] sm:$0xff]  ;;  %v134_v59 = vld [vmem:[%s2999_s1 + $0x310] sm:$0xff]  ;;  %v133_v61 = vld [vmem:[%s2999_s1 + $0x308] sm:$0xff] }
  0x2b   :  { %671 = vmatprep.subr.mxu1 %v155_v17  ;;  %601 = vmatpush2.msra.mxu0 %v90_v18  ;;  %v68_v62 = vld [vmem:[%s2999_s1 + $0x100] sm:$0xff]  ;;  %v21_v63 = vld [vmem:[%s3000_s0 + $0x8] sm:$0xff]  ;;  %v23_v2 = vld [vmem:[%s3000_s0 + $0x18] sm:$0xff] }
  0x2c   :  { %672 = vmatpush2.msra.mxu1 %v154_v19  ;;  %602 = vmatprep.subr.mxu0 %v89_v20  ;;  %v132_v0 = vld [vmem:[%s2999_s1 + $0x300] sm:$0xff]  ;;  %v195_v3 = vld [vmem:[%s2999_s1 + $0x4f8] sm:$0xff]  ;;  %v22_v5 = vld [vmem:[%s3000_s0 + $0x10] sm:$0xff] }
  0x2d   :  { %673 = vmatprep.subr.mxu1 %v153_v21  ;;  %603 = vmatpush2.msra.mxu0 %v88_v22  ;;  %v20_v1 = vld [vmem:[%s3000_s0] sm:$0xff]  ;;  %v259_v4 = vld [vmem:[%s2999_s1 + $0x6f8] sm:$0xff]  ;;  %v194_v6 = vld [vmem:[%s2999_s1 + $0x4f0] sm:$0xff] }
  0x2e   :  { %674 = vmatpush2.msra.mxu1 %v152_v23  ;;  %604 = vmatprep.subr.mxu0 %v87_v24  ;;  %v258_v7 = vld [vmem:[%s2999_s1 + $0x6f0] sm:$0xff]  ;;  %v193_v8 = vld [vmem:[%s2999_s1 + $0x4e8] sm:$0xff]  ;;  %v192_v10 = vld [vmem:[%s2999_s1 + $0x4e0] sm:$0xff] }
  0x2f   :  { %675 = vmatprep.subr.mxu1 %v151_v25  ;;  %605 = vmatpush2.msra.mxu0 %v86_v26  ;;  %v257_v9 = vld [vmem:[%s2999_s1 + $0x6e8] sm:$0xff]  ;;  %v256_v11 = vld [vmem:[%s2999_s1 + $0x6e0] sm:$0xff]  ;;  %v191_v12 = vld [vmem:[%s2999_s1 + $0x4d8] sm:$0xff] }
  0x30   :  { %676 = vmatpush2.msra.mxu1 %v150_v27  ;;  %606 = vmatprep.subr.mxu0 %v85_v28  ;;  %v255_v13 = vld [vmem:[%s2999_s1 + $0x6d8] sm:$0xff]  ;;  %v190_v14 = vld [vmem:[%s2999_s1 + $0x4d0] sm:$0xff]  ;;  %v189_v16 = vld [vmem:[%s2999_s1 + $0x4c8] sm:$0xff] }
  0x31   :  { %677 = vmatprep.subr.mxu1 %v149_v29  ;;  %607 = vmatpush2.msra.mxu0 %v84_v30  ;;  %v254_v15 = vld [vmem:[%s2999_s1 + $0x6d0] sm:$0xff]  ;;  %v253_v17 = vld [vmem:[%s2999_s1 + $0x6c8] sm:$0xff]  ;;  %v188_v18 = vld [vmem:[%s2999_s1 + $0x4c0] sm:$0xff] }
  0x32   :  { %678 = vmatpush2.msra.mxu1 %v148_v31  ;;  %608 = vmatprep.subr.mxu0 %v83_v32  ;;  %v252_v19 = vld [vmem:[%s2999_s1 + $0x6c0] sm:$0xff]  ;;  %v187_v20 = vld [vmem:[%s2999_s1 + $0x4b8] sm:$0xff]  ;;  %v186_v22 = vld [vmem:[%s2999_s1 + $0x4b0] sm:$0xff] }
  0x33   :  { %679 = vmatprep.subr.mxu1 %v147_v33  ;;  %609 = vmatpush2.msra.mxu0 %v82_v34  ;;  %v251_v21 = vld [vmem:[%s2999_s1 + $0x6b8] sm:$0xff]  ;;  %v250_v23 = vld [vmem:[%s2999_s1 + $0x6b0] sm:$0xff]  ;;  %v185_v24 = vld [vmem:[%s2999_s1 + $0x4a8] sm:$0xff] }
  0x34   :  { %680 = vmatpush2.msra.mxu1 %v146_v35  ;;  %610 = vmatprep.subr.mxu0 %v81_v36  ;;  %v249_v25 = vld [vmem:[%s2999_s1 + $0x6a8] sm:$0xff]  ;;  %v184_v26 = vld [vmem:[%s2999_s1 + $0x4a0] sm:$0xff]  ;;  %v183_v28 = vld [vmem:[%s2999_s1 + $0x498] sm:$0xff] }
  0x35   :  { %681 = vmatprep.subr.mxu1 %v145_v37  ;;  %611 = vmatpush2.msra.mxu0 %v80_v38  ;;  %v248_v27 = vld [vmem:[%s2999_s1 + $0x6a0] sm:$0xff]  ;;  %v247_v29 = vld [vmem:[%s2999_s1 + $0x698] sm:$0xff]  ;;  %v182_v30 = vld [vmem:[%s2999_s1 + $0x490] sm:$0xff] }
  0x36   :  { %682 = vmatpush2.msra.mxu1 %v144_v39  ;;  %612 = vmatprep.subr.mxu0 %v79_v40  ;;  %v246_v31 = vld [vmem:[%s2999_s1 + $0x690] sm:$0xff]  ;;  %v181_v32 = vld [vmem:[%s2999_s1 + $0x488] sm:$0xff]  ;;  %v180_v34 = vld [vmem:[%s2999_s1 + $0x480] sm:$0xff] }
  0x37   :  { %683 = vmatprep.subr.mxu1 %v143_v41  ;;  %613 = vmatpush2.msra.mxu0 %v78_v42  ;;  %v245_v33 = vld [vmem:[%s2999_s1 + $0x688] sm:$0xff]  ;;  %v244_v35 = vld [vmem:[%s2999_s1 + $0x680] sm:$0xff]  ;;  %v179_v36 = vld [vmem:[%s2999_s1 + $0x478] sm:$0xff] }
  0x38   :  { %684 = vmatpush2.msra.mxu1 %v142_v43  ;;  %614 = vmatprep.subr.mxu0 %v77_v44  ;;  %v243_v37 = vld [vmem:[%s2999_s1 + $0x678] sm:$0xff]  ;;  %v178_v38 = vld [vmem:[%s2999_s1 + $0x470] sm:$0xff]  ;;  %v177_v40 = vld [vmem:[%s2999_s1 + $0x468] sm:$0xff] }
  0x39   :  { %685 = vmatprep.subr.mxu1 %v141_v45  ;;  %615 = vmatpush2.msra.mxu0 %v76_v46  ;;  %v242_v39 = vld [vmem:[%s2999_s1 + $0x670] sm:$0xff]  ;;  %v241_v41 = vld [vmem:[%s2999_s1 + $0x668] sm:$0xff]  ;;  %v176_v42 = vld [vmem:[%s2999_s1 + $0x460] sm:$0xff] }
  0x3a   :  { %686 = vmatpush2.msra.mxu1 %v140_v47  ;;  %616 = vmatprep.subr.mxu0 %v75_v48  ;;  %v240_v43 = vld [vmem:[%s2999_s1 + $0x660] sm:$0xff]  ;;  %v175_v44 = vld [vmem:[%s2999_s1 + $0x458] sm:$0xff]  ;;  %v174_v46 = vld [vmem:[%s2999_s1 + $0x450] sm:$0xff] }
  0x3b   :  { %687 = vmatprep.subr.mxu1 %v139_v49  ;;  %617 = vmatpush2.msra.mxu0 %v74_v50  ;;  %v239_v45 = vld [vmem:[%s2999_s1 + $0x658] sm:$0xff]  ;;  %v238_v47 = vld [vmem:[%s2999_s1 + $0x650] sm:$0xff]  ;;  %v173_v48 = vld [vmem:[%s2999_s1 + $0x448] sm:$0xff] }
  0x3c   :  { %688 = vmatpush2.msra.mxu1 %v138_v51  ;;  %618 = vmatprep.subr.mxu0 %v73_v52  ;;  %v237_v49 = vld [vmem:[%s2999_s1 + $0x648] sm:$0xff]  ;;  %v172_v50 = vld [vmem:[%s2999_s1 + $0x440] sm:$0xff]  ;;  %v171_v52 = vld [vmem:[%s2999_s1 + $0x438] sm:$0xff] }
  0x3d   :  { %689 = vmatprep.subr.mxu1 %v137_v53  ;;  %619 = vmatpush2.msra.mxu0 %v72_v54  ;;  %v236_v51 = vld [vmem:[%s2999_s1 + $0x640] sm:$0xff]  ;;  %v235_v53 = vld [vmem:[%s2999_s1 + $0x638] sm:$0xff]  ;;  %v170_v54 = vld [vmem:[%s2999_s1 + $0x430] sm:$0xff] }
  0x3e   :  { %690 = vmatpush2.msra.mxu1 %v136_v55  ;;  %620 = vmatprep.subr.mxu0 %v71_v56  ;;  %v234_v55 = vld [vmem:[%s2999_s1 + $0x630] sm:$0xff]  ;;  %v169_v56 = vld [vmem:[%s2999_s1 + $0x428] sm:$0xff] }
  0x3f   :  { %691 = vmatprep.subr.mxu1 %v135_v57  ;;  %621 = vmatpush2.msra.mxu0 %v70_v58  ;;  %v233_v57 = vld [vmem:[%s2999_s1 + $0x628] sm:$0xff]  ;;  %v168_v58 = vld [vmem:[%s2999_s1 + $0x420] sm:$0xff] }
  0x40   :  { %692 = vmatpush2.msra.mxu1 %v134_v59  ;;  %622 = vmatprep.subr.mxu0 %v69_v60  ;;  %v232_v59 = vld [vmem:[%s2999_s1 + $0x620] sm:$0xff]  ;;  %v167_v60 = vld [vmem:[%s2999_s1 + $0x418] sm:$0xff] }
  0x41   :  { %693 = vmatprep.subr.mxu1 %v133_v61  ;;  %623 = vmatpush2.msra.mxu0 %v68_v62  ;;  %v231_v61 = vld [vmem:[%s2999_s1 + $0x618] sm:$0xff]  ;;  %v166_v62 = vld [vmem:[%s2999_s1 + $0x410] sm:$0xff] }
  0x42   :  { %624 = vmatprep.mubr.f32.mxu0 %v21_v63  ;;  %694 = vmatpush2.msra.mxu1 %v132_v0  ;;  %v230_v63 = vld [vmem:[%s2999_s1 + $0x610] sm:$0xff]  ;;  %v165_v0 = vld [vmem:[%s2999_s1 + $0x408] sm:$0xff] }
  0x43   :  { %625 = vmatmul.mubr.f32.vlgmr.msra.gmra.mxu0 %v20_v1  ;;  %695 = vmatprep.mubr.f32.mxu1 %v23_v2  ;;  %v229_v1 = vld [vmem:[%s2999_s1 + $0x608] sm:$0xff]  ;;  %v164_v2 = vld [vmem:[%s2999_s1 + $0x400] sm:$0xff] }
  0x44   :  { %702 = vmatprep.subr.mxu0 %v195_v3  ;;  %773 = vmatprep.subr.mxu1 %v259_v4  ;;  %v228_v3 = vld [vmem:[%s2999_s1 + $0x600] sm:$0xff]  ;;  %v227_v4 = vld [vmem:[%s2999_s1 + $0x5f8] sm:$0xff] }
  0x45   :  { %696 = vmatmul.mubr.f32.vlgmr.msra.gmra.mxu1 %v22_v5  ;;  %703 = vmatpush1.msra.mxu0 %v194_v6  ;;  %v291_v5 = vld [vmem:[%s2999_s1 + $0x7f8] sm:$0xff]  ;;  %v226_v6 = vld [vmem:[%s2999_s1 + $0x5f0] sm:$0xff] }
  0x46   :  { %774 = vmatpush1.msra.mxu1 %v258_v7  ;;  %704 = vmatprep.subr.mxu0 %v193_v8  ;;  %v290_v7 = vld [vmem:[%s2999_s1 + $0x7f0] sm:$0xff]  ;;  %v225_v8 = vld [vmem:[%s2999_s1 + $0x5e8] sm:$0xff] }
  0x47   :  { %775 = vmatprep.subr.mxu1 %v257_v9  ;;  %705 = vmatpush1.msra.mxu0 %v192_v10  ;;  %v289_v9 = vld [vmem:[%s2999_s1 + $0x7e8] sm:$0xff]  ;;  %v224_v10 = vld [vmem:[%s2999_s1 + $0x5e0] sm:$0xff] }
  0x48   :  { %776 = vmatpush1.msra.mxu1 %v256_v11  ;;  %706 = vmatprep.subr.mxu0 %v191_v12  ;;  %v288_v11 = vld [vmem:[%s2999_s1 + $0x7e0] sm:$0xff]  ;;  %v223_v12 = vld [vmem:[%s2999_s1 + $0x5d8] sm:$0xff] }
  0x49   :  { %777 = vmatprep.subr.mxu1 %v255_v13  ;;  %707 = vmatpush1.msra.mxu0 %v190_v14  ;;  %v287_v13 = vld [vmem:[%s2999_s1 + $0x7d8] sm:$0xff]  ;;  %v222_v14 = vld [vmem:[%s2999_s1 + $0x5d0] sm:$0xff] }
  0x4a   :  { %778 = vmatpush1.msra.mxu1 %v254_v15  ;;  %708 = vmatprep.subr.mxu0 %v189_v16  ;;  %v286_v15 = vld [vmem:[%s2999_s1 + $0x7d0] sm:$0xff]  ;;  %v221_v16 = vld [vmem:[%s2999_s1 + $0x5c8] sm:$0xff] }
  0x4b   :  { %779 = vmatprep.subr.mxu1 %v253_v17  ;;  %709 = vmatpush1.msra.mxu0 %v188_v18  ;;  %v285_v17 = vld [vmem:[%s2999_s1 + $0x7c8] sm:$0xff]  ;;  %v220_v18 = vld [vmem:[%s2999_s1 + $0x5c0] sm:$0xff] }
  0x4c   :  { %780 = vmatpush1.msra.mxu1 %v252_v19  ;;  %710 = vmatprep.subr.mxu0 %v187_v20  ;;  %v284_v19 = vld [vmem:[%s2999_s1 + $0x7c0] sm:$0xff]  ;;  %v219_v20 = vld [vmem:[%s2999_s1 + $0x5b8] sm:$0xff] }
  0x4d   :  { %781 = vmatprep.subr.mxu1 %v251_v21  ;;  %711 = vmatpush1.msra.mxu0 %v186_v22  ;;  %v283_v21 = vld [vmem:[%s2999_s1 + $0x7b8] sm:$0xff]  ;;  %v218_v22 = vld [vmem:[%s2999_s1 + $0x5b0] sm:$0xff] }
  0x4e   :  { %782 = vmatpush1.msra.mxu1 %v250_v23  ;;  %712 = vmatprep.subr.mxu0 %v185_v24  ;;  %v282_v23 = vld [vmem:[%s2999_s1 + $0x7b0] sm:$0xff]  ;;  %v217_v24 = vld [vmem:[%s2999_s1 + $0x5a8] sm:$0xff] }
  0x4f   :  { %783 = vmatprep.subr.mxu1 %v249_v25  ;;  %713 = vmatpush1.msra.mxu0 %v184_v26  ;;  %v281_v25 = vld [vmem:[%s2999_s1 + $0x7a8] sm:$0xff]  ;;  %v216_v26 = vld [vmem:[%s2999_s1 + $0x5a0] sm:$0xff] }
  0x50   :  { %784 = vmatpush1.msra.mxu1 %v248_v27  ;;  %714 = vmatprep.subr.mxu0 %v183_v28  ;;  %v280_v27 = vld [vmem:[%s2999_s1 + $0x7a0] sm:$0xff]  ;;  %v215_v28 = vld [vmem:[%s2999_s1 + $0x598] sm:$0xff] }
  0x51   :  { %785 = vmatprep.subr.mxu1 %v247_v29  ;;  %715 = vmatpush1.msra.mxu0 %v182_v30  ;;  %v279_v29 = vld [vmem:[%s2999_s1 + $0x798] sm:$0xff]  ;;  %v214_v30 = vld [vmem:[%s2999_s1 + $0x590] sm:$0xff] }
  0x52   :  { %786 = vmatpush1.msra.mxu1 %v246_v31  ;;  %716 = vmatprep.subr.mxu0 %v181_v32  ;;  %v278_v31 = vld [vmem:[%s2999_s1 + $0x790] sm:$0xff]  ;;  %v213_v32 = vld [vmem:[%s2999_s1 + $0x588] sm:$0xff] }
  0x53   :  { %787 = vmatprep.subr.mxu1 %v245_v33  ;;  %717 = vmatpush1.msra.mxu0 %v180_v34  ;;  %v277_v33 = vld [vmem:[%s2999_s1 + $0x788] sm:$0xff]  ;;  %v212_v34 = vld [vmem:[%s2999_s1 + $0x580] sm:$0xff] }
  0x54   :  { %788 = vmatpush1.msra.mxu1 %v244_v35  ;;  %718 = vmatprep.subr.mxu0 %v179_v36  ;;  %v276_v35 = vld [vmem:[%s2999_s1 + $0x780] sm:$0xff]  ;;  %v211_v36 = vld [vmem:[%s2999_s1 + $0x578] sm:$0xff] }
  0x55   :  { %789 = vmatprep.subr.mxu1 %v243_v37  ;;  %719 = vmatpush1.msra.mxu0 %v178_v38  ;;  %v275_v37 = vld [vmem:[%s2999_s1 + $0x778] sm:$0xff]  ;;  %v210_v38 = vld [vmem:[%s2999_s1 + $0x570] sm:$0xff] }
  0x56   :  { %790 = vmatpush1.msra.mxu1 %v242_v39  ;;  %720 = vmatprep.subr.mxu0 %v177_v40  ;;  %v274_v39 = vld [vmem:[%s2999_s1 + $0x770] sm:$0xff]  ;;  %v209_v40 = vld [vmem:[%s2999_s1 + $0x568] sm:$0xff] }
  0x57   :  { %791 = vmatprep.subr.mxu1 %v241_v41  ;;  %721 = vmatpush1.msra.mxu0 %v176_v42  ;;  %v273_v41 = vld [vmem:[%s2999_s1 + $0x768] sm:$0xff]  ;;  %v208_v42 = vld [vmem:[%s2999_s1 + $0x560] sm:$0xff] }
  0x58   :  { %792 = vmatpush1.msra.mxu1 %v240_v43  ;;  %722 = vmatprep.subr.mxu0 %v175_v44  ;;  %v272_v43 = vld [vmem:[%s2999_s1 + $0x760] sm:$0xff]  ;;  %v207_v44 = vld [vmem:[%s2999_s1 + $0x558] sm:$0xff] }
  0x59   :  { %793 = vmatprep.subr.mxu1 %v239_v45  ;;  %723 = vmatpush1.msra.mxu0 %v174_v46  ;;  %v271_v45 = vld [vmem:[%s2999_s1 + $0x758] sm:$0xff]  ;;  %v206_v46 = vld [vmem:[%s2999_s1 + $0x550] sm:$0xff] }
  0x5a   :  { %794 = vmatpush1.msra.mxu1 %v238_v47  ;;  %724 = vmatprep.subr.mxu0 %v173_v48  ;;  %v270_v47 = vld [vmem:[%s2999_s1 + $0x750] sm:$0xff]  ;;  %v205_v48 = vld [vmem:[%s2999_s1 + $0x548] sm:$0xff] }
  0x5b   :  { %795 = vmatprep.subr.mxu1 %v237_v49  ;;  %725 = vmatpush1.msra.mxu0 %v172_v50  ;;  %v269_v49 = vld [vmem:[%s2999_s1 + $0x748] sm:$0xff]  ;;  %v204_v50 = vld [vmem:[%s2999_s1 + $0x540] sm:$0xff] }
  0x5c   :  { %796 = vmatpush1.msra.mxu1 %v236_v51  ;;  %726 = vmatprep.subr.mxu0 %v171_v52  ;;  %v268_v51 = vld [vmem:[%s2999_s1 + $0x740] sm:$0xff]  ;;  %v203_v52 = vld [vmem:[%s2999_s1 + $0x538] sm:$0xff] }
  0x5d   :  { %797 = vmatprep.subr.mxu1 %v235_v53  ;;  %727 = vmatpush1.msra.mxu0 %v170_v54  ;;  %v267_v53 = vld [vmem:[%s2999_s1 + $0x738] sm:$0xff]  ;;  %v202_v54 = vld [vmem:[%s2999_s1 + $0x530] sm:$0xff] }
  0x5e   :  { %798 = vmatpush1.msra.mxu1 %v234_v55  ;;  %728 = vmatprep.subr.mxu0 %v169_v56  ;;  %v266_v55 = vld [vmem:[%s2999_s1 + $0x730] sm:$0xff]  ;;  %v201_v56 = vld [vmem:[%s2999_s1 + $0x528] sm:$0xff] }
  0x5f   :  { %799 = vmatprep.subr.mxu1 %v233_v57  ;;  %729 = vmatpush1.msra.mxu0 %v168_v58  ;;  %v265_v57 = vld [vmem:[%s2999_s1 + $0x728] sm:$0xff]  ;;  %v200_v58 = vld [vmem:[%s2999_s1 + $0x520] sm:$0xff] }
  0x60   :  { %800 = vmatpush1.msra.mxu1 %v232_v59  ;;  %730 = vmatprep.subr.mxu0 %v167_v60  ;;  %v264_v59 = vld [vmem:[%s2999_s1 + $0x720] sm:$0xff]  ;;  %v199_v60 = vld [vmem:[%s2999_s1 + $0x518] sm:$0xff] }
  0x61   :  { %801 = vmatprep.subr.mxu1 %v231_v61  ;;  %731 = vmatpush1.msra.mxu0 %v166_v62  ;;  %v263_v61 = vld [vmem:[%s2999_s1 + $0x718] sm:$0xff]  ;;  %v198_v62 = vld [vmem:[%s2999_s1 + $0x510] sm:$0xff] }
  0x62   :  { %802 = vmatpush1.msra.mxu1 %v230_v63  ;;  %732 = vmatprep.subr.mxu0 %v165_v0  ;;  %v262_v63 = vld [vmem:[%s2999_s1 + $0x710] sm:$0xff]  ;;  %v197_v0 = vld [vmem:[%s2999_s1 + $0x508] sm:$0xff] }
  0x63   :  { %803 = vmatprep.subr.mxu1 %v229_v1  ;;  %733 = vmatpush1.msra.mxu0 %v164_v2  ;;  %v261_v1 = vld [vmem:[%s2999_s1 + $0x708] sm:$0xff]  ;;  %v196_v2 = vld [vmem:[%s2999_s1 + $0x500] sm:$0xff] }
  0x64   :  { %804 = vmatpush1.msra.mxu1 %v228_v3  ;;  %734 = vmatprep.subr.mxu0 %v227_v4  ;;  %v25_v3 = vld [vmem:[%s3000_s0 + $0x28] sm:$0xff]  ;;  %v260_v4 = vld [vmem:[%s2999_s1 + $0x700] sm:$0xff] }
  0x65   :  { %805 = vmatprep.subr.mxu1 %v291_v5  ;;  %735 = vmatpush2.msra.mxu0 %v226_v6  ;;  %v24_v5 = vld [vmem:[%s3000_s0 + $0x20] sm:$0xff]  ;;  %v27_v6 = vld [vmem:[%s3000_s0 + $0x38] sm:$0xff] }
  0x66   :  { %806 = vmatpush2.msra.mxu1 %v290_v7  ;;  %736 = vmatprep.subr.mxu0 %v225_v8  ;;  %v323_v7 = vld [vmem:[%s2999_s1 + $0x8f8] sm:$0xff] }
  0x67   :  { %807 = vmatprep.subr.mxu1 %v289_v9  ;;  %737 = vmatpush2.msra.mxu0 %v224_v10  ;;  %v387_v8 = vld [vmem:[%s2999_s1 + $0xaf8] sm:$0xff]  ;;  %v26_v9 = vld [vmem:[%s3000_s0 + $0x30] sm:$0xff] }
  0x68   :  { %808 = vmatpush2.msra.mxu1 %v288_v11  ;;  %738 = vmatprep.subr.mxu0 %v223_v12  ;;  %v322_v10 = vld [vmem:[%s2999_s1 + $0x8f0] sm:$0xff]  ;;  %v321_v12 = vld [vmem:[%s2999_s1 + $0x8e8] sm:$0xff] }
  0x69   :  { %809 = vmatprep.subr.mxu1 %v287_v13  ;;  %739 = vmatpush2.msra.mxu0 %v222_v14  ;;  %v386_v11 = vld [vmem:[%s2999_s1 + $0xaf0] sm:$0xff]  ;;  %v385_v13 = vld [vmem:[%s2999_s1 + $0xae8] sm:$0xff]  ;;  %v320_v14 = vld [vmem:[%s2999_s1 + $0x8e0] sm:$0xff] }
  0x6a   :  { %810 = vmatpush2.msra.mxu1 %v286_v15  ;;  %740 = vmatprep.subr.mxu0 %v221_v16  ;;  %v384_v15 = vld [vmem:[%s2999_s1 + $0xae0] sm:$0xff]  ;;  %v319_v16 = vld [vmem:[%s2999_s1 + $0x8d8] sm:$0xff] }
  0x6b   :  { %811 = vmatprep.subr.mxu1 %v285_v17  ;;  %741 = vmatpush2.msra.mxu0 %v220_v18  ;;  %v383_v17 = vld [vmem:[%s2999_s1 + $0xad8] sm:$0xff]  ;;  %v318_v18 = vld [vmem:[%s2999_s1 + $0x8d0] sm:$0xff] }
  0x6c   :  { %812 = vmatpush2.msra.mxu1 %v284_v19  ;;  %742 = vmatprep.subr.mxu0 %v219_v20  ;;  %v382_v19 = vld [vmem:[%s2999_s1 + $0xad0] sm:$0xff]  ;;  %v317_v20 = vld [vmem:[%s2999_s1 + $0x8c8] sm:$0xff] }
  0x6d   :  { %813 = vmatprep.subr.mxu1 %v283_v21  ;;  %743 = vmatpush2.msra.mxu0 %v218_v22  ;;  %v381_v21 = vld [vmem:[%s2999_s1 + $0xac8] sm:$0xff]  ;;  %v316_v22 = vld [vmem:[%s2999_s1 + $0x8c0] sm:$0xff] }
  0x6e   :  { %814 = vmatpush2.msra.mxu1 %v282_v23  ;;  %744 = vmatprep.subr.mxu0 %v217_v24  ;;  %v380_v23 = vld [vmem:[%s2999_s1 + $0xac0] sm:$0xff]  ;;  %v315_v24 = vld [vmem:[%s2999_s1 + $0x8b8] sm:$0xff] }
  0x6f   :  { %815 = vmatprep.subr.mxu1 %v281_v25  ;;  %745 = vmatpush2.msra.mxu0 %v216_v26  ;;  %v379_v25 = vld [vmem:[%s2999_s1 + $0xab8] sm:$0xff]  ;;  %v314_v26 = vld [vmem:[%s2999_s1 + $0x8b0] sm:$0xff] }
  0x70   :  { %816 = vmatpush2.msra.mxu1 %v280_v27  ;;  %746 = vmatprep.subr.mxu0 %v215_v28  ;;  %v378_v27 = vld [vmem:[%s2999_s1 + $0xab0] sm:$0xff]  ;;  %v313_v28 = vld [vmem:[%s2999_s1 + $0x8a8] sm:$0xff] }
  0x71   :  { %817 = vmatprep.subr.mxu1 %v279_v29  ;;  %747 = vmatpush2.msra.mxu0 %v214_v30  ;;  %v377_v29 = vld [vmem:[%s2999_s1 + $0xaa8] sm:$0xff]  ;;  %v312_v30 = vld [vmem:[%s2999_s1 + $0x8a0] sm:$0xff] }
  0x72   :  { %818 = vmatpush2.msra.mxu1 %v278_v31  ;;  %748 = vmatprep.subr.mxu0 %v213_v32  ;;  %v376_v31 = vld [vmem:[%s2999_s1 + $0xaa0] sm:$0xff]  ;;  %v311_v32 = vld [vmem:[%s2999_s1 + $0x898] sm:$0xff] }
  0x73   :  { %819 = vmatprep.subr.mxu1 %v277_v33  ;;  %749 = vmatpush2.msra.mxu0 %v212_v34  ;;  %v375_v33 = vld [vmem:[%s2999_s1 + $0xa98] sm:$0xff]  ;;  %v310_v34 = vld [vmem:[%s2999_s1 + $0x890] sm:$0xff] }
  0x74   :  { %820 = vmatpush2.msra.mxu1 %v276_v35  ;;  %750 = vmatprep.subr.mxu0 %v211_v36  ;;  %v374_v35 = vld [vmem:[%s2999_s1 + $0xa90] sm:$0xff]  ;;  %v309_v36 = vld [vmem:[%s2999_s1 + $0x888] sm:$0xff] }
  0x75   :  { %821 = vmatprep.subr.mxu1 %v275_v37  ;;  %751 = vmatpush2.msra.mxu0 %v210_v38  ;;  %v373_v37 = vld [vmem:[%s2999_s1 + $0xa88] sm:$0xff]  ;;  %v308_v38 = vld [vmem:[%s2999_s1 + $0x880] sm:$0xff] }
  0x76   :  { %822 = vmatpush2.msra.mxu1 %v274_v39  ;;  %752 = vmatprep.subr.mxu0 %v209_v40  ;;  %v372_v39 = vld [vmem:[%s2999_s1 + $0xa80] sm:$0xff]  ;;  %v307_v40 = vld [vmem:[%s2999_s1 + $0x878] sm:$0xff] }
  0x77   :  { %823 = vmatprep.subr.mxu1 %v273_v41  ;;  %753 = vmatpush2.msra.mxu0 %v208_v42  ;;  %v371_v41 = vld [vmem:[%s2999_s1 + $0xa78] sm:$0xff]  ;;  %v306_v42 = vld [vmem:[%s2999_s1 + $0x870] sm:$0xff] }
  0x78   :  { %824 = vmatpush2.msra.mxu1 %v272_v43  ;;  %754 = vmatprep.subr.mxu0 %v207_v44  ;;  %v370_v43 = vld [vmem:[%s2999_s1 + $0xa70] sm:$0xff]  ;;  %v305_v44 = vld [vmem:[%s2999_s1 + $0x868] sm:$0xff] }
  0x79   :  { %825 = vmatprep.subr.mxu1 %v271_v45  ;;  %755 = vmatpush2.msra.mxu0 %v206_v46  ;;  %v369_v45 = vld [vmem:[%s2999_s1 + $0xa68] sm:$0xff]  ;;  %v304_v46 = vld [vmem:[%s2999_s1 + $0x860] sm:$0xff] }
  0x7a   :  { %826 = vmatpush2.msra.mxu1 %v270_v47  ;;  %756 = vmatprep.subr.mxu0 %v205_v48  ;;  %v368_v47 = vld [vmem:[%s2999_s1 + $0xa60] sm:$0xff]  ;;  %v303_v48 = vld [vmem:[%s2999_s1 + $0x858] sm:$0xff] }
  0x7b   :  { %827 = vmatprep.subr.mxu1 %v269_v49  ;;  %757 = vmatpush2.msra.mxu0 %v204_v50  ;;  %v367_v49 = vld [vmem:[%s2999_s1 + $0xa58] sm:$0xff]  ;;  %v302_v50 = vld [vmem:[%s2999_s1 + $0x850] sm:$0xff] }
  0x7c   :  { %828 = vmatpush2.msra.mxu1 %v268_v51  ;;  %758 = vmatprep.subr.mxu0 %v203_v52  ;;  %v366_v51 = vld [vmem:[%s2999_s1 + $0xa50] sm:$0xff]  ;;  %v301_v52 = vld [vmem:[%s2999_s1 + $0x848] sm:$0xff] }
  0x7d   :  { %829 = vmatprep.subr.mxu1 %v267_v53  ;;  %759 = vmatpush2.msra.mxu0 %v202_v54  ;;  %v365_v53 = vld [vmem:[%s2999_s1 + $0xa48] sm:$0xff]  ;;  %v300_v54 = vld [vmem:[%s2999_s1 + $0x840] sm:$0xff] }
  0x7e   :  { %830 = vmatpush2.msra.mxu1 %v266_v55  ;;  %760 = vmatprep.subr.mxu0 %v201_v56  ;;  %v364_v55 = vld [vmem:[%s2999_s1 + $0xa40] sm:$0xff]  ;;  %v299_v56 = vld [vmem:[%s2999_s1 + $0x838] sm:$0xff] }
  0x7f   :  { %831 = vmatprep.subr.mxu1 %v265_v57  ;;  %761 = vmatpush2.msra.mxu0 %v200_v58  ;;  %v363_v57 = vld [vmem:[%s2999_s1 + $0xa38] sm:$0xff]  ;;  %v298_v58 = vld [vmem:[%s2999_s1 + $0x830] sm:$0xff] }
  0x80   :  { %832 = vmatpush2.msra.mxu1 %v264_v59  ;;  %762 = vmatprep.subr.mxu0 %v199_v60  ;;  %v362_v59 = vld [vmem:[%s2999_s1 + $0xa30] sm:$0xff]  ;;  %v297_v60 = vld [vmem:[%s2999_s1 + $0x828] sm:$0xff] }
  0x81   :  { %833 = vmatprep.subr.mxu1 %v263_v61  ;;  %763 = vmatpush2.msra.mxu0 %v198_v62  ;;  %v361_v61 = vld [vmem:[%s2999_s1 + $0xa28] sm:$0xff]  ;;  %v296_v62 = vld [vmem:[%s2999_s1 + $0x820] sm:$0xff] }
  0x82   :  { %834 = vmatpush2.msra.mxu1 %v262_v63  ;;  %764 = vmatprep.subr.mxu0 %v197_v0  ;;  %v360_v63 = vld [vmem:[%s2999_s1 + $0xa20] sm:$0xff]  ;;  %v295_v0 = vld [vmem:[%s2999_s1 + $0x818] sm:$0xff] }
  0x83   :  { %835 = vmatprep.subr.mxu1 %v261_v1  ;;  %765 = vmatpush2.msra.mxu0 %v196_v2  ;;  %v359_v1 = vld [vmem:[%s2999_s1 + $0xa18] sm:$0xff]  ;;  %v294_v2 = vld [vmem:[%s2999_s1 + $0x810] sm:$0xff] }
  0x84   :  { %766 = vmatprep.mubr.f32.mxu0 %v25_v3  ;;  %836 = vmatpush2.msra.mxu1 %v260_v4  ;;  %v358_v3 = vld [vmem:[%s2999_s1 + $0xa10] sm:$0xff]  ;;  %v293_v4 = vld [vmem:[%s2999_s1 + $0x808] sm:$0xff] }
  0x85   :  { %767 = vmatmul.mubr.f32.vlgmr.msra.gmra.mxu0 %v24_v5  ;;  %837 = vmatprep.mubr.f32.mxu1 %v27_v6  ;;  %v357_v5 = vld [vmem:[%s2999_s1 + $0xa08] sm:$0xff]  ;;  %v292_v6 = vld [vmem:[%s2999_s1 + $0x800] sm:$0xff] }
  0x86   :  { %844 = vmatprep.subr.mxu0 %v323_v7  ;;  %915 = vmatprep.subr.mxu1 %v387_v8  ;;  %v356_v7 = vld [vmem:[%s2999_s1 + $0xa00] sm:$0xff]  ;;  %v355_v8 = vld [vmem:[%s2999_s1 + $0x9f8] sm:$0xff] }
  0x87   :  { %838 = vmatmul.mubr.f32.vlgmr.msra.gmra.mxu1 %v26_v9  ;;  %845 = vmatpush1.msra.mxu0 %v322_v10  ;;  %v419_v9 = vld [vmem:[%s2999_s1 + $0xbf8] sm:$0xff]  ;;  %v354_v10 = vld [vmem:[%s2999_s1 + $0x9f0] sm:$0xff] }
  0x88   :  { %916 = vmatpush1.msra.mxu1 %v386_v11  ;;  %846 = vmatprep.subr.mxu0 %v321_v12  ;;  %v418_v11 = vld [vmem:[%s2999_s1 + $0xbf0] sm:$0xff]  ;;  %v353_v12 = vld [vmem:[%s2999_s1 + $0x9e8] sm:$0xff] }
  0x89   :  { %917 = vmatprep.subr.mxu1 %v385_v13  ;;  %847 = vmatpush1.msra.mxu0 %v320_v14  ;;  %v417_v13 = vld [vmem:[%s2999_s1 + $0xbe8] sm:$0xff]  ;;  %v352_v14 = vld [vmem:[%s2999_s1 + $0x9e0] sm:$0xff] }
  0x8a   :  { %918 = vmatpush1.msra.mxu1 %v384_v15  ;;  %848 = vmatprep.subr.mxu0 %v319_v16  ;;  %v416_v15 = vld [vmem:[%s2999_s1 + $0xbe0] sm:$0xff]  ;;  %v351_v16 = vld [vmem:[%s2999_s1 + $0x9d8] sm:$0xff] }
  0x8b   :  { %919 = vmatprep.subr.mxu1 %v383_v17  ;;  %849 = vmatpush1.msra.mxu0 %v318_v18  ;;  %v415_v17 = vld [vmem:[%s2999_s1 + $0xbd8] sm:$0xff]  ;;  %v350_v18 = vld [vmem:[%s2999_s1 + $0x9d0] sm:$0xff] }
  0x8c   :  { %920 = vmatpush1.msra.mxu1 %v382_v19  ;;  %850 = vmatprep.subr.mxu0 %v317_v20  ;;  %v414_v19 = vld [vmem:[%s2999_s1 + $0xbd0] sm:$0xff]  ;;  %v349_v20 = vld [vmem:[%s2999_s1 + $0x9c8] sm:$0xff] }
  0x8d   :  { %921 = vmatprep.subr.mxu1 %v381_v21  ;;  %851 = vmatpush1.msra.mxu0 %v316_v22  ;;  %v413_v21 = vld [vmem:[%s2999_s1 + $0xbc8] sm:$0xff]  ;;  %v348_v22 = vld [vmem:[%s2999_s1 + $0x9c0] sm:$0xff] }
  0x8e   :  { %922 = vmatpush1.msra.mxu1 %v380_v23  ;;  %852 = vmatprep.subr.mxu0 %v315_v24  ;;  %v412_v23 = vld [vmem:[%s2999_s1 + $0xbc0] sm:$0xff]  ;;  %v347_v24 = vld [vmem:[%s2999_s1 + $0x9b8] sm:$0xff] }
  0x8f   :  { %923 = vmatprep.subr.mxu1 %v379_v25  ;;  %853 = vmatpush1.msra.mxu0 %v314_v26  ;;  %v411_v25 = vld [vmem:[%s2999_s1 + $0xbb8] sm:$0xff]  ;;  %v346_v26 = vld [vmem:[%s2999_s1 + $0x9b0] sm:$0xff] }
  0x90   :  { %924 = vmatpush1.msra.mxu1 %v378_v27  ;;  %854 = vmatprep.subr.mxu0 %v313_v28  ;;  %v410_v27 = vld [vmem:[%s2999_s1 + $0xbb0] sm:$0xff]  ;;  %v345_v28 = vld [vmem:[%s2999_s1 + $0x9a8] sm:$0xff] }
  0x91   :  { %925 = vmatprep.subr.mxu1 %v377_v29  ;;  %855 = vmatpush1.msra.mxu0 %v312_v30  ;;  %v409_v29 = vld [vmem:[%s2999_s1 + $0xba8] sm:$0xff]  ;;  %v344_v30 = vld [vmem:[%s2999_s1 + $0x9a0] sm:$0xff] }
  0x92   :  { %926 = vmatpush1.msra.mxu1 %v376_v31  ;;  %856 = vmatprep.subr.mxu0 %v311_v32  ;;  %v408_v31 = vld [vmem:[%s2999_s1 + $0xba0] sm:$0xff]  ;;  %v343_v32 = vld [vmem:[%s2999_s1 + $0x998] sm:$0xff] }
  0x93   :  { %927 = vmatprep.subr.mxu1 %v375_v33  ;;  %857 = vmatpush1.msra.mxu0 %v310_v34  ;;  %v407_v33 = vld [vmem:[%s2999_s1 + $0xb98] sm:$0xff]  ;;  %v342_v34 = vld [vmem:[%s2999_s1 + $0x990] sm:$0xff] }
  0x94   :  { %928 = vmatpush1.msra.mxu1 %v374_v35  ;;  %858 = vmatprep.subr.mxu0 %v309_v36  ;;  %v406_v35 = vld [vmem:[%s2999_s1 + $0xb90] sm:$0xff]  ;;  %v341_v36 = vld [vmem:[%s2999_s1 + $0x988] sm:$0xff] }
  0x95   :  { %929 = vmatprep.subr.mxu1 %v373_v37  ;;  %859 = vmatpush1.msra.mxu0 %v308_v38  ;;  %v405_v37 = vld [vmem:[%s2999_s1 + $0xb88] sm:$0xff]  ;;  %v340_v38 = vld [vmem:[%s2999_s1 + $0x980] sm:$0xff] }
  0x96   :  { %930 = vmatpush1.msra.mxu1 %v372_v39  ;;  %860 = vmatprep.subr.mxu0 %v307_v40  ;;  %v404_v39 = vld [vmem:[%s2999_s1 + $0xb80] sm:$0xff]  ;;  %v339_v40 = vld [vmem:[%s2999_s1 + $0x978] sm:$0xff] }
  0x97   :  { %931 = vmatprep.subr.mxu1 %v371_v41  ;;  %861 = vmatpush1.msra.mxu0 %v306_v42  ;;  %v403_v41 = vld [vmem:[%s2999_s1 + $0xb78] sm:$0xff]  ;;  %v338_v42 = vld [vmem:[%s2999_s1 + $0x970] sm:$0xff] }
  0x98   :  { %932 = vmatpush1.msra.mxu1 %v370_v43  ;;  %862 = vmatprep.subr.mxu0 %v305_v44  ;;  %v402_v43 = vld [vmem:[%s2999_s1 + $0xb70] sm:$0xff]  ;;  %v337_v44 = vld [vmem:[%s2999_s1 + $0x968] sm:$0xff] }
  0x99   :  { %933 = vmatprep.subr.mxu1 %v369_v45  ;;  %863 = vmatpush1.msra.mxu0 %v304_v46  ;;  %v401_v45 = vld [vmem:[%s2999_s1 + $0xb68] sm:$0xff]  ;;  %v336_v46 = vld [vmem:[%s2999_s1 + $0x960] sm:$0xff] }
  0x9a   :  { %934 = vmatpush1.msra.mxu1 %v368_v47  ;;  %864 = vmatprep.subr.mxu0 %v303_v48  ;;  %v400_v47 = vld [vmem:[%s2999_s1 + $0xb60] sm:$0xff]  ;;  %v335_v48 = vld [vmem:[%s2999_s1 + $0x958] sm:$0xff] }
  0x9b   :  { %935 = vmatprep.subr.mxu1 %v367_v49  ;;  %865 = vmatpush1.msra.mxu0 %v302_v50  ;;  %v399_v49 = vld [vmem:[%s2999_s1 + $0xb58] sm:$0xff]  ;;  %v334_v50 = vld [vmem:[%s2999_s1 + $0x950] sm:$0xff] }
  0x9c   :  { %936 = vmatpush1.msra.mxu1 %v366_v51  ;;  %866 = vmatprep.subr.mxu0 %v301_v52  ;;  %v398_v51 = vld [vmem:[%s2999_s1 + $0xb50] sm:$0xff]  ;;  %v333_v52 = vld [vmem:[%s2999_s1 + $0x948] sm:$0xff] }
  0x9d   :  { %937 = vmatprep.subr.mxu1 %v365_v53  ;;  %867 = vmatpush1.msra.mxu0 %v300_v54  ;;  %v397_v53 = vld [vmem:[%s2999_s1 + $0xb48] sm:$0xff]  ;;  %v332_v54 = vld [vmem:[%s2999_s1 + $0x940] sm:$0xff] }
  0x9e   :  { %938 = vmatpush1.msra.mxu1 %v364_v55  ;;  %868 = vmatprep.subr.mxu0 %v299_v56  ;;  %v396_v55 = vld [vmem:[%s2999_s1 + $0xb40] sm:$0xff]  ;;  %v331_v56 = vld [vmem:[%s2999_s1 + $0x938] sm:$0xff] }
  0x9f   :  { %939 = vmatprep.subr.mxu1 %v363_v57  ;;  %869 = vmatpush1.msra.mxu0 %v298_v58  ;;  %v395_v57 = vld [vmem:[%s2999_s1 + $0xb38] sm:$0xff]  ;;  %v330_v58 = vld [vmem:[%s2999_s1 + $0x930] sm:$0xff] }
  0xa0   :  { %940 = vmatpush1.msra.mxu1 %v362_v59  ;;  %870 = vmatprep.subr.mxu0 %v297_v60  ;;  %v394_v59 = vld [vmem:[%s2999_s1 + $0xb30] sm:$0xff]  ;;  %v329_v60 = vld [vmem:[%s2999_s1 + $0x928] sm:$0xff] }
  0xa1   :  { %941 = vmatprep.subr.mxu1 %v361_v61  ;;  %871 = vmatpush1.msra.mxu0 %v296_v62  ;;  %v393_v61 = vld [vmem:[%s2999_s1 + $0xb28] sm:$0xff]  ;;  %v328_v62 = vld [vmem:[%s2999_s1 + $0x920] sm:$0xff] }
  0xa2   :  { %942 = vmatpush1.msra.mxu1 %v360_v63  ;;  %872 = vmatprep.subr.mxu0 %v295_v0  ;;  %v392_v63 = vld [vmem:[%s2999_s1 + $0xb20] sm:$0xff]  ;;  %v327_v0 = vld [vmem:[%s2999_s1 + $0x918] sm:$0xff] }
  0xa3   :  { %943 = vmatprep.subr.mxu1 %v359_v1  ;;  %873 = vmatpush1.msra.mxu0 %v294_v2  ;;  %v391_v1 = vld [vmem:[%s2999_s1 + $0xb18] sm:$0xff]  ;;  %v326_v2 = vld [vmem:[%s2999_s1 + $0x910] sm:$0xff] }
  0xa4   :  { %944 = vmatpush1.msra.mxu1 %v358_v3  ;;  %874 = vmatprep.subr.mxu0 %v293_v4  ;;  %v390_v3 = vld [vmem:[%s2999_s1 + $0xb10] sm:$0xff]  ;;  %v325_v4 = vld [vmem:[%s2999_s1 + $0x908] sm:$0xff] }
  0xa5   :  { %945 = vmatprep.subr.mxu1 %v357_v5  ;;  %875 = vmatpush1.msra.mxu0 %v292_v6  ;;  %v389_v5 = vld [vmem:[%s2999_s1 + $0xb08] sm:$0xff]  ;;  %v324_v6 = vld [vmem:[%s2999_s1 + $0x900] sm:$0xff] }
  0xa6   :  { %946 = vmatpush1.msra.mxu1 %v356_v7  ;;  %876 = vmatprep.subr.mxu0 %v355_v8  ;;  %v29_v7 = vld [vmem:[%s3000_s0 + $0x48] sm:$0xff]  ;;  %v388_v8 = vld [vmem:[%s2999_s1 + $0xb00] sm:$0xff] }
  0xa7   :  { %947 = vmatprep.subr.mxu1 %v419_v9  ;;  %877 = vmatpush2.msra.mxu0 %v354_v10  ;;  %v28_v9 = vld [vmem:[%s3000_s0 + $0x40] sm:$0xff]  ;;  %v31_v10 = vld [vmem:[%s3000_s0 + $0x58] sm:$0xff] }
  0xa8   :  { %948 = vmatpush2.msra.mxu1 %v418_v11  ;;  %878 = vmatprep.subr.mxu0 %v353_v12  ;;  %v451_v11 = vld [vmem:[%s2999_s1 + $0xcf8] sm:$0xff] }
  0xa9   :  { %949 = vmatprep.subr.mxu1 %v417_v13  ;;  %879 = vmatpush2.msra.mxu0 %v352_v14  ;;  %v515_v12 = vld [vmem:[%s2999_s1 + $0xef8] sm:$0xff]  ;;  %v30_v13 = vld [vmem:[%s3000_s0 + $0x50] sm:$0xff] }
  0xaa   :  { %950 = vmatpush2.msra.mxu1 %v416_v15  ;;  %880 = vmatprep.subr.mxu0 %v351_v16  ;;  %v450_v14 = vld [vmem:[%s2999_s1 + $0xcf0] sm:$0xff]  ;;  %v449_v16 = vld [vmem:[%s2999_s1 + $0xce8] sm:$0xff] }
  0xab   :  { %951 = vmatprep.subr.mxu1 %v415_v17  ;;  %881 = vmatpush2.msra.mxu0 %v350_v18  ;;  %v514_v15 = vld [vmem:[%s2999_s1 + $0xef0] sm:$0xff]  ;;  %v513_v17 = vld [vmem:[%s2999_s1 + $0xee8] sm:$0xff]  ;;  %v448_v18 = vld [vmem:[%s2999_s1 + $0xce0] sm:$0xff] }
  0xac   :  { %952 = vmatpush2.msra.mxu1 %v414_v19  ;;  %882 = vmatprep.subr.mxu0 %v349_v20  ;;  %v512_v19 = vld [vmem:[%s2999_s1 + $0xee0] sm:$0xff]  ;;  %v447_v20 = vld [vmem:[%s2999_s1 + $0xcd8] sm:$0xff] }
  0xad   :  { %953 = vmatprep.subr.mxu1 %v413_v21  ;;  %883 = vmatpush2.msra.mxu0 %v348_v22  ;;  %v511_v21 = vld [vmem:[%s2999_s1 + $0xed8] sm:$0xff]  ;;  %v446_v22 = vld [vmem:[%s2999_s1 + $0xcd0] sm:$0xff] }
  0xae   :  { %954 = vmatpush2.msra.mxu1 %v412_v23  ;;  %884 = vmatprep.subr.mxu0 %v347_v24  ;;  %v510_v23 = vld [vmem:[%s2999_s1 + $0xed0] sm:$0xff]  ;;  %v445_v24 = vld [vmem:[%s2999_s1 + $0xcc8] sm:$0xff] }
  0xaf   :  { %955 = vmatprep.subr.mxu1 %v411_v25  ;;  %885 = vmatpush2.msra.mxu0 %v346_v26  ;;  %v509_v25 = vld [vmem:[%s2999_s1 + $0xec8] sm:$0xff]  ;;  %v444_v26 = vld [vmem:[%s2999_s1 + $0xcc0] sm:$0xff] }
  0xb0   :  { %956 = vmatpush2.msra.mxu1 %v410_v27  ;;  %886 = vmatprep.subr.mxu0 %v345_v28  ;;  %v508_v27 = vld [vmem:[%s2999_s1 + $0xec0] sm:$0xff]  ;;  %v443_v28 = vld [vmem:[%s2999_s1 + $0xcb8] sm:$0xff] }
  0xb1   :  { %957 = vmatprep.subr.mxu1 %v409_v29  ;;  %887 = vmatpush2.msra.mxu0 %v344_v30  ;;  %v507_v29 = vld [vmem:[%s2999_s1 + $0xeb8] sm:$0xff]  ;;  %v442_v30 = vld [vmem:[%s2999_s1 + $0xcb0] sm:$0xff] }
  0xb2   :  { %958 = vmatpush2.msra.mxu1 %v408_v31  ;;  %888 = vmatprep.subr.mxu0 %v343_v32  ;;  %v506_v31 = vld [vmem:[%s2999_s1 + $0xeb0] sm:$0xff]  ;;  %v441_v32 = vld [vmem:[%s2999_s1 + $0xca8] sm:$0xff] }
  0xb3   :  { %959 = vmatprep.subr.mxu1 %v407_v33  ;;  %889 = vmatpush2.msra.mxu0 %v342_v34  ;;  %v505_v33 = vld [vmem:[%s2999_s1 + $0xea8] sm:$0xff]  ;;  %v440_v34 = vld [vmem:[%s2999_s1 + $0xca0] sm:$0xff] }
  0xb4   :  { %960 = vmatpush2.msra.mxu1 %v406_v35  ;;  %890 = vmatprep.subr.mxu0 %v341_v36  ;;  %v504_v35 = vld [vmem:[%s2999_s1 + $0xea0] sm:$0xff]  ;;  %v439_v36 = vld [vmem:[%s2999_s1 + $0xc98] sm:$0xff] }
  0xb5   :  { %961 = vmatprep.subr.mxu1 %v405_v37  ;;  %891 = vmatpush2.msra.mxu0 %v340_v38  ;;  %v503_v37 = vld [vmem:[%s2999_s1 + $0xe98] sm:$0xff]  ;;  %v438_v38 = vld [vmem:[%s2999_s1 + $0xc90] sm:$0xff] }
  0xb6   :  { %962 = vmatpush2.msra.mxu1 %v404_v39  ;;  %892 = vmatprep.subr.mxu0 %v339_v40  ;;  %v502_v39 = vld [vmem:[%s2999_s1 + $0xe90] sm:$0xff]  ;;  %v437_v40 = vld [vmem:[%s2999_s1 + $0xc88] sm:$0xff] }
  0xb7   :  { %963 = vmatprep.subr.mxu1 %v403_v41  ;;  %893 = vmatpush2.msra.mxu0 %v338_v42  ;;  %v501_v41 = vld [vmem:[%s2999_s1 + $0xe88] sm:$0xff]  ;;  %v436_v42 = vld [vmem:[%s2999_s1 + $0xc80] sm:$0xff] }
  0xb8   :  { %964 = vmatpush2.msra.mxu1 %v402_v43  ;;  %894 = vmatprep.subr.mxu0 %v337_v44  ;;  %v500_v43 = vld [vmem:[%s2999_s1 + $0xe80] sm:$0xff]  ;;  %v435_v44 = vld [vmem:[%s2999_s1 + $0xc78] sm:$0xff] }
  0xb9   :  { %965 = vmatprep.subr.mxu1 %v401_v45  ;;  %895 = vmatpush2.msra.mxu0 %v336_v46  ;;  %v499_v45 = vld [vmem:[%s2999_s1 + $0xe78] sm:$0xff]  ;;  %v434_v46 = vld [vmem:[%s2999_s1 + $0xc70] sm:$0xff] }
  0xba   :  { %966 = vmatpush2.msra.mxu1 %v400_v47  ;;  %896 = vmatprep.subr.mxu0 %v335_v48  ;;  %v498_v47 = vld [vmem:[%s2999_s1 + $0xe70] sm:$0xff]  ;;  %v433_v48 = vld [vmem:[%s2999_s1 + $0xc68] sm:$0xff] }
  0xbb   :  { %967 = vmatprep.subr.mxu1 %v399_v49  ;;  %897 = vmatpush2.msra.mxu0 %v334_v50  ;;  %v497_v49 = vld [vmem:[%s2999_s1 + $0xe68] sm:$0xff]  ;;  %v432_v50 = vld [vmem:[%s2999_s1 + $0xc60] sm:$0xff] }
  0xbc   :  { %968 = vmatpush2.msra.mxu1 %v398_v51  ;;  %898 = vmatprep.subr.mxu0 %v333_v52  ;;  %v496_v51 = vld [vmem:[%s2999_s1 + $0xe60] sm:$0xff]  ;;  %v431_v52 = vld [vmem:[%s2999_s1 + $0xc58] sm:$0xff] }
  0xbd   :  { %969 = vmatprep.subr.mxu1 %v397_v53  ;;  %899 = vmatpush2.msra.mxu0 %v332_v54  ;;  %v495_v53 = vld [vmem:[%s2999_s1 + $0xe58] sm:$0xff]  ;;  %v430_v54 = vld [vmem:[%s2999_s1 + $0xc50] sm:$0xff] }
  0xbe   :  { %970 = vmatpush2.msra.mxu1 %v396_v55  ;;  %900 = vmatprep.subr.mxu0 %v331_v56  ;;  %v494_v55 = vld [vmem:[%s2999_s1 + $0xe50] sm:$0xff]  ;;  %v429_v56 = vld [vmem:[%s2999_s1 + $0xc48] sm:$0xff] }
  0xbf   :  { %971 = vmatprep.subr.mxu1 %v395_v57  ;;  %901 = vmatpush2.msra.mxu0 %v330_v58  ;;  %v493_v57 = vld [vmem:[%s2999_s1 + $0xe48] sm:$0xff]  ;;  %v428_v58 = vld [vmem:[%s2999_s1 + $0xc40] sm:$0xff] }
  0xc0   :  { %972 = vmatpush2.msra.mxu1 %v394_v59  ;;  %902 = vmatprep.subr.mxu0 %v329_v60  ;;  %v492_v59 = vld [vmem:[%s2999_s1 + $0xe40] sm:$0xff]  ;;  %v427_v60 = vld [vmem:[%s2999_s1 + $0xc38] sm:$0xff] }
  0xc1   :  { %973 = vmatprep.subr.mxu1 %v393_v61  ;;  %903 = vmatpush2.msra.mxu0 %v328_v62  ;;  %v491_v61 = vld [vmem:[%s2999_s1 + $0xe38] sm:$0xff]  ;;  %v426_v62 = vld [vmem:[%s2999_s1 + $0xc30] sm:$0xff] }
  0xc2   :  { %974 = vmatpush2.msra.mxu1 %v392_v63  ;;  %904 = vmatprep.subr.mxu0 %v327_v0  ;;  %v490_v63 = vld [vmem:[%s2999_s1 + $0xe30] sm:$0xff]  ;;  %v425_v0 = vld [vmem:[%s2999_s1 + $0xc28] sm:$0xff] }
  0xc3   :  { %975 = vmatprep.subr.mxu1 %v391_v1  ;;  %905 = vmatpush2.msra.mxu0 %v326_v2  ;;  %v489_v1 = vld [vmem:[%s2999_s1 + $0xe28] sm:$0xff]  ;;  %v424_v2 = vld [vmem:[%s2999_s1 + $0xc20] sm:$0xff] }
  0xc4   :  { %976 = vmatpush2.msra.mxu1 %v390_v3  ;;  %906 = vmatprep.subr.mxu0 %v325_v4  ;;  %v488_v3 = vld [vmem:[%s2999_s1 + $0xe20] sm:$0xff]  ;;  %v423_v4 = vld [vmem:[%s2999_s1 + $0xc18] sm:$0xff] }
  0xc5   :  { %977 = vmatprep.subr.mxu1 %v389_v5  ;;  %907 = vmatpush2.msra.mxu0 %v324_v6  ;;  %v487_v5 = vld [vmem:[%s2999_s1 + $0xe18] sm:$0xff]  ;;  %v422_v6 = vld [vmem:[%s2999_s1 + $0xc10] sm:$0xff] }
  0xc6   :  { %908 = vmatprep.mubr.f32.mxu0 %v29_v7  ;;  %978 = vmatpush2.msra.mxu1 %v388_v8  ;;  %v486_v7 = vld [vmem:[%s2999_s1 + $0xe10] sm:$0xff]  ;;  %v421_v8 = vld [vmem:[%s2999_s1 + $0xc08] sm:$0xff] }
  0xc7   :  { %909 = vmatmul.mubr.f32.vlgmr.msra.gmra.mxu0 %v28_v9  ;;  %979 = vmatprep.mubr.f32.mxu1 %v31_v10  ;;  %v485_v9 = vld [vmem:[%s2999_s1 + $0xe08] sm:$0xff]  ;;  %v420_v10 = vld [vmem:[%s2999_s1 + $0xc00] sm:$0xff] }
  0xc8   :  { %986 = vmatprep.subr.mxu0 %v451_v11  ;;  %1057 = vmatprep.subr.mxu1 %v515_v12  ;;  %v484_v11 = vld [vmem:[%s2999_s1 + $0xe00] sm:$0xff]  ;;  %v483_v12 = vld [vmem:[%s2999_s1 + $0xdf8] sm:$0xff] }
  0xc9   :  { %980 = vmatmul.mubr.f32.vlgmr.msra.gmra.mxu1 %v30_v13  ;;  %987 = vmatpush1.msra.mxu0 %v450_v14  ;;  %v547_v13 = vld [vmem:[%s2999_s1 + $0xff8] sm:$0xff]  ;;  %v482_v14 = vld [vmem:[%s2999_s1 + $0xdf0] sm:$0xff] }
  0xca   :  { %1058 = vmatpush1.msra.mxu1 %v514_v15  ;;  %988 = vmatprep.subr.mxu0 %v449_v16  ;;  %v546_v15 = vld [vmem:[%s2999_s1 + $0xff0] sm:$0xff]  ;;  %v481_v16 = vld [vmem:[%s2999_s1 + $0xde8] sm:$0xff] }
  0xcb   :  { %1059 = vmatprep.subr.mxu1 %v513_v17  ;;  %989 = vmatpush1.msra.mxu0 %v448_v18  ;;  %v545_v17 = vld [vmem:[%s2999_s1 + $0xfe8] sm:$0xff]  ;;  %v480_v18 = vld [vmem:[%s2999_s1 + $0xde0] sm:$0xff] }
  0xcc   :  { %1060 = vmatpush1.msra.mxu1 %v512_v19  ;;  %990 = vmatprep.subr.mxu0 %v447_v20  ;;  %v544_v19 = vld [vmem:[%s2999_s1 + $0xfe0] sm:$0xff]  ;;  %v479_v20 = vld [vmem:[%s2999_s1 + $0xdd8] sm:$0xff] }
  0xcd   :  { %1061 = vmatprep.subr.mxu1 %v511_v21  ;;  %991 = vmatpush1.msra.mxu0 %v446_v22  ;;  %v543_v21 = vld [vmem:[%s2999_s1 + $0xfd8] sm:$0xff]  ;;  %v478_v22 = vld [vmem:[%s2999_s1 + $0xdd0] sm:$0xff] }
  0xce   :  { %1062 = vmatpush1.msra.mxu1 %v510_v23  ;;  %992 = vmatprep.subr.mxu0 %v445_v24  ;;  %v542_v23 = vld [vmem:[%s2999_s1 + $0xfd0] sm:$0xff]  ;;  %v477_v24 = vld [vmem:[%s2999_s1 + $0xdc8] sm:$0xff] }
  0xcf   :  { %1063 = vmatprep.subr.mxu1 %v509_v25  ;;  %993 = vmatpush1.msra.mxu0 %v444_v26  ;;  %v541_v25 = vld [vmem:[%s2999_s1 + $0xfc8] sm:$0xff]  ;;  %v476_v26 = vld [vmem:[%s2999_s1 + $0xdc0] sm:$0xff] }
  0xd0   :  { %1064 = vmatpush1.msra.mxu1 %v508_v27  ;;  %994 = vmatprep.subr.mxu0 %v443_v28  ;;  %v540_v27 = vld [vmem:[%s2999_s1 + $0xfc0] sm:$0xff]  ;;  %v475_v28 = vld [vmem:[%s2999_s1 + $0xdb8] sm:$0xff] }
  0xd1   :  { %1065 = vmatprep.subr.mxu1 %v507_v29  ;;  %995 = vmatpush1.msra.mxu0 %v442_v30  ;;  %v539_v29 = vld [vmem:[%s2999_s1 + $0xfb8] sm:$0xff]  ;;  %v474_v30 = vld [vmem:[%s2999_s1 + $0xdb0] sm:$0xff] }
  0xd2   :  { %1066 = vmatpush1.msra.mxu1 %v506_v31  ;;  %996 = vmatprep.subr.mxu0 %v441_v32  ;;  %v538_v31 = vld [vmem:[%s2999_s1 + $0xfb0] sm:$0xff]  ;;  %v473_v32 = vld [vmem:[%s2999_s1 + $0xda8] sm:$0xff] }
  0xd3   :  { %1067 = vmatprep.subr.mxu1 %v505_v33  ;;  %997 = vmatpush1.msra.mxu0 %v440_v34  ;;  %v537_v33 = vld [vmem:[%s2999_s1 + $0xfa8] sm:$0xff]  ;;  %v472_v34 = vld [vmem:[%s2999_s1 + $0xda0] sm:$0xff] }
  0xd4   :  { %1068 = vmatpush1.msra.mxu1 %v504_v35  ;;  %998 = vmatprep.subr.mxu0 %v439_v36  ;;  %v536_v35 = vld [vmem:[%s2999_s1 + $0xfa0] sm:$0xff]  ;;  %v471_v36 = vld [vmem:[%s2999_s1 + $0xd98] sm:$0xff] }
  0xd5   :  { %1069 = vmatprep.subr.mxu1 %v503_v37  ;;  %999 = vmatpush1.msra.mxu0 %v438_v38  ;;  %v535_v37 = vld [vmem:[%s2999_s1 + $0xf98] sm:$0xff]  ;;  %v470_v38 = vld [vmem:[%s2999_s1 + $0xd90] sm:$0xff] }
  0xd6   :  { %1070 = vmatpush1.msra.mxu1 %v502_v39  ;;  %1000 = vmatprep.subr.mxu0 %v437_v40  ;;  %v534_v39 = vld [vmem:[%s2999_s1 + $0xf90] sm:$0xff]  ;;  %v469_v40 = vld [vmem:[%s2999_s1 + $0xd88] sm:$0xff] }
  0xd7   :  { %1071 = vmatprep.subr.mxu1 %v501_v41  ;;  %1001 = vmatpush1.msra.mxu0 %v436_v42  ;;  %v533_v41 = vld [vmem:[%s2999_s1 + $0xf88] sm:$0xff]  ;;  %v468_v42 = vld [vmem:[%s2999_s1 + $0xd80] sm:$0xff] }
  0xd8   :  { %1072 = vmatpush1.msra.mxu1 %v500_v43  ;;  %1002 = vmatprep.subr.mxu0 %v435_v44  ;;  %v532_v43 = vld [vmem:[%s2999_s1 + $0xf80] sm:$0xff]  ;;  %v467_v44 = vld [vmem:[%s2999_s1 + $0xd78] sm:$0xff] }
  0xd9   :  { %1073 = vmatprep.subr.mxu1 %v499_v45  ;;  %1003 = vmatpush1.msra.mxu0 %v434_v46  ;;  %v531_v45 = vld [vmem:[%s2999_s1 + $0xf78] sm:$0xff]  ;;  %v466_v46 = vld [vmem:[%s2999_s1 + $0xd70] sm:$0xff] }
  0xda   :  { %1074 = vmatpush1.msra.mxu1 %v498_v47  ;;  %1004 = vmatprep.subr.mxu0 %v433_v48  ;;  %v530_v47 = vld [vmem:[%s2999_s1 + $0xf70] sm:$0xff]  ;;  %v465_v48 = vld [vmem:[%s2999_s1 + $0xd68] sm:$0xff] }
  0xdb   :  { %1075 = vmatprep.subr.mxu1 %v497_v49  ;;  %1005 = vmatpush1.msra.mxu0 %v432_v50  ;;  %v529_v49 = vld [vmem:[%s2999_s1 + $0xf68] sm:$0xff]  ;;  %v464_v50 = vld [vmem:[%s2999_s1 + $0xd60] sm:$0xff] }
  0xdc   :  { %1076 = vmatpush1.msra.mxu1 %v496_v51  ;;  %1006 = vmatprep.subr.mxu0 %v431_v52  ;;  %v528_v51 = vld [vmem:[%s2999_s1 + $0xf60] sm:$0xff]  ;;  %v463_v52 = vld [vmem:[%s2999_s1 + $0xd58] sm:$0xff] }
  0xdd   :  { %1077 = vmatprep.subr.mxu1 %v495_v53  ;;  %1007 = vmatpush1.msra.mxu0 %v430_v54  ;;  %v527_v53 = vld [vmem:[%s2999_s1 + $0xf58] sm:$0xff]  ;;  %v462_v54 = vld [vmem:[%s2999_s1 + $0xd50] sm:$0xff] }
  0xde   :  { %1078 = vmatpush1.msra.mxu1 %v494_v55  ;;  %1008 = vmatprep.subr.mxu0 %v429_v56  ;;  %v526_v55 = vld [vmem:[%s2999_s1 + $0xf50] sm:$0xff]  ;;  %v461_v56 = vld [vmem:[%s2999_s1 + $0xd48] sm:$0xff] }
  0xdf   :  { %1079 = vmatprep.subr.mxu1 %v493_v57  ;;  %1009 = vmatpush1.msra.mxu0 %v428_v58  ;;  %v525_v57 = vld [vmem:[%s2999_s1 + $0xf48] sm:$0xff]  ;;  %v460_v58 = vld [vmem:[%s2999_s1 + $0xd40] sm:$0xff] }
  0xe0   :  { %1080 = vmatpush1.msra.mxu1 %v492_v59  ;;  %1010 = vmatprep.subr.mxu0 %v427_v60  ;;  %v524_v59 = vld [vmem:[%s2999_s1 + $0xf40] sm:$0xff]  ;;  %v459_v60 = vld [vmem:[%s2999_s1 + $0xd38] sm:$0xff] }
  0xe1   :  { %1081 = vmatprep.subr.mxu1 %v491_v61  ;;  %1011 = vmatpush1.msra.mxu0 %v426_v62  ;;  %v523_v61 = vld [vmem:[%s2999_s1 + $0xf38] sm:$0xff]  ;;  %v458_v62 = vld [vmem:[%s2999_s1 + $0xd30] sm:$0xff] }
  0xe2   :  { %1082 = vmatpush1.msra.mxu1 %v490_v63  ;;  %1012 = vmatprep.subr.mxu0 %v425_v0  ;;  %v522_v63 = vld [vmem:[%s2999_s1 + $0xf30] sm:$0xff]  ;;  %v457_v0 = vld [vmem:[%s2999_s1 + $0xd28] sm:$0xff] }
  0xe3   :  { %1083 = vmatprep.subr.mxu1 %v489_v1  ;;  %1013 = vmatpush1.msra.mxu0 %v424_v2  ;;  %v521_v1 = vld [vmem:[%s2999_s1 + $0xf28] sm:$0xff]  ;;  %v456_v2 = vld [vmem:[%s2999_s1 + $0xd20] sm:$0xff] }
  0xe4   :  { %1084 = vmatpush1.msra.mxu1 %v488_v3  ;;  %1014 = vmatprep.subr.mxu0 %v423_v4  ;;  %v520_v3 = vld [vmem:[%s2999_s1 + $0xf20] sm:$0xff]  ;;  %v455_v4 = vld [vmem:[%s2999_s1 + $0xd18] sm:$0xff] }
  0xe5   :  { %1085 = vmatprep.subr.mxu1 %v487_v5  ;;  %1015 = vmatpush1.msra.mxu0 %v422_v6  ;;  %v519_v5 = vld [vmem:[%s2999_s1 + $0xf18] sm:$0xff]  ;;  %v454_v6 = vld [vmem:[%s2999_s1 + $0xd10] sm:$0xff] }
  0xe6   :  { %1086 = vmatpush1.msra.mxu1 %v486_v7  ;;  %1016 = vmatprep.subr.mxu0 %v421_v8  ;;  %v518_v7 = vld [vmem:[%s2999_s1 + $0xf10] sm:$0xff]  ;;  %v453_v8 = vld [vmem:[%s2999_s1 + $0xd08] sm:$0xff] }
  0xe7   :  { %1087 = vmatprep.subr.mxu1 %v485_v9  ;;  %1017 = vmatpush1.msra.mxu0 %v420_v10  ;;  %v517_v9 = vld [vmem:[%s2999_s1 + $0xf08] sm:$0xff]  ;;  %v452_v10 = vld [vmem:[%s2999_s1 + $0xd00] sm:$0xff] }
  0xe8   :  { %1088 = vmatpush1.msra.mxu1 %v484_v11  ;;  %1018 = vmatprep.subr.mxu0 %v483_v12  ;;  %v33_v11 = vld [vmem:[%s3000_s0 + $0x68] sm:$0xff]  ;;  %v516_v12 = vld [vmem:[%s2999_s1 + $0xf00] sm:$0xff] }
  0xe9   :  { %1089 = vmatprep.subr.mxu1 %v547_v13  ;;  %1019 = vmatpush2.msra.mxu0 %v482_v14  ;;  %v35_v13 = vld [vmem:[%s3000_s0 + $0x78] sm:$0xff]  ;;  %v32_v14 = vld [vmem:[%s3000_s0 + $0x60] sm:$0xff] }
  0xea   :  { %1090 = vmatpush2.msra.mxu1 %v546_v15  ;;  %1020 = vmatprep.subr.mxu0 %v481_v16  ;;  %v34_v15 = vld [vmem:[%s3000_s0 + $0x70] sm:$0xff]  ;;  %v1161_v16 = vld [vmem:[%s3001_s3 + $0xf8] sm:$0xff] }
  0xeb   :  { %1091 = vmatprep.subr.mxu1 %v545_v17  ;;  %1021 = vmatpush2.msra.mxu0 %v480_v18  ;;  %v1145_v17 = vld [vmem:[%s3001_s3 + $0x78] sm:$0xff]  ;;  %v1160_v18 = vld [vmem:[%s3001_s3 + $0xf0] sm:$0xff] }
  0xec   :  { %1092 = vmatpush2.msra.mxu1 %v544_v19  ;;  %1022 = vmatprep.subr.mxu0 %v479_v20  ;;  %v1144_v19 = vld [vmem:[%s3001_s3 + $0x70] sm:$0xff]  ;;  %v1159_v20 = vld [vmem:[%s3001_s3 + $0xe8] sm:$0xff] }
  0xed   :  { %1093 = vmatprep.subr.mxu1 %v543_v21  ;;  %1023 = vmatpush2.msra.mxu0 %v478_v22  ;;  %v1143_v21 = vld [vmem:[%s3001_s3 + $0x68] sm:$0xff]  ;;  %v1158_v22 = vld [vmem:[%s3001_s3 + $0xe0] sm:$0xff] }
  0xee   :  { %1094 = vmatpush2.msra.mxu1 %v542_v23  ;;  %1024 = vmatprep.subr.mxu0 %v477_v24  ;;  %v1142_v23 = vld [vmem:[%s3001_s3 + $0x60] sm:$0xff]  ;;  %v1157_v24 = vld [vmem:[%s3001_s3 + $0xd8] sm:$0xff] }
  0xef   :  { %1095 = vmatprep.subr.mxu1 %v541_v25  ;;  %1025 = vmatpush2.msra.mxu0 %v476_v26  ;;  %v1141_v25 = vld [vmem:[%s3001_s3 + $0x58] sm:$0xff]  ;;  %v1156_v26 = vld [vmem:[%s3001_s3 + $0xd0] sm:$0xff] }
  0xf0   :  { %1096 = vmatpush2.msra.mxu1 %v540_v27  ;;  %1026 = vmatprep.subr.mxu0 %v475_v28  ;;  %v1140_v27 = vld [vmem:[%s3001_s3 + $0x50] sm:$0xff]  ;;  %v1155_v28 = vld [vmem:[%s3001_s3 + $0xc8] sm:$0xff] }
  0xf1   :  { %1097 = vmatprep.subr.mxu1 %v539_v29  ;;  %1027 = vmatpush2.msra.mxu0 %v474_v30  ;;  %v1139_v29 = vld [vmem:[%s3001_s3 + $0x48] sm:$0xff]  ;;  %v1154_v30 = vld [vmem:[%s3001_s3 + $0xc0] sm:$0xff] }
  0xf2   :  { %1098 = vmatpush2.msra.mxu1 %v538_v31  ;;  %1028 = vmatprep.subr.mxu0 %v473_v32  ;;  %v1138_v31 = vld [vmem:[%s3001_s3 + $0x40] sm:$0xff]  ;;  %v1153_v32 = vld [vmem:[%s3001_s3 + $0xb8] sm:$0xff] }
  0xf3   :  { %1099 = vmatprep.subr.mxu1 %v537_v33  ;;  %1029 = vmatpush2.msra.mxu0 %v472_v34  ;;  %v1137_v33 = vld [vmem:[%s3001_s3 + $0x38] sm:$0xff]  ;;  %v1152_v34 = vld [vmem:[%s3001_s3 + $0xb0] sm:$0xff] }
  0xf4   :  { %1100 = vmatpush2.msra.mxu1 %v536_v35  ;;  %1030 = vmatprep.subr.mxu0 %v471_v36  ;;  %v1136_v35 = vld [vmem:[%s3001_s3 + $0x30] sm:$0xff]  ;;  %v1151_v36 = vld [vmem:[%s3001_s3 + $0xa8] sm:$0xff] }
  0xf5   :  { %1101 = vmatprep.subr.mxu1 %v535_v37  ;;  %1031 = vmatpush2.msra.mxu0 %v470_v38  ;;  %v1135_v37 = vld [vmem:[%s3001_s3 + $0x28] sm:$0xff]  ;;  %v1150_v38 = vld [vmem:[%s3001_s3 + $0xa0] sm:$0xff] }
  0xf6   :  { %1102 = vmatpush2.msra.mxu1 %v534_v39  ;;  %1032 = vmatprep.subr.mxu0 %v469_v40  ;;  %v1134_v39 = vld [vmem:[%s3001_s3 + $0x20] sm:$0xff]  ;;  %v1149_v40 = vld [vmem:[%s3001_s3 + $0x98] sm:$0xff] }
  0xf7   :  { %1103 = vmatprep.subr.mxu1 %v533_v41  ;;  %1033 = vmatpush2.msra.mxu0 %v468_v42  ;;  %v1133_v41 = vld [vmem:[%s3001_s3 + $0x18] sm:$0xff]  ;;  %v1148_v42 = vld [vmem:[%s3001_s3 + $0x90] sm:$0xff] }
  0xf8   :  { %1104 = vmatpush2.msra.mxu1 %v532_v43  ;;  %1034 = vmatprep.subr.mxu0 %v467_v44  ;;  %v1132_v43 = vld [vmem:[%s3001_s3 + $0x10] sm:$0xff]  ;;  %v1147_v44 = vld [vmem:[%s3001_s3 + $0x88] sm:$0xff] }
  0xf9   :  { %1105 = vmatprep.subr.mxu1 %v531_v45  ;;  %1035 = vmatpush2.msra.mxu0 %v466_v46  ;;  %v1131_v45 = vld [vmem:[%s3001_s3 + $0x8] sm:$0xff]  ;;  %v1146_v46 = vld [vmem:[%s3001_s3 + $0x80] sm:$0xff] }
  0xfa   :  { %1106 = vmatpush2.msra.mxu1 %v530_v47  ;;  %1036 = vmatprep.subr.mxu0 %v465_v48  ;;  %v1130_v47 = vld [vmem:[%s3001_s3] sm:$0xff]  ;;  %v550_v48 = vlaneseq }
  0xfb   :  { %1107 = vmatprep.subr.mxu1 %v529_v49  ;;  %1037 = vmatpush2.msra.mxu0 %v464_v50 }
  0xfc   :  { %1108 = vmatpush2.msra.mxu1 %v528_v51  ;;  %1038 = vmatprep.subr.mxu0 %v463_v52  ;;  %v551_v49 = vshrl.u32 %v550_v48, 7  ;;  %v548_v51 = vld [vmem:[%s3002_s2] sm:$0x3] }
  0xfd   :  { %1109 = vmatprep.subr.mxu1 %v527_v53  ;;  %1039 = vmatpush2.msra.mxu0 %v462_v54 }
  0xfe   :  { %1110 = vmatpush2.msra.mxu1 %v526_v55  ;;  %1040 = vmatprep.subr.mxu0 %v461_v56  ;;  %v552_v50 = vsub.s32 0, %v551_v49  ;;  %v556_v52 = vsub.s32 1, %v551_v49 }
  0xff   :  { %1111 = vmatprep.subr.mxu1 %v525_v57  ;;  %1041 = vmatpush2.msra.mxu0 %v460_v58 }
 0x100   :  { %1112 = vmatpush2.msra.mxu1 %v524_v59  ;;  %1042 = vmatprep.subr.mxu0 %v459_v60  ;;  %v553_v54 = vrot.slane %v548_v51, %v552_v50  ;;  %v557_v55 = vrot.slane %v548_v51, %v556_v52 }
 0x101   :  { %1113 = vmatprep.subr.mxu1 %v523_v61  ;;  %1043 = vmatpush2.msra.mxu0 %v458_v62 }
 0x102   :  { %1114 = vmatpush2.msra.mxu1 %v522_v63  ;;  %1044 = vmatprep.subr.mxu0 %v457_v0 }
 0x103   :  { %1115 = vmatprep.subr.mxu1 %v521_v1  ;;  %1045 = vmatpush2.msra.mxu0 %v456_v2  ;;  %v626_v53 = vpop.f32.mrf.mxu0 }
 0x104   :  { %1116 = vmatpush2.msra.mxu1 %v520_v3  ;;  %1046 = vmatprep.subr.mxu0 %v455_v4  ;;  %v627_v58 = vadd.f32 %v626_v53, %v553_v54 }
 0x105   :  { %1117 = vmatprep.subr.mxu1 %v519_v5  ;;  %1047 = vmatpush2.msra.mxu0 %v454_v6  ;;  %v697_v56 = vpop.f32.mrf.mxu1  ;;  %v628_v57 = vpop.f32.mrf.mxu0 }
 0x106   :  { %1118 = vmatpush2.msra.mxu1 %v518_v7  ;;  %1048 = vmatprep.subr.mxu0 %v453_v8  ;;  %v629_v60 = vadd.f32 %v628_v57, %v557_v55  ;;  %v698_v62 = vadd.f32 %v697_v56, %v627_v58 }
 0x107   :  { %1119 = vmatprep.subr.mxu1 %v517_v9  ;;  %1049 = vmatpush2.msra.mxu0 %v452_v10  ;;  %v699_v61 = vpop.f32.mrf.mxu1 }
 0x108   :  { %1050 = vmatprep.mubr.f32.mxu0 %v33_v11  ;;  %1120 = vmatpush2.msra.mxu1 %v516_v12  ;;  %v700_v1 = vadd.f32 %v699_v61, %v629_v60 }
 0x109   :  { %1121 = vmatprep.mubr.f32.mxu1 %v35_v13  ;;  %1051 = vmatmul.mubr.f32.vlgmr.msra.gmra.mxu0 %v32_v14 }
 0x10a   :  { %1122 = vmatmul.mubr.f32.vlgmr.msra.gmra.mxu1 %v34_v15  ;;  %1245 = vmatprep.subr.mxu0 %v1161_v16 }
 0x10b   :  { %1246 = vmatpush3.msra.mxu0 %v1145_v17 }
 0x10c   :  { %1247 = vmatprep.subr.mxu0 %v1160_v18 }
 0x10d   :  { %1248 = vmatpush3.msra.mxu0 %v1144_v19 }
 0x10e   :  { %1249 = vmatprep.subr.mxu0 %v1159_v20 }
 0x10f   :  { %1250 = vmatpush3.msra.mxu0 %v1143_v21 }
 0x110   :  { %1251 = vmatprep.subr.mxu0 %v1158_v22 }
 0x111   :  { %1252 = vmatpush3.msra.mxu0 %v1142_v23 }
 0x112   :  { %1253 = vmatprep.subr.mxu0 %v1157_v24 }
 0x113   :  { %1254 = vmatpush3.msra.mxu0 %v1141_v25 }
 0x114   :  { %1255 = vmatprep.subr.mxu0 %v1156_v26  ;;  %v1244_v26 = vld [vmem:[%s3003_s4] ss:$0 sm:$0xff] }
 0x115   :  { %1256 = vmatpush3.msra.mxu0 %v1140_v27 }
 0x116   :  { %1257 = vmatprep.subr.mxu0 %v1155_v28 }
 0x117   :  { %1258 = vmatpush3.msra.mxu0 %v1139_v29 }
 0x118   :  { %1259 = vmatprep.subr.mxu0 %v1154_v30 }
 0x119   :  { %1260 = vmatpush3.msra.mxu0 %v1138_v31 }
 0x11a   :  { %1261 = vmatprep.subr.mxu0 %v1153_v32 }
 0x11b   :  { %1262 = vmatpush3.msra.mxu0 %v1137_v33 }
 0x11c   :  { %1263 = vmatprep.subr.mxu0 %v1152_v34 }
 0x11d   :  { %1264 = vmatpush3.msra.mxu0 %v1136_v35 }
 0x11e   :  { %1265 = vmatprep.subr.mxu0 %v1151_v36 }
 0x11f   :  { %1266 = vmatpush3.msra.mxu0 %v1135_v37 }
 0x120   :  { %1267 = vmatprep.subr.mxu0 %v1150_v38 }
 0x121   :  { %1268 = vmatpush3.msra.mxu0 %v1134_v39 }
 0x122   :  { %1269 = vmatprep.subr.mxu0 %v1149_v40 }
 0x123   :  { %1270 = vmatpush3.msra.mxu0 %v1133_v41 }
 0x124   :  { %1271 = vmatprep.subr.mxu0 %v1148_v42 }
 0x125   :  { %1272 = vmatpush3.msra.mxu0 %v1132_v43 }
 0x126   :  { %1273 = vmatprep.subr.mxu0 %v1147_v44 }
 0x127   :  { %1274 = vmatpush3.msra.mxu0 %v1131_v45 }
 0x128   :  { %1275 = vmatprep.subr.mxu0 %v1146_v46 }
 0x129   :  { %1276 = vmatpush3.msra.mxu0 %v1130_v47 }
 0x145   :  { %v768_v59 = vpop.f32.mrf.mxu0 }
 0x146   :  { %v769_v2 = vadd.f32 %v768_v59, %v698_v62 }
 0x147   :  { %v839_v63 = vpop.f32.mrf.mxu1  ;;  %v770_v0 = vpop.f32.mrf.mxu0 }
 0x148   :  { %v771_v4 = vadd.f32 %v770_v0, %v700_v1  ;;  %v840_v6 = vadd.f32 %v839_v63, %v769_v2 }
 0x149   :  { %v841_v5 = vpop.f32.mrf.mxu1 }
 0x14a   :  { %v842_v9 = vadd.f32 %v841_v5, %v771_v4 }
 0x187   :  { %v910_v3 = vpop.f32.mrf.mxu0 }
 0x188   :  { %v911_v10 = vadd.f32 %v910_v3, %v840_v6 }
 0x189   :  { %v981_v7 = vpop.f32.mrf.mxu1  ;;  %v912_v8 = vpop.f32.mrf.mxu0 }
 0x18a   :  { %v913_v11 = vadd.f32 %v912_v8, %v842_v9  ;;  %v982_v13 = vadd.f32 %v981_v7, %v911_v10 }
 0x18b   :  { %v983_v12 = vpop.f32.mrf.mxu1 }
 0x18c   :  { %v984_v16 = vadd.f32 %v983_v12, %v913_v11 }
 0x1c9   :  { %v1052_v14 = vpop.f32.mrf.mxu0 }
 0x1ca   :  { %v1123_v15 = vpop.f32.mrf.mxu1  ;;  %v1053_v17 = vadd.f32 %v1052_v14, %v982_v13 }
 0x1cb   :  { %v1054_v18 = vpop.f32.mrf.mxu0 }
 0x1cc   :  { %v1055_v19 = vadd.f32 %v1054_v18, %v984_v16  ;;  %v1124_v20 = vadd.f32 %v1123_v15, %v1053_v17  ;;  %v1125_v21 = vpop.f32.mrf.mxu1 }
 0x1ce   :  { %v1126_v22 = vadd.f32 %v1125_v21, %v1055_v19  ;;  %v1128_v24 = vmax.f32 %v1124_v20, 0.0 }
 0x1d0   :  { %v1129_v23 = vmax.f32 %v1126_v22, 0.0 }
 0x1d2   :  { %1233 = vmatprep.mubr.f32.mxu0 %v1129_v23 }
 0x1d3   :  { %1234 = vmatmul.mubr.f32.vlgmr.msra.gmra.mxu0 %v1128_v24 }
 0x293   :  { %v1277_v25 = vpop.f32.mrf.mxu0 }
 0x295   :  { %v1278_v27 = vpop.f32.mrf.mxu0 }
 0x296   :  { %v1279_v28 = vadd.f32 %v1278_v27, %v1277_v25 }
 0x298   :  { %v1236_v29 = vadd.f32 %v1279_v28, %v1244_v26 }
 0x29a   :  { %1239 = vst [vmem:[%s3004_s5] sm:$0xff] %v1236_v29 }

</bundles_post_ra>
